<compile_context>
chip_gen: v6e
topology: v6e:2x2x1
jax: 0.10.0
libtpu: 0.0.40
codegen_flags: <defaults>
</compile_context>

<pallas_src>
import functools

import jax
import jax.numpy as jnp
from jax.experimental import pallas as pl
from jax.experimental.pallas import tpu as pltpu


# Model constants (hard-wired to the PyTorch module: L = 128 so fc1 sees 64*16)
K = 5              # conv kernel size
PAD = 2            # conv "same" padding
CIN_PAD = 8        # conv1's single input channel zero-padded to 8 lanes
C1, C2, C3 = 16, 32, 64
L1, L2, L3, T = 128, 64, 32, 16   # time length before conv1/conv2/conv3, after pool3
HIDDEN = 128       # fc1 width
NCLASS_PAD = 128   # fc2 output padded to a full 128-lane store
BT = 8             # batch tile (sublane-aligned: all row slices are tile aligned)

# Row offsets of each layer's weights inside the packed (W_ROWS, 128) slab.
W1_OFF = 0
W2_OFF = W1_OFF + K * CIN_PAD        # 40
W3_OFF = W2_OFF + K * C1             # 120
WFC1_OFF = W3_OFF + K * C2           # 280
WFC2_OFF = WFC1_OFF + T * C3         # 1304
W_ROWS = WFC2_OFF + HIDDEN           # 1432


# --------------------------------------------------------------------------- #
# Fused Pallas kernel (one batch tile of BT samples per grid step)
# --------------------------------------------------------------------------- #
def cnn1d_fused_kernel(x_ref, w_ref, s_ref, o_ref,
                       ic1, pad2, ic2, pad3, ic3, feat):
    """Activations are (time*BT, channels) matrices with rows ordered (t, b),
    so every conv tap is a contiguous, sublane-aligned row slice."""
    B = BT
    f32 = jnp.float32
    mm = w_ref.dtype          # matmul operand dtype (f32 or bf16); acc in f32

    def conv_bn_relu_pool(src_ref, ic_ref, w_off, s_row, cin, cout, L):
        # src_ref: ((L+4)*B, cin) ref, rows (t_padded, b), zero rows both ends.
        LB = L * B
        # im2col: 5 static tap copies, then ONE (L*B, K*cin) @ (K*cin, cout).
        for k in range(K):
            ic_ref[:, k * cin:(k + 1) * cin] = src_ref[k * B:k * B + LB, :]
        acc = jnp.dot(ic_ref[...].astype(mm),
                      w_ref[w_off:w_off + K * cin, 0:cout],
                      preferred_element_type=f32)                  # (LB, cout)
        # MaxPool1d(2,2) on the raw accumulator (max commutes with +shift and
        # ReLU). With rows (t, b) and B == 8 the reshape is tile aligned.
        acc = acc.reshape(L // 2, 2 * B, cout)
        acc = jnp.maximum(acc[:, :B, :], acc[:, B:, :]).reshape((L // 2) * B, cout)
        # Folded conv-bias + BN shift, then ReLU, in f32 on the pooled tensor.
        return jnp.maximum(acc + s_ref[s_row:s_row + 1, 0:cout], 0.0)

    # Layer 1: input already time-padded (and channel-padded to 8) by the host.
    y = conv_bn_relu_pool(x_ref, ic1, W1_OFF, 0, CIN_PAD, C1, L1)   # (L2*B, 16)

    # Layers 2/3: zero-padded VMEM scratch replaces the placement matmul.
    pad2[0:PAD * B, :] = jnp.zeros((PAD * B, C1), f32)
    pad2[(L2 + PAD) * B:(L2 + 2 * PAD) * B, :] = jnp.zeros((PAD * B, C1), f32)
    pad2[PAD * B:(L2 + PAD) * B, :] = y
    y = conv_bn_relu_pool(pad2, ic2, W2_OFF, 1, C1, C2, L2)         # (L3*B, 32)

    pad3[0:PAD * B, :] = jnp.zeros((PAD * B, C2), f32)
    pad3[(L3 + PAD) * B:(L3 + 2 * PAD) * B, :] = jnp.zeros((PAD * B, C2), f32)
    pad3[PAD * B:(L3 + PAD) * B, :] = y
    y = conv_bn_relu_pool(pad3, ic3, W3_OFF, 2, C2, C3, L3)         # (T*B, 64)

    # fc1: gather the T row blocks into a (B, T*64) feature matrix so fc1 is a
    # single matmul. wfc1 rows were permuted to (t, c) order on the host,
    # absorbing PyTorch's channel-major x.view(B, -1).
    for t in range(T):
        feat[:, t * C3:(t + 1) * C3] = y[t * B:(t + 1) * B, :]
    h = jnp.dot(feat[...].astype(mm), w_ref[WFC1_OFF:WFC1_OFF + T * C3, :],
                preferred_element_type=f32)
    h = jnp.maximum(h + s_ref[3:4, :], 0.0)                          # (B, 128)
    # TODO(synk): nn.Dropout(0.5) is identity at inference; training-mode
    # random masking (and BatchNorm batch statistics) are not implemented.
    o_ref[...] = (jnp.dot(h.astype(mm), w_ref[WFC2_OFF:WFC2_OFF + HIDDEN, :],
                          preferred_element_type=f32) + s_ref[4:5, :])


def cnn1d_forward(x_ncl, W, S, *, num_classes=8):
    """x_ncl: (B, 1, L) PyTorch NCL layout. W/S: packed slabs from fold_params.
    Returns (B, num_classes)."""
    b, cin, L = x_ncl.shape
    assert cin == 1 and L == L1, "fc1 expects 64 * (L/8) = 1024 features"
    nt = (b + BT - 1) // BT            # number of batch tiles (grid steps)
    bp = nt * BT                       # batch padded up to a multiple of BT
    Lp = L + 2 * PAD

    # Host prep: NCL -> time-major columns, zero-pad time by 2 and batch to bp,
    # reorder tile-major with rows (t, b_local) inside each tile, pad channel.
    xt = jnp.transpose(x_ncl[:, 0, :], (1, 0)).astype(jnp.float32)   # (L, b)
    xt = jnp.pad(xt, ((PAD, PAD), (0, bp - b)))                      # (Lp, bp)
    a1 = jnp.transpose(xt.reshape(Lp, nt, BT), (1, 0, 2)).reshape(nt * Lp * BT, 1)
    a1 = jnp.pad(a1, ((0, 0), (0, CIN_PAD - 1)))                     # (nt*Lp*BT, 8)

    out = pl.pallas_call(
        cnn1d_fused_kernel,
        out_shape=jax.ShapeDtypeStruct((bp, NCLASS_PAD), jnp.float32),
        grid=(nt,),
        in_specs=[
            pl.BlockSpec((Lp * BT, CIN_PAD), lambda i: (i, 0)),   # batch-tiled input
            pl.BlockSpec((W_ROWS, 128), lambda i: (0, 0)),        # weight slab, resident
            pl.BlockSpec((5, 128), lambda i: (0, 0)),             # bias/shift slab, resident
        ],
        out_specs=pl.BlockSpec((BT, NCLASS_PAD), lambda i: (i, 0)),  # lane-dense store
        scratch_shapes=[
            pltpu.VMEM((L1 * BT, K * CIN_PAD), jnp.float32),      # im2col conv1
            pltpu.VMEM(((L2 + 2 * PAD) * BT, C1), jnp.float32),   # zero-padded act 2
            pltpu.VMEM((L2 * BT, K * C1), jnp.float32),           # im2col conv2
            pltpu.VMEM(((L3 + 2 * PAD) * BT, C2), jnp.float32),   # zero-padded act 3
            pltpu.VMEM((L3 * BT, K * C2), jnp.float32),           # im2col conv3
            pltpu.VMEM((BT, T * C3), jnp.float32),                # fc1 feature matrix
        ],
        compiler_params=pltpu.CompilerParams(dimension_semantics=("parallel",)),
    )(a1, W, S)
    return out[:b, :num_classes]


# --------------------------------------------------------------------------- #
# Parameters (PyTorch layout) and host-side folding/packing for the kernel
# --------------------------------------------------------------------------- #
def init_params(key, num_classes=8):
    ks = jax.random.split(key, 5)

    def conv(k, cin, cout, ksz):
        kw, kb, kg, kbe, km, kv = jax.random.split(k, 6)
        return {
            "w": jax.random.normal(kw, (cout, cin, ksz), jnp.float32) * 0.1,
            "b": jax.random.normal(kb, (cout,), jnp.float32) * 0.1,
            # non-trivial BatchNorm1d inference stats to exercise the folding
            "gamma": 1.0 + 0.1 * jax.random.normal(kg, (cout,), jnp.float32),
            "beta": 0.1 * jax.random.normal(kbe, (cout,), jnp.float32),
            "mean": 0.1 * jax.random.normal(km, (cout,), jnp.float32),
            "var": jax.random.uniform(kv, (cout,), jnp.float32, 0.5, 1.5),
        }

    def fc(k, fin, fout):
        kw, kb = jax.random.split(k)
        return {"w": jax.random.normal(kw, (fout, fin), jnp.float32) * 0.05,
                "b": jax.random.normal(kb, (fout,), jnp.float32) * 0.05}

    return {"conv1": conv(ks[0], 1, C1, K), "conv2": conv(ks[1], C1, C2, K),
            "conv3": conv(ks[2], C2, C3, K), "fc1": fc(ks[3], C3 * T, HIDDEN),
            "fc2": fc(ks[4], HIDDEN, num_classes)}


def fold_params(params, num_classes=8, eps=1e-5, matmul_dtype=jnp.float32):
    """Fold BN + conv bias into weights/shifts, permute fc1 rows so the
    channel-major flatten disappears, pad conv1 C_in and fc2 C_out, and pack
    everything into one weight slab and one bias/shift slab."""
    W = jnp.zeros((W_ROWS, 128), jnp.float32)
    S = jnp.zeros((5, 128), jnp.float32)

    offs = (W1_OFF, W2_OFF, W3_OFF)
    for i, name in enumerate(("conv1", "conv2", "conv3")):
        p = params[name]
        cout, cin, ksz = p["w"].shape
        scale = p["gamma"] / jnp.sqrt(p["var"] + eps)
        shift = p["beta"] - p["mean"] * scale
        wf = p["w"] * scale[:, None, None]                  # fold BN scale
        cinp = CIN_PAD if cin < CIN_PAD else cin
        wk = jnp.zeros((ksz, cinp, cout), jnp.float32)
        wk = wk.at[:, :cin, :].set(jnp.transpose(wf, (2, 1, 0)))
        W = W.at[offs[i]:offs[i] + ksz * cinp, :cout].set(
            wk.reshape(ksz * cinp, cout))                   # rows: k*cin + c
        S = S.at[i, :cout].set(p["b"] * scale + shift)

    wfc1 = params["fc1"]["w"].reshape(HIDDEN, C3, T)        # [h, c, t]
    W = W.at[WFC1_OFF:WFC1_OFF + T * C3, :].set(
        jnp.transpose(wfc1, (2, 1, 0)).reshape(T * C3, HIDDEN))   # rows: t*64 + c
    S = S.at[3, :].set(params["fc1"]["b"])
    W = W.at[WFC2_OFF:WFC2_OFF + HIDDEN, :num_classes].set(params["fc2"]["w"].T)
    S = S.at[4, :num_classes].set(params["fc2"]["b"])
    return W.astype(matmul_dtype), S                        # S stays f32


# --------------------------------------------------------------------------- #
# Plain-JAX reference with identical PyTorch semantics (sanity check)
# --------------------------------------------------------------------------- #
def reference_forward(x_ncl, params, eps=1e-5):
    b = x_ncl.shape[0]
    a = jnp.transpose(x_ncl, (0, 2, 1)).astype(jnp.float32)   # (B, L, Cin)
    for name in ("conv1", "conv2", "conv3"):
        p = params[name]
        cout, cin, ksz = p["w"].shape
        L = a.shape[1]
        ap = jnp.pad(a, ((0, 0), (PAD, PAD), (0, 0)))
        patches = jnp.stack([ap[:, i:i + L, :] for i in range(ksz)], axis=-1)
        patches = patches.reshape(b * L, cin * ksz)           # (c, k) ordered
        y = patches @ p["w"].reshape(cout, cin * ksz).T + p["b"]
        scale = p["gamma"] / jnp.sqrt(p["var"] + eps)
        y = y * scale + (p["beta"] - p["mean"] * scale)
        y = jnp.maximum(y, 0.0)
        y = y.reshape(b * L // 2, 2, cout).max(axis=1)        # MaxPool1d(2,2)
        a = y.reshape(b, L // 2, cout)
    feat = jnp.transpose(a, (0, 2, 1)).reshape(b, -1)         # x.view(B, -1)
    h = jnp.maximum(feat @ params["fc1"]["w"].T + params["fc1"]["b"], 0.0)
    return h @ params["fc2"]["w"].T + params["fc2"]["b"]


if __name__ == "__main__":
    key = jax.random.PRNGKey(0)
    kx, kx2, kparam = jax.random.split(key, 3)

    params = init_params(kparam, num_classes=8)
    fwd = jax.jit(functools.partial(cnn1d_forward, num_classes=8))

    # 1) Small batch (fc1 expects 64*16 features after three /2 pools => L=128),
    #    f32 matmuls, tight check against the PyTorch-equivalent reference.
    x = jax.random.normal(kx, (2, 1, 128), jnp.float32)
    W32, S32 = fold_params(params, num_classes=8, matmul_dtype=jnp.float32)
    out = jax.block_until_ready(fwd(x, W32, S32))
    assert out.shape == (2, 8), out.shape
    ref = reference_forward(x, params)
    assert jnp.allclose(out, ref, atol=1e-3, rtol=1e-3), \
        f"f32 max abs err {float(jnp.max(jnp.abs(out - ref)))}"

    # 2) Larger batch => 2 grid tiles sharded "parallel"; bf16 matmul operands
    #    (half the weight DMA, ~3x fewer MXU passes on v6e/v7x); looser check.
    x2 = jax.random.normal(kx2, (16, 1, 128), jnp.float32)
    Wbf, Sbf = fold_params(params, num_classes=8, matmul_dtype=jnp.bfloat16)
    out2 = jax.block_until_ready(fwd(x2, Wbf, Sbf))
    assert out2.shape == (16, 8), out2.shape
    ref2 = reference_forward(x2, params)
    assert jnp.allclose(out2, ref2, atol=5e-2, rtol=5e-2), \
        f"bf16 max abs err {float(jnp.max(jnp.abs(out2 - ref2)))}"

    print("KERNEL_OK")
</pallas_src>

<mosaic_0001>
module attributes {stable_mosaic.version = 11 : i64} {
  func.func @cnn1d_fused_kernel(%arg0: i32, %arg1: memref<1056x8xf32, #tpu.memory_space<vmem>>, %arg2: memref<1432x128xf32, #tpu.memory_space<vmem>>, %arg3: memref<5x128xf32, #tpu.memory_space<vmem>>, %arg4: memref<8x128xf32, #tpu.memory_space<vmem>>, %arg5: memref<1024x40xf32, #tpu.memory_space<vmem>>, %arg6: memref<544x16xf32, #tpu.memory_space<vmem>>, %arg7: memref<512x80xf32, #tpu.memory_space<vmem>>, %arg8: memref<288x32xf32, #tpu.memory_space<vmem>>, %arg9: memref<256x160xf32, #tpu.memory_space<vmem>>, %arg10: memref<8x1024xf32, #tpu.memory_space<vmem>>) attributes {dimension_semantics = [#tpu.dimension_semantics<parallel>], iteration_bounds = array<i64: 1>, scalar_prefetch = 0 : i64, scratch_operands = 6 : i64, tpu.core_type = #tpu.core_type<tc>, window_params = [{transform_indices = @transform_0, window_bounds = array<i64: 1056, 8>}, {pipeline_mode = #tpu.pipeline_mode<synchronous>, transform_indices = @transform_1, window_bounds = array<i64: 1432, 128>}, {pipeline_mode = #tpu.pipeline_mode<synchronous>, transform_indices = @transform_2, window_bounds = array<i64: 5, 128>}, {transform_indices = @transform_3, window_bounds = array<i64: 8, 128>}]} {
    %c0 = arith.constant 0 : index
    %c0_0 = arith.constant 0 : index
    %0 = vector.load %arg1[%c0, %c0_0] : memref<1056x8xf32, #tpu.memory_space<vmem>>, vector<1024x8xf32>
    %c0_1 = arith.constant 0 : index
    %c0_2 = arith.constant 0 : index
    %1 = vector.load %arg5[%c0_1, %c0_2] : memref<1024x40xf32, #tpu.memory_space<vmem>>, vector<1024x8xf32>
    tpu.vector_store %arg5[%c0_1, %c0_2], %0 {strides = array<i32>} : memref<1024x40xf32, #tpu.memory_space<vmem>>, vector<1024x8xf32>,
    %c8 = arith.constant 8 : index
    %c0_3 = arith.constant 0 : index
    %2 = vector.load %arg1[%c8, %c0_3] : memref<1056x8xf32, #tpu.memory_space<vmem>>, vector<1024x8xf32>
    %c0_4 = arith.constant 0 : index
    %c8_5 = arith.constant 8 : index
    %3 = vector.load %arg5[%c0_4, %c8_5] : memref<1024x40xf32, #tpu.memory_space<vmem>>, vector<1024x8xf32>
    tpu.vector_store %arg5[%c0_4, %c8_5], %2 {strides = array<i32>} : memref<1024x40xf32, #tpu.memory_space<vmem>>, vector<1024x8xf32>,
    %c16 = arith.constant 16 : index
    %c0_6 = arith.constant 0 : index
    %4 = vector.load %arg1[%c16, %c0_6] : memref<1056x8xf32, #tpu.memory_space<vmem>>, vector<1024x8xf32>
    %c0_7 = arith.constant 0 : index
    %c16_8 = arith.constant 16 : index
    %5 = vector.load %arg5[%c0_7, %c16_8] : memref<1024x40xf32, #tpu.memory_space<vmem>>, vector<1024x8xf32>
    tpu.vector_store %arg5[%c0_7, %c16_8], %4 {strides = array<i32>} : memref<1024x40xf32, #tpu.memory_space<vmem>>, vector<1024x8xf32>,
    %c24 = arith.constant 24 : index
    %c0_9 = arith.constant 0 : index
    %6 = vector.load %arg1[%c24, %c0_9] : memref<1056x8xf32, #tpu.memory_space<vmem>>, vector<1024x8xf32>
    %c0_10 = arith.constant 0 : index
    %c24_11 = arith.constant 24 : index
    %7 = vector.load %arg5[%c0_10, %c24_11] : memref<1024x40xf32, #tpu.memory_space<vmem>>, vector<1024x8xf32>
    tpu.vector_store %arg5[%c0_10, %c24_11], %6 {strides = array<i32>} : memref<1024x40xf32, #tpu.memory_space<vmem>>, vector<1024x8xf32>,
    %c32 = arith.constant 32 : index
    %c0_12 = arith.constant 0 : index
    %8 = vector.load %arg1[%c32, %c0_12] : memref<1056x8xf32, #tpu.memory_space<vmem>>, vector<1024x8xf32>
    %c0_13 = arith.constant 0 : index
    %c32_14 = arith.constant 32 : index
    %9 = vector.load %arg5[%c0_13, %c32_14] : memref<1024x40xf32, #tpu.memory_space<vmem>>, vector<1024x8xf32>
    tpu.vector_store %arg5[%c0_13, %c32_14], %8 {strides = array<i32>} : memref<1024x40xf32, #tpu.memory_space<vmem>>, vector<1024x8xf32>,
    %c0_15 = arith.constant 0 : index
    %c0_16 = arith.constant 0 : index
    %10 = vector.load %arg5[%c0_15, %c0_16] : memref<1024x40xf32, #tpu.memory_space<vmem>>, vector<1024x40xf32>
    %c0_17 = arith.constant 0 : index
    %c0_18 = arith.constant 0 : index
    %11 = vector.load %arg2[%c0_17, %c0_18] : memref<1432x128xf32, #tpu.memory_space<vmem>>, vector<40x16xf32>
    %cst = arith.constant dense<0.000000e+00> : vector<1024x16xf32>
    %12 = tpu.matmul %10, %11, %cst {dimension_numbers = #tpu.dot_dimension_numbers<[1], [0], [0], [1], [0, 0, 1, 1], [], []>} : vector<1024x40xf32>, vector<40x16xf32>, vector<1024x16xf32> -> vector<1024x16xf32>
    %13 = vector.shape_cast %12 : vector<1024x16xf32> to vector<64x16x16xf32>
    %14 = vector.extract_strided_slice %13 {offsets = [0, 0, 0], sizes = [64, 8, 16], strides = [1, 1, 1]} : vector<64x16x16xf32> to vector<64x8x16xf32>
    %15 = vector.extract_strided_slice %13 {offsets = [0, 8, 0], sizes = [64, 8, 16], strides = [1, 1, 1]} : vector<64x16x16xf32> to vector<64x8x16xf32>
    %16 = arith.maximumf %14, %15 : vector<64x8x16xf32>
    %17 = vector.shape_cast %16 : vector<64x8x16xf32> to vector<512x16xf32>
    %c0_19 = arith.constant 0 : index
    %c0_20 = arith.constant 0 : index
    %18 = vector.load %arg3[%c0_19, %c0_20] : memref<5x128xf32, #tpu.memory_space<vmem>>, vector<1x16xf32>
    %19 = vector.broadcast %18 : vector<1x16xf32> to vector<512x16xf32>
    %20 = arith.addf %17, %19 : vector<512x16xf32>
    %cst_21 = arith.constant 0.000000e+00 : f32
    %21 = vector.broadcast %cst_21 : f32 to vector<512x16xf32>
    %22 = arith.maximumf %20, %21 : vector<512x16xf32>
    %cst_22 = arith.constant 0.000000e+00 : f32
    %23 = vector.broadcast %cst_22 : f32 to vector<16x16xf32>
    %c0_23 = arith.constant 0 : index
    %c0_24 = arith.constant 0 : index
    %24 = vector.load %arg6[%c0_23, %c0_24] : memref<544x16xf32, #tpu.memory_space<vmem>>, vector<16x16xf32>
    tpu.vector_store %arg6[%c0_23, %c0_24], %23 {strides = array<i32>} : memref<544x16xf32, #tpu.memory_space<vmem>>, vector<16x16xf32>,
    %cst_25 = arith.constant 0.000000e+00 : f32
    %25 = vector.broadcast %cst_25 : f32 to vector<16x16xf32>
    %c528 = arith.constant 528 : index
    %c0_26 = arith.constant 0 : index
    %26 = vector.load %arg6[%c528, %c0_26] : memref<544x16xf32, #tpu.memory_space<vmem>>, vector<16x16xf32>
    tpu.vector_store %arg6[%c528, %c0_26], %25 {strides = array<i32>} : memref<544x16xf32, #tpu.memory_space<vmem>>, vector<16x16xf32>,
    %c16_27 = arith.constant 16 : index
    %c0_28 = arith.constant 0 : index
    %27 = vector.load %arg6[%c16_27, %c0_28] : memref<544x16xf32, #tpu.memory_space<vmem>>, vector<512x16xf32>
    tpu.vector_store %arg6[%c16_27, %c0_28], %22 {strides = array<i32>} : memref<544x16xf32, #tpu.memory_space<vmem>>, vector<512x16xf32>,
    %c0_29 = arith.constant 0 : index
    %c0_30 = arith.constant 0 : index
    %28 = vector.load %arg6[%c0_29, %c0_30] : memref<544x16xf32, #tpu.memory_space<vmem>>, vector<512x16xf32>
    %c0_31 = arith.constant 0 : index
    %c0_32 = arith.constant 0 : index
    %29 = vector.load %arg7[%c0_31, %c0_32] : memref<512x80xf32, #tpu.memory_space<vmem>>, vector<512x16xf32>
    tpu.vector_store %arg7[%c0_31, %c0_32], %28 {strides = array<i32>} : memref<512x80xf32, #tpu.memory_space<vmem>>, vector<512x16xf32>,
    %c8_33 = arith.constant 8 : index
    %c0_34 = arith.constant 0 : index
    %30 = vector.load %arg6[%c8_33, %c0_34] : memref<544x16xf32, #tpu.memory_space<vmem>>, vector<512x16xf32>
    %c0_35 = arith.constant 0 : index
    %c16_36 = arith.constant 16 : index
    %31 = vector.load %arg7[%c0_35, %c16_36] : memref<512x80xf32, #tpu.memory_space<vmem>>, vector<512x16xf32>
    tpu.vector_store %arg7[%c0_35, %c16_36], %30 {strides = array<i32>} : memref<512x80xf32, #tpu.memory_space<vmem>>, vector<512x16xf32>,
    %c16_37 = arith.constant 16 : index
    %c0_38 = arith.constant 0 : index
    %32 = vector.load %arg6[%c16_37, %c0_38] : memref<544x16xf32, #tpu.memory_space<vmem>>, vector<512x16xf32>
    %c0_39 = arith.constant 0 : index
    %c32_40 = arith.constant 32 : index
    %33 = vector.load %arg7[%c0_39, %c32_40] : memref<512x80xf32, #tpu.memory_space<vmem>>, vector<512x16xf32>
    tpu.vector_store %arg7[%c0_39, %c32_40], %32 {strides = array<i32>} : memref<512x80xf32, #tpu.memory_space<vmem>>, vector<512x16xf32>,
    %c24_41 = arith.constant 24 : index
    %c0_42 = arith.constant 0 : index
    %34 = vector.load %arg6[%c24_41, %c0_42] : memref<544x16xf32, #tpu.memory_space<vmem>>, vector<512x16xf32>
    %c0_43 = arith.constant 0 : index
    %c48 = arith.constant 48 : index
    %35 = vector.load %arg7[%c0_43, %c48] : memref<512x80xf32, #tpu.memory_space<vmem>>, vector<512x16xf32>
    tpu.vector_store %arg7[%c0_43, %c48], %34 {strides = array<i32>} : memref<512x80xf32, #tpu.memory_space<vmem>>, vector<512x16xf32>,
    %c32_44 = arith.constant 32 : index
    %c0_45 = arith.constant 0 : index
    %36 = vector.load %arg6[%c32_44, %c0_45] : memref<544x16xf32, #tpu.memory_space<vmem>>, vector<512x16xf32>
    %c0_46 = arith.constant 0 : index
    %c64 = arith.constant 64 : index
    %37 = vector.load %arg7[%c0_46, %c64] : memref<512x80xf32, #tpu.memory_space<vmem>>, vector<512x16xf32>
    tpu.vector_store %arg7[%c0_46, %c64], %36 {strides = array<i32>} : memref<512x80xf32, #tpu.memory_space<vmem>>, vector<512x16xf32>,
    %c0_47 = arith.constant 0 : index
    %c0_48 = arith.constant 0 : index
    %38 = vector.load %arg7[%c0_47, %c0_48] : memref<512x80xf32, #tpu.memory_space<vmem>>, vector<512x80xf32>
    %c40 = arith.constant 40 : index
    %c0_49 = arith.constant 0 : index
    %39 = vector.load %arg2[%c40, %c0_49] : memref<1432x128xf32, #tpu.memory_space<vmem>>, vector<80x32xf32>
    %cst_50 = arith.constant dense<0.000000e+00> : vector<512x32xf32>
    %40 = tpu.matmul %38, %39, %cst_50 {dimension_numbers = #tpu.dot_dimension_numbers<[1], [0], [0], [1], [0, 0, 1, 1], [], []>} : vector<512x80xf32>, vector<80x32xf32>, vector<512x32xf32> -> vector<512x32xf32>
    %41 = vector.shape_cast %40 : vector<512x32xf32> to vector<32x16x32xf32>
    %42 = vector.extract_strided_slice %41 {offsets = [0, 0, 0], sizes = [32, 8, 32], strides = [1, 1, 1]} : vector<32x16x32xf32> to vector<32x8x32xf32>
    %43 = vector.extract_strided_slice %41 {offsets = [0, 8, 0], sizes = [32, 8, 32], strides = [1, 1, 1]} : vector<32x16x32xf32> to vector<32x8x32xf32>
    %44 = arith.maximumf %42, %43 : vector<32x8x32xf32>
    %45 = vector.shape_cast %44 : vector<32x8x32xf32> to vector<256x32xf32>
    %c1 = arith.constant 1 : index
    %c0_51 = arith.constant 0 : index
    %46 = vector.load %arg3[%c1, %c0_51] : memref<5x128xf32, #tpu.memory_space<vmem>>, vector<1x32xf32>
    %47 = vector.broadcast %46 : vector<1x32xf32> to vector<256x32xf32>
    %48 = arith.addf %45, %47 : vector<256x32xf32>
    %cst_52 = arith.constant 0.000000e+00 : f32
    %49 = vector.broadcast %cst_52 : f32 to vector<256x32xf32>
    %50 = arith.maximumf %48, %49 : vector<256x32xf32>
    %cst_53 = arith.constant 0.000000e+00 : f32
    %51 = vector.broadcast %cst_53 : f32 to vector<16x32xf32>
    %c0_54 = arith.constant 0 : index
    %c0_55 = arith.constant 0 : index
    %52 = vector.load %arg8[%c0_54, %c0_55] : memref<288x32xf32, #tpu.memory_space<vmem>>, vector<16x32xf32>
    tpu.vector_store %arg8[%c0_54, %c0_55], %51 {strides = array<i32>} : memref<288x32xf32, #tpu.memory_space<vmem>>, vector<16x32xf32>,
    %cst_56 = arith.constant 0.000000e+00 : f32
    %53 = vector.broadcast %cst_56 : f32 to vector<16x32xf32>
    %c272 = arith.constant 272 : index
    %c0_57 = arith.constant 0 : index
    %54 = vector.load %arg8[%c272, %c0_57] : memref<288x32xf32, #tpu.memory_space<vmem>>, vector<16x32xf32>
    tpu.vector_store %arg8[%c272, %c0_57], %53 {strides = array<i32>} : memref<288x32xf32, #tpu.memory_space<vmem>>, vector<16x32xf32>,
    %c16_58 = arith.constant 16 : index
    %c0_59 = arith.constant 0 : index
    %55 = vector.load %arg8[%c16_58, %c0_59] : memref<288x32xf32, #tpu.memory_space<vmem>>, vector<256x32xf32>
    tpu.vector_store %arg8[%c16_58, %c0_59], %50 {strides = array<i32>} : memref<288x32xf32, #tpu.memory_space<vmem>>, vector<256x32xf32>,
    %c0_60 = arith.constant 0 : index
    %c0_61 = arith.constant 0 : index
    %56 = vector.load %arg8[%c0_60, %c0_61] : memref<288x32xf32, #tpu.memory_space<vmem>>, vector<256x32xf32>
    %c0_62 = arith.constant 0 : index
    %c0_63 = arith.constant 0 : index
    %57 = vector.load %arg9[%c0_62, %c0_63] : memref<256x160xf32, #tpu.memory_space<vmem>>, vector<256x32xf32>
    tpu.vector_store %arg9[%c0_62, %c0_63], %56 {strides = array<i32>} : memref<256x160xf32, #tpu.memory_space<vmem>>, vector<256x32xf32>,
    %c8_64 = arith.constant 8 : index
    %c0_65 = arith.constant 0 : index
    %58 = vector.load %arg8[%c8_64, %c0_65] : memref<288x32xf32, #tpu.memory_space<vmem>>, vector<256x32xf32>
    %c0_66 = arith.constant 0 : index
    %c32_67 = arith.constant 32 : index
    %59 = vector.load %arg9[%c0_66, %c32_67] : memref<256x160xf32, #tpu.memory_space<vmem>>, vector<256x32xf32>
    tpu.vector_store %arg9[%c0_66, %c32_67], %58 {strides = array<i32>} : memref<256x160xf32, #tpu.memory_space<vmem>>, vector<256x32xf32>,
    %c16_68 = arith.constant 16 : index
    %c0_69 = arith.constant 0 : index
    %60 = vector.load %arg8[%c16_68, %c0_69] : memref<288x32xf32, #tpu.memory_space<vmem>>, vector<256x32xf32>
    %c0_70 = arith.constant 0 : index
    %c64_71 = arith.constant 64 : index
    %61 = vector.load %arg9[%c0_70, %c64_71] : memref<256x160xf32, #tpu.memory_space<vmem>>, vector<256x32xf32>
    tpu.vector_store %arg9[%c0_70, %c64_71], %60 {strides = array<i32>} : memref<256x160xf32, #tpu.memory_space<vmem>>, vector<256x32xf32>,
    %c24_72 = arith.constant 24 : index
    %c0_73 = arith.constant 0 : index
    %62 = vector.load %arg8[%c24_72, %c0_73] : memref<288x32xf32, #tpu.memory_space<vmem>>, vector<256x32xf32>
    %c0_74 = arith.constant 0 : index
    %c96 = arith.constant 96 : index
    %63 = vector.load %arg9[%c0_74, %c96] : memref<256x160xf32, #tpu.memory_space<vmem>>, vector<256x32xf32>
    tpu.vector_store %arg9[%c0_74, %c96], %62 {strides = array<i32>} : memref<256x160xf32, #tpu.memory_space<vmem>>, vector<256x32xf32>,
    %c32_75 = arith.constant 32 : index
    %c0_76 = arith.constant 0 : index
    %64 = vector.load %arg8[%c32_75, %c0_76] : memref<288x32xf32, #tpu.memory_space<vmem>>, vector<256x32xf32>
    %c0_77 = arith.constant 0 : index
    %c128 = arith.constant 128 : index
    %65 = vector.load %arg9[%c0_77, %c128] : memref<256x160xf32, #tpu.memory_space<vmem>>, vector<256x32xf32>
    tpu.vector_store %arg9[%c0_77, %c128], %64 {strides = array<i32>} : memref<256x160xf32, #tpu.memory_space<vmem>>, vector<256x32xf32>,
    %c0_78 = arith.constant 0 : index
    %c0_79 = arith.constant 0 : index
    %66 = vector.load %arg9[%c0_78, %c0_79] : memref<256x160xf32, #tpu.memory_space<vmem>>, vector<256x160xf32>
    %c120 = arith.constant 120 : index
    %c0_80 = arith.constant 0 : index
    %67 = vector.load %arg2[%c120, %c0_80] : memref<1432x128xf32, #tpu.memory_space<vmem>>, vector<160x64xf32>
    %cst_81 = arith.constant dense<0.000000e+00> : vector<256x64xf32>
    %68 = tpu.matmul %66, %67, %cst_81 {dimension_numbers = #tpu.dot_dimension_numbers<[1], [0], [0], [1], [0, 0, 1, 1], [], []>} : vector<256x160xf32>, vector<160x64xf32>, vector<256x64xf32> -> vector<256x64xf32>
    %69 = vector.shape_cast %68 : vector<256x64xf32> to vector<16x16x64xf32>
    %70 = vector.extract_strided_slice %69 {offsets = [0, 0, 0], sizes = [16, 8, 64], strides = [1, 1, 1]} : vector<16x16x64xf32> to vector<16x8x64xf32>
    %71 = vector.extract_strided_slice %69 {offsets = [0, 8, 0], sizes = [16, 8, 64], strides = [1, 1, 1]} : vector<16x16x64xf32> to vector<16x8x64xf32>
    %72 = arith.maximumf %70, %71 : vector<16x8x64xf32>
    %73 = vector.shape_cast %72 : vector<16x8x64xf32> to vector<128x64xf32>
    %c2 = arith.constant 2 : index
    %c0_82 = arith.constant 0 : index
    %74 = vector.load %arg3[%c2, %c0_82] : memref<5x128xf32, #tpu.memory_space<vmem>>, vector<1x64xf32>
    %75 = vector.broadcast %74 : vector<1x64xf32> to vector<128x64xf32>
    %76 = arith.addf %73, %75 : vector<128x64xf32>
    %cst_83 = arith.constant 0.000000e+00 : f32
    %77 = vector.broadcast %cst_83 : f32 to vector<128x64xf32>
    %78 = arith.maximumf %76, %77 : vector<128x64xf32>
    %79 = vector.extract_strided_slice %78 {offsets = [0, 0], sizes = [8, 64], strides = [1, 1]} : vector<128x64xf32> to vector<8x64xf32>
    %c0_84 = arith.constant 0 : index
    %c0_85 = arith.constant 0 : index
    %80 = vector.load %arg10[%c0_84, %c0_85] : memref<8x1024xf32, #tpu.memory_space<vmem>>, vector<8x64xf32>
    tpu.vector_store %arg10[%c0_84, %c0_85], %79 {strides = array<i32>} : memref<8x1024xf32, #tpu.memory_space<vmem>>, vector<8x64xf32>,
    %81 = vector.extract_strided_slice %78 {offsets = [8, 0], sizes = [8, 64], strides = [1, 1]} : vector<128x64xf32> to vector<8x64xf32>
    %c0_86 = arith.constant 0 : index
    %c64_87 = arith.constant 64 : index
    %82 = vector.load %arg10[%c0_86, %c64_87] : memref<8x1024xf32, #tpu.memory_space<vmem>>, vector<8x64xf32>
    tpu.vector_store %arg10[%c0_86, %c64_87], %81 {strides = array<i32>} : memref<8x1024xf32, #tpu.memory_space<vmem>>, vector<8x64xf32>,
    %83 = vector.extract_strided_slice %78 {offsets = [16, 0], sizes = [8, 64], strides = [1, 1]} : vector<128x64xf32> to vector<8x64xf32>
    %c0_88 = arith.constant 0 : index
    %c128_89 = arith.constant 128 : index
    %84 = vector.load %arg10[%c0_88, %c128_89] : memref<8x1024xf32, #tpu.memory_space<vmem>>, vector<8x64xf32>
    tpu.vector_store %arg10[%c0_88, %c128_89], %83 {strides = array<i32>} : memref<8x1024xf32, #tpu.memory_space<vmem>>, vector<8x64xf32>,
    %85 = vector.extract_strided_slice %78 {offsets = [24, 0], sizes = [8, 64], strides = [1, 1]} : vector<128x64xf32> to vector<8x64xf32>
    %c0_90 = arith.constant 0 : index
    %c192 = arith.constant 192 : index
    %86 = vector.load %arg10[%c0_90, %c192] : memref<8x1024xf32, #tpu.memory_space<vmem>>, vector<8x64xf32>
    tpu.vector_store %arg10[%c0_90, %c192], %85 {strides = array<i32>} : memref<8x1024xf32, #tpu.memory_space<vmem>>, vector<8x64xf32>,
    %87 = vector.extract_strided_slice %78 {offsets = [32, 0], sizes = [8, 64], strides = [1, 1]} : vector<128x64xf32> to vector<8x64xf32>
    %c0_91 = arith.constant 0 : index
    %c256 = arith.constant 256 : index
    %88 = vector.load %arg10[%c0_91, %c256] : memref<8x1024xf32, #tpu.memory_space<vmem>>, vector<8x64xf32>
    tpu.vector_store %arg10[%c0_91, %c256], %87 {strides = array<i32>} : memref<8x1024xf32, #tpu.memory_space<vmem>>, vector<8x64xf32>,
    %89 = vector.extract_strided_slice %78 {offsets = [40, 0], sizes = [8, 64], strides = [1, 1]} : vector<128x64xf32> to vector<8x64xf32>
    %c0_92 = arith.constant 0 : index
    %c320 = arith.constant 320 : index
    %90 = vector.load %arg10[%c0_92, %c320] : memref<8x1024xf32, #tpu.memory_space<vmem>>, vector<8x64xf32>
    tpu.vector_store %arg10[%c0_92, %c320], %89 {strides = array<i32>} : memref<8x1024xf32, #tpu.memory_space<vmem>>, vector<8x64xf32>,
    %91 = vector.extract_strided_slice %78 {offsets = [48, 0], sizes = [8, 64], strides = [1, 1]} : vector<128x64xf32> to vector<8x64xf32>
    %c0_93 = arith.constant 0 : index
    %c384 = arith.constant 384 : index
    %92 = vector.load %arg10[%c0_93, %c384] : memref<8x1024xf32, #tpu.memory_space<vmem>>, vector<8x64xf32>
    tpu.vector_store %arg10[%c0_93, %c384], %91 {strides = array<i32>} : memref<8x1024xf32, #tpu.memory_space<vmem>>, vector<8x64xf32>,
    %93 = vector.extract_strided_slice %78 {offsets = [56, 0], sizes = [8, 64], strides = [1, 1]} : vector<128x64xf32> to vector<8x64xf32>
    %c0_94 = arith.constant 0 : index
    %c448 = arith.constant 448 : index
    %94 = vector.load %arg10[%c0_94, %c448] : memref<8x1024xf32, #tpu.memory_space<vmem>>, vector<8x64xf32>
    tpu.vector_store %arg10[%c0_94, %c448], %93 {strides = array<i32>} : memref<8x1024xf32, #tpu.memory_space<vmem>>, vector<8x64xf32>,
    %95 = vector.extract_strided_slice %78 {offsets = [64, 0], sizes = [8, 64], strides = [1, 1]} : vector<128x64xf32> to vector<8x64xf32>
    %c0_95 = arith.constant 0 : index
    %c512 = arith.constant 512 : index
    %96 = vector.load %arg10[%c0_95, %c512] : memref<8x1024xf32, #tpu.memory_space<vmem>>, vector<8x64xf32>
    tpu.vector_store %arg10[%c0_95, %c512], %95 {strides = array<i32>} : memref<8x1024xf32, #tpu.memory_space<vmem>>, vector<8x64xf32>,
    %97 = vector.extract_strided_slice %78 {offsets = [72, 0], sizes = [8, 64], strides = [1, 1]} : vector<128x64xf32> to vector<8x64xf32>
    %c0_96 = arith.constant 0 : index
    %c576 = arith.constant 576 : index
    %98 = vector.load %arg10[%c0_96, %c576] : memref<8x1024xf32, #tpu.memory_space<vmem>>, vector<8x64xf32>
    tpu.vector_store %arg10[%c0_96, %c576], %97 {strides = array<i32>} : memref<8x1024xf32, #tpu.memory_space<vmem>>, vector<8x64xf32>,
    %99 = vector.extract_strided_slice %78 {offsets = [80, 0], sizes = [8, 64], strides = [1, 1]} : vector<128x64xf32> to vector<8x64xf32>
    %c0_97 = arith.constant 0 : index
    %c640 = arith.constant 640 : index
    %100 = vector.load %arg10[%c0_97, %c640] : memref<8x1024xf32, #tpu.memory_space<vmem>>, vector<8x64xf32>
    tpu.vector_store %arg10[%c0_97, %c640], %99 {strides = array<i32>} : memref<8x1024xf32, #tpu.memory_space<vmem>>, vector<8x64xf32>,
    %101 = vector.extract_strided_slice %78 {offsets = [88, 0], sizes = [8, 64], strides = [1, 1]} : vector<128x64xf32> to vector<8x64xf32>
    %c0_98 = arith.constant 0 : index
    %c704 = arith.constant 704 : index
    %102 = vector.load %arg10[%c0_98, %c704] : memref<8x1024xf32, #tpu.memory_space<vmem>>, vector<8x64xf32>
    tpu.vector_store %arg10[%c0_98, %c704], %101 {strides = array<i32>} : memref<8x1024xf32, #tpu.memory_space<vmem>>, vector<8x64xf32>,
    %103 = vector.extract_strided_slice %78 {offsets = [96, 0], sizes = [8, 64], strides = [1, 1]} : vector<128x64xf32> to vector<8x64xf32>
    %c0_99 = arith.constant 0 : index
    %c768 = arith.constant 768 : index
    %104 = vector.load %arg10[%c0_99, %c768] : memref<8x1024xf32, #tpu.memory_space<vmem>>, vector<8x64xf32>
    tpu.vector_store %arg10[%c0_99, %c768], %103 {strides = array<i32>} : memref<8x1024xf32, #tpu.memory_space<vmem>>, vector<8x64xf32>,
    %105 = vector.extract_strided_slice %78 {offsets = [104, 0], sizes = [8, 64], strides = [1, 1]} : vector<128x64xf32> to vector<8x64xf32>
    %c0_100 = arith.constant 0 : index
    %c832 = arith.constant 832 : index
    %106 = vector.load %arg10[%c0_100, %c832] : memref<8x1024xf32, #tpu.memory_space<vmem>>, vector<8x64xf32>
    tpu.vector_store %arg10[%c0_100, %c832], %105 {strides = array<i32>} : memref<8x1024xf32, #tpu.memory_space<vmem>>, vector<8x64xf32>,
    %107 = vector.extract_strided_slice %78 {offsets = [112, 0], sizes = [8, 64], strides = [1, 1]} : vector<128x64xf32> to vector<8x64xf32>
    %c0_101 = arith.constant 0 : index
    %c896 = arith.constant 896 : index
    %108 = vector.load %arg10[%c0_101, %c896] : memref<8x1024xf32, #tpu.memory_space<vmem>>, vector<8x64xf32>
    tpu.vector_store %arg10[%c0_101, %c896], %107 {strides = array<i32>} : memref<8x1024xf32, #tpu.memory_space<vmem>>, vector<8x64xf32>,
    %109 = vector.extract_strided_slice %78 {offsets = [120, 0], sizes = [8, 64], strides = [1, 1]} : vector<128x64xf32> to vector<8x64xf32>
    %c0_102 = arith.constant 0 : index
    %c960 = arith.constant 960 : index
    %110 = vector.load %arg10[%c0_102, %c960] : memref<8x1024xf32, #tpu.memory_space<vmem>>, vector<8x64xf32>
    tpu.vector_store %arg10[%c0_102, %c960], %109 {strides = array<i32>} : memref<8x1024xf32, #tpu.memory_space<vmem>>, vector<8x64xf32>,
    %c0_103 = arith.constant 0 : index
    %c0_104 = arith.constant 0 : index
    %111 = vector.load %arg10[%c0_103, %c0_104] : memref<8x1024xf32, #tpu.memory_space<vmem>>, vector<8x1024xf32>
    %c280 = arith.constant 280 : index
    %c0_105 = arith.constant 0 : index
    %112 = vector.load %arg2[%c280, %c0_105] : memref<1432x128xf32, #tpu.memory_space<vmem>>, vector<1024x128xf32>
    %cst_106 = arith.constant dense<0.000000e+00> : vector<8x128xf32>
    %113 = tpu.matmul %111, %112, %cst_106 {dimension_numbers = #tpu.dot_dimension_numbers<[1], [0], [0], [1], [0, 0, 1, 1], [], []>} : vector<8x1024xf32>, vector<1024x128xf32>, vector<8x128xf32> -> vector<8x128xf32>
    %c3 = arith.constant 3 : index
    %c0_107 = arith.constant 0 : index
    %114 = vector.load %arg3[%c3, %c0_107] : memref<5x128xf32, #tpu.memory_space<vmem>>, vector<1x128xf32>
    %115 = vector.broadcast %114 : vector<1x128xf32> to vector<8x128xf32>
    %116 = arith.addf %113, %115 : vector<8x128xf32>
    %cst_108 = arith.constant 0.000000e+00 : f32
    %117 = vector.broadcast %cst_108 : f32 to vector<8x128xf32>
    %118 = arith.maximumf %116, %117 : vector<8x128xf32>
    %c1304 = arith.constant 1304 : index
    %c0_109 = arith.constant 0 : index
    %119 = vector.load %arg2[%c1304, %c0_109] : memref<1432x128xf32, #tpu.memory_space<vmem>>, vector<128x128xf32>
    %cst_110 = arith.constant dense<0.000000e+00> : vector<8x128xf32>
    %120 = tpu.matmul %118, %119, %cst_110 {dimension_numbers = #tpu.dot_dimension_numbers<[1], [0], [0], [1], [0, 0, 1, 1], [], []>} : vector<8x128xf32>, vector<128x128xf32>, vector<8x128xf32> -> vector<8x128xf32>
    %c4 = arith.constant 4 : index
    %c0_111 = arith.constant 0 : index
    %121 = vector.load %arg3[%c4, %c0_111] : memref<5x128xf32, #tpu.memory_space<vmem>>, vector<1x128xf32>
    %122 = vector.broadcast %121 : vector<1x128xf32> to vector<8x128xf32>
    %123 = arith.addf %120, %122 : vector<8x128xf32>
    %c0_112 = arith.constant 0 : index
    %c0_113 = arith.constant 0 : index
    %124 = vector.load %arg4[%c0_112, %c0_113] : memref<8x128xf32, #tpu.memory_space<vmem>>, vector<8x128xf32>
    tpu.vector_store %arg4[%c0_112, %c0_113], %123 {strides = array<i32>} : memref<8x128xf32, #tpu.memory_space<vmem>>, vector<8x128xf32>,
    return
  }
  func.func @transform_0(%arg0: i32) -> (i32, i32) {
    %c0_i32 = arith.constant 0 : i32
    %c0_i32_0 = arith.constant 0 : i32
    return %arg0, %c0_i32 : i32, i32
  }
  func.func @transform_1(%arg0: i32) -> (i32, i32) {
    %c0_i32 = arith.constant 0 : i32
    %c0_i32_0 = arith.constant 0 : i32
    %c0_i32_1 = arith.constant 0 : i32
    return %c0_i32, %c0_i32_0 : i32, i32
  }
  func.func @transform_2(%arg0: i32) -> (i32, i32) {
    %c0_i32 = arith.constant 0 : i32
    %c0_i32_0 = arith.constant 0 : i32
    %c0_i32_1 = arith.constant 0 : i32
    return %c0_i32, %c0_i32_0 : i32, i32
  }
  func.func @transform_3(%arg0: i32) -> (i32, i32) {
    %c0_i32 = arith.constant 0 : i32
    %c0_i32_0 = arith.constant 0 : i32
    return %arg0, %c0_i32 : i32, i32
  }
}

</mosaic_0001>

<bundles_post_ra>
// kernel: cnn1d_forward.1
= control target key start
LH: loop header
LB: loop body
LE: loop exit
PB: predicated region body
PF: predicated region fallthrough
CT: control target
= control target key end

     0   :  { %vm142_vm0 = vcmask 64512   ;;  %s9987_s18 = smov 8   ;;  %vm911_vm1 = vcmask 130112   ;;  %s9988_s19 = smov 16   ;;  %vm1680_vm2 = vcmask 195712   ;;  %vm2449_vm3 = vcmask 261312   ;;  %s14920_s0 = inlined_call_operand.vmem [shape: f32[1056,8], index: 0, kind: input, shape index: {}]   ;;  %s14921_s1 = inlined_call_operand.vmem [shape: f32[1432,128], index: 1, kind: input, shape index: {}]   ;;  %s14922_s2 = inlined_call_operand.vmem [shape: f32[5,128], index: 2, kind: input, shape index: {}]   ;;  %s14923_s3 = inlined_call_operand.vmem [shape: f32[8,128], index: 3, kind: output, shape index: {}]  }
   0x1   :  { %v10019_v0 = vld [vmem:[%s14920_s0 + $0x18] sm:$0xff]  ;;  %v271_v1 = vld [vmem:[%s14920_s0 + $0x8] sm:$0xff]  ;;  %v10027_v2 = vld [vmem:[%s14920_s0 + $0x20] sm:$0xff]  ;;  %s9989_s22 = smov 24   ;;  %s9990_s23 = smov 32   ;;  %vm3218_vm4 = vcmask 326912  }
   0x2   :  { %14946 = vst [vmem:[#allocation8_spill] sm:$0xff] %v10019_v0  ;;  %14947 = vst [vmem:[#allocation9_spill] sm:$0xff] %v10027_v2  ;;  %531 = vrot.lane.b32.xlu1 %v10019_v0, %s9987_s18  ;;  %527 = vrot.lane.b32.xlu0 %v271_v1, %s9987_s18  ;;  %v10035_v3 = vld [vmem:[%s14920_s0 + $0x10] sm:$0xff]  ;;  %v10050_v5 = vld [vmem:[%s14920_s0 + $0x28] sm:$0xff]  ;;  %vm3480_vm5 = vcmask 326656   ;;  %vm4767_vm6 = vcmask 130048  }
   0x3   :  { %14948 = vst [vmem:[#allocation10_spill] sm:$0xff] %v10035_v3  ;;  %v10040_v4 = vld [vmem:[%s14920_s0 + $0x30] sm:$0xff]  ;;  %146 = vst.msk [vmem:[#allocation2 + $0x18] sm:$0xff] %vm142_vm0, %v10019_v0  ;;  %v10055_v6 = vld [vmem:[%s14920_s0 + $0x40] sm:$0xff]  ;;  %s9992_s5 = smov 48   ;;  %s9993_s10 = smov 64  }
   0x4   :  { %14949 = vst [vmem:[#allocation11_spill] sm:$0xff] %v10040_v4  ;;  %144 = vst.msk [vmem:[#allocation2 + $0x8] sm:$0xff] %vm142_vm0, %v271_v1  ;;  %v10060_v7 = vld [vmem:[%s14920_s0 + $0x38] sm:$0xff]  ;;  %v10069_v8 = vld [vmem:[%s14920_s0 + $0x50] sm:$0xff]  ;;  %vm5284_vm7 = vcmask 261248   ;;  %vm5669_vm8 = vcmask 392448  }
   0x5   :  { %147 = vst.msk [vmem:[#allocation2 + $0x20] sm:$0xff] %vm142_vm0, %v10027_v2  ;;  %14950 = vst [vmem:[#allocation12_spill] sm:$0xff] %v10050_v5  ;;  %v10074_v9 = vld [vmem:[%s14920_s0 + $0x48] sm:$0xff]  ;;  %v10079_v10 = vld [vmem:[%s14920_s0 + $0x60] sm:$0xff]  ;;  %vm6054_vm9 = vcmask 523648   ;;  %vm6439_vm10 = vcmask 654848  }
   0x6   :  { %14951 = vst [vmem:[#allocation13_spill] sm:$0xff] %v10055_v6  ;;  %14952 = vst [vmem:[#allocation14_spill] sm:$0xff] %v10060_v7  ;;  %v10090_v11 = vld [vmem:[%s14920_s0 + $0x58] sm:$0xff]  ;;  %v10095_v12 = vld [vmem:[%s14920_s0 + $0x70] sm:$0xff]  ;;  %533 = vrot.lane.b32.xlu1 %v10027_v2, %s9987_s18  ;;  %529 = vrot.lane.b32.xlu0 %v10035_v3, %s9987_s18  ;;  %vm6578_vm11 = vcmask 654336   ;;  %vm7257_vm12 = vcmask 261120  }
   0x7   :  { %145 = vst.msk [vmem:[#allocation2 + $0x10] sm:$0xff] %vm142_vm0, %v10035_v3  ;;  %149 = vst.msk [vmem:[#allocation2 + $0x30] sm:$0xff] %vm142_vm0, %v10040_v4  ;;  %v10100_v13 = vld [vmem:[%s14920_s0 + $0x68] sm:$0xff]  ;;  %v10115_v14 = vld [vmem:[%s14920_s0 + $0x80] sm:$0xff]  ;;  %s9994_s6 = smov 96   ;;  %vm7518_vm13 = vcmask 523520  }
   0x8   :  { %14953 = vst [vmem:[#allocation15_spill] sm:$0xff] %v10069_v8  ;;  %14954 = vst [vmem:[#allocation16_spill] sm:$0xff] %v10074_v9  ;;  %v10120_v15 = vld [vmem:[%s14920_s0 + $0x78] sm:$0xff]  ;;  %v10131_v16 = vld [vmem:[%s14920_s0 + $0x90] sm:$0xff]  ;;  %vm7711_vm14 = vcmask 785920   ;;  %vm7904_vm15 = vcmask 1048320  }
   0x9   :  { %148 = vst.msk [vmem:[#allocation2 + $0x28] sm:$0xff] %vm142_vm0, %v10050_v5  ;;  %150 = vst.msk [vmem:[#allocation2 + $0x38] sm:$0xff] %vm142_vm0, %v10060_v7  ;;  %v10136_v17 = vld [vmem:[%s14920_s0 + $0x88] sm:$0xff]  ;;  %v10141_v18 = vld [vmem:[%s14920_s0 + $0xa0] sm:$0xff] }
   0xa   :  { %151 = vst.msk [vmem:[#allocation2 + $0x40] sm:$0xff] %vm142_vm0, %v10055_v6  ;;  %14955 = vst [vmem:[#allocation17_spill] sm:$0xff] %v10090_v11  ;;  %v10150_v19 = vld [vmem:[%s14920_s0 + $0x98] sm:$0xff]  ;;  %v10155_v20 = vld [vmem:[%s14920_s0 + $0xb0] sm:$0xff]  ;;  %537 = vrot.lane.b32.xlu1 %v10040_v4, %s9987_s18  ;;  %535 = vrot.lane.b32.xlu0 %v10050_v5, %s9987_s18 }
   0xb   :  { %152 = vst.msk [vmem:[#allocation2 + $0x48] sm:$0xff] %vm142_vm0, %v10074_v9  ;;  %153 = vst.msk [vmem:[#allocation2 + $0x50] sm:$0xff] %vm142_vm0, %v10069_v8  ;;  %v10160_v21 = vld [vmem:[%s14920_s0 + $0xa8] sm:$0xff]  ;;  %v10171_v22 = vld [vmem:[%s14920_s0 + $0xc0] sm:$0xff] }
   0xc   :  { %155 = vst.msk [vmem:[#allocation2 + $0x60] sm:$0xff] %vm142_vm0, %v10079_v10  ;;  %154 = vst.msk [vmem:[#allocation2 + $0x58] sm:$0xff] %vm142_vm0, %v10090_v11  ;;  %v10176_v23 = vld [vmem:[%s14920_s0 + $0xb8] sm:$0xff]  ;;  %v10181_v24 = vld [vmem:[%s14920_s0 + $0xd0] sm:$0xff] }
   0xd   :  { %156 = vst.msk [vmem:[#allocation2 + $0x68] sm:$0xff] %vm142_vm0, %v10100_v13  ;;  %157 = vst.msk [vmem:[#allocation2 + $0x70] sm:$0xff] %vm142_vm0, %v10095_v12  ;;  %v10196_v25 = vld [vmem:[%s14920_s0 + $0xc8] sm:$0xff]  ;;  %v10201_v26 = vld [vmem:[%s14920_s0 + $0xe0] sm:$0xff] }
   0xe   :  { %158 = vst.msk [vmem:[#allocation2 + $0x78] sm:$0xff] %vm142_vm0, %v10120_v15  ;;  %159 = vst.msk [vmem:[#allocation2 + $0x80] sm:$0xff] %vm142_vm0, %v10115_v14  ;;  %v10212_v27 = vld [vmem:[%s14920_s0 + $0xd8] sm:$0xff]  ;;  %v10217_v28 = vld [vmem:[%s14920_s0 + $0xf0] sm:$0xff]  ;;  %541 = vrot.lane.b32.xlu1 %v10055_v6, %s9987_s18  ;;  %539 = vrot.lane.b32.xlu0 %v10060_v7, %s9987_s18 }
   0xf   :  { %160 = vst.msk [vmem:[#allocation2 + $0x88] sm:$0xff] %vm142_vm0, %v10136_v17  ;;  %161 = vst.msk [vmem:[#allocation2 + $0x90] sm:$0xff] %vm142_vm0, %v10131_v16  ;;  %v10222_v29 = vld [vmem:[%s14920_s0 + $0xe8] sm:$0xff]  ;;  %v10231_v30 = vld [vmem:[%s14920_s0 + $0x100] sm:$0xff] }
  0x10   :  { %163 = vst.msk [vmem:[#allocation2 + $0xa0] sm:$0xff] %vm142_vm0, %v10141_v18  ;;  %162 = vst.msk [vmem:[#allocation2 + $0x98] sm:$0xff] %vm142_vm0, %v10150_v19  ;;  %v10236_v31 = vld [vmem:[%s14920_s0 + $0xf8] sm:$0xff]  ;;  %v10241_v32 = vld [vmem:[%s14920_s0 + $0x110] sm:$0xff] }
  0x11   :  { %164 = vst.msk [vmem:[#allocation2 + $0xa8] sm:$0xff] %vm142_vm0, %v10160_v21  ;;  %165 = vst.msk [vmem:[#allocation2 + $0xb0] sm:$0xff] %vm142_vm0, %v10155_v20  ;;  %v10252_v33 = vld [vmem:[%s14920_s0 + $0x108] sm:$0xff]  ;;  %v10257_v34 = vld [vmem:[%s14920_s0 + $0x120] sm:$0xff] }
  0x12   :  { %166 = vst.msk [vmem:[#allocation2 + $0xb8] sm:$0xff] %vm142_vm0, %v10176_v23  ;;  %167 = vst.msk [vmem:[#allocation2 + $0xc0] sm:$0xff] %vm142_vm0, %v10171_v22  ;;  %v10262_v35 = vld [vmem:[%s14920_s0 + $0x118] sm:$0xff]  ;;  %v10277_v36 = vld [vmem:[%s14920_s0 + $0x130] sm:$0xff]  ;;  %545 = vrot.lane.b32.xlu1 %v10069_v8, %s9987_s18  ;;  %543 = vrot.lane.b32.xlu0 %v10074_v9, %s9987_s18 }
  0x13   :  { %169 = vst.msk [vmem:[#allocation2 + $0xd0] sm:$0xff] %vm142_vm0, %v10181_v24  ;;  %168 = vst.msk [vmem:[#allocation2 + $0xc8] sm:$0xff] %vm142_vm0, %v10196_v25  ;;  %v10282_v37 = vld [vmem:[%s14920_s0 + $0x128] sm:$0xff]  ;;  %v10293_v38 = vld [vmem:[%s14920_s0 + $0x140] sm:$0xff] }
  0x14   :  { %171 = vst.msk [vmem:[#allocation2 + $0xe0] sm:$0xff] %vm142_vm0, %v10201_v26  ;;  %170 = vst.msk [vmem:[#allocation2 + $0xd8] sm:$0xff] %vm142_vm0, %v10212_v27  ;;  %v10298_v39 = vld [vmem:[%s14920_s0 + $0x138] sm:$0xff]  ;;  %v10303_v40 = vld [vmem:[%s14920_s0 + $0x150] sm:$0xff] }
  0x15   :  { %172 = vst.msk [vmem:[#allocation2 + $0xe8] sm:$0xff] %vm142_vm0, %v10222_v29  ;;  %173 = vst.msk [vmem:[#allocation2 + $0xf0] sm:$0xff] %vm142_vm0, %v10217_v28  ;;  %v10312_v41 = vld [vmem:[%s14920_s0 + $0x148] sm:$0xff]  ;;  %v10317_v42 = vld [vmem:[%s14920_s0 + $0x160] sm:$0xff] }
  0x16   :  { %174 = vst.msk [vmem:[#allocation2 + $0xf8] sm:$0xff] %vm142_vm0, %v10236_v31  ;;  %175 = vst.msk [vmem:[#allocation2 + $0x100] sm:$0xff] %vm142_vm0, %v10231_v30  ;;  %v10322_v43 = vld [vmem:[%s14920_s0 + $0x158] sm:$0xff]  ;;  %v10333_v44 = vld [vmem:[%s14920_s0 + $0x170] sm:$0xff]  ;;  %549 = vrot.lane.b32.xlu1 %v10079_v10, %s9987_s18  ;;  %547 = vrot.lane.b32.xlu0 %v10090_v11, %s9987_s18 }
  0x17   :  { %177 = vst.msk [vmem:[#allocation2 + $0x110] sm:$0xff] %vm142_vm0, %v10241_v32  ;;  %176 = vst.msk [vmem:[#allocation2 + $0x108] sm:$0xff] %vm142_vm0, %v10252_v33  ;;  %v10338_v45 = vld [vmem:[%s14920_s0 + $0x168] sm:$0xff]  ;;  %v10343_v46 = vld [vmem:[%s14920_s0 + $0x180] sm:$0xff] }
  0x18   :  { %178 = vst.msk [vmem:[#allocation2 + $0x118] sm:$0xff] %vm142_vm0, %v10262_v35  ;;  %179 = vst.msk [vmem:[#allocation2 + $0x120] sm:$0xff] %vm142_vm0, %v10257_v34  ;;  %v10358_v47 = vld [vmem:[%s14920_s0 + $0x178] sm:$0xff]  ;;  %v10363_v48 = vld [vmem:[%s14920_s0 + $0x190] sm:$0xff] }
  0x19   :  { %180 = vst.msk [vmem:[#allocation2 + $0x128] sm:$0xff] %vm142_vm0, %v10282_v37  ;;  %181 = vst.msk [vmem:[#allocation2 + $0x130] sm:$0xff] %vm142_vm0, %v10277_v36  ;;  %v10374_v49 = vld [vmem:[%s14920_s0 + $0x188] sm:$0xff]  ;;  %v10379_v50 = vld [vmem:[%s14920_s0 + $0x1a0] sm:$0xff] }
  0x1a   :  { %182 = vst.msk [vmem:[#allocation2 + $0x138] sm:$0xff] %vm142_vm0, %v10298_v39  ;;  %183 = vst.msk [vmem:[#allocation2 + $0x140] sm:$0xff] %vm142_vm0, %v10293_v38  ;;  %v10384_v51 = vld [vmem:[%s14920_s0 + $0x198] sm:$0xff]  ;;  %v10393_v52 = vld [vmem:[%s14920_s0 + $0x1b0] sm:$0xff]  ;;  %553 = vrot.lane.b32.xlu1 %v10095_v12, %s9987_s18  ;;  %551 = vrot.lane.b32.xlu0 %v10100_v13, %s9987_s18 }
  0x1b   :  { %185 = vst.msk [vmem:[#allocation2 + $0x150] sm:$0xff] %vm142_vm0, %v10303_v40  ;;  %184 = vst.msk [vmem:[#allocation2 + $0x148] sm:$0xff] %vm142_vm0, %v10312_v41  ;;  %v10398_v53 = vld [vmem:[%s14920_s0 + $0x1a8] sm:$0xff]  ;;  %v10403_v54 = vld [vmem:[%s14920_s0 + $0x1c0] sm:$0xff] }
  0x1c   :  { %186 = vst.msk [vmem:[#allocation2 + $0x158] sm:$0xff] %vm142_vm0, %v10322_v43  ;;  %187 = vst.msk [vmem:[#allocation2 + $0x160] sm:$0xff] %vm142_vm0, %v10317_v42  ;;  %v10414_v55 = vld [vmem:[%s14920_s0 + $0x1b8] sm:$0xff]  ;;  %v10419_v56 = vld [vmem:[%s14920_s0 + $0x1d0] sm:$0xff] }
  0x1d   :  { %188 = vst.msk [vmem:[#allocation2 + $0x168] sm:$0xff] %vm142_vm0, %v10338_v45  ;;  %189 = vst.msk [vmem:[#allocation2 + $0x170] sm:$0xff] %vm142_vm0, %v10333_v44  ;;  %v10424_v57 = vld [vmem:[%s14920_s0 + $0x1c8] sm:$0xff]  ;;  %v14_v58 = vld [vmem:[%s14920_s0] sm:$0xff] }
  0x1e   :  { %191 = vst.msk [vmem:[#allocation2 + $0x180] sm:$0xff] %vm142_vm0, %v10343_v46  ;;  %190 = vst.msk [vmem:[#allocation2 + $0x178] sm:$0xff] %vm142_vm0, %v10358_v47  ;;  %v10442_v59 = vld [vmem:[%s14920_s0 + $0x1e0] sm:$0xff]  ;;  %v10454_v60 = vld [vmem:[%s14920_s0 + $0x1d8] sm:$0xff]  ;;  %557 = vrot.lane.b32.xlu1 %v10115_v14, %s9987_s18  ;;  %555 = vrot.lane.b32.xlu0 %v10120_v15, %s9987_s18 }
  0x1f   :  { %193 = vst.msk [vmem:[#allocation2 + $0x190] sm:$0xff] %vm142_vm0, %v10363_v48  ;;  %192 = vst.msk [vmem:[#allocation2 + $0x188] sm:$0xff] %vm142_vm0, %v10374_v49  ;;  %v10459_v61 = vld [vmem:[%s14920_s0 + $0x1f0] sm:$0xff]  ;;  %v10464_v62 = vld [vmem:[%s14920_s0 + $0x1e8] sm:$0xff] }
  0x20   :  { %194 = vst.msk [vmem:[#allocation2 + $0x198] sm:$0xff] %vm142_vm0, %v10384_v51  ;;  %195 = vst.msk [vmem:[#allocation2 + $0x1a0] sm:$0xff] %vm142_vm0, %v10379_v50  ;;  %v10471_v63 = vld [vmem:[%s14920_s0 + $0x200] sm:$0xff]  ;;  %v10476_v1 = vld [vmem:[%s14920_s0 + $0x1f8] sm:$0xff] }
  0x21   :  { %196 = vst.msk [vmem:[#allocation2 + $0x1a8] sm:$0xff] %vm142_vm0, %v10398_v53  ;;  %197 = vst.msk [vmem:[#allocation2 + $0x1b0] sm:$0xff] %vm142_vm0, %v10393_v52  ;;  %v10481_v10 = vld [vmem:[%s14920_s0 + $0x210] sm:$0xff]  ;;  %v10497_v11 = vld [vmem:[%s14920_s0 + $0x220] sm:$0xff] }
  0x22   :  { %199 = vst.msk [vmem:[#allocation2 + $0x1c0] sm:$0xff] %vm142_vm0, %v10403_v54  ;;  %198 = vst.msk [vmem:[#allocation2 + $0x1b8] sm:$0xff] %vm142_vm0, %v10414_v55  ;;  %v10502_v8 = vld [vmem:[%s14920_s0 + $0x218] sm:$0xff]  ;;  %v10517_v9 = vld [vmem:[%s14920_s0 + $0x230] sm:$0xff]  ;;  %561 = vrot.lane.b32.xlu1 %v10131_v16, %s9987_s18  ;;  %559 = vrot.lane.b32.xlu0 %v10136_v17, %s9987_s18 }
  0x23   :  { %200 = vst.msk [vmem:[#allocation2 + $0x1c8] sm:$0xff] %vm142_vm0, %v10424_v57  ;;  %201 = vst.msk [vmem:[#allocation2 + $0x1d0] sm:$0xff] %vm142_vm0, %v10419_v56  ;;  %v10522_v6 = vld [vmem:[%s14920_s0 + $0x228] sm:$0xff]  ;;  %v10533_v12 = vld [vmem:[%s14920_s0 + $0x240] sm:$0xff] }
  0x24   :  { %143 = vst.msk [vmem:[#allocation2] sm:$0xff] %vm142_vm0, %v14_v58  ;;  %203 = vst.msk [vmem:[#allocation2 + $0x1e0] sm:$0xff] %vm142_vm0, %v10442_v59  ;;  %v10492_v58 = vld [vmem:[%s14920_s0 + $0x208] sm:$0xff]  ;;  %v10538_v13 = vld [vmem:[%s14920_s0 + $0x238] sm:$0xff] }
  0x25   :  { %202 = vst.msk [vmem:[#allocation2 + $0x1d8] sm:$0xff] %vm142_vm0, %v10454_v60  ;;  %204 = vst.msk [vmem:[#allocation2 + $0x1e8] sm:$0xff] %vm142_vm0, %v10464_v62  ;;  %v10543_v7 = vld [vmem:[%s14920_s0 + $0x250] sm:$0xff]  ;;  %v10552_v4 = vld [vmem:[%s14920_s0 + $0x248] sm:$0xff] }
  0x26   :  { %205 = vst.msk [vmem:[#allocation2 + $0x1f0] sm:$0xff] %vm142_vm0, %v10459_v61  ;;  %206 = vst.msk [vmem:[#allocation2 + $0x1f8] sm:$0xff] %vm142_vm0, %v10476_v1  ;;  %v10557_v5 = vld [vmem:[%s14920_s0 + $0x260] sm:$0xff]  ;;  %v10562_v2 = vld [vmem:[%s14920_s0 + $0x258] sm:$0xff]  ;;  %565 = vrot.lane.b32.xlu1 %v10141_v18, %s9987_s18  ;;  %563 = vrot.lane.b32.xlu0 %v10150_v19, %s9987_s18 }
  0x27   :  { %207 = vst.msk [vmem:[#allocation2 + $0x200] sm:$0xff] %vm142_vm0, %v10471_v63  ;;  %209 = vst.msk [vmem:[#allocation2 + $0x210] sm:$0xff] %vm142_vm0, %v10481_v10  ;;  %v10573_v3 = vld [vmem:[%s14920_s0 + $0x270] sm:$0xff]  ;;  %v10578_v0 = vld [vmem:[%s14920_s0 + $0x268] sm:$0xff] }
  0x28   :  { %208 = vst.msk [vmem:[#allocation2 + $0x208] sm:$0xff] %vm142_vm0, %v10492_v58  ;;  %210 = vst.msk [vmem:[#allocation2 + $0x218] sm:$0xff] %vm142_vm0, %v10502_v8  ;;  %v10611_v14 = vld [vmem:[%s14920_s0 + $0x290] sm:$0xff]  ;;  %v10616_v15 = vld [vmem:[%s14920_s0 + $0x288] sm:$0xff] }
  0x29   :  { %211 = vst.msk [vmem:[#allocation2 + $0x220] sm:$0xff] %vm142_vm0, %v10497_v11  ;;  %14956 = vst [vmem:[#allocation18_spill] sm:$0xff] %v10538_v13  ;;  %v10647_v16 = vld [vmem:[%s14920_s0 + $0x2b0] sm:$0xff]  ;;  %v10652_v17 = vld [vmem:[%s14920_s0 + $0x2a8] sm:$0xff] }
  0x2a   :  { %14957 = vst [vmem:[#allocation19_spill] sm:$0xff] %v10543_v7  ;;  %212 = vst.msk [vmem:[#allocation2 + $0x228] sm:$0xff] %vm142_vm0, %v10522_v6  ;;  %569 = vrot.lane.b32.xlu1 %v10155_v20, %s9987_s18  ;;  %567 = vrot.lane.b32.xlu0 %v10160_v21, %s9987_s18  ;;  %v10665_v18 = vld [vmem:[%s14920_s0 + $0x2c0] sm:$0xff]  ;;  %v10670_v19 = vld [vmem:[%s14920_s0 + $0x2b8] sm:$0xff] }
  0x2b   :  { %213 = vst.msk [vmem:[#allocation2 + $0x230] sm:$0xff] %vm142_vm0, %v10517_v9  ;;  %214 = vst.msk [vmem:[#allocation2 + $0x238] sm:$0xff] %vm142_vm0, %v10538_v13  ;;  %v10583_v13 = vld [vmem:[%s14920_s0 + $0x280] sm:$0xff]  ;;  %v10683_v20 = vld [vmem:[%s14920_s0 + $0x2d0] sm:$0xff] }
  0x2c   :  { %215 = vst.msk [vmem:[#allocation2 + $0x240] sm:$0xff] %vm142_vm0, %v10533_v12  ;;  %217 = vst.msk [vmem:[#allocation2 + $0x250] sm:$0xff] %vm142_vm0, %v10543_v7  ;;  %v10598_v7 = vld [vmem:[%s14920_s0 + $0x278] sm:$0xff]  ;;  %v10688_v21 = vld [vmem:[%s14920_s0 + $0x2c8] sm:$0xff] }
  0x2d   :  { %14958 = vst [vmem:[#allocation20_spill] sm:$0xff] %v10583_v13  ;;  %216 = vst.msk [vmem:[#allocation2 + $0x248] sm:$0xff] %vm142_vm0, %v10552_v4 }
  0x2e   :  { %218 = vst.msk [vmem:[#allocation2 + $0x258] sm:$0xff] %vm142_vm0, %v10562_v2  ;;  %219 = vst.msk [vmem:[#allocation2 + $0x260] sm:$0xff] %vm142_vm0, %v10557_v5  ;;  %573 = vrot.lane.b32.xlu1 %v10171_v22, %s9987_s18  ;;  %571 = vrot.lane.b32.xlu0 %v10176_v23, %s9987_s18  ;;  %v10701_v22 = vld [vmem:[%s14920_s0 + $0x2e0] sm:$0xff]  ;;  %v10706_v23 = vld [vmem:[%s14920_s0 + $0x2d8] sm:$0xff] }
  0x2f   :  { %14959 = vst [vmem:[#allocation21_spill] sm:$0xff] %v10598_v7  ;;  %220 = vst.msk [vmem:[#allocation2 + $0x268] sm:$0xff] %vm142_vm0, %v10578_v0 }
  0x30   :  { %221 = vst.msk [vmem:[#allocation2 + $0x270] sm:$0xff] %vm142_vm0, %v10573_v3  ;;  %223 = vst.msk [vmem:[#allocation2 + $0x280] sm:$0xff] %vm142_vm0, %v10583_v13  ;;  %v10634_v13 = vld [vmem:[%s14920_s0 + $0x298] sm:$0xff] }
  0x31   :  { %222 = vst.msk [vmem:[#allocation2 + $0x278] sm:$0xff] %vm142_vm0, %v10598_v7  ;;  %224 = vst.msk [vmem:[#allocation2 + $0x288] sm:$0xff] %vm142_vm0, %v10616_v15  ;;  %v10629_v7 = vld [vmem:[%s14920_s0 + $0x2a0] sm:$0xff] }
  0x32   :  { %225 = vst.msk [vmem:[#allocation2 + $0x290] sm:$0xff] %vm142_vm0, %v10611_v14  ;;  %226 = vst.msk [vmem:[#allocation2 + $0x298] sm:$0xff] %vm142_vm0, %v10634_v13  ;;  %577 = vrot.lane.b32.xlu1 %v10181_v24, %s9987_s18  ;;  %575 = vrot.lane.b32.xlu0 %v10196_v25, %s9987_s18  ;;  %v10719_v24 = vld [vmem:[%s14920_s0 + $0x2f0] sm:$0xff]  ;;  %v10724_v25 = vld [vmem:[%s14920_s0 + $0x2e8] sm:$0xff] }
  0x33   :  { %227 = vst.msk [vmem:[#allocation2 + $0x2a0] sm:$0xff] %vm142_vm0, %v10629_v7  ;;  %228 = vst.msk [vmem:[#allocation2 + $0x2a8] sm:$0xff] %vm142_vm0, %v10652_v17 }
  0x34   :  { %229 = vst.msk [vmem:[#allocation2 + $0x2b0] sm:$0xff] %vm142_vm0, %v10647_v16  ;;  %230 = vst.msk [vmem:[#allocation2 + $0x2b8] sm:$0xff] %vm142_vm0, %v10670_v19 }
  0x35   :  { %231 = vst.msk [vmem:[#allocation2 + $0x2c0] sm:$0xff] %vm142_vm0, %v10665_v18  ;;  %232 = vst.msk [vmem:[#allocation2 + $0x2c8] sm:$0xff] %vm142_vm0, %v10688_v21 }
  0x36   :  { %233 = vst.msk [vmem:[#allocation2 + $0x2d0] sm:$0xff] %vm142_vm0, %v10683_v20  ;;  %581 = vrot.lane.b32.xlu1 %v10201_v26, %s9987_s18  ;;  %579 = vrot.lane.b32.xlu0 %v10212_v27, %s9987_s18  ;;  %234 = vst.msk [vmem:[#allocation2 + $0x2d8] sm:$0xff] %vm142_vm0, %v10706_v23  ;;  %v10737_v26 = vld [vmem:[%s14920_s0 + $0x300] sm:$0xff]  ;;  %v10742_v27 = vld [vmem:[%s14920_s0 + $0x2f8] sm:$0xff] }
  0x37   :  { %235 = vst.msk [vmem:[#allocation2 + $0x2e0] sm:$0xff] %vm142_vm0, %v10701_v22  ;;  %236 = vst.msk [vmem:[#allocation2 + $0x2e8] sm:$0xff] %vm142_vm0, %v10724_v25 }
  0x38   :  { %237 = vst.msk [vmem:[#allocation2 + $0x2f0] sm:$0xff] %vm142_vm0, %v10719_v24  ;;  %238 = vst.msk [vmem:[#allocation2 + $0x2f8] sm:$0xff] %vm142_vm0, %v10742_v27 }
  0x39   :  { %239 = vst.msk [vmem:[#allocation2 + $0x300] sm:$0xff] %vm142_vm0, %v10737_v26 }
  0x3a   :  { %585 = vrot.lane.b32.xlu1 %v10217_v28, %s9987_s18  ;;  %583 = vrot.lane.b32.xlu0 %v10222_v29, %s9987_s18  ;;  %v10755_v28 = vld [vmem:[%s14920_s0 + $0x310] sm:$0xff]  ;;  %v10760_v29 = vld [vmem:[%s14920_s0 + $0x308] sm:$0xff] }
  0x3b   :  { %240 = vst.msk [vmem:[#allocation2 + $0x308] sm:$0xff] %vm142_vm0, %v10760_v29  ;;  %241 = vst.msk [vmem:[#allocation2 + $0x310] sm:$0xff] %vm142_vm0, %v10755_v28 }
  0x3e   :  { %589 = vrot.lane.b32.xlu1 %v10231_v30, %s9987_s18  ;;  %587 = vrot.lane.b32.xlu0 %v10236_v31, %s9987_s18  ;;  %v10773_v30 = vld [vmem:[%s14920_s0 + $0x320] sm:$0xff]  ;;  %v10778_v31 = vld [vmem:[%s14920_s0 + $0x318] sm:$0xff] }
  0x3f   :  { %242 = vst.msk [vmem:[#allocation2 + $0x318] sm:$0xff] %vm142_vm0, %v10778_v31  ;;  %243 = vst.msk [vmem:[#allocation2 + $0x320] sm:$0xff] %vm142_vm0, %v10773_v30 }
  0x42   :  { %593 = vrot.lane.b32.xlu1 %v10241_v32, %s9987_s18  ;;  %591 = vrot.lane.b32.xlu0 %v10252_v33, %s9987_s18  ;;  %v10791_v32 = vld [vmem:[%s14920_s0 + $0x328] sm:$0xff] }
  0x43   :  { %244 = vst.msk [vmem:[#allocation2 + $0x328] sm:$0xff] %vm142_vm0, %v10791_v32 }
  0x46   :  { %597 = vrot.lane.b32.xlu1 %v10257_v34, %s9987_s18  ;;  %595 = vrot.lane.b32.xlu0 %v10262_v35, %s9987_s18 }
  0x4a   :  { %601 = vrot.lane.b32.xlu1 %v10277_v36, %s9987_s18  ;;  %599 = vrot.lane.b32.xlu0 %v10282_v37, %s9987_s18 }
  0x4e   :  { %605 = vrot.lane.b32.xlu1 %v10293_v38, %s9987_s18  ;;  %603 = vrot.lane.b32.xlu0 %v10298_v39, %s9987_s18 }
  0x52   :  { %609 = vrot.lane.b32.xlu1 %v10303_v40, %s9987_s18  ;;  %607 = vrot.lane.b32.xlu0 %v10312_v41, %s9987_s18 }
  0x56   :  { %613 = vrot.lane.b32.xlu1 %v10317_v42, %s9987_s18  ;;  %611 = vrot.lane.b32.xlu0 %v10322_v43, %s9987_s18 }
  0x5a   :  { %617 = vrot.lane.b32.xlu1 %v10333_v44, %s9987_s18  ;;  %615 = vrot.lane.b32.xlu0 %v10338_v45, %s9987_s18 }
  0x5e   :  { %621 = vrot.lane.b32.xlu1 %v10343_v46, %s9987_s18  ;;  %619 = vrot.lane.b32.xlu0 %v10358_v47, %s9987_s18 }
  0x62   :  { %625 = vrot.lane.b32.xlu1 %v10363_v48, %s9987_s18  ;;  %623 = vrot.lane.b32.xlu0 %v10374_v49, %s9987_s18 }
  0x66   :  { %629 = vrot.lane.b32.xlu1 %v10379_v50, %s9987_s18  ;;  %627 = vrot.lane.b32.xlu0 %v10384_v51, %s9987_s18 }
  0x6a   :  { %633 = vrot.lane.b32.xlu1 %v10393_v52, %s9987_s18  ;;  %631 = vrot.lane.b32.xlu0 %v10398_v53, %s9987_s18 }
  0x6e   :  { %637 = vrot.lane.b32.xlu1 %v10403_v54, %s9987_s18  ;;  %635 = vrot.lane.b32.xlu0 %v10414_v55, %s9987_s18 }
  0x72   :  { %641 = vrot.lane.b32.xlu1 %v10419_v56, %s9987_s18  ;;  %639 = vrot.lane.b32.xlu0 %v10424_v57, %s9987_s18 }
  0x74   :  { %v532_v33 = vpop.permute.xlu1 %531  ;;  %v528_v34 = vpop.permute.xlu0 %527 }
  0x75   :  { %914 = vst.msk [vmem:[#allocation2 + $0x10] sm:$0xff] %vm911_vm1, %v532_v33  ;;  %912 = vst.msk [vmem:[#allocation2] sm:$0xff] %vm911_vm1, %v528_v34 }
  0x76   :  { %645 = vrot.lane.b32.xlu1 %v10442_v59, %s9987_s18  ;;  %643 = vrot.lane.b32.xlu0 %v10454_v60, %s9987_s18 }
  0x78   :  { %v534_v35 = vpop.permute.xlu1 %533  ;;  %v530_v36 = vpop.permute.xlu0 %529 }
  0x79   :  { %915 = vst.msk [vmem:[#allocation2 + $0x18] sm:$0xff] %vm911_vm1, %v534_v35  ;;  %913 = vst.msk [vmem:[#allocation2 + $0x8] sm:$0xff] %vm911_vm1, %v530_v36 }
  0x7a   :  { %649 = vrot.lane.b32.xlu1 %v10459_v61, %s9987_s18  ;;  %647 = vrot.lane.b32.xlu0 %v10464_v62, %s9987_s18 }
  0x7c   :  { %v538_v37 = vpop.permute.xlu1 %537  ;;  %v536_v38 = vpop.permute.xlu0 %535 }
  0x7d   :  { %917 = vst.msk [vmem:[#allocation2 + $0x28] sm:$0xff] %vm911_vm1, %v538_v37  ;;  %916 = vst.msk [vmem:[#allocation2 + $0x20] sm:$0xff] %vm911_vm1, %v536_v38  ;;  %v14968_v37 = vld [vmem:[#allocation11_spill] sm:$0xff] }
  0x7e   :  { %653 = vrot.lane.b32.xlu1 %v10471_v63, %s9987_s18  ;;  %651 = vrot.lane.b32.xlu0 %v10476_v1, %s9987_s18 }
  0x80   :  { %v542_v39 = vpop.permute.xlu1 %541  ;;  %v540_v40 = vpop.permute.xlu0 %539 }
  0x81   :  { %919 = vst.msk [vmem:[#allocation2 + $0x38] sm:$0xff] %vm911_vm1, %v542_v39  ;;  %918 = vst.msk [vmem:[#allocation2 + $0x30] sm:$0xff] %vm911_vm1, %v540_v40  ;;  %v14969_v40 = vld [vmem:[#allocation14_spill] sm:$0xff] }
  0x82   :  { %657 = vrot.lane.b32.xlu1 %v10481_v10, %s9987_s18  ;;  %655 = vrot.lane.b32.xlu0 %v10492_v58, %s9987_s18 }
  0x84   :  { %v546_v41 = vpop.permute.xlu1 %545  ;;  %v544_v42 = vpop.permute.xlu0 %543 }
  0x85   :  { %921 = vst.msk [vmem:[#allocation2 + $0x48] sm:$0xff] %vm911_vm1, %v546_v41  ;;  %920 = vst.msk [vmem:[#allocation2 + $0x40] sm:$0xff] %vm911_vm1, %v544_v42 }
  0x86   :  { %661 = vrot.lane.b32.xlu1 %v10497_v11, %s9987_s18  ;;  %659 = vrot.lane.b32.xlu0 %v10502_v8, %s9987_s18  ;;  %v14960_v8 = vld [vmem:[#allocation18_spill] sm:$0xff] }
  0x88   :  { %v550_v43 = vpop.permute.xlu1 %549  ;;  %v548_v44 = vpop.permute.xlu0 %547 }
  0x89   :  { %923 = vst.msk [vmem:[#allocation2 + $0x58] sm:$0xff] %vm911_vm1, %v550_v43  ;;  %922 = vst.msk [vmem:[#allocation2 + $0x50] sm:$0xff] %vm911_vm1, %v548_v44 }
  0x8a   :  { %665 = vrot.lane.b32.xlu1 %v10517_v9, %s9987_s18  ;;  %663 = vrot.lane.b32.xlu0 %v10522_v6, %s9987_s18  ;;  %v14961_v6 = vld [vmem:[#allocation19_spill] sm:$0xff] }
  0x8c   :  { %v554_v45 = vpop.permute.xlu1 %553  ;;  %v552_v46 = vpop.permute.xlu0 %551 }
  0x8d   :  { %925 = vst.msk [vmem:[#allocation2 + $0x68] sm:$0xff] %vm911_vm1, %v554_v45  ;;  %924 = vst.msk [vmem:[#allocation2 + $0x60] sm:$0xff] %vm911_vm1, %v552_v46  ;;  %v14970_v45 = vld [vmem:[#allocation13_spill] sm:$0xff] }
  0x8e   :  { %669 = vrot.lane.b32.xlu1 %v10533_v12, %s9987_s18  ;;  %667 = vrot.lane.b32.xlu0 %v14960_v8, %s9987_s18 }
  0x90   :  { %v558_v11 = vpop.permute.xlu1 %557  ;;  %v556_v47 = vpop.permute.xlu0 %555 }
  0x91   :  { %927 = vst.msk [vmem:[#allocation2 + $0x78] sm:$0xff] %vm911_vm1, %v558_v11  ;;  %926 = vst.msk [vmem:[#allocation2 + $0x70] sm:$0xff] %vm911_vm1, %v556_v47  ;;  %v14971_v11 = vld [vmem:[#allocation16_spill] sm:$0xff] }
  0x92   :  { %673 = vrot.lane.b32.xlu1 %v14961_v6, %s9987_s18  ;;  %671 = vrot.lane.b32.xlu0 %v10552_v4, %s9987_s18 }
  0x94   :  { %v562_v9 = vpop.permute.xlu1 %561  ;;  %v560_v48 = vpop.permute.xlu0 %559 }
  0x95   :  { %929 = vst.msk [vmem:[#allocation2 + $0x88] sm:$0xff] %vm911_vm1, %v562_v9  ;;  %928 = vst.msk [vmem:[#allocation2 + $0x80] sm:$0xff] %vm911_vm1, %v560_v48 }
  0x96   :  { %677 = vrot.lane.b32.xlu1 %v10557_v5, %s9987_s18  ;;  %675 = vrot.lane.b32.xlu0 %v10562_v2, %s9987_s18  ;;  %v14962_v2 = vld [vmem:[#allocation20_spill] sm:$0xff]  ;;  %v14963_v5 = vld [vmem:[#allocation21_spill] sm:$0xff] }
  0x98   :  { %v566_v49 = vpop.permute.xlu1 %565  ;;  %v564_v50 = vpop.permute.xlu0 %563 }
  0x99   :  { %931 = vst.msk [vmem:[#allocation2 + $0x98] sm:$0xff] %vm911_vm1, %v566_v49  ;;  %930 = vst.msk [vmem:[#allocation2 + $0x90] sm:$0xff] %vm911_vm1, %v564_v50  ;;  %v14972_v49 = vld [vmem:[#allocation15_spill] sm:$0xff] }
  0x9a   :  { %681 = vrot.lane.b32.xlu1 %v10573_v3, %s9987_s18  ;;  %679 = vrot.lane.b32.xlu0 %v10578_v0, %s9987_s18 }
  0x9c   :  { %v570_v4 = vpop.permute.xlu1 %569  ;;  %v568_v51 = vpop.permute.xlu0 %567 }
  0x9d   :  { %933 = vst.msk [vmem:[#allocation2 + $0xa8] sm:$0xff] %vm911_vm1, %v570_v4  ;;  %932 = vst.msk [vmem:[#allocation2 + $0xa0] sm:$0xff] %vm911_vm1, %v568_v51  ;;  %v14973_v51 = vld [vmem:[#allocation17_spill] sm:$0xff] }
  0x9e   :  { %685 = vrot.lane.b32.xlu1 %v14962_v2, %s9987_s18  ;;  %683 = vrot.lane.b32.xlu0 %v14963_v5, %s9987_s18  ;;  %v1049_v2 = vld [vmem:[%s14920_s0 + $0x58] sm:$0xff]  ;;  %v1048_v5 = vld [vmem:[%s14920_s0 + $0x50] sm:$0xff] }
  0xa0   :  { %v574_v52 = vpop.permute.xlu1 %573  ;;  %v572_v53 = vpop.permute.xlu0 %571 }
  0xa1   :  { %935 = vst.msk [vmem:[#allocation2 + $0xb8] sm:$0xff] %vm911_vm1, %v574_v52  ;;  %934 = vst.msk [vmem:[#allocation2 + $0xb0] sm:$0xff] %vm911_vm1, %v572_v53 }
  0xa2   :  { %689 = vrot.lane.b32.xlu1 %v10611_v14, %s9987_s18  ;;  %687 = vrot.lane.b32.xlu0 %v10616_v15, %s9987_s18  ;;  %v372_v15 = vld [vmem:[%s14920_s0 + $0x330] sm:$0xff] }
  0xa4   :  { %v578_v0 = vpop.permute.xlu1 %577  ;;  %v576_v3 = vpop.permute.xlu0 %575 }
  0xa5   :  { %937 = vst.msk [vmem:[#allocation2 + $0xc8] sm:$0xff] %vm911_vm1, %v578_v0  ;;  %936 = vst.msk [vmem:[#allocation2 + $0xc0] sm:$0xff] %vm911_vm1, %v576_v3  ;;  %v1818_v0 = vld [vmem:[%s14920_s0 + $0x60] sm:$0xff] }
  0xa6   :  { %693 = vrot.lane.b32.xlu1 %v10629_v7, %s9987_s18  ;;  %691 = vrot.lane.b32.xlu0 %v10634_v13, %s9987_s18 }
  0xa8   :  { %v582_v54 = vpop.permute.xlu1 %581  ;;  %v580_v55 = vpop.permute.xlu0 %579 }
  0xa9   :  { %939 = vst.msk [vmem:[#allocation2 + $0xd8] sm:$0xff] %vm911_vm1, %v582_v54  ;;  %938 = vst.msk [vmem:[#allocation2 + $0xd0] sm:$0xff] %vm911_vm1, %v580_v55  ;;  %v2587_v55 = vld [vmem:[%s14920_s0 + $0x68] sm:$0xff] }
  0xaa   :  { %697 = vrot.lane.b32.xlu1 %v10647_v16, %s9987_s18  ;;  %695 = vrot.lane.b32.xlu0 %v10652_v17, %s9987_s18  ;;  %v3479_v16 = vld [vmem:[%s14921_s1 + $0x20] sm:$0xff] }
  0xab   :  { %9620 = vmatprep.subr.mxu0 %v3479_v16 }
  0xac   :  { %v586_v56 = vpop.permute.xlu1 %585  ;;  %v584_v57 = vpop.permute.xlu0 %583  ;;  %9621 = vmatpush3.msra.mxu0 %v3479_v16  ;;  %v2591_v16 = vld [vmem:[%s14920_s0 + $0x88] sm:$0xff] }
  0xad   :  { %941 = vst.msk [vmem:[#allocation2 + $0xe8] sm:$0xff] %vm911_vm1, %v586_v56  ;;  %940 = vst.msk [vmem:[#allocation2 + $0xe0] sm:$0xff] %vm911_vm1, %v584_v57 }
  0xae   :  { %701 = vrot.lane.b32.xlu1 %v10665_v18, %s9987_s18  ;;  %699 = vrot.lane.b32.xlu0 %v10670_v19, %s9987_s18  ;;  %v3478_v19 = vld [vmem:[%s14921_s1 + $0x18] sm:$0xff] }
  0xaf   :  { %9622 = vmatprep.subr.mxu0 %v3478_v19 }
  0xb0   :  { %v590_v7 = vpop.permute.xlu1 %589  ;;  %v588_v59 = vpop.permute.xlu0 %587  ;;  %9623 = vmatpush3.msra.mxu0 %v3478_v19 }
  0xb1   :  { %943 = vst.msk [vmem:[#allocation2 + $0xf8] sm:$0xff] %vm911_vm1, %v590_v7  ;;  %942 = vst.msk [vmem:[#allocation2 + $0xf0] sm:$0xff] %vm911_vm1, %v588_v59 }
  0xb2   :  { %705 = vrot.lane.b32.xlu1 %v10683_v20, %s9987_s18  ;;  %703 = vrot.lane.b32.xlu0 %v10688_v21, %s9987_s18  ;;  %v3477_v20 = vld [vmem:[%s14921_s1 + $0x10] sm:$0xff] }
  0xb3   :  { %9624 = vmatprep.subr.mxu0 %v3477_v20 }
  0xb4   :  { %v594_v60 = vpop.permute.xlu1 %593  ;;  %v592_v61 = vpop.permute.xlu0 %591  ;;  %9625 = vmatpush3.msra.mxu0 %v3477_v20 }
  0xb5   :  { %945 = vst.msk [vmem:[#allocation2 + $0x108] sm:$0xff] %vm911_vm1, %v594_v60  ;;  %944 = vst.msk [vmem:[#allocation2 + $0x100] sm:$0xff] %vm911_vm1, %v592_v61  ;;  %v1820_v60 = vld [vmem:[%s14920_s0 + $0x70] sm:$0xff] }
  0xb6   :  { %709 = vrot.lane.b32.xlu1 %v10701_v22, %s9987_s18  ;;  %707 = vrot.lane.b32.xlu0 %v10706_v23, %s9987_s18  ;;  %v3476_v23 = vld [vmem:[%s14921_s1 + $0x8] sm:$0xff] }
  0xb7   :  { %9626 = vmatprep.subr.mxu0 %v3476_v23 }
  0xb8   :  { %v598_v62 = vpop.permute.xlu1 %597  ;;  %v596_v63 = vpop.permute.xlu0 %595  ;;  %9627 = vmatpush3.msra.mxu0 %v3476_v23 }
  0xb9   :  { %947 = vst.msk [vmem:[#allocation2 + $0x118] sm:$0xff] %vm911_vm1, %v598_v62  ;;  %946 = vst.msk [vmem:[#allocation2 + $0x110] sm:$0xff] %vm911_vm1, %v596_v63  ;;  %v2589_v63 = vld [vmem:[%s14920_s0 + $0x78] sm:$0xff] }
  0xba   :  { %713 = vrot.lane.b32.xlu1 %v10719_v24, %s9987_s18  ;;  %711 = vrot.lane.b32.xlu0 %v10724_v25, %s9987_s18  ;;  %v14964_v24 = vld [vmem:[#allocation8_spill] sm:$0xff]  ;;  %v14965_v25 = vld [vmem:[#allocation10_spill] sm:$0xff] }
  0xbc   :  { %v602_v1 = vpop.permute.xlu1 %601  ;;  %v600_v10 = vpop.permute.xlu0 %599 }
  0xbd   :  { %949 = vst.msk [vmem:[#allocation2 + $0x128] sm:$0xff] %vm911_vm1, %v602_v1  ;;  %948 = vst.msk [vmem:[#allocation2 + $0x120] sm:$0xff] %vm911_vm1, %v600_v10 }
  0xbe   :  { %717 = vrot.lane.b32.xlu1 %v10737_v26, %s9987_s18  ;;  %715 = vrot.lane.b32.xlu0 %v10742_v27, %s9987_s18 }
  0xc0   :  { %v606_v58 = vpop.permute.xlu1 %605  ;;  %v604_v12 = vpop.permute.xlu0 %603 }
  0xc1   :  { %951 = vst.msk [vmem:[#allocation2 + $0x138] sm:$0xff] %vm911_vm1, %v606_v58  ;;  %950 = vst.msk [vmem:[#allocation2 + $0x130] sm:$0xff] %vm911_vm1, %v604_v12 }
  0xc2   :  { %721 = vrot.lane.b32.xlu1 %v10755_v28, %s9987_s18  ;;  %719 = vrot.lane.b32.xlu0 %v10760_v29, %s9987_s18  ;;  %v3475_v28 = vld [vmem:[%s14921_s1] sm:$0xff]  ;;  %v14966_v29 = vld [vmem:[#allocation9_spill] sm:$0xff] }
  0xc3   :  { %9628 = vmatprep.subr.mxu0 %v3475_v28 }
  0xc4   :  { %v610_v13 = vpop.permute.xlu1 %609  ;;  %v608_v14 = vpop.permute.xlu0 %607  ;;  %9629 = vmatpush3.msra.mxu0 %v3475_v28 }
  0xc5   :  { %953 = vst.msk [vmem:[#allocation2 + $0x148] sm:$0xff] %vm911_vm1, %v610_v13  ;;  %952 = vst.msk [vmem:[#allocation2 + $0x140] sm:$0xff] %vm911_vm1, %v608_v14  ;;  %v1822_v13 = vld [vmem:[%s14920_s0 + $0x80] sm:$0xff] }
  0xc6   :  { %725 = vrot.lane.b32.xlu1 %v10773_v30, %s9987_s18  ;;  %723 = vrot.lane.b32.xlu0 %v10778_v31, %s9987_s18 }
  0xc8   :  { %v614_v17 = vpop.permute.xlu1 %613  ;;  %v612_v18 = vpop.permute.xlu0 %611 }
  0xc9   :  { %955 = vst.msk [vmem:[#allocation2 + $0x158] sm:$0xff] %vm911_vm1, %v614_v17  ;;  %954 = vst.msk [vmem:[#allocation2 + $0x150] sm:$0xff] %vm911_vm1, %v612_v18 }
  0xca   :  { %729 = vrot.lane.b32.xlu1 %v372_v15, %s9987_s18  ;;  %727 = vrot.lane.b32.xlu0 %v10791_v32, %s9987_s18  ;;  %v14967_v32 = vld [vmem:[#allocation12_spill] sm:$0xff] }
  0xcc   :  { %v618_v21 = vpop.permute.xlu1 %617  ;;  %v616_v22 = vpop.permute.xlu0 %615 }
  0xcd   :  { %957 = vst.msk [vmem:[#allocation2 + $0x168] sm:$0xff] %vm911_vm1, %v618_v21  ;;  %956 = vst.msk [vmem:[#allocation2 + $0x160] sm:$0xff] %vm911_vm1, %v616_v22  ;;  %v1824_v21 = vld [vmem:[%s14920_s0 + $0x90] sm:$0xff] }
  0xce   :  { %1298 = vrot.lane.b32.xlu1 %v14964_v24, %s9988_s19  ;;  %1296 = vrot.lane.b32.xlu0 %v14965_v25, %s9988_s19 }
  0xd0   :  { %v622_v26 = vpop.permute.xlu1 %621  ;;  %v620_v27 = vpop.permute.xlu0 %619 }
  0xd1   :  { %959 = vst.msk [vmem:[#allocation2 + $0x178] sm:$0xff] %vm911_vm1, %v622_v26  ;;  %958 = vst.msk [vmem:[#allocation2 + $0x170] sm:$0xff] %vm911_vm1, %v620_v27 }
  0xd2   :  { %2067 = vrot.lane.b32.xlu1 %v14966_v29, %s9989_s22  ;;  %2065 = vrot.lane.b32.xlu0 %v14964_v24, %s9989_s22  ;;  %v2593_v24 = vld [vmem:[%s14920_s0 + $0x98] sm:$0xff] }
  0xd4   :  { %v626_v30 = vpop.permute.xlu1 %625  ;;  %v624_v31 = vpop.permute.xlu0 %623 }
  0xd5   :  { %961 = vst.msk [vmem:[#allocation2 + $0x188] sm:$0xff] %vm911_vm1, %v626_v30  ;;  %960 = vst.msk [vmem:[#allocation2 + $0x180] sm:$0xff] %vm911_vm1, %v624_v31 }
  0xd6   :  { %2836 = vrot.lane.b32.xlu1 %v14967_v32, %s9990_s23  ;;  %2834 = vrot.lane.b32.xlu0 %v14966_v29, %s9990_s23 }
  0xd8   :  { %v630_v33 = vpop.permute.xlu1 %629  ;;  %v628_v34 = vpop.permute.xlu0 %627 }
  0xd9   :  { %963 = vst.msk [vmem:[#allocation2 + $0x198] sm:$0xff] %vm911_vm1, %v630_v33  ;;  %962 = vst.msk [vmem:[#allocation2 + $0x190] sm:$0xff] %vm911_vm1, %v628_v34 }
  0xda   :  { %1302 = vrot.lane.b32.xlu1 %v14967_v32, %s9988_s19  ;;  %1300 = vrot.lane.b32.xlu0 %v14966_v29, %s9988_s19  ;;  %v1826_v29 = vld [vmem:[%s14920_s0 + $0xa0] sm:$0xff] }
  0xdc   :  { %v634_v35 = vpop.permute.xlu1 %633  ;;  %v632_v36 = vpop.permute.xlu0 %631 }
  0xdd   :  { %965 = vst.msk [vmem:[#allocation2 + $0x1a8] sm:$0xff] %vm911_vm1, %v634_v35  ;;  %964 = vst.msk [vmem:[#allocation2 + $0x1a0] sm:$0xff] %vm911_vm1, %v632_v36 }
  0xde   :  { %2071 = vrot.lane.b32.xlu1 %v14968_v37, %s9989_s22  ;;  %2069 = vrot.lane.b32.xlu0 %v14967_v32, %s9989_s22  ;;  %v2595_v32 = vld [vmem:[%s14920_s0 + $0xa8] sm:$0xff] }
  0xe0   :  { %v638_v38 = vpop.permute.xlu1 %637  ;;  %v636_v39 = vpop.permute.xlu0 %635 }
  0xe1   :  { %967 = vst.msk [vmem:[#allocation2 + $0x1b8] sm:$0xff] %vm911_vm1, %v638_v38  ;;  %966 = vst.msk [vmem:[#allocation2 + $0x1b0] sm:$0xff] %vm911_vm1, %v636_v39 }
  0xe2   :  { %2840 = vrot.lane.b32.xlu1 %v14969_v40, %s9990_s23  ;;  %2838 = vrot.lane.b32.xlu0 %v14968_v37, %s9990_s23 }
  0xe4   :  { %v642_v41 = vpop.permute.xlu1 %641  ;;  %v640_v42 = vpop.permute.xlu0 %639 }
  0xe5   :  { %969 = vst.msk [vmem:[#allocation2 + $0x1c8] sm:$0xff] %vm911_vm1, %v642_v41  ;;  %968 = vst.msk [vmem:[#allocation2 + $0x1c0] sm:$0xff] %vm911_vm1, %v640_v42 }
  0xe6   :  { %1306 = vrot.lane.b32.xlu1 %v14969_v40, %s9988_s19  ;;  %1304 = vrot.lane.b32.xlu0 %v14968_v37, %s9988_s19  ;;  %v1828_v37 = vld [vmem:[%s14920_s0 + $0xb0] sm:$0xff] }
  0xe8   :  { %v646_v43 = vpop.permute.xlu1 %645  ;;  %v644_v44 = vpop.permute.xlu0 %643 }
  0xe9   :  { %971 = vst.msk [vmem:[#allocation2 + $0x1d8] sm:$0xff] %vm911_vm1, %v646_v43  ;;  %970 = vst.msk [vmem:[#allocation2 + $0x1d0] sm:$0xff] %vm911_vm1, %v644_v44 }
  0xea   :  { %2075 = vrot.lane.b32.xlu1 %v14970_v45, %s9989_s22  ;;  %2073 = vrot.lane.b32.xlu0 %v14969_v40, %s9989_s22  ;;  %v2597_v40 = vld [vmem:[%s14920_s0 + $0xb8] sm:$0xff] }
  0xec   :  { %v650_v46 = vpop.permute.xlu1 %649  ;;  %v648_v8 = vpop.permute.xlu0 %647 }
  0xed   :  { %973 = vst.msk [vmem:[#allocation2 + $0x1e8] sm:$0xff] %vm911_vm1, %v650_v46  ;;  %972 = vst.msk [vmem:[#allocation2 + $0x1e0] sm:$0xff] %vm911_vm1, %v648_v8 }
  0xee   :  { %2844 = vrot.lane.b32.xlu1 %v14971_v11, %s9990_s23  ;;  %2842 = vrot.lane.b32.xlu0 %v14970_v45, %s9990_s23 }
  0xf0   :  { %v654_v47 = vpop.permute.xlu1 %653  ;;  %v652_v6 = vpop.permute.xlu0 %651 }
  0xf1   :  { %975 = vst.msk [vmem:[#allocation2 + $0x1f8] sm:$0xff] %vm911_vm1, %v654_v47  ;;  %974 = vst.msk [vmem:[#allocation2 + $0x1f0] sm:$0xff] %vm911_vm1, %v652_v6 }
  0xf2   :  { %1310 = vrot.lane.b32.xlu1 %v14971_v11, %s9988_s19  ;;  %1308 = vrot.lane.b32.xlu0 %v14970_v45, %s9988_s19  ;;  %v1830_v45 = vld [vmem:[%s14920_s0 + $0xc0] sm:$0xff] }
  0xf4   :  { %v658_v9 = vpop.permute.xlu1 %657  ;;  %v656_v48 = vpop.permute.xlu0 %655 }
  0xf5   :  { %977 = vst.msk [vmem:[#allocation2 + $0x208] sm:$0xff] %vm911_vm1, %v658_v9  ;;  %976 = vst.msk [vmem:[#allocation2 + $0x200] sm:$0xff] %vm911_vm1, %v656_v48 }
  0xf6   :  { %2079 = vrot.lane.b32.xlu1 %v14972_v49, %s9989_s22  ;;  %2077 = vrot.lane.b32.xlu0 %v14971_v11, %s9989_s22  ;;  %v2599_v11 = vld [vmem:[%s14920_s0 + $0xc8] sm:$0xff] }
  0xf8   :  { %v662_v50 = vpop.permute.xlu1 %661  ;;  %v660_v4 = vpop.permute.xlu0 %659 }
  0xf9   :  { %979 = vst.msk [vmem:[#allocation2 + $0x218] sm:$0xff] %vm911_vm1, %v662_v50  ;;  %978 = vst.msk [vmem:[#allocation2 + $0x210] sm:$0xff] %vm911_vm1, %v660_v4  ;;  %v1832_v4 = vld [vmem:[%s14920_s0 + $0xd0] sm:$0xff] }
  0xfa   :  { %2848 = vrot.lane.b32.xlu1 %v14973_v51, %s9990_s23  ;;  %2846 = vrot.lane.b32.xlu0 %v14972_v49, %s9990_s23 }
  0xfc   :  { %v666_v52 = vpop.permute.xlu1 %665  ;;  %v664_v53 = vpop.permute.xlu0 %663 }
  0xfd   :  { %981 = vst.msk [vmem:[#allocation2 + $0x228] sm:$0xff] %vm911_vm1, %v666_v52  ;;  %980 = vst.msk [vmem:[#allocation2 + $0x220] sm:$0xff] %vm911_vm1, %v664_v53 }
  0xfe   :  { %1314 = vrot.lane.b32.xlu1 %v1049_v2, %s9988_s19  ;;  %1312 = vrot.lane.b32.xlu0 %v1048_v5, %s9988_s19  ;;  %v2601_v5 = vld [vmem:[%s14920_s0 + $0xd8] sm:$0xff] }
 0x100   :  { %v670_v3 = vpop.permute.xlu1 %669  ;;  %v668_v54 = vpop.permute.xlu0 %667 }
 0x101   :  { %983 = vst.msk [vmem:[#allocation2 + $0x238] sm:$0xff] %vm911_vm1, %v670_v3  ;;  %982 = vst.msk [vmem:[#allocation2 + $0x230] sm:$0xff] %vm911_vm1, %v668_v54 }
 0x102   :  { %2083 = vrot.lane.b32.xlu1 %v1818_v0, %s9989_s22  ;;  %2081 = vrot.lane.b32.xlu0 %v1049_v2, %s9989_s22 }
 0x104   :  { %v674_v56 = vpop.permute.xlu1 %673  ;;  %v672_v57 = vpop.permute.xlu0 %671 }
 0x105   :  { %985 = vst.msk [vmem:[#allocation2 + $0x248] sm:$0xff] %vm911_vm1, %v674_v56  ;;  %984 = vst.msk [vmem:[#allocation2 + $0x240] sm:$0xff] %vm911_vm1, %v672_v57  ;;  %v1834_v56 = vld [vmem:[%s14920_s0 + $0xe0] sm:$0xff] }
 0x106   :  { %2852 = vrot.lane.b32.xlu1 %v2587_v55, %s9990_s23  ;;  %2850 = vrot.lane.b32.xlu0 %v1818_v0, %s9990_s23 }
 0x108   :  { %v678_v7 = vpop.permute.xlu1 %677  ;;  %v676_v59 = vpop.permute.xlu0 %675 }
 0x109   :  { %987 = vst.msk [vmem:[#allocation2 + $0x258] sm:$0xff] %vm911_vm1, %v678_v7  ;;  %986 = vst.msk [vmem:[#allocation2 + $0x250] sm:$0xff] %vm911_vm1, %v676_v59  ;;  %v2603_v59 = vld [vmem:[%s14920_s0 + $0xe8] sm:$0xff] }
 0x10a   :  { %1318 = vrot.lane.b32.xlu1 %v2587_v55, %s9988_s19  ;;  %1316 = vrot.lane.b32.xlu0 %v1818_v0, %s9988_s19 }
 0x10c   :  { %v682_v61 = vpop.permute.xlu1 %681  ;;  %v680_v62 = vpop.permute.xlu0 %679 }
 0x10d   :  { %989 = vst.msk [vmem:[#allocation2 + $0x268] sm:$0xff] %vm911_vm1, %v682_v61  ;;  %988 = vst.msk [vmem:[#allocation2 + $0x260] sm:$0xff] %vm911_vm1, %v680_v62 }
 0x10e   :  { %2087 = vrot.lane.b32.xlu1 %v1820_v60, %s9989_s22  ;;  %2085 = vrot.lane.b32.xlu0 %v2587_v55, %s9989_s22 }
 0x110   :  { %v686_v1 = vpop.permute.xlu1 %685  ;;  %v684_v10 = vpop.permute.xlu0 %683 }
 0x111   :  { %991 = vst.msk [vmem:[#allocation2 + $0x278] sm:$0xff] %vm911_vm1, %v686_v1  ;;  %990 = vst.msk [vmem:[#allocation2 + $0x270] sm:$0xff] %vm911_vm1, %v684_v10 }
 0x112   :  { %2856 = vrot.lane.b32.xlu1 %v2589_v63, %s9990_s23  ;;  %2854 = vrot.lane.b32.xlu0 %v1820_v60, %s9990_s23 }
 0x114   :  { %v690_v58 = vpop.permute.xlu1 %689  ;;  %v688_v12 = vpop.permute.xlu0 %687 }
 0x115   :  { %993 = vst.msk [vmem:[#allocation2 + $0x288] sm:$0xff] %vm911_vm1, %v690_v58  ;;  %992 = vst.msk [vmem:[#allocation2 + $0x280] sm:$0xff] %vm911_vm1, %v688_v12  ;;  %v1836_v58 = vld [vmem:[%s14920_s0 + $0xf0] sm:$0xff] }
 0x116   :  { %1322 = vrot.lane.b32.xlu1 %v2589_v63, %s9988_s19  ;;  %1320 = vrot.lane.b32.xlu0 %v1820_v60, %s9988_s19 }
 0x118   :  { %v694_v14 = vpop.permute.xlu1 %693  ;;  %v692_v15 = vpop.permute.xlu0 %691 }
 0x119   :  { %995 = vst.msk [vmem:[#allocation2 + $0x298] sm:$0xff] %vm911_vm1, %v694_v14  ;;  %994 = vst.msk [vmem:[#allocation2 + $0x290] sm:$0xff] %vm911_vm1, %v692_v15  ;;  %v2605_v14 = vld [vmem:[%s14920_s0 + $0xf8] sm:$0xff] }
 0x11a   :  { %2091 = vrot.lane.b32.xlu1 %v1822_v13, %s9989_s22  ;;  %2089 = vrot.lane.b32.xlu0 %v2589_v63, %s9989_s22 }
 0x11c   :  { %v698_v17 = vpop.permute.xlu1 %697  ;;  %v696_v18 = vpop.permute.xlu0 %695 }
 0x11d   :  { %997 = vst.msk [vmem:[#allocation2 + $0x2a8] sm:$0xff] %vm911_vm1, %v698_v17  ;;  %996 = vst.msk [vmem:[#allocation2 + $0x2a0] sm:$0xff] %vm911_vm1, %v696_v18 }
 0x11e   :  { %2860 = vrot.lane.b32.xlu1 %v2591_v16, %s9990_s23  ;;  %2858 = vrot.lane.b32.xlu0 %v1822_v13, %s9990_s23 }
 0x120   :  { %v702_v19 = vpop.permute.xlu1 %701  ;;  %v700_v20 = vpop.permute.xlu0 %699 }
 0x121   :  { %999 = vst.msk [vmem:[#allocation2 + $0x2b8] sm:$0xff] %vm911_vm1, %v702_v19  ;;  %998 = vst.msk [vmem:[#allocation2 + $0x2b0] sm:$0xff] %vm911_vm1, %v700_v20 }
 0x122   :  { %1326 = vrot.lane.b32.xlu1 %v2591_v16, %s9988_s19  ;;  %1324 = vrot.lane.b32.xlu0 %v1822_v13, %s9988_s19 }
 0x124   :  { %v706_v22 = vpop.permute.xlu1 %705  ;;  %v704_v23 = vpop.permute.xlu0 %703 }
 0x125   :  { %1001 = vst.msk [vmem:[#allocation2 + $0x2c8] sm:$0xff] %vm911_vm1, %v706_v22  ;;  %1000 = vst.msk [vmem:[#allocation2 + $0x2c0] sm:$0xff] %vm911_vm1, %v704_v23 }
 0x126   :  { %2095 = vrot.lane.b32.xlu1 %v1824_v21, %s9989_s22  ;;  %2093 = vrot.lane.b32.xlu0 %v2591_v16, %s9989_s22 }
 0x128   :  { %v710_v25 = vpop.permute.xlu1 %709  ;;  %v708_v26 = vpop.permute.xlu0 %707 }
 0x129   :  { %1003 = vst.msk [vmem:[#allocation2 + $0x2d8] sm:$0xff] %vm911_vm1, %v710_v25  ;;  %1002 = vst.msk [vmem:[#allocation2 + $0x2d0] sm:$0xff] %vm911_vm1, %v708_v26 }
 0x12a   :  { %2864 = vrot.lane.b32.xlu1 %v2593_v24, %s9990_s23  ;;  %2862 = vrot.lane.b32.xlu0 %v1824_v21, %s9990_s23 }
 0x12c   :  { %v714_v27 = vpop.permute.xlu1 %713  ;;  %v712_v28 = vpop.permute.xlu0 %711 }
 0x12d   :  { %1005 = vst.msk [vmem:[#allocation2 + $0x2e8] sm:$0xff] %vm911_vm1, %v714_v27  ;;  %1004 = vst.msk [vmem:[#allocation2 + $0x2e0] sm:$0xff] %vm911_vm1, %v712_v28 }
 0x12e   :  { %1330 = vrot.lane.b32.xlu1 %v2593_v24, %s9988_s19  ;;  %1328 = vrot.lane.b32.xlu0 %v1824_v21, %s9988_s19  ;;  %v1838_v21 = vld [vmem:[%s14920_s0 + $0x100] sm:$0xff] }
 0x130   :  { %v718_v30 = vpop.permute.xlu1 %717  ;;  %v716_v31 = vpop.permute.xlu0 %715 }
 0x131   :  { %1007 = vst.msk [vmem:[#allocation2 + $0x2f8] sm:$0xff] %vm911_vm1, %v718_v30  ;;  %1006 = vst.msk [vmem:[#allocation2 + $0x2f0] sm:$0xff] %vm911_vm1, %v716_v31  ;;  %v1840_v31 = vld [vmem:[%s14920_s0 + $0x110] sm:$0xff] }
 0x132   :  { %2099 = vrot.lane.b32.xlu1 %v1826_v29, %s9989_s22  ;;  %2097 = vrot.lane.b32.xlu0 %v2593_v24, %s9989_s22  ;;  %v2607_v24 = vld [vmem:[%s14920_s0 + $0x108] sm:$0xff] }
 0x134   :  { %v722_v33 = vpop.permute.xlu1 %721  ;;  %v720_v34 = vpop.permute.xlu0 %719 }
 0x135   :  { %1009 = vst.msk [vmem:[#allocation2 + $0x308] sm:$0xff] %vm911_vm1, %v722_v33  ;;  %1008 = vst.msk [vmem:[#allocation2 + $0x300] sm:$0xff] %vm911_vm1, %v720_v34  ;;  %v2609_v34 = vld [vmem:[%s14920_s0 + $0x118] sm:$0xff] }
 0x136   :  { %2868 = vrot.lane.b32.xlu1 %v2595_v32, %s9990_s23  ;;  %2866 = vrot.lane.b32.xlu0 %v1826_v29, %s9990_s23 }
 0x138   :  { %v726_v35 = vpop.permute.xlu1 %725  ;;  %v724_v36 = vpop.permute.xlu0 %723 }
 0x139   :  { %1011 = vst.msk [vmem:[#allocation2 + $0x318] sm:$0xff] %vm911_vm1, %v726_v35  ;;  %1010 = vst.msk [vmem:[#allocation2 + $0x310] sm:$0xff] %vm911_vm1, %v724_v36 }
 0x13a   :  { %1334 = vrot.lane.b32.xlu1 %v2595_v32, %s9988_s19  ;;  %1332 = vrot.lane.b32.xlu0 %v1826_v29, %s9988_s19 }
 0x13c   :  { %v730_v38 = vpop.permute.xlu1 %729  ;;  %v728_v39 = vpop.permute.xlu0 %727 }
 0x13d   :  { %1013 = vst.msk [vmem:[#allocation2 + $0x328] sm:$0xff] %vm911_vm1, %v730_v38  ;;  %1012 = vst.msk [vmem:[#allocation2 + $0x320] sm:$0xff] %vm911_vm1, %v728_v39 }
 0x13e   :  { %2103 = vrot.lane.b32.xlu1 %v1828_v37, %s9989_s22  ;;  %2101 = vrot.lane.b32.xlu0 %v2595_v32, %s9989_s22 }
 0x140   :  { %v1299_v41 = vpop.permute.xlu1 %1298  ;;  %v1297_v42 = vpop.permute.xlu0 %1296 }
 0x141   :  { %1682 = vst.msk [vmem:[#allocation2 + $0x8] sm:$0xff] %vm1680_vm2, %v1299_v41  ;;  %1681 = vst.msk [vmem:[#allocation2] sm:$0xff] %vm1680_vm2, %v1297_v42  ;;  %v1842_v41 = vld [vmem:[%s14920_s0 + $0x120] sm:$0xff] }
 0x142   :  { %2872 = vrot.lane.b32.xlu1 %v2597_v40, %s9990_s23  ;;  %2870 = vrot.lane.b32.xlu0 %v1828_v37, %s9990_s23 }
 0x144   :  { %v2068_v43 = vpop.permute.xlu1 %2067  ;;  %v2066_v44 = vpop.permute.xlu0 %2065 }
 0x145   :  { %2451 = vst.msk [vmem:[#allocation2 + $0x8] sm:$0xff] %vm2449_vm3, %v2068_v43  ;;  %2450 = vst.msk [vmem:[#allocation2] sm:$0xff] %vm2449_vm3, %v2066_v44  ;;  %v2611_v44 = vld [vmem:[%s14920_s0 + $0x128] sm:$0xff] }
 0x146   :  { %1338 = vrot.lane.b32.xlu1 %v2597_v40, %s9988_s19  ;;  %1336 = vrot.lane.b32.xlu0 %v1828_v37, %s9988_s19 }
 0x148   :  { %v2837_v46 = vpop.permute.xlu1 %2836  ;;  %v2835_v8 = vpop.permute.xlu0 %2834 }
 0x149   :  { %3220 = vst.msk [vmem:[#allocation2 + $0x8] sm:$0xff] %vm3218_vm4, %v2837_v46  ;;  %3219 = vst.msk [vmem:[#allocation2] sm:$0xff] %vm3218_vm4, %v2835_v8 }
 0x14a   :  { %2107 = vrot.lane.b32.xlu1 %v1830_v45, %s9989_s22  ;;  %2105 = vrot.lane.b32.xlu0 %v2597_v40, %s9989_s22 }
 0x14c   :  { %v1303_v47 = vpop.permute.xlu1 %1302  ;;  %v1301_v6 = vpop.permute.xlu0 %1300 }
 0x14d   :  { %1684 = vst.msk [vmem:[#allocation2 + $0x18] sm:$0xff] %vm1680_vm2, %v1303_v47  ;;  %1683 = vst.msk [vmem:[#allocation2 + $0x10] sm:$0xff] %vm1680_vm2, %v1301_v6 }
 0x14e   :  { %2876 = vrot.lane.b32.xlu1 %v2599_v11, %s9990_s23  ;;  %2874 = vrot.lane.b32.xlu0 %v1830_v45, %s9990_s23 }
 0x150   :  { %v2072_v9 = vpop.permute.xlu1 %2071  ;;  %v2070_v48 = vpop.permute.xlu0 %2069  ;;  %v3347_v49 = vld [vmem:[#allocation2] sm:$0xff]  ;;  %v3348_v50 = vld [vmem:[#allocation2 + $0x8] sm:$0xff] }
 0x151   :  { %2453 = vst.msk [vmem:[#allocation2 + $0x18] sm:$0xff] %vm2449_vm3, %v2072_v9  ;;  %2452 = vst.msk [vmem:[#allocation2 + $0x10] sm:$0xff] %vm2449_vm3, %v2070_v48  ;;  %9630 = vmatprep.mubr.msk.f32.mxu0 %vm3480_vm5, %v3347_v49  ;;  %v1844_v9 = vld [vmem:[%s14920_s0 + $0x130] sm:$0xff] }
 0x152   :  { %1342 = vrot.lane.b32.xlu1 %v2599_v11, %s9988_s19  ;;  %1340 = vrot.lane.b32.xlu0 %v1830_v45, %s9988_s19 }
 0x153   :  { %9631 = vmatmul.mubr.msk.f32.vlgmr.msra.gmra.mxu0 %vm3480_vm5, %v3348_v50  ;;  %v2613_v50 = vld [vmem:[%s14920_s0 + $0x138] sm:$0xff] }
 0x154   :  { %v2841_v51 = vpop.permute.xlu1 %2840  ;;  %v2839_v2 = vpop.permute.xlu0 %2838 }
 0x155   :  { %3222 = vst.msk [vmem:[#allocation2 + $0x18] sm:$0xff] %vm3218_vm4, %v2841_v51  ;;  %3221 = vst.msk [vmem:[#allocation2 + $0x10] sm:$0xff] %vm3218_vm4, %v2839_v2 }
 0x156   :  { %2111 = vrot.lane.b32.xlu1 %v1832_v4, %s9989_s22  ;;  %2109 = vrot.lane.b32.xlu0 %v2599_v11, %s9989_s22 }
 0x158   :  { %v1307_v52 = vpop.permute.xlu1 %1306  ;;  %v1305_v53 = vpop.permute.xlu0 %1304 }
 0x159   :  { %1686 = vst.msk [vmem:[#allocation2 + $0x28] sm:$0xff] %vm1680_vm2, %v1307_v52  ;;  %1685 = vst.msk [vmem:[#allocation2 + $0x20] sm:$0xff] %vm1680_vm2, %v1305_v53 }
 0x15a   :  { %2880 = vrot.lane.b32.xlu1 %v2601_v5, %s9990_s23  ;;  %2878 = vrot.lane.b32.xlu0 %v1832_v4, %s9990_s23 }
 0x15c   :  { %v2076_v0 = vpop.permute.xlu1 %2075  ;;  %v2074_v3 = vpop.permute.xlu0 %2073  ;;  %v3349_v54 = vld [vmem:[#allocation2 + $0x10] sm:$0xff]  ;;  %v3350_v55 = vld [vmem:[#allocation2 + $0x18] sm:$0xff] }
 0x15d   :  { %2455 = vst.msk [vmem:[#allocation2 + $0x28] sm:$0xff] %vm2449_vm3, %v2076_v0  ;;  %2454 = vst.msk [vmem:[#allocation2 + $0x20] sm:$0xff] %vm2449_vm3, %v2074_v3  ;;  %9633 = vmatprep.mubr.msk.f32.mxu0 %vm3480_vm5, %v3349_v54  ;;  %v1846_v0 = vld [vmem:[%s14920_s0 + $0x140] sm:$0xff] }
 0x15e   :  { %1346 = vrot.lane.b32.xlu1 %v2601_v5, %s9988_s19  ;;  %1344 = vrot.lane.b32.xlu0 %v1832_v4, %s9988_s19 }
 0x15f   :  { %9634 = vmatmul.mubr.msk.f32.gmra.mxu0 %vm3480_vm5, %v3350_v55  ;;  %v2615_v55 = vld [vmem:[%s14920_s0 + $0x148] sm:$0xff] }
 0x160   :  { %v2845_v57 = vpop.permute.xlu1 %2844  ;;  %v2843_v7 = vpop.permute.xlu0 %2842 }
 0x161   :  { %3224 = vst.msk [vmem:[#allocation2 + $0x28] sm:$0xff] %vm3218_vm4, %v2845_v57  ;;  %3223 = vst.msk [vmem:[#allocation2 + $0x20] sm:$0xff] %vm3218_vm4, %v2843_v7 }
 0x162   :  { %2115 = vrot.lane.b32.xlu1 %v1834_v56, %s9989_s22  ;;  %2113 = vrot.lane.b32.xlu0 %v2601_v5, %s9989_s22 }
 0x164   :  { %v1311_v60 = vpop.permute.xlu1 %1310  ;;  %v1309_v61 = vpop.permute.xlu0 %1308 }
 0x165   :  { %1688 = vst.msk [vmem:[#allocation2 + $0x38] sm:$0xff] %vm1680_vm2, %v1311_v60  ;;  %1687 = vst.msk [vmem:[#allocation2 + $0x30] sm:$0xff] %vm1680_vm2, %v1309_v61 }
 0x166   :  { %2884 = vrot.lane.b32.xlu1 %v2603_v59, %s9990_s23  ;;  %2882 = vrot.lane.b32.xlu0 %v1834_v56, %s9990_s23 }
 0x168   :  { %v2080_v62 = vpop.permute.xlu1 %2079  ;;  %v2078_v63 = vpop.permute.xlu0 %2077  ;;  %v3351_v1 = vld [vmem:[#allocation2 + $0x20] sm:$0xff]  ;;  %v3352_v10 = vld [vmem:[#allocation2 + $0x28] sm:$0xff] }
 0x169   :  { %2457 = vst.msk [vmem:[#allocation2 + $0x38] sm:$0xff] %vm2449_vm3, %v2080_v62  ;;  %2456 = vst.msk [vmem:[#allocation2 + $0x30] sm:$0xff] %vm2449_vm3, %v2078_v63  ;;  %9636 = vmatprep.mubr.msk.f32.mxu0 %vm3480_vm5, %v3351_v1  ;;  %v1848_v62 = vld [vmem:[%s14920_s0 + $0x150] sm:$0xff] }
 0x16a   :  { %1350 = vrot.lane.b32.xlu1 %v2603_v59, %s9988_s19  ;;  %1348 = vrot.lane.b32.xlu0 %v1834_v56, %s9988_s19 }
 0x16b   :  { %9637 = vmatmul.mubr.msk.f32.gmra.mxu0 %vm3480_vm5, %v3352_v10  ;;  %v2617_v10 = vld [vmem:[%s14920_s0 + $0x158] sm:$0xff] }
 0x16c   :  { %v2849_v12 = vpop.permute.xlu1 %2848  ;;  %v2847_v13 = vpop.permute.xlu0 %2846 }
 0x16d   :  { %3226 = vst.msk [vmem:[#allocation2 + $0x38] sm:$0xff] %vm3218_vm4, %v2849_v12  ;;  %3225 = vst.msk [vmem:[#allocation2 + $0x30] sm:$0xff] %vm3218_vm4, %v2847_v13 }
 0x16e   :  { %2119 = vrot.lane.b32.xlu1 %v1836_v58, %s9989_s22  ;;  %2117 = vrot.lane.b32.xlu0 %v2603_v59, %s9989_s22 }
 0x170   :  { %v1315_v15 = vpop.permute.xlu1 %1314  ;;  %v1313_v16 = vpop.permute.xlu0 %1312 }
 0x171   :  { %1690 = vst.msk [vmem:[#allocation2 + $0x48] sm:$0xff] %vm1680_vm2, %v1315_v15  ;;  %1689 = vst.msk [vmem:[#allocation2 + $0x40] sm:$0xff] %vm1680_vm2, %v1313_v16 }
 0x172   :  { %2888 = vrot.lane.b32.xlu1 %v2605_v14, %s9990_s23  ;;  %2886 = vrot.lane.b32.xlu0 %v1836_v58, %s9990_s23 }
 0x174   :  { %v2084_v17 = vpop.permute.xlu1 %2083  ;;  %v2082_v18 = vpop.permute.xlu0 %2081  ;;  %v3353_v19 = vld [vmem:[#allocation2 + $0x30] sm:$0xff]  ;;  %v3354_v20 = vld [vmem:[#allocation2 + $0x38] sm:$0xff] }
 0x175   :  { %2459 = vst.msk [vmem:[#allocation2 + $0x48] sm:$0xff] %vm2449_vm3, %v2084_v17  ;;  %2458 = vst.msk [vmem:[#allocation2 + $0x40] sm:$0xff] %vm2449_vm3, %v2082_v18  ;;  %9639 = vmatprep.mubr.msk.f32.mxu0 %vm3480_vm5, %v3353_v19  ;;  %v1850_v17 = vld [vmem:[%s14920_s0 + $0x160] sm:$0xff] }
 0x176   :  { %1354 = vrot.lane.b32.xlu1 %v2605_v14, %s9988_s19  ;;  %1352 = vrot.lane.b32.xlu0 %v1836_v58, %s9988_s19 }
 0x177   :  { %9640 = vmatmul.mubr.msk.f32.gmra.mxu0 %vm3480_vm5, %v3354_v20  ;;  %v2619_v20 = vld [vmem:[%s14920_s0 + $0x168] sm:$0xff] }
 0x178   :  { %v2853_v22 = vpop.permute.xlu1 %2852  ;;  %v2851_v23 = vpop.permute.xlu0 %2850 }
 0x179   :  { %3228 = vst.msk [vmem:[#allocation2 + $0x48] sm:$0xff] %vm3218_vm4, %v2853_v22  ;;  %3227 = vst.msk [vmem:[#allocation2 + $0x40] sm:$0xff] %vm3218_vm4, %v2851_v23 }
 0x17a   :  { %2123 = vrot.lane.b32.xlu1 %v1838_v21, %s9989_s22  ;;  %2121 = vrot.lane.b32.xlu0 %v2605_v14, %s9989_s22 }
 0x17c   :  { %v1319_v25 = vpop.permute.xlu1 %1318  ;;  %v1317_v26 = vpop.permute.xlu0 %1316 }
 0x17d   :  { %1692 = vst.msk [vmem:[#allocation2 + $0x58] sm:$0xff] %vm1680_vm2, %v1319_v25  ;;  %1691 = vst.msk [vmem:[#allocation2 + $0x50] sm:$0xff] %vm1680_vm2, %v1317_v26 }
 0x17e   :  { %2892 = vrot.lane.b32.xlu1 %v2607_v24, %s9990_s23  ;;  %2890 = vrot.lane.b32.xlu0 %v1838_v21, %s9990_s23 }
 0x180   :  { %v2088_v27 = vpop.permute.xlu1 %2087  ;;  %v2086_v28 = vpop.permute.xlu0 %2085  ;;  %v3355_v29 = vld [vmem:[#allocation2 + $0x40] sm:$0xff]  ;;  %v3356_v30 = vld [vmem:[#allocation2 + $0x48] sm:$0xff] }
 0x181   :  { %2461 = vst.msk [vmem:[#allocation2 + $0x58] sm:$0xff] %vm2449_vm3, %v2088_v27  ;;  %2460 = vst.msk [vmem:[#allocation2 + $0x50] sm:$0xff] %vm2449_vm3, %v2086_v28  ;;  %9642 = vmatprep.mubr.msk.f32.mxu0 %vm3480_vm5, %v3355_v29  ;;  %v1852_v27 = vld [vmem:[%s14920_s0 + $0x170] sm:$0xff] }
 0x182   :  { %1358 = vrot.lane.b32.xlu1 %v2607_v24, %s9988_s19  ;;  %1356 = vrot.lane.b32.xlu0 %v1838_v21, %s9988_s19 }
 0x183   :  { %9643 = vmatmul.mubr.msk.f32.gmra.mxu0 %vm3480_vm5, %v3356_v30  ;;  %v2621_v30 = vld [vmem:[%s14920_s0 + $0x178] sm:$0xff] }
 0x184   :  { %v2857_v32 = vpop.permute.xlu1 %2856  ;;  %v2855_v33 = vpop.permute.xlu0 %2854 }
 0x185   :  { %3230 = vst.msk [vmem:[#allocation2 + $0x58] sm:$0xff] %vm3218_vm4, %v2857_v32  ;;  %3229 = vst.msk [vmem:[#allocation2 + $0x50] sm:$0xff] %vm3218_vm4, %v2855_v33 }
 0x186   :  { %2127 = vrot.lane.b32.xlu1 %v1840_v31, %s9989_s22  ;;  %2125 = vrot.lane.b32.xlu0 %v2607_v24, %s9989_s22 }
 0x188   :  { %v1323_v35 = vpop.permute.xlu1 %1322  ;;  %v1321_v36 = vpop.permute.xlu0 %1320 }
 0x189   :  { %1694 = vst.msk [vmem:[#allocation2 + $0x68] sm:$0xff] %vm1680_vm2, %v1323_v35  ;;  %1693 = vst.msk [vmem:[#allocation2 + $0x60] sm:$0xff] %vm1680_vm2, %v1321_v36 }
 0x18a   :  { %2896 = vrot.lane.b32.xlu1 %v2609_v34, %s9990_s23  ;;  %2894 = vrot.lane.b32.xlu0 %v1840_v31, %s9990_s23 }
 0x18c   :  { %v2092_v37 = vpop.permute.xlu1 %2091  ;;  %v2090_v38 = vpop.permute.xlu0 %2089  ;;  %v3357_v39 = vld [vmem:[#allocation2 + $0x50] sm:$0xff]  ;;  %v3358_v40 = vld [vmem:[#allocation2 + $0x58] sm:$0xff] }
 0x18d   :  { %2463 = vst.msk [vmem:[#allocation2 + $0x68] sm:$0xff] %vm2449_vm3, %v2092_v37  ;;  %2462 = vst.msk [vmem:[#allocation2 + $0x60] sm:$0xff] %vm2449_vm3, %v2090_v38  ;;  %9645 = vmatprep.mubr.msk.f32.mxu0 %vm3480_vm5, %v3357_v39  ;;  %v1854_v37 = vld [vmem:[%s14920_s0 + $0x180] sm:$0xff] }
 0x18e   :  { %1362 = vrot.lane.b32.xlu1 %v2609_v34, %s9988_s19  ;;  %1360 = vrot.lane.b32.xlu0 %v1840_v31, %s9988_s19 }
 0x18f   :  { %9646 = vmatmul.mubr.msk.f32.gmra.mxu0 %vm3480_vm5, %v3358_v40  ;;  %v2623_v40 = vld [vmem:[%s14920_s0 + $0x188] sm:$0xff] }
 0x190   :  { %v2861_v42 = vpop.permute.xlu1 %2860  ;;  %v2859_v43 = vpop.permute.xlu0 %2858 }
 0x191   :  { %3232 = vst.msk [vmem:[#allocation2 + $0x68] sm:$0xff] %vm3218_vm4, %v2861_v42  ;;  %3231 = vst.msk [vmem:[#allocation2 + $0x60] sm:$0xff] %vm3218_vm4, %v2859_v43 }
 0x192   :  { %2131 = vrot.lane.b32.xlu1 %v1842_v41, %s9989_s22  ;;  %2129 = vrot.lane.b32.xlu0 %v2609_v34, %s9989_s22 }
 0x194   :  { %v1327_v45 = vpop.permute.xlu1 %1326  ;;  %v1325_v46 = vpop.permute.xlu0 %1324 }
 0x195   :  { %1696 = vst.msk [vmem:[#allocation2 + $0x78] sm:$0xff] %vm1680_vm2, %v1327_v45  ;;  %1695 = vst.msk [vmem:[#allocation2 + $0x70] sm:$0xff] %vm1680_vm2, %v1325_v46 }
 0x196   :  { %2900 = vrot.lane.b32.xlu1 %v2611_v44, %s9990_s23  ;;  %2898 = vrot.lane.b32.xlu0 %v1842_v41, %s9990_s23 }
 0x198   :  { %v2096_v8 = vpop.permute.xlu1 %2095  ;;  %v2094_v11 = vpop.permute.xlu0 %2093  ;;  %v3359_v47 = vld [vmem:[#allocation2 + $0x60] sm:$0xff]  ;;  %v3360_v6 = vld [vmem:[#allocation2 + $0x68] sm:$0xff] }
 0x199   :  { %2465 = vst.msk [vmem:[#allocation2 + $0x78] sm:$0xff] %vm2449_vm3, %v2096_v8  ;;  %2464 = vst.msk [vmem:[#allocation2 + $0x70] sm:$0xff] %vm2449_vm3, %v2094_v11  ;;  %9648 = vmatprep.mubr.msk.f32.mxu0 %vm3480_vm5, %v3359_v47  ;;  %v1856_v8 = vld [vmem:[%s14920_s0 + $0x190] sm:$0xff] }
 0x19a   :  { %1366 = vrot.lane.b32.xlu1 %v2611_v44, %s9988_s19  ;;  %1364 = vrot.lane.b32.xlu0 %v1842_v41, %s9988_s19 }
 0x19b   :  { %9649 = vmatmul.mubr.msk.f32.gmra.mxu0 %vm3480_vm5, %v3360_v6  ;;  %v2625_v6 = vld [vmem:[%s14920_s0 + $0x198] sm:$0xff] }
 0x19c   :  { %v2865_v48 = vpop.permute.xlu1 %2864  ;;  %v2863_v49 = vpop.permute.xlu0 %2862 }
 0x19d   :  { %3234 = vst.msk [vmem:[#allocation2 + $0x78] sm:$0xff] %vm3218_vm4, %v2865_v48  ;;  %3233 = vst.msk [vmem:[#allocation2 + $0x70] sm:$0xff] %vm3218_vm4, %v2863_v49 }
 0x19e   :  { %2135 = vrot.lane.b32.xlu1 %v1844_v9, %s9989_s22  ;;  %2133 = vrot.lane.b32.xlu0 %v2611_v44, %s9989_s22 }
 0x1a0   :  { %v1331_v4 = vpop.permute.xlu1 %1330  ;;  %v1329_v51 = vpop.permute.xlu0 %1328 }
 0x1a1   :  { %1698 = vst.msk [vmem:[#allocation2 + $0x88] sm:$0xff] %vm1680_vm2, %v1331_v4  ;;  %1697 = vst.msk [vmem:[#allocation2 + $0x80] sm:$0xff] %vm1680_vm2, %v1329_v51 }
 0x1a2   :  { %2904 = vrot.lane.b32.xlu1 %v2613_v50, %s9990_s23  ;;  %2902 = vrot.lane.b32.xlu0 %v1844_v9, %s9990_s23 }
 0x1a4   :  { %v2100_v2 = vpop.permute.xlu1 %2099  ;;  %v2098_v5 = vpop.permute.xlu0 %2097  ;;  %v3361_v52 = vld [vmem:[#allocation2 + $0x70] sm:$0xff]  ;;  %v3362_v53 = vld [vmem:[#allocation2 + $0x78] sm:$0xff] }
 0x1a5   :  { %2467 = vst.msk [vmem:[#allocation2 + $0x88] sm:$0xff] %vm2449_vm3, %v2100_v2  ;;  %2466 = vst.msk [vmem:[#allocation2 + $0x80] sm:$0xff] %vm2449_vm3, %v2098_v5  ;;  %9651 = vmatprep.mubr.msk.f32.mxu0 %vm3480_vm5, %v3361_v52  ;;  %v1858_v2 = vld [vmem:[%s14920_s0 + $0x1a0] sm:$0xff] }
 0x1a6   :  { %1370 = vrot.lane.b32.xlu1 %v2613_v50, %s9988_s19  ;;  %1368 = vrot.lane.b32.xlu0 %v1844_v9, %s9988_s19 }
 0x1a7   :  { %9652 = vmatmul.mubr.msk.f32.gmra.mxu0 %vm3480_vm5, %v3362_v53  ;;  %v2627_v53 = vld [vmem:[%s14920_s0 + $0x1a8] sm:$0xff] }
 0x1a8   :  { %v2869_v3 = vpop.permute.xlu1 %2868  ;;  %v2867_v54 = vpop.permute.xlu0 %2866 }
 0x1a9   :  { %3236 = vst.msk [vmem:[#allocation2 + $0x88] sm:$0xff] %vm3218_vm4, %v2869_v3  ;;  %3235 = vst.msk [vmem:[#allocation2 + $0x80] sm:$0xff] %vm3218_vm4, %v2867_v54 }
 0x1aa   :  { %2139 = vrot.lane.b32.xlu1 %v1846_v0, %s9989_s22  ;;  %2137 = vrot.lane.b32.xlu0 %v2613_v50, %s9989_s22 }
 0x1ac   :  { %v1335_v56 = vpop.permute.xlu1 %1334  ;;  %v1333_v57 = vpop.permute.xlu0 %1332 }
 0x1ad   :  { %1700 = vst.msk [vmem:[#allocation2 + $0x98] sm:$0xff] %vm1680_vm2, %v1335_v56  ;;  %1699 = vst.msk [vmem:[#allocation2 + $0x90] sm:$0xff] %vm1680_vm2, %v1333_v57 }
 0x1ae   :  { %2908 = vrot.lane.b32.xlu1 %v2615_v55, %s9990_s23  ;;  %2906 = vrot.lane.b32.xlu0 %v1846_v0, %s9990_s23 }
 0x1b0   :  { %v2104_v7 = vpop.permute.xlu1 %2103  ;;  %v2102_v59 = vpop.permute.xlu0 %2101  ;;  %v3363_v60 = vld [vmem:[#allocation2 + $0x80] sm:$0xff]  ;;  %v3364_v61 = vld [vmem:[#allocation2 + $0x88] sm:$0xff] }
 0x1b1   :  { %2469 = vst.msk [vmem:[#allocation2 + $0x98] sm:$0xff] %vm2449_vm3, %v2104_v7  ;;  %2468 = vst.msk [vmem:[#allocation2 + $0x90] sm:$0xff] %vm2449_vm3, %v2102_v59  ;;  %9654 = vmatprep.mubr.msk.f32.mxu0 %vm3480_vm5, %v3363_v60  ;;  %v1860_v7 = vld [vmem:[%s14920_s0 + $0x1b0] sm:$0xff] }
 0x1b2   :  { %1374 = vrot.lane.b32.xlu1 %v2615_v55, %s9988_s19  ;;  %1372 = vrot.lane.b32.xlu0 %v1846_v0, %s9988_s19 }
 0x1b3   :  { %9655 = vmatmul.mubr.msk.f32.gmra.mxu0 %vm3480_vm5, %v3364_v61  ;;  %v2629_v61 = vld [vmem:[%s14920_s0 + $0x1b8] sm:$0xff] }
 0x1b4   :  { %v2873_v63 = vpop.permute.xlu1 %2872  ;;  %v2871_v1 = vpop.permute.xlu0 %2870 }
 0x1b5   :  { %3238 = vst.msk [vmem:[#allocation2 + $0x98] sm:$0xff] %vm3218_vm4, %v2873_v63  ;;  %3237 = vst.msk [vmem:[#allocation2 + $0x90] sm:$0xff] %vm3218_vm4, %v2871_v1 }
 0x1b6   :  { %2143 = vrot.lane.b32.xlu1 %v1848_v62, %s9989_s22  ;;  %2141 = vrot.lane.b32.xlu0 %v2615_v55, %s9989_s22 }
 0x1b8   :  { %v1339_v58 = vpop.permute.xlu1 %1338  ;;  %v1337_v12 = vpop.permute.xlu0 %1336 }
 0x1b9   :  { %1702 = vst.msk [vmem:[#allocation2 + $0xa8] sm:$0xff] %vm1680_vm2, %v1339_v58  ;;  %1701 = vst.msk [vmem:[#allocation2 + $0xa0] sm:$0xff] %vm1680_vm2, %v1337_v12 }
 0x1ba   :  { %2912 = vrot.lane.b32.xlu1 %v2617_v10, %s9990_s23  ;;  %2910 = vrot.lane.b32.xlu0 %v1848_v62, %s9990_s23 }
 0x1bc   :  { %v2108_v13 = vpop.permute.xlu1 %2107  ;;  %v2106_v14 = vpop.permute.xlu0 %2105  ;;  %v3365_v15 = vld [vmem:[#allocation2 + $0x90] sm:$0xff]  ;;  %v3366_v16 = vld [vmem:[#allocation2 + $0x98] sm:$0xff] }
 0x1bd   :  { %2471 = vst.msk [vmem:[#allocation2 + $0xa8] sm:$0xff] %vm2449_vm3, %v2108_v13  ;;  %2470 = vst.msk [vmem:[#allocation2 + $0xa0] sm:$0xff] %vm2449_vm3, %v2106_v14  ;;  %9657 = vmatprep.mubr.msk.f32.mxu0 %vm3480_vm5, %v3365_v15  ;;  %v1862_v13 = vld [vmem:[%s14920_s0 + $0x1c0] sm:$0xff] }
 0x1be   :  { %1378 = vrot.lane.b32.xlu1 %v2617_v10, %s9988_s19  ;;  %1376 = vrot.lane.b32.xlu0 %v1848_v62, %s9988_s19 }
 0x1bf   :  { %9658 = vmatmul.mubr.msk.f32.gmra.mxu0 %vm3480_vm5, %v3366_v16  ;;  %v2631_v16 = vld [vmem:[%s14920_s0 + $0x1c8] sm:$0xff] }
 0x1c0   :  { %v2877_v18 = vpop.permute.xlu1 %2876  ;;  %v2875_v19 = vpop.permute.xlu0 %2874 }
 0x1c1   :  { %3240 = vst.msk [vmem:[#allocation2 + $0xa8] sm:$0xff] %vm3218_vm4, %v2877_v18  ;;  %3239 = vst.msk [vmem:[#allocation2 + $0xa0] sm:$0xff] %vm3218_vm4, %v2875_v19 }
 0x1c2   :  { %2147 = vrot.lane.b32.xlu1 %v1850_v17, %s9989_s22  ;;  %2145 = vrot.lane.b32.xlu0 %v2617_v10, %s9989_s22 }
 0x1c4   :  { %v1343_v21 = vpop.permute.xlu1 %1342  ;;  %v1341_v22 = vpop.permute.xlu0 %1340 }
 0x1c5   :  { %1704 = vst.msk [vmem:[#allocation2 + $0xb8] sm:$0xff] %vm1680_vm2, %v1343_v21  ;;  %1703 = vst.msk [vmem:[#allocation2 + $0xb0] sm:$0xff] %vm1680_vm2, %v1341_v22 }
 0x1c6   :  { %2916 = vrot.lane.b32.xlu1 %v2619_v20, %s9990_s23  ;;  %2914 = vrot.lane.b32.xlu0 %v1850_v17, %s9990_s23 }
 0x1c8   :  { %v2112_v23 = vpop.permute.xlu1 %2111  ;;  %v2110_v24 = vpop.permute.xlu0 %2109  ;;  %v3367_v25 = vld [vmem:[#allocation2 + $0xa0] sm:$0xff]  ;;  %v3368_v26 = vld [vmem:[#allocation2 + $0xa8] sm:$0xff] }
 0x1c9   :  { %2473 = vst.msk [vmem:[#allocation2 + $0xb8] sm:$0xff] %vm2449_vm3, %v2112_v23  ;;  %2472 = vst.msk [vmem:[#allocation2 + $0xb0] sm:$0xff] %vm2449_vm3, %v2110_v24  ;;  %9660 = vmatprep.mubr.msk.f32.mxu0 %vm3480_vm5, %v3367_v25  ;;  %v1864_v24 = vld [vmem:[%s14920_s0 + $0x1d0] sm:$0xff] }
 0x1ca   :  { %1382 = vrot.lane.b32.xlu1 %v2619_v20, %s9988_s19  ;;  %1380 = vrot.lane.b32.xlu0 %v1850_v17, %s9988_s19 }
 0x1cb   :  { %9661 = vmatmul.mubr.msk.f32.gmra.mxu0 %vm3480_vm5, %v3368_v26 }
 0x1cc   :  { %v2881_v28 = vpop.permute.xlu1 %2880  ;;  %v2879_v29 = vpop.permute.xlu0 %2878 }
 0x1cd   :  { %3242 = vst.msk [vmem:[#allocation2 + $0xb8] sm:$0xff] %vm3218_vm4, %v2881_v28  ;;  %3241 = vst.msk [vmem:[#allocation2 + $0xb0] sm:$0xff] %vm3218_vm4, %v2879_v29  ;;  %v11526_v28 = vld [vmem:[%s14922_s2] ss:$0 sm:$0xff] }
 0x1ce   :  { %2151 = vrot.lane.b32.xlu1 %v1852_v27, %s9989_s22  ;;  %2149 = vrot.lane.b32.xlu0 %v2619_v20, %s9989_s22 }
 0x1d0   :  { %v1347_v31 = vpop.permute.xlu1 %1346  ;;  %v1345_v32 = vpop.permute.xlu0 %1344 }
 0x1d1   :  { %1706 = vst.msk [vmem:[#allocation2 + $0xc8] sm:$0xff] %vm1680_vm2, %v1347_v31  ;;  %1705 = vst.msk [vmem:[#allocation2 + $0xc0] sm:$0xff] %vm1680_vm2, %v1345_v32 }
 0x1d2   :  { %2920 = vrot.lane.b32.xlu1 %v2621_v30, %s9990_s23  ;;  %2918 = vrot.lane.b32.xlu0 %v1852_v27, %s9990_s23 }
 0x1d4   :  { %v2116_v33 = vpop.permute.xlu1 %2115  ;;  %v2114_v34 = vpop.permute.xlu0 %2113  ;;  %v3369_v35 = vld [vmem:[#allocation2 + $0xb0] sm:$0xff]  ;;  %v3370_v36 = vld [vmem:[#allocation2 + $0xb8] sm:$0xff] }
 0x1d5   :  { %2475 = vst.msk [vmem:[#allocation2 + $0xc8] sm:$0xff] %vm2449_vm3, %v2116_v33  ;;  %2474 = vst.msk [vmem:[#allocation2 + $0xc0] sm:$0xff] %vm2449_vm3, %v2114_v34  ;;  %9663 = vmatprep.mubr.msk.f32.mxu0 %vm3480_vm5, %v3369_v35 }
 0x1d6   :  { %1386 = vrot.lane.b32.xlu1 %v2621_v30, %s9988_s19  ;;  %1384 = vrot.lane.b32.xlu0 %v1852_v27, %s9988_s19 }
 0x1d7   :  { %9664 = vmatmul.mubr.msk.f32.gmra.mxu0 %vm3480_vm5, %v3370_v36 }
 0x1d8   :  { %v2885_v38 = vpop.permute.xlu1 %2884  ;;  %v2883_v39 = vpop.permute.xlu0 %2882 }
 0x1d9   :  { %3244 = vst.msk [vmem:[#allocation2 + $0xc8] sm:$0xff] %vm3218_vm4, %v2885_v38  ;;  %3243 = vst.msk [vmem:[#allocation2 + $0xc0] sm:$0xff] %vm3218_vm4, %v2883_v39 }
 0x1da   :  { %2155 = vrot.lane.b32.xlu1 %v1854_v37, %s9989_s22  ;;  %2153 = vrot.lane.b32.xlu0 %v2621_v30, %s9989_s22  ;;  %v2633_v30 = vld [vmem:[%s14920_s0 + $0x1d8] sm:$0xff] }
 0x1dc   :  { %v1351_v41 = vpop.permute.xlu1 %1350  ;;  %v1349_v42 = vpop.permute.xlu0 %1348 }
 0x1dd   :  { %1708 = vst.msk [vmem:[#allocation2 + $0xd8] sm:$0xff] %vm1680_vm2, %v1351_v41  ;;  %1707 = vst.msk [vmem:[#allocation2 + $0xd0] sm:$0xff] %vm1680_vm2, %v1349_v42 }
 0x1de   :  { %2924 = vrot.lane.b32.xlu1 %v2623_v40, %s9990_s23  ;;  %2922 = vrot.lane.b32.xlu0 %v1854_v37, %s9990_s23 }
 0x1e0   :  { %v2120_v43 = vpop.permute.xlu1 %2119  ;;  %v2118_v44 = vpop.permute.xlu0 %2117  ;;  %v3371_v45 = vld [vmem:[#allocation2 + $0xc0] sm:$0xff]  ;;  %v3372_v46 = vld [vmem:[#allocation2 + $0xc8] sm:$0xff] }
 0x1e1   :  { %2477 = vst.msk [vmem:[#allocation2 + $0xd8] sm:$0xff] %vm2449_vm3, %v2120_v43  ;;  %2476 = vst.msk [vmem:[#allocation2 + $0xd0] sm:$0xff] %vm2449_vm3, %v2118_v44  ;;  %9666 = vmatprep.mubr.msk.f32.mxu0 %vm3480_vm5, %v3371_v45  ;;  %v2635_v45 = vld [vmem:[%s14920_s0 + $0x1e8] sm:$0xff] }
 0x1e2   :  { %1390 = vrot.lane.b32.xlu1 %v2623_v40, %s9988_s19  ;;  %1388 = vrot.lane.b32.xlu0 %v1854_v37, %s9988_s19 }
 0x1e3   :  { %9667 = vmatmul.mubr.msk.f32.gmra.mxu0 %vm3480_vm5, %v3372_v46 }
 0x1e4   :  { %v2889_v11 = vpop.permute.xlu1 %2888  ;;  %v2887_v47 = vpop.permute.xlu0 %2886 }
 0x1e5   :  { %3246 = vst.msk [vmem:[#allocation2 + $0xd8] sm:$0xff] %vm3218_vm4, %v2889_v11  ;;  %3245 = vst.msk [vmem:[#allocation2 + $0xd0] sm:$0xff] %vm3218_vm4, %v2887_v47 }
 0x1e6   :  { %2159 = vrot.lane.b32.xlu1 %v1856_v8, %s9989_s22  ;;  %2157 = vrot.lane.b32.xlu0 %v2623_v40, %s9989_s22  ;;  %v1866_v40 = vld [vmem:[%s14920_s0 + $0x1e0] sm:$0xff] }
 0x1e8   :  { %v1355_v9 = vpop.permute.xlu1 %1354  ;;  %v1353_v48 = vpop.permute.xlu0 %1352 }
 0x1e9   :  { %1710 = vst.msk [vmem:[#allocation2 + $0xe8] sm:$0xff] %vm1680_vm2, %v1355_v9  ;;  %1709 = vst.msk [vmem:[#allocation2 + $0xe0] sm:$0xff] %vm1680_vm2, %v1353_v48 }
 0x1ea   :  { %2928 = vrot.lane.b32.xlu1 %v2625_v6, %s9990_s23  ;;  %2926 = vrot.lane.b32.xlu0 %v1856_v8, %s9990_s23 }
 0x1ec   :  { %v2124_v49 = vpop.permute.xlu1 %2123  ;;  %v2122_v50 = vpop.permute.xlu0 %2121  ;;  %v3373_v4 = vld [vmem:[#allocation2 + $0xd0] sm:$0xff]  ;;  %v3374_v51 = vld [vmem:[#allocation2 + $0xd8] sm:$0xff] }
 0x1ed   :  { %2479 = vst.msk [vmem:[#allocation2 + $0xe8] sm:$0xff] %vm2449_vm3, %v2124_v49  ;;  %2478 = vst.msk [vmem:[#allocation2 + $0xe0] sm:$0xff] %vm2449_vm3, %v2122_v50  ;;  %9669 = vmatprep.mubr.msk.f32.mxu0 %vm3480_vm5, %v3373_v4 }
 0x1ee   :  { %1394 = vrot.lane.b32.xlu1 %v2625_v6, %s9988_s19  ;;  %1392 = vrot.lane.b32.xlu0 %v1856_v8, %s9988_s19 }
 0x1ef   :  { %9670 = vmatmul.mubr.msk.f32.gmra.mxu0 %vm3480_vm5, %v3374_v51  ;;  %v1868_v51 = vld [vmem:[%s14920_s0 + $0x1f0] sm:$0xff] }
 0x1f0   :  { %v2893_v5 = vpop.permute.xlu1 %2892  ;;  %v2891_v52 = vpop.permute.xlu0 %2890 }
 0x1f1   :  { %3248 = vst.msk [vmem:[#allocation2 + $0xe8] sm:$0xff] %vm3218_vm4, %v2893_v5  ;;  %3247 = vst.msk [vmem:[#allocation2 + $0xe0] sm:$0xff] %vm3218_vm4, %v2891_v52 }
 0x1f2   :  { %2163 = vrot.lane.b32.xlu1 %v1858_v2, %s9989_s22  ;;  %2161 = vrot.lane.b32.xlu0 %v2625_v6, %s9989_s22 }
 0x1f4   :  { %v1359_v0 = vpop.permute.xlu1 %1358  ;;  %v1357_v3 = vpop.permute.xlu0 %1356 }
 0x1f5   :  { %1712 = vst.msk [vmem:[#allocation2 + $0xf8] sm:$0xff] %vm1680_vm2, %v1359_v0  ;;  %1711 = vst.msk [vmem:[#allocation2 + $0xf0] sm:$0xff] %vm1680_vm2, %v1357_v3  ;;  %v2637_v0 = vld [vmem:[%s14920_s0 + $0x1f8] sm:$0xff] }
 0x1f6   :  { %2932 = vrot.lane.b32.xlu1 %v2627_v53, %s9990_s23  ;;  %2930 = vrot.lane.b32.xlu0 %v1858_v2, %s9990_s23 }
 0x1f8   :  { %v2128_v54 = vpop.permute.xlu1 %2127  ;;  %v2126_v55 = vpop.permute.xlu0 %2125  ;;  %v3375_v56 = vld [vmem:[#allocation2 + $0xe0] sm:$0xff]  ;;  %v3376_v57 = vld [vmem:[#allocation2 + $0xe8] sm:$0xff] }
 0x1f9   :  { %2481 = vst.msk [vmem:[#allocation2 + $0xf8] sm:$0xff] %vm2449_vm3, %v2128_v54  ;;  %2480 = vst.msk [vmem:[#allocation2 + $0xf0] sm:$0xff] %vm2449_vm3, %v2126_v55  ;;  %9672 = vmatprep.mubr.msk.f32.mxu0 %vm3480_vm5, %v3375_v56 }
 0x1fa   :  { %1398 = vrot.lane.b32.xlu1 %v2627_v53, %s9988_s19  ;;  %1396 = vrot.lane.b32.xlu0 %v1858_v2, %s9988_s19 }
 0x1fb   :  { %9673 = vmatmul.mubr.msk.f32.gmra.mxu0 %vm3480_vm5, %v3376_v57 }
 0x1fc   :  { %v2897_v59 = vpop.permute.xlu1 %2896  ;;  %v2895_v60 = vpop.permute.xlu0 %2894 }
 0x1fd   :  { %3250 = vst.msk [vmem:[#allocation2 + $0xf8] sm:$0xff] %vm3218_vm4, %v2897_v59  ;;  %3249 = vst.msk [vmem:[#allocation2 + $0xf0] sm:$0xff] %vm3218_vm4, %v2895_v60 }
 0x1fe   :  { %2167 = vrot.lane.b32.xlu1 %v1860_v7, %s9989_s22  ;;  %2165 = vrot.lane.b32.xlu0 %v2627_v53, %s9989_s22 }
 0x200   :  { %v1363_v62 = vpop.permute.xlu1 %1362  ;;  %v1361_v63 = vpop.permute.xlu0 %1360 }
 0x201   :  { %1714 = vst.msk [vmem:[#allocation2 + $0x108] sm:$0xff] %vm1680_vm2, %v1363_v62  ;;  %1713 = vst.msk [vmem:[#allocation2 + $0x100] sm:$0xff] %vm1680_vm2, %v1361_v63  ;;  %v1870_v63 = vld [vmem:[%s14920_s0 + $0x200] sm:$0xff] }
 0x202   :  { %2936 = vrot.lane.b32.xlu1 %v2629_v61, %s9990_s23  ;;  %2934 = vrot.lane.b32.xlu0 %v1860_v7, %s9990_s23 }
 0x204   :  { %v2132_v1 = vpop.permute.xlu1 %2131  ;;  %v2130_v10 = vpop.permute.xlu0 %2129  ;;  %v3377_v58 = vld [vmem:[#allocation2 + $0xf0] sm:$0xff]  ;;  %v3378_v12 = vld [vmem:[#allocation2 + $0xf8] sm:$0xff] }
 0x205   :  { %2483 = vst.msk [vmem:[#allocation2 + $0x108] sm:$0xff] %vm2449_vm3, %v2132_v1  ;;  %2482 = vst.msk [vmem:[#allocation2 + $0x100] sm:$0xff] %vm2449_vm3, %v2130_v10  ;;  %9675 = vmatprep.mubr.msk.f32.mxu0 %vm3480_vm5, %v3377_v58 }
 0x206   :  { %1402 = vrot.lane.b32.xlu1 %v2629_v61, %s9988_s19  ;;  %1400 = vrot.lane.b32.xlu0 %v1860_v7, %s9988_s19 }
 0x207   :  { %9676 = vmatmul.mubr.msk.f32.gmra.mxu0 %vm3480_vm5, %v3378_v12 }
 0x208   :  { %v2901_v14 = vpop.permute.xlu1 %2900  ;;  %v2899_v15 = vpop.permute.xlu0 %2898 }
 0x209   :  { %3252 = vst.msk [vmem:[#allocation2 + $0x108] sm:$0xff] %vm3218_vm4, %v2901_v14  ;;  %3251 = vst.msk [vmem:[#allocation2 + $0x100] sm:$0xff] %vm3218_vm4, %v2899_v15 }
 0x20a   :  { %2171 = vrot.lane.b32.xlu1 %v1862_v13, %s9989_s22  ;;  %2169 = vrot.lane.b32.xlu0 %v2629_v61, %s9989_s22 }
 0x20c   :  { %v1367_v17 = vpop.permute.xlu1 %1366  ;;  %v1365_v18 = vpop.permute.xlu0 %1364 }
 0x20d   :  { %1716 = vst.msk [vmem:[#allocation2 + $0x118] sm:$0xff] %vm1680_vm2, %v1367_v17  ;;  %1715 = vst.msk [vmem:[#allocation2 + $0x110] sm:$0xff] %vm1680_vm2, %v1365_v18 }
 0x20e   :  { %2940 = vrot.lane.b32.xlu1 %v2631_v16, %s9990_s23  ;;  %2938 = vrot.lane.b32.xlu0 %v1862_v13, %s9990_s23 }
 0x210   :  { %v2136_v19 = vpop.permute.xlu1 %2135  ;;  %v2134_v20 = vpop.permute.xlu0 %2133  ;;  %v3379_v21 = vld [vmem:[#allocation2 + $0x100] sm:$0xff]  ;;  %v3380_v22 = vld [vmem:[#allocation2 + $0x108] sm:$0xff] }
 0x211   :  { %2485 = vst.msk [vmem:[#allocation2 + $0x118] sm:$0xff] %vm2449_vm3, %v2136_v19  ;;  %2484 = vst.msk [vmem:[#allocation2 + $0x110] sm:$0xff] %vm2449_vm3, %v2134_v20  ;;  %9678 = vmatprep.mubr.msk.f32.mxu0 %vm3480_vm5, %v3379_v21 }
 0x212   :  { %1406 = vrot.lane.b32.xlu1 %v2631_v16, %s9988_s19  ;;  %1404 = vrot.lane.b32.xlu0 %v1862_v13, %s9988_s19  ;;  %v2639_v13 = vld [vmem:[%s14920_s0 + $0x208] sm:$0xff] }
 0x213   :  { %v9632_v23 = vpop.f32.mrf.mxu0  ;;  %9679 = vmatmul.mubr.msk.f32.gmra.mxu0 %vm3480_vm5, %v3380_v22 }
 0x214   :  { %v2905_v25 = vpop.permute.xlu1 %2904  ;;  %v2903_v26 = vpop.permute.xlu0 %2902 }
 0x215   :  { %3254 = vst.msk [vmem:[#allocation2 + $0x118] sm:$0xff] %vm3218_vm4, %v2905_v25  ;;  %3253 = vst.msk [vmem:[#allocation2 + $0x110] sm:$0xff] %vm3218_vm4, %v2903_v26  ;;  %v3931_v27 = vpop.f32.mrf.mxu0 }
 0x216   :  { %v4570_v29 = vmax.f32 %v3931_v27, %v9632_v23  ;;  %2175 = vrot.lane.b32.xlu1 %v1864_v24, %s9989_s22  ;;  %2173 = vrot.lane.b32.xlu0 %v2631_v16, %s9989_s22 }
 0x218   :  { %v4639_v31 = vadd.f32 %v11526_v28, %v4570_v29  ;;  %v1371_v32 = vpop.permute.xlu1 %1370  ;;  %v1369_v33 = vpop.permute.xlu0 %1368 }
 0x219   :  { %1718 = vst.msk [vmem:[#allocation2 + $0x128] sm:$0xff] %vm1680_vm2, %v1371_v32  ;;  %1717 = vst.msk [vmem:[#allocation2 + $0x120] sm:$0xff] %vm1680_vm2, %v1369_v33 }
 0x21a   :  { %v4703_v34 = vmax.f32 %v4639_v31, 0.0  ;;  %2944 = vrot.lane.b32.xlu1 %v2633_v30, %s9990_s23  ;;  %2942 = vrot.lane.b32.xlu0 %v1864_v24, %s9990_s23 }
 0x21c   :  { %4772 = vst.msk [vmem:[#allocation3 + $0x10] sm:$0xff] %vm4767_vm6, %v4703_v34  ;;  %v2140_v35 = vpop.permute.xlu1 %2139  ;;  %v2138_v36 = vpop.permute.xlu0 %2137  ;;  %v3381_v37 = vld [vmem:[#allocation2 + $0x110] sm:$0xff]  ;;  %v3382_v38 = vld [vmem:[#allocation2 + $0x118] sm:$0xff] }
 0x21d   :  { %2487 = vst.msk [vmem:[#allocation2 + $0x128] sm:$0xff] %vm2449_vm3, %v2140_v35  ;;  %2486 = vst.msk [vmem:[#allocation2 + $0x120] sm:$0xff] %vm2449_vm3, %v2138_v36  ;;  %9681 = vmatprep.mubr.msk.f32.mxu0 %vm3480_vm5, %v3381_v37 }
 0x21e   :  { %1410 = vrot.lane.b32.xlu1 %v2633_v30, %s9988_s19  ;;  %1408 = vrot.lane.b32.xlu0 %v1864_v24, %s9988_s19  ;;  %v1872_v24 = vld [vmem:[%s14920_s0 + $0x210] sm:$0xff] }
 0x21f   :  { %v9635_v39 = vpop.f32.mrf.mxu0  ;;  %9682 = vmatmul.mubr.msk.f32.gmra.mxu0 %vm3480_vm5, %v3382_v38 }
 0x220   :  { %v2909_v41 = vpop.permute.xlu1 %2908  ;;  %v2907_v42 = vpop.permute.xlu0 %2906 }
 0x221   :  { %3256 = vst.msk [vmem:[#allocation2 + $0x128] sm:$0xff] %vm3218_vm4, %v2909_v41  ;;  %3255 = vst.msk [vmem:[#allocation2 + $0x120] sm:$0xff] %vm3218_vm4, %v2907_v42  ;;  %v3941_v43 = vpop.f32.mrf.mxu0  ;;  %v1874_v41 = vld [vmem:[%s14920_s0 + $0x220] sm:$0xff] }
 0x222   :  { %v4571_v44 = vmax.f32 %v3941_v43, %v9635_v39  ;;  %2179 = vrot.lane.b32.xlu1 %v1866_v40, %s9989_s22  ;;  %2177 = vrot.lane.b32.xlu0 %v2633_v30, %s9989_s22  ;;  %v2641_v30 = vld [vmem:[%s14920_s0 + $0x218] sm:$0xff] }
 0x223   :  { %v11555_v46 = vld [vmem:[#allocation3 + $0x10] sm:$0xff] }
 0x224   :  { %v4640_v8 = vadd.f32 %v11526_v28, %v4571_v44  ;;  %v1375_v11 = vpop.permute.xlu1 %1374  ;;  %v1373_v47 = vpop.permute.xlu0 %1372  ;;  %4902 = vst.msk [vmem:[#allocation4 + $0x10] sm:$0xff] %vm4767_vm6, %v11555_v46 }
 0x225   :  { %1720 = vst.msk [vmem:[#allocation2 + $0x138] sm:$0xff] %vm1680_vm2, %v1375_v11  ;;  %1719 = vst.msk [vmem:[#allocation2 + $0x130] sm:$0xff] %vm1680_vm2, %v1373_v47 }
 0x226   :  { %v4704_v6 = vmax.f32 %v4640_v8, 0.0  ;;  %2948 = vrot.lane.b32.xlu1 %v2635_v45, %s9990_s23  ;;  %2946 = vrot.lane.b32.xlu0 %v1866_v40, %s9990_s23  ;;  %v2643_v8 = vld [vmem:[%s14920_s0 + $0x228] sm:$0xff] }
 0x228   :  { %4773 = vst.msk [vmem:[#allocation3 + $0x18] sm:$0xff] %vm4767_vm6, %v4704_v6  ;;  %v2144_v9 = vpop.permute.xlu1 %2143  ;;  %v2142_v48 = vpop.permute.xlu0 %2141  ;;  %v3383_v49 = vld [vmem:[#allocation2 + $0x120] sm:$0xff]  ;;  %v3384_v50 = vld [vmem:[#allocation2 + $0x128] sm:$0xff] }
 0x229   :  { %2489 = vst.msk [vmem:[#allocation2 + $0x138] sm:$0xff] %vm2449_vm3, %v2144_v9  ;;  %2488 = vst.msk [vmem:[#allocation2 + $0x130] sm:$0xff] %vm2449_vm3, %v2142_v48  ;;  %9684 = vmatprep.mubr.msk.f32.mxu0 %vm3480_vm5, %v3383_v49 }
 0x22a   :  { %1414 = vrot.lane.b32.xlu1 %v2635_v45, %s9988_s19  ;;  %1412 = vrot.lane.b32.xlu0 %v1866_v40, %s9988_s19 }
 0x22b   :  { %v9638_v4 = vpop.f32.mrf.mxu0  ;;  %9685 = vmatmul.mubr.msk.f32.gmra.mxu0 %vm3480_vm5, %v3384_v50 }
 0x22c   :  { %v2913_v2 = vpop.permute.xlu1 %2912  ;;  %v2911_v5 = vpop.permute.xlu0 %2910 }
 0x22d   :  { %3258 = vst.msk [vmem:[#allocation2 + $0x138] sm:$0xff] %vm3218_vm4, %v2913_v2  ;;  %3257 = vst.msk [vmem:[#allocation2 + $0x130] sm:$0xff] %vm3218_vm4, %v2911_v5  ;;  %v3951_v52 = vpop.f32.mrf.mxu0  ;;  %v1876_v5 = vld [vmem:[%s14920_s0 + $0x230] sm:$0xff] }
 0x22e   :  { %v4572_v53 = vmax.f32 %v3951_v52, %v9638_v4  ;;  %2183 = vrot.lane.b32.xlu1 %v1868_v51, %s9989_s22  ;;  %2181 = vrot.lane.b32.xlu0 %v2635_v45, %s9989_s22 }
 0x22f   :  { %v11581_v3 = vld [vmem:[#allocation3 + $0x18] sm:$0xff] }
 0x230   :  { %v4641_v54 = vadd.f32 %v11526_v28, %v4572_v53  ;;  %v1379_v55 = vpop.permute.xlu1 %1378  ;;  %v1377_v56 = vpop.permute.xlu0 %1376  ;;  %4903 = vst.msk [vmem:[#allocation4 + $0x18] sm:$0xff] %vm4767_vm6, %v11581_v3 }
 0x231   :  { %1722 = vst.msk [vmem:[#allocation2 + $0x148] sm:$0xff] %vm1680_vm2, %v1379_v55  ;;  %1721 = vst.msk [vmem:[#allocation2 + $0x140] sm:$0xff] %vm1680_vm2, %v1377_v56  ;;  %v2645_v55 = vld [vmem:[%s14920_s0 + $0x238] sm:$0xff] }
 0x232   :  { %v4705_v57 = vmax.f32 %v4641_v54, 0.0  ;;  %2952 = vrot.lane.b32.xlu1 %v2637_v0, %s9990_s23  ;;  %2950 = vrot.lane.b32.xlu0 %v1868_v51, %s9990_s23 }
 0x234   :  { %4774 = vst.msk [vmem:[#allocation3 + $0x20] sm:$0xff] %vm4767_vm6, %v4705_v57  ;;  %v2148_v7 = vpop.permute.xlu1 %2147  ;;  %v2146_v59 = vpop.permute.xlu0 %2145  ;;  %v3385_v60 = vld [vmem:[#allocation2 + $0x130] sm:$0xff]  ;;  %v3386_v61 = vld [vmem:[#allocation2 + $0x138] sm:$0xff] }
 0x235   :  { %2491 = vst.msk [vmem:[#allocation2 + $0x148] sm:$0xff] %vm2449_vm3, %v2148_v7  ;;  %2490 = vst.msk [vmem:[#allocation2 + $0x140] sm:$0xff] %vm2449_vm3, %v2146_v59  ;;  %9687 = vmatprep.mubr.msk.f32.mxu0 %vm3480_vm5, %v3385_v60 }
 0x236   :  { %1418 = vrot.lane.b32.xlu1 %v2637_v0, %s9988_s19  ;;  %1416 = vrot.lane.b32.xlu0 %v1868_v51, %s9988_s19 }
 0x237   :  { %v9641_v62 = vpop.f32.mrf.mxu0  ;;  %9688 = vmatmul.mubr.msk.f32.gmra.mxu0 %vm3480_vm5, %v3386_v61 }
 0x238   :  { %v2917_v1 = vpop.permute.xlu1 %2916  ;;  %v2915_v10 = vpop.permute.xlu0 %2914 }
 0x239   :  { %3260 = vst.msk [vmem:[#allocation2 + $0x148] sm:$0xff] %vm3218_vm4, %v2917_v1  ;;  %3259 = vst.msk [vmem:[#allocation2 + $0x140] sm:$0xff] %vm3218_vm4, %v2915_v10  ;;  %v3961_v58 = vpop.f32.mrf.mxu0 }
 0x23a   :  { %v4573_v12 = vmax.f32 %v3961_v58, %v9641_v62  ;;  %2187 = vrot.lane.b32.xlu1 %v1870_v63, %s9989_s22  ;;  %2185 = vrot.lane.b32.xlu0 %v2637_v0, %s9989_s22  ;;  %v1878_v58 = vld [vmem:[%s14920_s0 + $0x240] sm:$0xff] }
 0x23b   :  { %v11607_v14 = vld [vmem:[#allocation3 + $0x20] sm:$0xff] }
 0x23c   :  { %v4642_v15 = vadd.f32 %v11526_v28, %v4573_v12  ;;  %v1383_v16 = vpop.permute.xlu1 %1382  ;;  %v1381_v17 = vpop.permute.xlu0 %1380  ;;  %4904 = vst.msk [vmem:[#allocation4 + $0x20] sm:$0xff] %vm4767_vm6, %v11607_v14 }
 0x23d   :  { %1724 = vst.msk [vmem:[#allocation2 + $0x158] sm:$0xff] %vm1680_vm2, %v1383_v16  ;;  %1723 = vst.msk [vmem:[#allocation2 + $0x150] sm:$0xff] %vm1680_vm2, %v1381_v17  ;;  %v2647_v17 = vld [vmem:[%s14920_s0 + $0x248] sm:$0xff] }
 0x23e   :  { %v4706_v18 = vmax.f32 %v4642_v15, 0.0  ;;  %2956 = vrot.lane.b32.xlu1 %v2639_v13, %s9990_s23  ;;  %2954 = vrot.lane.b32.xlu0 %v1870_v63, %s9990_s23 }
 0x240   :  { %4775 = vst.msk [vmem:[#allocation3 + $0x28] sm:$0xff] %vm4767_vm6, %v4706_v18  ;;  %v2152_v19 = vpop.permute.xlu1 %2151  ;;  %v2150_v20 = vpop.permute.xlu0 %2149  ;;  %v3387_v21 = vld [vmem:[#allocation2 + $0x140] sm:$0xff]  ;;  %v3388_v22 = vld [vmem:[#allocation2 + $0x148] sm:$0xff] }
 0x241   :  { %2493 = vst.msk [vmem:[#allocation2 + $0x158] sm:$0xff] %vm2449_vm3, %v2152_v19  ;;  %2492 = vst.msk [vmem:[#allocation2 + $0x150] sm:$0xff] %vm2449_vm3, %v2150_v20  ;;  %9690 = vmatprep.mubr.msk.f32.mxu0 %vm3480_vm5, %v3387_v21 }
 0x242   :  { %1422 = vrot.lane.b32.xlu1 %v2639_v13, %s9988_s19  ;;  %1420 = vrot.lane.b32.xlu0 %v1870_v63, %s9988_s19 }
 0x243   :  { %v9644_v23 = vpop.f32.mrf.mxu0  ;;  %9691 = vmatmul.mubr.msk.f32.gmra.mxu0 %vm3480_vm5, %v3388_v22 }
 0x244   :  { %v2921_v25 = vpop.permute.xlu1 %2920  ;;  %v2919_v26 = vpop.permute.xlu0 %2918 }
 0x245   :  { %3262 = vst.msk [vmem:[#allocation2 + $0x158] sm:$0xff] %vm3218_vm4, %v2921_v25  ;;  %3261 = vst.msk [vmem:[#allocation2 + $0x150] sm:$0xff] %vm3218_vm4, %v2919_v26  ;;  %v3971_v27 = vpop.f32.mrf.mxu0 }
 0x246   :  { %v4574_v29 = vmax.f32 %v3971_v27, %v9644_v23  ;;  %2191 = vrot.lane.b32.xlu1 %v1872_v24, %s9989_s22  ;;  %2189 = vrot.lane.b32.xlu0 %v2639_v13, %s9989_s22 }
 0x247   :  { %v11633_v31 = vld [vmem:[#allocation3 + $0x28] sm:$0xff] }
 0x248   :  { %v4643_v32 = vadd.f32 %v11526_v28, %v4574_v29  ;;  %v1387_v33 = vpop.permute.xlu1 %1386  ;;  %v1385_v34 = vpop.permute.xlu0 %1384  ;;  %4905 = vst.msk [vmem:[#allocation4 + $0x28] sm:$0xff] %vm4767_vm6, %v11633_v31  ;;  %v1880_v29 = vld [vmem:[%s14920_s0 + $0x250] sm:$0xff] }
 0x249   :  { %1726 = vst.msk [vmem:[#allocation2 + $0x168] sm:$0xff] %vm1680_vm2, %v1387_v33  ;;  %1725 = vst.msk [vmem:[#allocation2 + $0x160] sm:$0xff] %vm1680_vm2, %v1385_v34 }
 0x24a   :  { %v4707_v35 = vmax.f32 %v4643_v32, 0.0  ;;  %2960 = vrot.lane.b32.xlu1 %v2641_v30, %s9990_s23  ;;  %2958 = vrot.lane.b32.xlu0 %v1872_v24, %s9990_s23 }
 0x24c   :  { %4776 = vst.msk [vmem:[#allocation3 + $0x30] sm:$0xff] %vm4767_vm6, %v4707_v35  ;;  %v2156_v36 = vpop.permute.xlu1 %2155  ;;  %v2154_v37 = vpop.permute.xlu0 %2153  ;;  %v3389_v38 = vld [vmem:[#allocation2 + $0x150] sm:$0xff]  ;;  %v3390_v39 = vld [vmem:[#allocation2 + $0x158] sm:$0xff] }
 0x24d   :  { %2495 = vst.msk [vmem:[#allocation2 + $0x168] sm:$0xff] %vm2449_vm3, %v2156_v36  ;;  %2494 = vst.msk [vmem:[#allocation2 + $0x160] sm:$0xff] %vm2449_vm3, %v2154_v37  ;;  %9693 = vmatprep.mubr.msk.f32.mxu0 %vm3480_vm5, %v3389_v38  ;;  %v2649_v35 = vld [vmem:[%s14920_s0 + $0x258] sm:$0xff] }
 0x24e   :  { %1426 = vrot.lane.b32.xlu1 %v2641_v30, %s9988_s19  ;;  %1424 = vrot.lane.b32.xlu0 %v1872_v24, %s9988_s19 }
 0x24f   :  { %v9647_v40 = vpop.f32.mrf.mxu0  ;;  %9694 = vmatmul.mubr.msk.f32.gmra.mxu0 %vm3480_vm5, %v3390_v39 }
 0x250   :  { %v2925_v42 = vpop.permute.xlu1 %2924  ;;  %v2923_v43 = vpop.permute.xlu0 %2922 }
 0x251   :  { %3264 = vst.msk [vmem:[#allocation2 + $0x168] sm:$0xff] %vm3218_vm4, %v2925_v42  ;;  %3263 = vst.msk [vmem:[#allocation2 + $0x160] sm:$0xff] %vm3218_vm4, %v2923_v43  ;;  %v3981_v44 = vpop.f32.mrf.mxu0 }
 0x252   :  { %v4575_v45 = vmax.f32 %v3981_v44, %v9647_v40  ;;  %2195 = vrot.lane.b32.xlu1 %v1874_v41, %s9989_s22  ;;  %2193 = vrot.lane.b32.xlu0 %v2641_v30, %s9989_s22 }
 0x253   :  { %v11659_v11 = vld [vmem:[#allocation3 + $0x30] sm:$0xff] }
 0x254   :  { %v4644_v47 = vadd.f32 %v11526_v28, %v4575_v45  ;;  %v1391_v6 = vpop.permute.xlu1 %1390  ;;  %v1389_v9 = vpop.permute.xlu0 %1388  ;;  %4906 = vst.msk [vmem:[#allocation4 + $0x30] sm:$0xff] %vm4767_vm6, %v11659_v11 }
 0x255   :  { %1728 = vst.msk [vmem:[#allocation2 + $0x178] sm:$0xff] %vm1680_vm2, %v1391_v6  ;;  %1727 = vst.msk [vmem:[#allocation2 + $0x170] sm:$0xff] %vm1680_vm2, %v1389_v9 }
 0x256   :  { %v4708_v48 = vmax.f32 %v4644_v47, 0.0  ;;  %2964 = vrot.lane.b32.xlu1 %v2643_v8, %s9990_s23  ;;  %2962 = vrot.lane.b32.xlu0 %v1874_v41, %s9990_s23 }
 0x258   :  { %4777 = vst.msk [vmem:[#allocation3 + $0x38] sm:$0xff] %vm4767_vm6, %v4708_v48  ;;  %v2160_v49 = vpop.permute.xlu1 %2159  ;;  %v2158_v50 = vpop.permute.xlu0 %2157  ;;  %v3391_v4 = vld [vmem:[#allocation2 + $0x160] sm:$0xff]  ;;  %v3392_v51 = vld [vmem:[#allocation2 + $0x168] sm:$0xff] }
 0x259   :  { %2497 = vst.msk [vmem:[#allocation2 + $0x178] sm:$0xff] %vm2449_vm3, %v2160_v49  ;;  %2496 = vst.msk [vmem:[#allocation2 + $0x170] sm:$0xff] %vm2449_vm3, %v2158_v50  ;;  %9696 = vmatprep.mubr.msk.f32.mxu0 %vm3480_vm5, %v3391_v4  ;;  %v2651_v49 = vld [vmem:[%s14920_s0 + $0x268] sm:$0xff] }
 0x25a   :  { %1430 = vrot.lane.b32.xlu1 %v2643_v8, %s9988_s19  ;;  %1428 = vrot.lane.b32.xlu0 %v1874_v41, %s9988_s19 }
 0x25b   :  { %v9650_v2 = vpop.f32.mrf.mxu0  ;;  %9697 = vmatmul.mubr.msk.f32.gmra.mxu0 %vm3480_vm5, %v3392_v51 }
 0x25c   :  { %v2929_v52 = vpop.permute.xlu1 %2928  ;;  %v2927_v53 = vpop.permute.xlu0 %2926 }
 0x25d   :  { %3266 = vst.msk [vmem:[#allocation2 + $0x178] sm:$0xff] %vm3218_vm4, %v2929_v52  ;;  %3265 = vst.msk [vmem:[#allocation2 + $0x170] sm:$0xff] %vm3218_vm4, %v2927_v53  ;;  %v3991_v0 = vpop.f32.mrf.mxu0 }
 0x25e   :  { %v4576_v54 = vmax.f32 %v3991_v0, %v9650_v2  ;;  %2199 = vrot.lane.b32.xlu1 %v1876_v5, %s9989_s22  ;;  %2197 = vrot.lane.b32.xlu0 %v2643_v8, %s9989_s22  ;;  %v1882_v8 = vld [vmem:[%s14920_s0 + $0x260] sm:$0xff] }
 0x25f   :  { %v11685_v56 = vld [vmem:[#allocation3 + $0x38] sm:$0xff] }
 0x260   :  { %v4645_v57 = vadd.f32 %v11526_v28, %v4576_v54  ;;  %v1395_v7 = vpop.permute.xlu1 %1394  ;;  %v1393_v59 = vpop.permute.xlu0 %1392  ;;  %4907 = vst.msk [vmem:[#allocation4 + $0x38] sm:$0xff] %vm4767_vm6, %v11685_v56 }
 0x261   :  { %1730 = vst.msk [vmem:[#allocation2 + $0x188] sm:$0xff] %vm1680_vm2, %v1395_v7  ;;  %1729 = vst.msk [vmem:[#allocation2 + $0x180] sm:$0xff] %vm1680_vm2, %v1393_v59 }
 0x262   :  { %v4709_v60 = vmax.f32 %v4645_v57, 0.0  ;;  %2968 = vrot.lane.b32.xlu1 %v2645_v55, %s9990_s23  ;;  %2966 = vrot.lane.b32.xlu0 %v1876_v5, %s9990_s23  ;;  %v1884_v57 = vld [vmem:[%s14920_s0 + $0x270] sm:$0xff] }
 0x264   :  { %4778 = vst.msk [vmem:[#allocation3 + $0x40] sm:$0xff] %vm4767_vm6, %v4709_v60  ;;  %v2164_v61 = vpop.permute.xlu1 %2163  ;;  %v2162_v62 = vpop.permute.xlu0 %2161  ;;  %v3393_v63 = vld [vmem:[#allocation2 + $0x170] sm:$0xff]  ;;  %v3394_v1 = vld [vmem:[#allocation2 + $0x178] sm:$0xff] }
 0x265   :  { %2499 = vst.msk [vmem:[#allocation2 + $0x188] sm:$0xff] %vm2449_vm3, %v2164_v61  ;;  %2498 = vst.msk [vmem:[#allocation2 + $0x180] sm:$0xff] %vm2449_vm3, %v2162_v62  ;;  %9699 = vmatprep.mubr.msk.f32.mxu0 %vm3480_vm5, %v3393_v63  ;;  %v2653_v62 = vld [vmem:[%s14920_s0 + $0x278] sm:$0xff] }
 0x266   :  { %1434 = vrot.lane.b32.xlu1 %v2645_v55, %s9988_s19  ;;  %1432 = vrot.lane.b32.xlu0 %v1876_v5, %s9988_s19 }
 0x267   :  { %v9653_v10 = vpop.f32.mrf.mxu0  ;;  %9700 = vmatmul.mubr.msk.f32.gmra.mxu0 %vm3480_vm5, %v3394_v1 }
 0x268   :  { %v2933_v12 = vpop.permute.xlu1 %2932  ;;  %v2931_v13 = vpop.permute.xlu0 %2930 }
 0x269   :  { %3268 = vst.msk [vmem:[#allocation2 + $0x188] sm:$0xff] %vm3218_vm4, %v2933_v12  ;;  %3267 = vst.msk [vmem:[#allocation2 + $0x180] sm:$0xff] %vm3218_vm4, %v2931_v13  ;;  %v4001_v15 = vpop.f32.mrf.mxu0 }
 0x26a   :  { %v4577_v16 = vmax.f32 %v4001_v15, %v9653_v10  ;;  %2203 = vrot.lane.b32.xlu1 %v1878_v58, %s9989_s22  ;;  %2201 = vrot.lane.b32.xlu0 %v2645_v55, %s9989_s22 }
 0x26b   :  { %v11711_v18 = vld [vmem:[#allocation3 + $0x40] sm:$0xff] }
 0x26c   :  { %v4646_v19 = vadd.f32 %v11526_v28, %v4577_v16  ;;  %v1399_v20 = vpop.permute.xlu1 %1398  ;;  %v1397_v21 = vpop.permute.xlu0 %1396  ;;  %4908 = vst.msk [vmem:[#allocation4 + $0x40] sm:$0xff] %vm4767_vm6, %v11711_v18 }
 0x26d   :  { %1732 = vst.msk [vmem:[#allocation2 + $0x198] sm:$0xff] %vm1680_vm2, %v1399_v20  ;;  %1731 = vst.msk [vmem:[#allocation2 + $0x190] sm:$0xff] %vm1680_vm2, %v1397_v21  ;;  %v1886_v20 = vld [vmem:[%s14920_s0 + $0x280] sm:$0xff] }
 0x26e   :  { %v4710_v22 = vmax.f32 %v4646_v19, 0.0  ;;  %2972 = vrot.lane.b32.xlu1 %v2647_v17, %s9990_s23  ;;  %2970 = vrot.lane.b32.xlu0 %v1878_v58, %s9990_s23 }
 0x270   :  { %4779 = vst.msk [vmem:[#allocation3 + $0x48] sm:$0xff] %vm4767_vm6, %v4710_v22  ;;  %v2168_v23 = vpop.permute.xlu1 %2167  ;;  %v2166_v24 = vpop.permute.xlu0 %2165  ;;  %v3395_v25 = vld [vmem:[#allocation2 + $0x180] sm:$0xff]  ;;  %v3396_v26 = vld [vmem:[#allocation2 + $0x188] sm:$0xff] }
 0x271   :  { %2501 = vst.msk [vmem:[#allocation2 + $0x198] sm:$0xff] %vm2449_vm3, %v2168_v23  ;;  %2500 = vst.msk [vmem:[#allocation2 + $0x190] sm:$0xff] %vm2449_vm3, %v2166_v24  ;;  %9702 = vmatprep.mubr.msk.f32.mxu0 %vm3480_vm5, %v3395_v25  ;;  %v2655_v25 = vld [vmem:[%s14920_s0 + $0x288] sm:$0xff] }
 0x272   :  { %1438 = vrot.lane.b32.xlu1 %v2647_v17, %s9988_s19  ;;  %1436 = vrot.lane.b32.xlu0 %v1878_v58, %s9988_s19 }
 0x273   :  { %v9656_v27 = vpop.f32.mrf.mxu0  ;;  %9703 = vmatmul.mubr.msk.f32.gmra.mxu0 %vm3480_vm5, %v3396_v26 }
 0x274   :  { %v2937_v30 = vpop.permute.xlu1 %2936  ;;  %v2935_v32 = vpop.permute.xlu0 %2934 }
 0x275   :  { %3270 = vst.msk [vmem:[#allocation2 + $0x198] sm:$0xff] %vm3218_vm4, %v2937_v30  ;;  %3269 = vst.msk [vmem:[#allocation2 + $0x190] sm:$0xff] %vm3218_vm4, %v2935_v32  ;;  %v4011_v33 = vpop.f32.mrf.mxu0 }
 0x276   :  { %v4578_v34 = vmax.f32 %v4011_v33, %v9656_v27  ;;  %2207 = vrot.lane.b32.xlu1 %v1880_v29, %s9989_s22  ;;  %2205 = vrot.lane.b32.xlu0 %v2647_v17, %s9989_s22  ;;  %v11827_v33 = vld [vmem:[%s14920_s0 + $0x330] sm:$0xff] }
 0x277   :  { %v11737_v36 = vld [vmem:[#allocation3 + $0x48] sm:$0xff]  ;;  %245 = vst.msk [vmem:[#allocation2 + $0x330] sm:$0xff] %vm142_vm0, %v11827_v33 }
 0x278   :  { %v4647_v37 = vadd.f32 %v11526_v28, %v4578_v34  ;;  %v1403_v38 = vpop.permute.xlu1 %1402  ;;  %v1401_v39 = vpop.permute.xlu0 %1400  ;;  %4909 = vst.msk [vmem:[#allocation4 + $0x48] sm:$0xff] %vm4767_vm6, %v11737_v36 }
 0x279   :  { %1734 = vst.msk [vmem:[#allocation2 + $0x1a8] sm:$0xff] %vm1680_vm2, %v1403_v38  ;;  %1733 = vst.msk [vmem:[#allocation2 + $0x1a0] sm:$0xff] %vm1680_vm2, %v1401_v39  ;;  %v11840_v39 = vld [vmem:[%s14920_s0 + $0x338] sm:$0xff] }
 0x27a   :  { %v4711_v40 = vmax.f32 %v4647_v37, 0.0  ;;  %2976 = vrot.lane.b32.xlu1 %v2649_v35, %s9990_s23  ;;  %2974 = vrot.lane.b32.xlu0 %v1880_v29, %s9990_s23  ;;  %246 = vst.msk [vmem:[#allocation2 + $0x338] sm:$0xff] %vm142_vm0, %v11840_v39 }
 0x27c   :  { %4780 = vst.msk [vmem:[#allocation3 + $0x50] sm:$0xff] %vm4767_vm6, %v4711_v40  ;;  %v2172_v41 = vpop.permute.xlu1 %2171  ;;  %v2170_v42 = vpop.permute.xlu0 %2169  ;;  %v3397_v43 = vld [vmem:[#allocation2 + $0x190] sm:$0xff]  ;;  %v3398_v44 = vld [vmem:[#allocation2 + $0x198] sm:$0xff] }
 0x27d   :  { %2503 = vst.msk [vmem:[#allocation2 + $0x1a8] sm:$0xff] %vm2449_vm3, %v2172_v41  ;;  %2502 = vst.msk [vmem:[#allocation2 + $0x1a0] sm:$0xff] %vm2449_vm3, %v2170_v42  ;;  %9705 = vmatprep.mubr.msk.f32.mxu0 %vm3480_vm5, %v3397_v43  ;;  %v1888_v41 = vld [vmem:[%s14920_s0 + $0x290] sm:$0xff] }
 0x27e   :  { %1442 = vrot.lane.b32.xlu1 %v2649_v35, %s9988_s19  ;;  %1440 = vrot.lane.b32.xlu0 %v1880_v29, %s9988_s19 }
 0x27f   :  { %v9659_v45 = vpop.f32.mrf.mxu0  ;;  %9706 = vmatmul.mubr.msk.f32.gmra.mxu0 %vm3480_vm5, %v3398_v44 }
 0x280   :  { %v2941_v47 = vpop.permute.xlu1 %2940  ;;  %v2939_v6 = vpop.permute.xlu0 %2938 }
 0x281   :  { %3272 = vst.msk [vmem:[#allocation2 + $0x1a8] sm:$0xff] %vm3218_vm4, %v2941_v47  ;;  %3271 = vst.msk [vmem:[#allocation2 + $0x1a0] sm:$0xff] %vm3218_vm4, %v2939_v6  ;;  %v4021_v9 = vpop.f32.mrf.mxu0 }
 0x282   :  { %v4579_v48 = vmax.f32 %v4021_v9, %v9659_v45  ;;  %2211 = vrot.lane.b32.xlu1 %v1882_v8, %s9989_s22  ;;  %2209 = vrot.lane.b32.xlu0 %v2649_v35, %s9989_s22 }
 0x283   :  { %v11763_v50 = vld [vmem:[#allocation3 + $0x50] sm:$0xff] }
 0x284   :  { %v4648_v4 = vadd.f32 %v11526_v28, %v4579_v48  ;;  %v1407_v51 = vpop.permute.xlu1 %1406  ;;  %v1405_v2 = vpop.permute.xlu0 %1404  ;;  %4910 = vst.msk [vmem:[#allocation4 + $0x50] sm:$0xff] %vm4767_vm6, %v11763_v50 }
 0x285   :  { %1736 = vst.msk [vmem:[#allocation2 + $0x1b8] sm:$0xff] %vm1680_vm2, %v1407_v51  ;;  %1735 = vst.msk [vmem:[#allocation2 + $0x1b0] sm:$0xff] %vm1680_vm2, %v1405_v2 }
 0x286   :  { %v4712_v5 = vmax.f32 %v4648_v4, 0.0  ;;  %2980 = vrot.lane.b32.xlu1 %v2651_v49, %s9990_s23  ;;  %2978 = vrot.lane.b32.xlu0 %v1882_v8, %s9990_s23  ;;  %v11867_v4 = vld [vmem:[%s14920_s0 + $0x340] sm:$0xff] }
 0x287   :  { %247 = vst.msk [vmem:[#allocation2 + $0x340] sm:$0xff] %vm142_vm0, %v11867_v4 }
 0x288   :  { %4781 = vst.msk [vmem:[#allocation3 + $0x58] sm:$0xff] %vm4767_vm6, %v4712_v5  ;;  %v2176_v52 = vpop.permute.xlu1 %2175  ;;  %v2174_v53 = vpop.permute.xlu0 %2173  ;;  %v3399_v0 = vld [vmem:[#allocation2 + $0x1a0] sm:$0xff]  ;;  %v3400_v54 = vld [vmem:[#allocation2 + $0x1a8] sm:$0xff] }
 0x289   :  { %2505 = vst.msk [vmem:[#allocation2 + $0x1b8] sm:$0xff] %vm2449_vm3, %v2176_v52  ;;  %2504 = vst.msk [vmem:[#allocation2 + $0x1b0] sm:$0xff] %vm2449_vm3, %v2174_v53  ;;  %9708 = vmatprep.mubr.msk.f32.mxu0 %vm3480_vm5, %v3399_v0  ;;  %v1890_v0 = vld [vmem:[%s14920_s0 + $0x2a0] sm:$0xff] }
 0x28a   :  { %1446 = vrot.lane.b32.xlu1 %v2651_v49, %s9988_s19  ;;  %1444 = vrot.lane.b32.xlu0 %v1882_v8, %s9988_s19  ;;  %v2657_v8 = vld [vmem:[%s14920_s0 + $0x298] sm:$0xff] }
 0x28b   :  { %v9662_v55 = vpop.f32.mrf.mxu0  ;;  %9709 = vmatmul.mubr.msk.f32.gmra.mxu0 %vm3480_vm5, %v3400_v54 }
 0x28c   :  { %v2945_v7 = vpop.permute.xlu1 %2944  ;;  %v2943_v59 = vpop.permute.xlu0 %2942 }
 0x28d   :  { %3274 = vst.msk [vmem:[#allocation2 + $0x1b8] sm:$0xff] %vm3218_vm4, %v2945_v7  ;;  %3273 = vst.msk [vmem:[#allocation2 + $0x1b0] sm:$0xff] %vm3218_vm4, %v2943_v59  ;;  %v4031_v60 = vpop.f32.mrf.mxu0  ;;  %v11888_v59 = vld [vmem:[%s14920_s0 + $0x348] sm:$0xff] }
 0x28e   :  { %v4580_v61 = vmax.f32 %v4031_v60, %v9662_v55  ;;  %2215 = vrot.lane.b32.xlu1 %v1884_v57, %s9989_s22  ;;  %2213 = vrot.lane.b32.xlu0 %v2651_v49, %s9989_s22  ;;  %v2659_v60 = vld [vmem:[%s14920_s0 + $0x2a8] sm:$0xff]  ;;  %248 = vst.msk [vmem:[#allocation2 + $0x348] sm:$0xff] %vm142_vm0, %v11888_v59 }
 0x28f   :  { %v11789_v63 = vld [vmem:[#allocation3 + $0x58] sm:$0xff] }
 0x290   :  { %v4649_v1 = vadd.f32 %v11526_v28, %v4580_v61  ;;  %v1411_v10 = vpop.permute.xlu1 %1410  ;;  %v1409_v58 = vpop.permute.xlu0 %1408  ;;  %4911 = vst.msk [vmem:[#allocation4 + $0x58] sm:$0xff] %vm4767_vm6, %v11789_v63 }
 0x291   :  { %1738 = vst.msk [vmem:[#allocation2 + $0x1c8] sm:$0xff] %vm1680_vm2, %v1411_v10  ;;  %1737 = vst.msk [vmem:[#allocation2 + $0x1c0] sm:$0xff] %vm1680_vm2, %v1409_v58 }
 0x292   :  { %v4713_v12 = vmax.f32 %v4649_v1, 0.0  ;;  %2984 = vrot.lane.b32.xlu1 %v2653_v62, %s9990_s23  ;;  %2982 = vrot.lane.b32.xlu0 %v1884_v57, %s9990_s23 }
 0x294   :  { %4782 = vst.msk [vmem:[#allocation3 + $0x60] sm:$0xff] %vm4767_vm6, %v4713_v12  ;;  %v2180_v13 = vpop.permute.xlu1 %2179  ;;  %v2178_v15 = vpop.permute.xlu0 %2177  ;;  %v3401_v16 = vld [vmem:[#allocation2 + $0x1b0] sm:$0xff]  ;;  %v3402_v17 = vld [vmem:[#allocation2 + $0x1b8] sm:$0xff] }
 0x295   :  { %2507 = vst.msk [vmem:[#allocation2 + $0x1c8] sm:$0xff] %vm2449_vm3, %v2180_v13  ;;  %2506 = vst.msk [vmem:[#allocation2 + $0x1c0] sm:$0xff] %vm2449_vm3, %v2178_v15  ;;  %9711 = vmatprep.mubr.msk.f32.mxu0 %vm3480_vm5, %v3401_v16 }
 0x296   :  { %1450 = vrot.lane.b32.xlu1 %v2653_v62, %s9988_s19  ;;  %1448 = vrot.lane.b32.xlu0 %v1884_v57, %s9988_s19 }
 0x297   :  { %v9665_v19 = vpop.f32.mrf.mxu0  ;;  %9712 = vmatmul.mubr.msk.f32.gmra.mxu0 %vm3480_vm5, %v3402_v17  ;;  %v11913_v17 = vld [vmem:[%s14920_s0 + $0x350] sm:$0xff] }
 0x298   :  { %v2949_v21 = vpop.permute.xlu1 %2948  ;;  %v2947_v22 = vpop.permute.xlu0 %2946  ;;  %249 = vst.msk [vmem:[#allocation2 + $0x350] sm:$0xff] %vm142_vm0, %v11913_v17 }
 0x299   :  { %3276 = vst.msk [vmem:[#allocation2 + $0x1c8] sm:$0xff] %vm3218_vm4, %v2949_v21  ;;  %3275 = vst.msk [vmem:[#allocation2 + $0x1c0] sm:$0xff] %vm3218_vm4, %v2947_v22  ;;  %v4041_v23 = vpop.f32.mrf.mxu0 }
 0x29a   :  { %v4581_v24 = vmax.f32 %v4041_v23, %v9665_v19  ;;  %2219 = vrot.lane.b32.xlu1 %v1886_v20, %s9989_s22  ;;  %2217 = vrot.lane.b32.xlu0 %v2653_v62, %s9989_s22 }
 0x29b   :  { %v11815_v26 = vld [vmem:[#allocation3 + $0x60] sm:$0xff] }
 0x29c   :  { %v4650_v27 = vadd.f32 %v11526_v28, %v4581_v24  ;;  %v1415_v29 = vpop.permute.xlu1 %1414  ;;  %v1413_v30 = vpop.permute.xlu0 %1412  ;;  %4912 = vst.msk [vmem:[#allocation4 + $0x60] sm:$0xff] %vm4767_vm6, %v11815_v26 }
 0x29d   :  { %1740 = vst.msk [vmem:[#allocation2 + $0x1d8] sm:$0xff] %vm1680_vm2, %v1415_v29  ;;  %1739 = vst.msk [vmem:[#allocation2 + $0x1d0] sm:$0xff] %vm1680_vm2, %v1413_v30 }
 0x29e   :  { %v4714_v32 = vmax.f32 %v4650_v27, 0.0  ;;  %2988 = vrot.lane.b32.xlu1 %v2655_v25, %s9990_s23  ;;  %2986 = vrot.lane.b32.xlu0 %v1886_v20, %s9990_s23 }
 0x2a0   :  { %4783 = vst.msk [vmem:[#allocation3 + $0x68] sm:$0xff] %vm4767_vm6, %v4714_v32  ;;  %v2184_v34 = vpop.permute.xlu1 %2183  ;;  %v2182_v35 = vpop.permute.xlu0 %2181  ;;  %v3403_v37 = vld [vmem:[#allocation2 + $0x1c0] sm:$0xff]  ;;  %v3404_v38 = vld [vmem:[#allocation2 + $0x1c8] sm:$0xff] }
 0x2a1   :  { %2509 = vst.msk [vmem:[#allocation2 + $0x1d8] sm:$0xff] %vm2449_vm3, %v2184_v34  ;;  %2508 = vst.msk [vmem:[#allocation2 + $0x1d0] sm:$0xff] %vm2449_vm3, %v2182_v35  ;;  %9714 = vmatprep.mubr.msk.f32.mxu0 %vm3480_vm5, %v3403_v37  ;;  %v11940_v35 = vld [vmem:[%s14920_s0 + $0x358] sm:$0xff] }
 0x2a2   :  { %1454 = vrot.lane.b32.xlu1 %v2655_v25, %s9988_s19  ;;  %1452 = vrot.lane.b32.xlu0 %v1886_v20, %s9988_s19  ;;  %v1892_v20 = vld [vmem:[%s14920_s0 + $0x2b0] sm:$0xff]  ;;  %250 = vst.msk [vmem:[#allocation2 + $0x358] sm:$0xff] %vm142_vm0, %v11940_v35 }
 0x2a3   :  { %v9668_v40 = vpop.f32.mrf.mxu0  ;;  %9715 = vmatmul.mubr.msk.f32.gmra.mxu0 %vm3480_vm5, %v3404_v38 }
 0x2a4   :  { %v2953_v42 = vpop.permute.xlu1 %2952  ;;  %v2951_v43 = vpop.permute.xlu0 %2950 }
 0x2a5   :  { %3278 = vst.msk [vmem:[#allocation2 + $0x1d8] sm:$0xff] %vm3218_vm4, %v2953_v42  ;;  %3277 = vst.msk [vmem:[#allocation2 + $0x1d0] sm:$0xff] %vm3218_vm4, %v2951_v43  ;;  %v4051_v44 = vpop.f32.mrf.mxu0  ;;  %v1894_v43 = vld [vmem:[%s14920_s0 + $0x2c0] sm:$0xff] }
 0x2a6   :  { %v4582_v45 = vmax.f32 %v4051_v44, %v9668_v40  ;;  %2223 = vrot.lane.b32.xlu1 %v1888_v41, %s9989_s22  ;;  %2221 = vrot.lane.b32.xlu0 %v2655_v25, %s9989_s22  ;;  %v2661_v25 = vld [vmem:[%s14920_s0 + $0x2b8] sm:$0xff] }
 0x2a7   :  { %v11855_v47 = vld [vmem:[#allocation3 + $0x68] sm:$0xff] }
 0x2a8   :  { %v4651_v6 = vadd.f32 %v11526_v28, %v4582_v45  ;;  %v1419_v9 = vpop.permute.xlu1 %1418  ;;  %v1417_v48 = vpop.permute.xlu0 %1416  ;;  %4913 = vst.msk [vmem:[#allocation4 + $0x68] sm:$0xff] %vm4767_vm6, %v11855_v47 }
 0x2a9   :  { %1742 = vst.msk [vmem:[#allocation2 + $0x1e8] sm:$0xff] %vm1680_vm2, %v1419_v9  ;;  %1741 = vst.msk [vmem:[#allocation2 + $0x1e0] sm:$0xff] %vm1680_vm2, %v1417_v48  ;;  %v2663_v48 = vld [vmem:[%s14920_s0 + $0x2c8] sm:$0xff] }
 0x2aa   :  { %v4715_v49 = vmax.f32 %v4651_v6, 0.0  ;;  %2992 = vrot.lane.b32.xlu1 %v2657_v8, %s9990_s23  ;;  %2990 = vrot.lane.b32.xlu0 %v1888_v41, %s9990_s23  ;;  %v11959_v6 = vld [vmem:[%s14920_s0 + $0x360] sm:$0xff] }
 0x2ab   :  { %251 = vst.msk [vmem:[#allocation2 + $0x360] sm:$0xff] %vm142_vm0, %v11959_v6 }
 0x2ac   :  { %4784 = vst.msk [vmem:[#allocation3 + $0x70] sm:$0xff] %vm4767_vm6, %v4715_v49  ;;  %v2188_v51 = vpop.permute.xlu1 %2187  ;;  %v2186_v2 = vpop.permute.xlu0 %2185  ;;  %v3405_v5 = vld [vmem:[#allocation2 + $0x1d0] sm:$0xff]  ;;  %v3406_v52 = vld [vmem:[#allocation2 + $0x1d8] sm:$0xff] }
 0x2ad   :  { %2511 = vst.msk [vmem:[#allocation2 + $0x1e8] sm:$0xff] %vm2449_vm3, %v2188_v51  ;;  %2510 = vst.msk [vmem:[#allocation2 + $0x1e0] sm:$0xff] %vm2449_vm3, %v2186_v2  ;;  %9717 = vmatprep.mubr.msk.f32.mxu0 %vm3480_vm5, %v3405_v5 }
 0x2ae   :  { %1458 = vrot.lane.b32.xlu1 %v2657_v8, %s9988_s19  ;;  %1456 = vrot.lane.b32.xlu0 %v1888_v41, %s9988_s19 }
 0x2af   :  { %v9671_v53 = vpop.f32.mrf.mxu0  ;;  %9718 = vmatmul.mubr.msk.f32.gmra.mxu0 %vm3480_vm5, %v3406_v52 }
 0x2b0   :  { %v2957_v54 = vpop.permute.xlu1 %2956  ;;  %v2955_v55 = vpop.permute.xlu0 %2954 }
 0x2b1   :  { %3280 = vst.msk [vmem:[#allocation2 + $0x1e8] sm:$0xff] %vm3218_vm4, %v2957_v54  ;;  %3279 = vst.msk [vmem:[#allocation2 + $0x1e0] sm:$0xff] %vm3218_vm4, %v2955_v55  ;;  %v4061_v57 = vpop.f32.mrf.mxu0  ;;  %v11986_v55 = vld [vmem:[%s14920_s0 + $0x368] sm:$0xff] }
 0x2b2   :  { %v4583_v7 = vmax.f32 %v4061_v57, %v9671_v53  ;;  %2227 = vrot.lane.b32.xlu1 %v1890_v0, %s9989_s22  ;;  %2225 = vrot.lane.b32.xlu0 %v2657_v8, %s9989_s22  ;;  %252 = vst.msk [vmem:[#allocation2 + $0x368] sm:$0xff] %vm142_vm0, %v11986_v55 }
 0x2b3   :  { %v11895_v61 = vld [vmem:[#allocation3 + $0x70] sm:$0xff] }
 0x2b4   :  { %v4652_v62 = vadd.f32 %v11526_v28, %v4583_v7  ;;  %v1423_v1 = vpop.permute.xlu1 %1422  ;;  %v1421_v10 = vpop.permute.xlu0 %1420  ;;  %4914 = vst.msk [vmem:[#allocation4 + $0x70] sm:$0xff] %vm4767_vm6, %v11895_v61  ;;  %v1896_v7 = vld [vmem:[%s14920_s0 + $0x2d0] sm:$0xff] }
 0x2b5   :  { %1744 = vst.msk [vmem:[#allocation2 + $0x1f8] sm:$0xff] %vm1680_vm2, %v1423_v1  ;;  %1743 = vst.msk [vmem:[#allocation2 + $0x1f0] sm:$0xff] %vm1680_vm2, %v1421_v10 }
 0x2b6   :  { %v4716_v58 = vmax.f32 %v4652_v62, 0.0  ;;  %2996 = vrot.lane.b32.xlu1 %v2659_v60, %s9990_s23  ;;  %2994 = vrot.lane.b32.xlu0 %v1890_v0, %s9990_s23 }
 0x2b8   :  { %4785 = vst.msk [vmem:[#allocation3 + $0x78] sm:$0xff] %vm4767_vm6, %v4716_v58  ;;  %v2192_v12 = vpop.permute.xlu1 %2191  ;;  %v2190_v13 = vpop.permute.xlu0 %2189  ;;  %v3407_v15 = vld [vmem:[#allocation2 + $0x1e0] sm:$0xff]  ;;  %v3408_v16 = vld [vmem:[#allocation2 + $0x1e8] sm:$0xff]  ;;  %v2665_v58 = vld [vmem:[%s14920_s0 + $0x2d8] sm:$0xff] }
 0x2b9   :  { %2513 = vst.msk [vmem:[#allocation2 + $0x1f8] sm:$0xff] %vm2449_vm3, %v2192_v12  ;;  %2512 = vst.msk [vmem:[#allocation2 + $0x1f0] sm:$0xff] %vm2449_vm3, %v2190_v13  ;;  %9720 = vmatprep.mubr.msk.f32.mxu0 %vm3480_vm5, %v3407_v15  ;;  %v12006_v13 = vld [vmem:[%s14922_s2] ss:$0 sm:$0xff] }
 0x2ba   :  { %1462 = vrot.lane.b32.xlu1 %v2659_v60, %s9988_s19  ;;  %1460 = vrot.lane.b32.xlu0 %v1890_v0, %s9988_s19 }
 0x2bb   :  { %v9674_v19 = vpop.f32.mrf.mxu0  ;;  %9721 = vmatmul.mubr.msk.f32.gmra.mxu0 %vm3480_vm5, %v3408_v16 }
 0x2bc   :  { %v2961_v21 = vpop.permute.xlu1 %2960  ;;  %v2959_v22 = vpop.permute.xlu0 %2958 }
 0x2bd   :  { %3282 = vst.msk [vmem:[#allocation2 + $0x1f8] sm:$0xff] %vm3218_vm4, %v2961_v21  ;;  %3281 = vst.msk [vmem:[#allocation2 + $0x1f0] sm:$0xff] %vm3218_vm4, %v2959_v22  ;;  %v4071_v23 = vpop.f32.mrf.mxu0  ;;  %v12018_v21 = vld [vmem:[%s14920_s0 + $0x370] sm:$0xff] }
 0x2be   :  { %v4584_v24 = vmax.f32 %v4071_v23, %v9674_v19  ;;  %2231 = vrot.lane.b32.xlu1 %v1892_v20, %s9989_s22  ;;  %2229 = vrot.lane.b32.xlu0 %v2659_v60, %s9989_s22  ;;  %253 = vst.msk [vmem:[#allocation2 + $0x370] sm:$0xff] %vm142_vm0, %v12018_v21 }
 0x2bf   :  { %v11928_v27 = vld [vmem:[#allocation3 + $0x78] sm:$0xff] }
 0x2c0   :  { %v4653_v29 = vadd.f32 %v11526_v28, %v4584_v24  ;;  %v1427_v30 = vpop.permute.xlu1 %1426  ;;  %v1425_v32 = vpop.permute.xlu0 %1424  ;;  %4915 = vst.msk [vmem:[#allocation4 + $0x78] sm:$0xff] %vm4767_vm6, %v11928_v27 }
 0x2c1   :  { %1746 = vst.msk [vmem:[#allocation2 + $0x208] sm:$0xff] %vm1680_vm2, %v1427_v30  ;;  %1745 = vst.msk [vmem:[#allocation2 + $0x200] sm:$0xff] %vm1680_vm2, %v1425_v32  ;;  %v1898_v30 = vld [vmem:[%s14920_s0 + $0x2e0] sm:$0xff] }
 0x2c2   :  { %v4717_v34 = vmax.f32 %v4653_v29, 0.0  ;;  %3000 = vrot.lane.b32.xlu1 %v2661_v25, %s9990_s23  ;;  %2998 = vrot.lane.b32.xlu0 %v1892_v20, %s9990_s23 }
 0x2c4   :  { %4786 = vst.msk [vmem:[#allocation3 + $0x80] sm:$0xff] %vm4767_vm6, %v4717_v34  ;;  %v2196_v37 = vpop.permute.xlu1 %2195  ;;  %v2194_v38 = vpop.permute.xlu0 %2193  ;;  %v3409_v40 = vld [vmem:[#allocation2 + $0x1f0] sm:$0xff]  ;;  %v3410_v41 = vld [vmem:[#allocation2 + $0x1f8] sm:$0xff] }
 0x2c5   :  { %2515 = vst.msk [vmem:[#allocation2 + $0x208] sm:$0xff] %vm2449_vm3, %v2196_v37  ;;  %2514 = vst.msk [vmem:[#allocation2 + $0x200] sm:$0xff] %vm2449_vm3, %v2194_v38  ;;  %9723 = vmatprep.mubr.msk.f32.mxu0 %vm3480_vm5, %v3409_v40  ;;  %v12039_v40 = vld [vmem:[%s14920_s0 + $0x378] sm:$0xff] }
 0x2c6   :  { %1466 = vrot.lane.b32.xlu1 %v2661_v25, %s9988_s19  ;;  %1464 = vrot.lane.b32.xlu0 %v1892_v20, %s9988_s19  ;;  %254 = vst.msk [vmem:[#allocation2 + $0x378] sm:$0xff] %vm142_vm0, %v12039_v40 }
 0x2c7   :  { %v9677_v42 = vpop.f32.mrf.mxu0  ;;  %9724 = vmatmul.mubr.msk.f32.gmra.mxu0 %vm3480_vm5, %v3410_v41  ;;  %v2667_v41 = vld [vmem:[%s14920_s0 + $0x2e8] sm:$0xff] }
 0x2c8   :  { %v2965_v44 = vpop.permute.xlu1 %2964  ;;  %v2963_v45 = vpop.permute.xlu0 %2962 }
 0x2c9   :  { %3284 = vst.msk [vmem:[#allocation2 + $0x208] sm:$0xff] %vm3218_vm4, %v2965_v44  ;;  %3283 = vst.msk [vmem:[#allocation2 + $0x200] sm:$0xff] %vm3218_vm4, %v2963_v45  ;;  %v4081_v8 = vpop.f32.mrf.mxu0 }
 0x2ca   :  { %v4585_v9 = vmax.f32 %v4081_v8, %v9677_v42  ;;  %2235 = vrot.lane.b32.xlu1 %v1894_v43, %s9989_s22  ;;  %2233 = vrot.lane.b32.xlu0 %v2661_v25, %s9989_s22 }
 0x2cb   :  { %v11968_v49 = vld [vmem:[#allocation3 + $0x80] sm:$0xff] }
 0x2cc   :  { %v4654_v51 = vadd.f32 %v11526_v28, %v4585_v9  ;;  %v1431_v2 = vpop.permute.xlu1 %1430  ;;  %v1429_v5 = vpop.permute.xlu0 %1428  ;;  %4916 = vst.msk [vmem:[#allocation4 + $0x80] sm:$0xff] %vm4767_vm6, %v11968_v49 }
 0x2cd   :  { %1748 = vst.msk [vmem:[#allocation2 + $0x218] sm:$0xff] %vm1680_vm2, %v1431_v2  ;;  %1747 = vst.msk [vmem:[#allocation2 + $0x210] sm:$0xff] %vm1680_vm2, %v1429_v5  ;;  %v12064_v5 = vld [vmem:[%s14920_s0 + $0x380] sm:$0xff] }
 0x2ce   :  { %v4718_v52 = vmax.f32 %v4654_v51, 0.0  ;;  %3004 = vrot.lane.b32.xlu1 %v2663_v48, %s9990_s23  ;;  %3002 = vrot.lane.b32.xlu0 %v1894_v43, %s9990_s23  ;;  %255 = vst.msk [vmem:[#allocation2 + $0x380] sm:$0xff] %vm142_vm0, %v12064_v5 }
 0x2d0   :  { %4787 = vst.msk [vmem:[#allocation3 + $0x88] sm:$0xff] %vm4767_vm6, %v4718_v52  ;;  %v2200_v53 = vpop.permute.xlu1 %2199  ;;  %v2198_v0 = vpop.permute.xlu0 %2197  ;;  %v3411_v54 = vld [vmem:[#allocation2 + $0x200] sm:$0xff]  ;;  %v3412_v28 = vld [vmem:[#allocation2 + $0x208] sm:$0xff] }
 0x2d1   :  { %2517 = vst.msk [vmem:[#allocation2 + $0x218] sm:$0xff] %vm2449_vm3, %v2200_v53  ;;  %2516 = vst.msk [vmem:[#allocation2 + $0x210] sm:$0xff] %vm2449_vm3, %v2198_v0  ;;  %9726 = vmatprep.mubr.msk.f32.mxu0 %vm3480_vm5, %v3411_v54  ;;  %v1900_v53 = vld [vmem:[%s14920_s0 + $0x2f0] sm:$0xff] }
 0x2d2   :  { %1470 = vrot.lane.b32.xlu1 %v2663_v48, %s9988_s19  ;;  %1468 = vrot.lane.b32.xlu0 %v1894_v43, %s9988_s19 }
 0x2d3   :  { %v9680_v57 = vpop.f32.mrf.mxu0  ;;  %9727 = vmatmul.mubr.msk.f32.gmra.mxu0 %vm3480_vm5, %v3412_v28 }
 0x2d4   :  { %v2969_v60 = vpop.permute.xlu1 %2968  ;;  %v2967_v62 = vpop.permute.xlu0 %2966 }
 0x2d5   :  { %3286 = vst.msk [vmem:[#allocation2 + $0x218] sm:$0xff] %vm3218_vm4, %v2969_v60  ;;  %3285 = vst.msk [vmem:[#allocation2 + $0x210] sm:$0xff] %vm3218_vm4, %v2967_v62  ;;  %v4091_v1 = vpop.f32.mrf.mxu0 }
 0x2d6   :  { %v4586_v10 = vmax.f32 %v4091_v1, %v9680_v57  ;;  %2239 = vrot.lane.b32.xlu1 %v1896_v7, %s9989_s22  ;;  %2237 = vrot.lane.b32.xlu0 %v2663_v48, %s9989_s22 }
 0x2d7   :  { %v12001_v12 = vld [vmem:[#allocation3 + $0x88] sm:$0xff] }
 0x2d8   :  { %v4655_v15 = vadd.f32 %v12006_v13, %v4586_v10  ;;  %v1435_v16 = vpop.permute.xlu1 %1434  ;;  %v1433_v19 = vpop.permute.xlu0 %1432  ;;  %4917 = vst.msk [vmem:[#allocation4 + $0x88] sm:$0xff] %vm4767_vm6, %v12001_v12 }
 0x2d9   :  { %1750 = vst.msk [vmem:[#allocation2 + $0x228] sm:$0xff] %vm1680_vm2, %v1435_v16  ;;  %1749 = vst.msk [vmem:[#allocation2 + $0x220] sm:$0xff] %vm1680_vm2, %v1433_v19 }
 0x2da   :  { %v4719_v20 = vmax.f32 %v4655_v15, 0.0  ;;  %3008 = vrot.lane.b32.xlu1 %v2665_v58, %s9990_s23  ;;  %3006 = vrot.lane.b32.xlu0 %v1896_v7, %s9990_s23  ;;  %v12091_v15 = vld [vmem:[%s14920_s0 + $0x388] sm:$0xff] }
 0x2db   :  { %256 = vst.msk [vmem:[#allocation2 + $0x388] sm:$0xff] %vm142_vm0, %v12091_v15 }
 0x2dc   :  { %4788 = vst.msk [vmem:[#allocation3 + $0x90] sm:$0xff] %vm4767_vm6, %v4719_v20  ;;  %v2204_v22 = vpop.permute.xlu1 %2203  ;;  %v2202_v23 = vpop.permute.xlu0 %2201  ;;  %v3413_v24 = vld [vmem:[#allocation2 + $0x210] sm:$0xff]  ;;  %v3414_v25 = vld [vmem:[#allocation2 + $0x218] sm:$0xff] }
 0x2dd   :  { %2519 = vst.msk [vmem:[#allocation2 + $0x228] sm:$0xff] %vm2449_vm3, %v2204_v22  ;;  %2518 = vst.msk [vmem:[#allocation2 + $0x220] sm:$0xff] %vm2449_vm3, %v2202_v23  ;;  %9729 = vmatprep.mubr.msk.f32.mxu0 %vm3480_vm5, %v3413_v24  ;;  %v1902_v24 = vld [vmem:[%s14920_s0 + $0x300] sm:$0xff] }
 0x2de   :  { %1474 = vrot.lane.b32.xlu1 %v2665_v58, %s9988_s19  ;;  %1472 = vrot.lane.b32.xlu0 %v1896_v7, %s9988_s19  ;;  %v2669_v7 = vld [vmem:[%s14920_s0 + $0x2f8] sm:$0xff] }
 0x2df   :  { %v9683_v29 = vpop.f32.mrf.mxu0  ;;  %9730 = vmatmul.mubr.msk.f32.gmra.mxu0 %vm3480_vm5, %v3414_v25 }
 0x2e0   :  { %v2973_v32 = vpop.permute.xlu1 %2972  ;;  %v2971_v34 = vpop.permute.xlu0 %2970 }
 0x2e1   :  { %3288 = vst.msk [vmem:[#allocation2 + $0x228] sm:$0xff] %vm3218_vm4, %v2973_v32  ;;  %3287 = vst.msk [vmem:[#allocation2 + $0x220] sm:$0xff] %vm3218_vm4, %v2971_v34  ;;  %v4101_v37 = vpop.f32.mrf.mxu0  ;;  %v12110_v32 = vld [vmem:[%s14920_s0 + $0x390] sm:$0xff] }
 0x2e2   :  { %v4587_v38 = vmax.f32 %v4101_v37, %v9683_v29  ;;  %2243 = vrot.lane.b32.xlu1 %v1898_v30, %s9989_s22  ;;  %2241 = vrot.lane.b32.xlu0 %v2665_v58, %s9989_s22  ;;  %257 = vst.msk [vmem:[#allocation2 + $0x390] sm:$0xff] %vm142_vm0, %v12110_v32  ;;  %v2671_v37 = vld [vmem:[%s14920_s0 + $0x308] sm:$0xff] }
 0x2e3   :  { %v12046_v42 = vld [vmem:[#allocation3 + $0x90] sm:$0xff] }
 0x2e4   :  { %v4656_v43 = vadd.f32 %v12006_v13, %v4587_v38  ;;  %v1439_v44 = vpop.permute.xlu1 %1438  ;;  %v1437_v45 = vpop.permute.xlu0 %1436  ;;  %4918 = vst.msk [vmem:[#allocation4 + $0x90] sm:$0xff] %vm4767_vm6, %v12046_v42 }
 0x2e5   :  { %1752 = vst.msk [vmem:[#allocation2 + $0x238] sm:$0xff] %vm1680_vm2, %v1439_v44  ;;  %1751 = vst.msk [vmem:[#allocation2 + $0x230] sm:$0xff] %vm1680_vm2, %v1437_v45 }
 0x2e6   :  { %v4720_v8 = vmax.f32 %v4656_v43, 0.0  ;;  %3012 = vrot.lane.b32.xlu1 %v2667_v41, %s9990_s23  ;;  %3010 = vrot.lane.b32.xlu0 %v1898_v30, %s9990_s23 }
 0x2e8   :  { %4789 = vst.msk [vmem:[#allocation3 + $0x98] sm:$0xff] %vm4767_vm6, %v4720_v8  ;;  %v2208_v9 = vpop.permute.xlu1 %2207  ;;  %v2206_v48 = vpop.permute.xlu0 %2205  ;;  %v3415_v51 = vld [vmem:[#allocation2 + $0x220] sm:$0xff]  ;;  %v3416_v2 = vld [vmem:[#allocation2 + $0x228] sm:$0xff] }
 0x2e9   :  { %2521 = vst.msk [vmem:[#allocation2 + $0x238] sm:$0xff] %vm2449_vm3, %v2208_v9  ;;  %2520 = vst.msk [vmem:[#allocation2 + $0x230] sm:$0xff] %vm2449_vm3, %v2206_v48  ;;  %9732 = vmatprep.mubr.msk.f32.mxu0 %vm3480_vm5, %v3415_v51 }
 0x2ea   :  { %1478 = vrot.lane.b32.xlu1 %v2667_v41, %s9988_s19  ;;  %1476 = vrot.lane.b32.xlu0 %v1898_v30, %s9988_s19 }
 0x2eb   :  { %v9686_v52 = vpop.f32.mrf.mxu0  ;;  %9733 = vmatmul.mubr.msk.f32.gmra.mxu0 %vm3480_vm5, %v3416_v2  ;;  %v12137_v2 = vld [vmem:[%s14920_s0 + $0x398] sm:$0xff] }
 0x2ec   :  { %v2977_v0 = vpop.permute.xlu1 %2976  ;;  %v2975_v54 = vpop.permute.xlu0 %2974  ;;  %258 = vst.msk [vmem:[#allocation2 + $0x398] sm:$0xff] %vm142_vm0, %v12137_v2 }
 0x2ed   :  { %3290 = vst.msk [vmem:[#allocation2 + $0x238] sm:$0xff] %vm3218_vm4, %v2977_v0  ;;  %3289 = vst.msk [vmem:[#allocation2 + $0x230] sm:$0xff] %vm3218_vm4, %v2975_v54  ;;  %v4111_v28 = vpop.f32.mrf.mxu0 }
 0x2ee   :  { %v4588_v57 = vmax.f32 %v4111_v28, %v9686_v52  ;;  %2247 = vrot.lane.b32.xlu1 %v1900_v53, %s9989_s22  ;;  %2245 = vrot.lane.b32.xlu0 %v2667_v41, %s9989_s22 }
 0x2ef   :  { %v12079_v60 = vld [vmem:[#allocation3 + $0x98] sm:$0xff] }
 0x2f0   :  { %v4657_v62 = vadd.f32 %v12006_v13, %v4588_v57  ;;  %v1443_v1 = vpop.permute.xlu1 %1442  ;;  %v1441_v10 = vpop.permute.xlu0 %1440  ;;  %4919 = vst.msk [vmem:[#allocation4 + $0x98] sm:$0xff] %vm4767_vm6, %v12079_v60 }
 0x2f1   :  { %1754 = vst.msk [vmem:[#allocation2 + $0x248] sm:$0xff] %vm1680_vm2, %v1443_v1  ;;  %1753 = vst.msk [vmem:[#allocation2 + $0x240] sm:$0xff] %vm1680_vm2, %v1441_v10 }
 0x2f2   :  { %v4721_v58 = vmax.f32 %v4657_v62, 0.0  ;;  %3016 = vrot.lane.b32.xlu1 %v2669_v7, %s9990_s23  ;;  %3014 = vrot.lane.b32.xlu0 %v1900_v53, %s9990_s23 }
 0x2f4   :  { %4790 = vst.msk [vmem:[#allocation3 + $0xa0] sm:$0xff] %vm4767_vm6, %v4721_v58  ;;  %v2212_v16 = vpop.permute.xlu1 %2211  ;;  %v2210_v19 = vpop.permute.xlu0 %2209  ;;  %v3417_v20 = vld [vmem:[#allocation2 + $0x230] sm:$0xff]  ;;  %v3418_v22 = vld [vmem:[#allocation2 + $0x238] sm:$0xff] }
 0x2f5   :  { %2523 = vst.msk [vmem:[#allocation2 + $0x248] sm:$0xff] %vm2449_vm3, %v2212_v16  ;;  %2522 = vst.msk [vmem:[#allocation2 + $0x240] sm:$0xff] %vm2449_vm3, %v2210_v19  ;;  %9735 = vmatprep.mubr.msk.f32.mxu0 %vm3480_vm5, %v3417_v20  ;;  %v12164_v19 = vld [vmem:[%s14920_s0 + $0x3a0] sm:$0xff] }
 0x2f6   :  { %1482 = vrot.lane.b32.xlu1 %v2669_v7, %s9988_s19  ;;  %1480 = vrot.lane.b32.xlu0 %v1900_v53, %s9988_s19  ;;  %v1904_v53 = vld [vmem:[%s14920_s0 + $0x310] sm:$0xff]  ;;  %259 = vst.msk [vmem:[#allocation2 + $0x3a0] sm:$0xff] %vm142_vm0, %v12164_v19 }
 0x2f7   :  { %v9689_v23 = vpop.f32.mrf.mxu0  ;;  %9736 = vmatmul.mubr.msk.f32.gmra.mxu0 %vm3480_vm5, %v3418_v22 }
 0x2f8   :  { %v2981_v25 = vpop.permute.xlu1 %2980  ;;  %v2979_v29 = vpop.permute.xlu0 %2978 }
 0x2f9   :  { %3292 = vst.msk [vmem:[#allocation2 + $0x248] sm:$0xff] %vm3218_vm4, %v2981_v25  ;;  %3291 = vst.msk [vmem:[#allocation2 + $0x240] sm:$0xff] %vm3218_vm4, %v2979_v29  ;;  %v4121_v30 = vpop.f32.mrf.mxu0  ;;  %v1906_v29 = vld [vmem:[%s14920_s0 + $0x320] sm:$0xff] }
 0x2fa   :  { %v4589_v34 = vmax.f32 %v4121_v30, %v9689_v23  ;;  %2251 = vrot.lane.b32.xlu1 %v1902_v24, %s9989_s22  ;;  %2249 = vrot.lane.b32.xlu0 %v2669_v7, %s9989_s22  ;;  %v2673_v7 = vld [vmem:[%s14920_s0 + $0x318] sm:$0xff] }
 0x2fb   :  { %v12119_v38 = vld [vmem:[#allocation3 + $0xa0] sm:$0xff] }
 0x2fc   :  { %v4658_v41 = vadd.f32 %v12006_v13, %v4589_v34  ;;  %v1447_v43 = vpop.permute.xlu1 %1446  ;;  %v1445_v44 = vpop.permute.xlu0 %1444  ;;  %4920 = vst.msk [vmem:[#allocation4 + $0xa0] sm:$0xff] %vm4767_vm6, %v12119_v38 }
 0x2fd   :  { %1756 = vst.msk [vmem:[#allocation2 + $0x258] sm:$0xff] %vm1680_vm2, %v1447_v43  ;;  %1755 = vst.msk [vmem:[#allocation2 + $0x250] sm:$0xff] %vm1680_vm2, %v1445_v44  ;;  %v12185_v43 = vld [vmem:[%s14920_s0 + $0x3a8] sm:$0xff] }
 0x2fe   :  { %v4722_v45 = vmax.f32 %v4658_v41, 0.0  ;;  %3020 = vrot.lane.b32.xlu1 %v2671_v37, %s9990_s23  ;;  %3018 = vrot.lane.b32.xlu0 %v1902_v24, %s9990_s23  ;;  %v2675_v44 = vld [vmem:[%s14920_s0 + $0x328] sm:$0xff]  ;;  %260 = vst.msk [vmem:[#allocation2 + $0x3a8] sm:$0xff] %vm142_vm0, %v12185_v43 }
 0x300   :  { %4791 = vst.msk [vmem:[#allocation3 + $0xa8] sm:$0xff] %vm4767_vm6, %v4722_v45  ;;  %v2216_v8 = vpop.permute.xlu1 %2215  ;;  %v2214_v9 = vpop.permute.xlu0 %2213  ;;  %v3419_v48 = vld [vmem:[#allocation2 + $0x240] sm:$0xff]  ;;  %v3420_v51 = vld [vmem:[#allocation2 + $0x248] sm:$0xff] }
 0x301   :  { %2525 = vst.msk [vmem:[#allocation2 + $0x258] sm:$0xff] %vm2449_vm3, %v2216_v8  ;;  %2524 = vst.msk [vmem:[#allocation2 + $0x250] sm:$0xff] %vm2449_vm3, %v2214_v9  ;;  %9738 = vmatprep.mubr.msk.f32.mxu0 %vm3480_vm5, %v3419_v48 }
 0x302   :  { %1486 = vrot.lane.b32.xlu1 %v2671_v37, %s9988_s19  ;;  %1484 = vrot.lane.b32.xlu0 %v1902_v24, %s9988_s19 }
 0x303   :  { %v9692_v52 = vpop.f32.mrf.mxu0  ;;  %9739 = vmatmul.mubr.msk.f32.gmra.mxu0 %vm3480_vm5, %v3420_v51 }
 0x304   :  { %v2985_v0 = vpop.permute.xlu1 %2984  ;;  %v2983_v54 = vpop.permute.xlu0 %2982 }
 0x305   :  { %3294 = vst.msk [vmem:[#allocation2 + $0x258] sm:$0xff] %vm3218_vm4, %v2985_v0  ;;  %3293 = vst.msk [vmem:[#allocation2 + $0x250] sm:$0xff] %vm3218_vm4, %v2983_v54  ;;  %v4131_v28 = vpop.f32.mrf.mxu0 }
 0x306   :  { %v4590_v57 = vmax.f32 %v4131_v28, %v9692_v52  ;;  %2255 = vrot.lane.b32.xlu1 %v1904_v53, %s9989_s22  ;;  %2253 = vrot.lane.b32.xlu0 %v2671_v37, %s9989_s22  ;;  %v12210_v28 = vld [vmem:[%s14920_s0 + $0x3b0] sm:$0xff] }
 0x307   :  { %v12152_v62 = vld [vmem:[#allocation3 + $0xa8] sm:$0xff]  ;;  %261 = vst.msk [vmem:[#allocation2 + $0x3b0] sm:$0xff] %vm142_vm0, %v12210_v28 }
 0x308   :  { %v4659_v1 = vadd.f32 %v12006_v13, %v4590_v57  ;;  %v1451_v10 = vpop.permute.xlu1 %1450  ;;  %v1449_v58 = vpop.permute.xlu0 %1448  ;;  %4921 = vst.msk [vmem:[#allocation4 + $0xa8] sm:$0xff] %vm4767_vm6, %v12152_v62 }
 0x309   :  { %1758 = vst.msk [vmem:[#allocation2 + $0x268] sm:$0xff] %vm1680_vm2, %v1451_v10  ;;  %1757 = vst.msk [vmem:[#allocation2 + $0x260] sm:$0xff] %vm1680_vm2, %v1449_v58 }
 0x30a   :  { %v4723_v16 = vmax.f32 %v4659_v1, 0.0  ;;  %3024 = vrot.lane.b32.xlu1 %v2673_v7, %s9990_s23  ;;  %3022 = vrot.lane.b32.xlu0 %v1904_v53, %s9990_s23 }
 0x30c   :  { %4792 = vst.msk [vmem:[#allocation3 + $0xb0] sm:$0xff] %vm4767_vm6, %v4723_v16  ;;  %v2220_v20 = vpop.permute.xlu1 %2219  ;;  %v2218_v22 = vpop.permute.xlu0 %2217  ;;  %v3421_v23 = vld [vmem:[#allocation2 + $0x250] sm:$0xff]  ;;  %v3422_v24 = vld [vmem:[#allocation2 + $0x258] sm:$0xff] }
 0x30d   :  { %2527 = vst.msk [vmem:[#allocation2 + $0x268] sm:$0xff] %vm2449_vm3, %v2220_v20  ;;  %2526 = vst.msk [vmem:[#allocation2 + $0x260] sm:$0xff] %vm2449_vm3, %v2218_v22  ;;  %9741 = vmatprep.mubr.msk.f32.mxu0 %vm3480_vm5, %v3421_v23 }
 0x30e   :  { %1490 = vrot.lane.b32.xlu1 %v2673_v7, %s9988_s19  ;;  %1488 = vrot.lane.b32.xlu0 %v1904_v53, %s9988_s19 }
 0x30f   :  { %v9695_v25 = vpop.f32.mrf.mxu0  ;;  %9742 = vmatmul.mubr.msk.f32.gmra.mxu0 %vm3480_vm5, %v3422_v24 }
 0x310   :  { %v2989_v30 = vpop.permute.xlu1 %2988  ;;  %v2987_v34 = vpop.permute.xlu0 %2986 }
 0x311   :  { %3296 = vst.msk [vmem:[#allocation2 + $0x268] sm:$0xff] %vm3218_vm4, %v2989_v30  ;;  %3295 = vst.msk [vmem:[#allocation2 + $0x260] sm:$0xff] %vm3218_vm4, %v2987_v34  ;;  %v4141_v37 = vpop.f32.mrf.mxu0 }
 0x312   :  { %v4591_v41 = vmax.f32 %v4141_v37, %v9695_v25  ;;  %2259 = vrot.lane.b32.xlu1 %v1906_v29, %s9989_s22  ;;  %2257 = vrot.lane.b32.xlu0 %v2673_v7, %s9989_s22  ;;  %v12234_v25 = vld [vmem:[%s14920_s0 + $0x3b8] sm:$0xff] }
 0x313   :  { %v12192_v45 = vld [vmem:[#allocation3 + $0xb0] sm:$0xff]  ;;  %262 = vst.msk [vmem:[#allocation2 + $0x3b8] sm:$0xff] %vm142_vm0, %v12234_v25 }
 0x314   :  { %v4660_v8 = vadd.f32 %v12006_v13, %v4591_v41  ;;  %v1455_v9 = vpop.permute.xlu1 %1454  ;;  %v1453_v48 = vpop.permute.xlu0 %1452  ;;  %4922 = vst.msk [vmem:[#allocation4 + $0xb0] sm:$0xff] %vm4767_vm6, %v12192_v45 }
 0x315   :  { %1760 = vst.msk [vmem:[#allocation2 + $0x278] sm:$0xff] %vm1680_vm2, %v1455_v9  ;;  %1759 = vst.msk [vmem:[#allocation2 + $0x270] sm:$0xff] %vm1680_vm2, %v1453_v48  ;;  %v12252_v48 = vld [vmem:[%s14920_s0 + $0x3c0] sm:$0xff] }
 0x316   :  { %v4724_v51 = vmax.f32 %v4660_v8, 0.0  ;;  %3028 = vrot.lane.b32.xlu1 %v2675_v44, %s9990_s23  ;;  %3026 = vrot.lane.b32.xlu0 %v1906_v29, %s9990_s23  ;;  %263 = vst.msk [vmem:[#allocation2 + $0x3c0] sm:$0xff] %vm142_vm0, %v12252_v48 }
 0x318   :  { %4793 = vst.msk [vmem:[#allocation3 + $0xb8] sm:$0xff] %vm4767_vm6, %v4724_v51  ;;  %v2224_v52 = vpop.permute.xlu1 %2223  ;;  %v2222_v53 = vpop.permute.xlu0 %2221  ;;  %v3423_v0 = vld [vmem:[#allocation2 + $0x260] sm:$0xff]  ;;  %v3424_v54 = vld [vmem:[#allocation2 + $0x268] sm:$0xff] }
 0x319   :  { %2529 = vst.msk [vmem:[#allocation2 + $0x278] sm:$0xff] %vm2449_vm3, %v2224_v52  ;;  %2528 = vst.msk [vmem:[#allocation2 + $0x270] sm:$0xff] %vm2449_vm3, %v2222_v53  ;;  %9744 = vmatprep.mubr.msk.f32.mxu0 %vm3480_vm5, %v3423_v0 }
 0x31a   :  { %1494 = vrot.lane.b32.xlu1 %v2675_v44, %s9988_s19  ;;  %1492 = vrot.lane.b32.xlu0 %v1906_v29, %s9988_s19 }
 0x31b   :  { %v9698_v57 = vpop.f32.mrf.mxu0  ;;  %9745 = vmatmul.mubr.msk.f32.gmra.mxu0 %vm3480_vm5, %v3424_v54 }
 0x31c   :  { %v2993_v7 = vpop.permute.xlu1 %2992  ;;  %v2991_v1 = vpop.permute.xlu0 %2990 }
 0x31d   :  { %3298 = vst.msk [vmem:[#allocation2 + $0x278] sm:$0xff] %vm3218_vm4, %v2993_v7  ;;  %3297 = vst.msk [vmem:[#allocation2 + $0x270] sm:$0xff] %vm3218_vm4, %v2991_v1  ;;  %v4151_v10 = vpop.f32.mrf.mxu0 }
 0x31e   :  { %v4592_v58 = vmax.f32 %v4151_v10, %v9698_v57  ;;  %2263 = vrot.lane.b32.xlu1 %v11827_v33, %s9989_s22  ;;  %2261 = vrot.lane.b32.xlu0 %v2675_v44, %s9989_s22 }
 0x31f   :  { %v12220_v16 = vld [vmem:[#allocation3 + $0xb8] sm:$0xff] }
 0x320   :  { %v4661_v20 = vadd.f32 %v12006_v13, %v4592_v58  ;;  %v1459_v22 = vpop.permute.xlu1 %1458  ;;  %v1457_v23 = vpop.permute.xlu0 %1456  ;;  %4923 = vst.msk [vmem:[#allocation4 + $0xb8] sm:$0xff] %vm4767_vm6, %v12220_v16 }
 0x321   :  { %1762 = vst.msk [vmem:[#allocation2 + $0x288] sm:$0xff] %vm1680_vm2, %v1459_v22  ;;  %1761 = vst.msk [vmem:[#allocation2 + $0x280] sm:$0xff] %vm1680_vm2, %v1457_v23 }
 0x322   :  { %v4725_v24 = vmax.f32 %v4661_v20, 0.0  ;;  %3032 = vrot.lane.b32.xlu1 %v11840_v39, %s9990_s23  ;;  %3030 = vrot.lane.b32.xlu0 %v11827_v33, %s9990_s23 }
 0x324   :  { %4794 = vst.msk [vmem:[#allocation3 + $0xc0] sm:$0xff] %vm4767_vm6, %v4725_v24  ;;  %v2228_v29 = vpop.permute.xlu1 %2227  ;;  %v2226_v30 = vpop.permute.xlu0 %2225  ;;  %v3425_v34 = vld [vmem:[#allocation2 + $0x270] sm:$0xff]  ;;  %v3426_v37 = vld [vmem:[#allocation2 + $0x278] sm:$0xff] }
 0x325   :  { %2531 = vst.msk [vmem:[#allocation2 + $0x288] sm:$0xff] %vm2449_vm3, %v2228_v29  ;;  %2530 = vst.msk [vmem:[#allocation2 + $0x280] sm:$0xff] %vm2449_vm3, %v2226_v30  ;;  %9747 = vmatprep.mubr.msk.f32.mxu0 %vm3480_vm5, %v3425_v34 }
 0x326   :  { %1498 = vrot.lane.b32.xlu1 %v11840_v39, %s9988_s19  ;;  %1496 = vrot.lane.b32.xlu0 %v11827_v33, %s9988_s19 }
 0x327   :  { %v9701_v41 = vpop.f32.mrf.mxu0  ;;  %9748 = vmatmul.mubr.msk.f32.gmra.mxu0 %vm3480_vm5, %v3426_v37 }
 0x328   :  { %v2997_v44 = vpop.permute.xlu1 %2996  ;;  %v2995_v8 = vpop.permute.xlu0 %2994 }
 0x329   :  { %3300 = vst.msk [vmem:[#allocation2 + $0x288] sm:$0xff] %vm3218_vm4, %v2997_v44  ;;  %3299 = vst.msk [vmem:[#allocation2 + $0x280] sm:$0xff] %vm3218_vm4, %v2995_v8  ;;  %v4161_v9 = vpop.f32.mrf.mxu0 }
 0x32a   :  { %v4593_v51 = vmax.f32 %v4161_v9, %v9701_v41  ;;  %2267 = vrot.lane.b32.xlu1 %v11867_v4, %s9989_s22  ;;  %2265 = vrot.lane.b32.xlu0 %v11840_v39, %s9989_s22 }
 0x32b   :  { %v12260_v33 = vld [vmem:[#allocation3 + $0xc0] sm:$0xff] }
 0x32c   :  { %v4662_v52 = vadd.f32 %v12006_v13, %v4593_v51  ;;  %v1463_v53 = vpop.permute.xlu1 %1462  ;;  %v1461_v0 = vpop.permute.xlu0 %1460  ;;  %4924 = vst.msk [vmem:[#allocation4 + $0xc0] sm:$0xff] %vm4767_vm6, %v12260_v33 }
 0x32d   :  { %1764 = vst.msk [vmem:[#allocation2 + $0x298] sm:$0xff] %vm1680_vm2, %v1463_v53  ;;  %1763 = vst.msk [vmem:[#allocation2 + $0x290] sm:$0xff] %vm1680_vm2, %v1461_v0 }
 0x32e   :  { %v4726_v54 = vmax.f32 %v4662_v52, 0.0  ;;  %731 = vrot.lane.b32.xlu1 %v11840_v39, %s9987_s18  ;;  %3034 = vrot.lane.b32.xlu0 %v11867_v4, %s9990_s23  ;;  %v12282_v39 = vld [vmem:[%s14920_s0 + $0x3c8] sm:$0xff] }
 0x32f   :  { %264 = vst.msk [vmem:[#allocation2 + $0x3c8] sm:$0xff] %vm142_vm0, %v12282_v39 }
 0x330   :  { %4795 = vst.msk [vmem:[#allocation3 + $0xc8] sm:$0xff] %vm4767_vm6, %v4726_v54  ;;  %v2232_v57 = vpop.permute.xlu1 %2231  ;;  %v2230_v7 = vpop.permute.xlu0 %2229  ;;  %v3427_v1 = vld [vmem:[#allocation2 + $0x280] sm:$0xff]  ;;  %v3428_v10 = vld [vmem:[#allocation2 + $0x288] sm:$0xff] }
 0x331   :  { %2533 = vst.msk [vmem:[#allocation2 + $0x298] sm:$0xff] %vm2449_vm3, %v2232_v57  ;;  %2532 = vst.msk [vmem:[#allocation2 + $0x290] sm:$0xff] %vm2449_vm3, %v2230_v7  ;;  %9750 = vmatprep.mubr.msk.f32.mxu0 %vm3480_vm5, %v3427_v1 }
 0x332   :  { %733 = vrot.lane.b32.xlu1 %v11867_v4, %s9987_s18  ;;  %3036 = vrot.lane.b32.xlu0 %v11888_v59, %s9990_s23 }
 0x333   :  { %v9704_v58 = vpop.f32.mrf.mxu0  ;;  %9751 = vmatmul.mubr.msk.f32.gmra.mxu0 %vm3480_vm5, %v3428_v10 }
 0x334   :  { %v3001_v20 = vpop.permute.xlu1 %3000  ;;  %v2999_v22 = vpop.permute.xlu0 %2998 }
 0x335   :  { %3302 = vst.msk [vmem:[#allocation2 + $0x298] sm:$0xff] %vm3218_vm4, %v3001_v20  ;;  %3301 = vst.msk [vmem:[#allocation2 + $0x290] sm:$0xff] %vm3218_vm4, %v2999_v22  ;;  %v4171_v23 = vpop.f32.mrf.mxu0 }
 0x336   :  { %v4594_v24 = vmax.f32 %v4171_v23, %v9704_v58  ;;  %1502 = vrot.lane.b32.xlu1 %v11888_v59, %s9988_s19  ;;  %1500 = vrot.lane.b32.xlu0 %v11867_v4, %s9988_s19  ;;  %v12307_v4 = vld [vmem:[%s14920_s0 + $0x3d0] sm:$0xff] }
 0x337   :  { %v12293_v29 = vld [vmem:[#allocation3 + $0xc8] sm:$0xff]  ;;  %265 = vst.msk [vmem:[#allocation2 + $0x3d0] sm:$0xff] %vm142_vm0, %v12307_v4 }
 0x338   :  { %v4663_v30 = vadd.f32 %v12006_v13, %v4594_v24  ;;  %v1467_v34 = vpop.permute.xlu1 %1466  ;;  %v1465_v37 = vpop.permute.xlu0 %1464  ;;  %4925 = vst.msk [vmem:[#allocation4 + $0xc8] sm:$0xff] %vm4767_vm6, %v12293_v29 }
 0x339   :  { %1766 = vst.msk [vmem:[#allocation2 + $0x2a8] sm:$0xff] %vm1680_vm2, %v1467_v34  ;;  %1765 = vst.msk [vmem:[#allocation2 + $0x2a0] sm:$0xff] %vm1680_vm2, %v1465_v37 }
 0x33a   :  { %v4727_v41 = vmax.f32 %v4663_v30, 0.0  ;;  %2271 = vrot.lane.b32.xlu1 %v11913_v17, %s9989_s22  ;;  %2269 = vrot.lane.b32.xlu0 %v11888_v59, %s9989_s22 }
 0x33c   :  { %4796 = vst.msk [vmem:[#allocation3 + $0xd0] sm:$0xff] %vm4767_vm6, %v4727_v41  ;;  %v2236_v44 = vpop.permute.xlu1 %2235  ;;  %v2234_v8 = vpop.permute.xlu0 %2233  ;;  %v3429_v9 = vld [vmem:[#allocation2 + $0x290] sm:$0xff]  ;;  %v3430_v51 = vld [vmem:[#allocation2 + $0x298] sm:$0xff] }
 0x33d   :  { %2535 = vst.msk [vmem:[#allocation2 + $0x2a8] sm:$0xff] %vm2449_vm3, %v2236_v44  ;;  %2534 = vst.msk [vmem:[#allocation2 + $0x2a0] sm:$0xff] %vm2449_vm3, %v2234_v8  ;;  %9753 = vmatprep.mubr.msk.f32.mxu0 %vm3480_vm5, %v3429_v9 }
 0x33e   :  { %735 = vrot.lane.b32.xlu1 %v11888_v59, %s9987_s18  ;;  %3038 = vrot.lane.b32.xlu0 %v11913_v17, %s9990_s23  ;;  %v12329_v59 = vld [vmem:[%s14920_s0 + $0x3d8] sm:$0xff] }
 0x33f   :  { %v9707_v52 = vpop.f32.mrf.mxu0  ;;  %9754 = vmatmul.mubr.msk.f32.gmra.mxu0 %vm3480_vm5, %v3430_v51  ;;  %266 = vst.msk [vmem:[#allocation2 + $0x3d8] sm:$0xff] %vm142_vm0, %v12329_v59 }
 0x340   :  { %v3005_v53 = vpop.permute.xlu1 %3004  ;;  %v3003_v0 = vpop.permute.xlu0 %3002 }
 0x341   :  { %3304 = vst.msk [vmem:[#allocation2 + $0x2a8] sm:$0xff] %vm3218_vm4, %v3005_v53  ;;  %3303 = vst.msk [vmem:[#allocation2 + $0x2a0] sm:$0xff] %vm3218_vm4, %v3003_v0  ;;  %v4181_v54 = vpop.f32.mrf.mxu0 }
 0x342   :  { %v4595_v57 = vmax.f32 %v4181_v54, %v9707_v52  ;;  %737 = vrot.lane.b32.xlu1 %v11913_v17, %s9987_s18  ;;  %3040 = vrot.lane.b32.xlu0 %v11940_v35, %s9990_s23 }
 0x343   :  { %v12333_v7 = vld [vmem:[#allocation3 + $0xd0] sm:$0xff] }
 0x344   :  { %v4664_v1 = vadd.f32 %v12006_v13, %v4595_v57  ;;  %v1471_v10 = vpop.permute.xlu1 %1470  ;;  %v1469_v58 = vpop.permute.xlu0 %1468  ;;  %4926 = vst.msk [vmem:[#allocation4 + $0xd0] sm:$0xff] %vm4767_vm6, %v12333_v7 }
 0x345   :  { %1768 = vst.msk [vmem:[#allocation2 + $0x2b8] sm:$0xff] %vm1680_vm2, %v1471_v10  ;;  %1767 = vst.msk [vmem:[#allocation2 + $0x2b0] sm:$0xff] %vm1680_vm2, %v1469_v58 }
 0x346   :  { %v4728_v20 = vmax.f32 %v4664_v1, 0.0  ;;  %1506 = vrot.lane.b32.xlu1 %v11940_v35, %s9988_s19  ;;  %1504 = vrot.lane.b32.xlu0 %v11913_v17, %s9988_s19  ;;  %v12355_v17 = vld [vmem:[%s14920_s0 + $0x3e0] sm:$0xff] }
 0x347   :  { %267 = vst.msk [vmem:[#allocation2 + $0x3e0] sm:$0xff] %vm142_vm0, %v12355_v17 }
 0x348   :  { %4797 = vst.msk [vmem:[#allocation3 + $0xd8] sm:$0xff] %vm4767_vm6, %v4728_v20  ;;  %v2240_v22 = vpop.permute.xlu1 %2239  ;;  %v2238_v23 = vpop.permute.xlu0 %2237  ;;  %v3431_v24 = vld [vmem:[#allocation2 + $0x2a0] sm:$0xff]  ;;  %v3432_v30 = vld [vmem:[#allocation2 + $0x2a8] sm:$0xff] }
 0x349   :  { %2537 = vst.msk [vmem:[#allocation2 + $0x2b8] sm:$0xff] %vm2449_vm3, %v2240_v22  ;;  %2536 = vst.msk [vmem:[#allocation2 + $0x2b0] sm:$0xff] %vm2449_vm3, %v2238_v23  ;;  %9756 = vmatprep.mubr.msk.f32.mxu0 %vm3480_vm5, %v3431_v24  ;;  %v12398_v24 = vld [vmem:[%s14920_s0 + $0x3f0] sm:$0xff] }
 0x34a   :  { %2275 = vrot.lane.b32.xlu1 %v11959_v6, %s9989_s22  ;;  %2273 = vrot.lane.b32.xlu0 %v11940_v35, %s9989_s22  ;;  %269 = vst.msk [vmem:[#allocation2 + $0x3f0] sm:$0xff] %vm142_vm0, %v12398_v24 }
 0x34b   :  { %v9710_v34 = vpop.f32.mrf.mxu0  ;;  %9757 = vmatmul.mubr.msk.f32.gmra.mxu0 %vm3480_vm5, %v3432_v30 }
 0x34c   :  { %v3009_v37 = vpop.permute.xlu1 %3008  ;;  %v3007_v41 = vpop.permute.xlu0 %3006 }
 0x34d   :  { %3306 = vst.msk [vmem:[#allocation2 + $0x2b8] sm:$0xff] %vm3218_vm4, %v3009_v37  ;;  %3305 = vst.msk [vmem:[#allocation2 + $0x2b0] sm:$0xff] %vm3218_vm4, %v3007_v41  ;;  %v4191_v44 = vpop.f32.mrf.mxu0 }
 0x34e   :  { %v4596_v8 = vmax.f32 %v4191_v44, %v9710_v34  ;;  %739 = vrot.lane.b32.xlu1 %v11940_v35, %s9987_s18  ;;  %3042 = vrot.lane.b32.xlu0 %v11959_v6, %s9990_s23  ;;  %v12380_v35 = vld [vmem:[%s14920_s0 + $0x3e8] sm:$0xff] }
 0x34f   :  { %v12366_v9 = vld [vmem:[#allocation3 + $0xd8] sm:$0xff]  ;;  %268 = vst.msk [vmem:[#allocation2 + $0x3e8] sm:$0xff] %vm142_vm0, %v12380_v35 }
 0x350   :  { %v4665_v51 = vadd.f32 %v12006_v13, %v4596_v8  ;;  %v1475_v52 = vpop.permute.xlu1 %1474  ;;  %v1473_v53 = vpop.permute.xlu0 %1472  ;;  %4927 = vst.msk [vmem:[#allocation4 + $0xd8] sm:$0xff] %vm4767_vm6, %v12366_v9 }
 0x351   :  { %1770 = vst.msk [vmem:[#allocation2 + $0x2c8] sm:$0xff] %vm1680_vm2, %v1475_v52  ;;  %1769 = vst.msk [vmem:[#allocation2 + $0x2c0] sm:$0xff] %vm1680_vm2, %v1473_v53 }
 0x352   :  { %v4729_v0 = vmax.f32 %v4665_v51, 0.0  ;;  %741 = vrot.lane.b32.xlu1 %v11959_v6, %s9987_s18  ;;  %3044 = vrot.lane.b32.xlu0 %v11986_v55, %s9990_s23 }
 0x354   :  { %4798 = vst.msk [vmem:[#allocation3 + $0xe0] sm:$0xff] %vm4767_vm6, %v4729_v0  ;;  %v2244_v54 = vpop.permute.xlu1 %2243  ;;  %v2242_v57 = vpop.permute.xlu0 %2241  ;;  %v3433_v1 = vld [vmem:[#allocation2 + $0x2b0] sm:$0xff]  ;;  %v3434_v10 = vld [vmem:[#allocation2 + $0x2b8] sm:$0xff] }
 0x355   :  { %2539 = vst.msk [vmem:[#allocation2 + $0x2c8] sm:$0xff] %vm2449_vm3, %v2244_v54  ;;  %2538 = vst.msk [vmem:[#allocation2 + $0x2c0] sm:$0xff] %vm2449_vm3, %v2242_v57  ;;  %9759 = vmatprep.mubr.msk.f32.mxu0 %vm3480_vm5, %v3433_v1 }
 0x356   :  { %1510 = vrot.lane.b32.xlu1 %v11986_v55, %s9988_s19  ;;  %1508 = vrot.lane.b32.xlu0 %v11959_v6, %s9988_s19 }
 0x357   :  { %v9713_v58 = vpop.f32.mrf.mxu0  ;;  %9760 = vmatmul.mubr.msk.f32.gmra.mxu0 %vm3480_vm5, %v3434_v10 }
 0x358   :  { %v3013_v20 = vpop.permute.xlu1 %3012  ;;  %v3011_v22 = vpop.permute.xlu0 %3010 }
 0x359   :  { %3308 = vst.msk [vmem:[#allocation2 + $0x2c8] sm:$0xff] %vm3218_vm4, %v3013_v20  ;;  %3307 = vst.msk [vmem:[#allocation2 + $0x2c0] sm:$0xff] %vm3218_vm4, %v3011_v22  ;;  %v4201_v23 = vpop.f32.mrf.mxu0 }
 0x35a   :  { %v4597_v30 = vmax.f32 %v4201_v23, %v9713_v58  ;;  %2279 = vrot.lane.b32.xlu1 %v12018_v21, %s9989_s22  ;;  %2277 = vrot.lane.b32.xlu0 %v11986_v55, %s9989_s22 }
 0x35b   :  { %v12406_v6 = vld [vmem:[#allocation3 + $0xe0] sm:$0xff] }
 0x35c   :  { %v4666_v34 = vadd.f32 %v12006_v13, %v4597_v30  ;;  %v1479_v37 = vpop.permute.xlu1 %1478  ;;  %v1477_v41 = vpop.permute.xlu0 %1476  ;;  %4928 = vst.msk [vmem:[#allocation4 + $0xe0] sm:$0xff] %vm4767_vm6, %v12406_v6 }
 0x35d   :  { %1772 = vst.msk [vmem:[#allocation2 + $0x2d8] sm:$0xff] %vm1680_vm2, %v1479_v37  ;;  %1771 = vst.msk [vmem:[#allocation2 + $0x2d0] sm:$0xff] %vm1680_vm2, %v1477_v41 }
 0x35e   :  { %v4730_v44 = vmax.f32 %v4666_v34, 0.0  ;;  %743 = vrot.lane.b32.xlu1 %v11986_v55, %s9987_s18  ;;  %3046 = vrot.lane.b32.xlu0 %v12018_v21, %s9990_s23  ;;  %v12428_v55 = vld [vmem:[%s14920_s0 + $0x3f8] sm:$0xff] }
 0x35f   :  { %270 = vst.msk [vmem:[#allocation2 + $0x3f8] sm:$0xff] %vm142_vm0, %v12428_v55  ;;  %vm8459_vm0 = vcmask 523264  }
 0x360   :  { %4799 = vst.msk [vmem:[#allocation3 + $0xe8] sm:$0xff] %vm4767_vm6, %v4730_v44  ;;  %v2248_v8 = vpop.permute.xlu1 %2247  ;;  %v2246_v51 = vpop.permute.xlu0 %2245  ;;  %v3435_v52 = vld [vmem:[#allocation2 + $0x2c0] sm:$0xff]  ;;  %v3436_v53 = vld [vmem:[#allocation2 + $0x2c8] sm:$0xff] }
 0x361   :  { %2541 = vst.msk [vmem:[#allocation2 + $0x2d8] sm:$0xff] %vm2449_vm3, %v2248_v8  ;;  %2540 = vst.msk [vmem:[#allocation2 + $0x2d0] sm:$0xff] %vm2449_vm3, %v2246_v51  ;;  %9762 = vmatprep.mubr.msk.f32.mxu0 %vm3480_vm5, %v3435_v52 }
 0x362   :  { %745 = vrot.lane.b32.xlu1 %v12018_v21, %s9987_s18  ;;  %3048 = vrot.lane.b32.xlu0 %v12039_v40, %s9990_s23 }
 0x363   :  { %v9716_v0 = vpop.f32.mrf.mxu0  ;;  %9763 = vmatmul.mubr.msk.f32.gmra.mxu0 %vm3480_vm5, %v3436_v53 }
 0x364   :  { %v3017_v54 = vpop.permute.xlu1 %3016  ;;  %v3015_v57 = vpop.permute.xlu0 %3014 }
 0x365   :  { %3310 = vst.msk [vmem:[#allocation2 + $0x2d8] sm:$0xff] %vm3218_vm4, %v3017_v54  ;;  %3309 = vst.msk [vmem:[#allocation2 + $0x2d0] sm:$0xff] %vm3218_vm4, %v3015_v57  ;;  %v4211_v1 = vpop.f32.mrf.mxu0 }
 0x366   :  { %v4598_v10 = vmax.f32 %v4211_v1, %v9716_v0  ;;  %1514 = vrot.lane.b32.xlu1 %v12039_v40, %s9988_s19  ;;  %1512 = vrot.lane.b32.xlu0 %v12018_v21, %s9988_s19 }
 0x367   :  { %v12439_v58 = vld [vmem:[#allocation3 + $0xe8] sm:$0xff] }
 0x368   :  { %v4667_v20 = vadd.f32 %v12006_v13, %v4598_v10  ;;  %v1483_v22 = vpop.permute.xlu1 %1482  ;;  %v1481_v23 = vpop.permute.xlu0 %1480  ;;  %4929 = vst.msk [vmem:[#allocation4 + $0xe8] sm:$0xff] %vm4767_vm6, %v12439_v58 }
 0x369   :  { %1774 = vst.msk [vmem:[#allocation2 + $0x2e8] sm:$0xff] %vm1680_vm2, %v1483_v22  ;;  %1773 = vst.msk [vmem:[#allocation2 + $0x2e0] sm:$0xff] %vm1680_vm2, %v1481_v23 }
 0x36a   :  { %v4731_v30 = vmax.f32 %v4667_v20, 0.0  ;;  %2283 = vrot.lane.b32.xlu1 %v12064_v5, %s9989_s22  ;;  %2281 = vrot.lane.b32.xlu0 %v12039_v40, %s9989_s22 }
 0x36c   :  { %4800 = vst.msk [vmem:[#allocation3 + $0xf0] sm:$0xff] %vm4767_vm6, %v4731_v30  ;;  %v2252_v21 = vpop.permute.xlu1 %2251  ;;  %v2250_v34 = vpop.permute.xlu0 %2249  ;;  %v3437_v37 = vld [vmem:[#allocation2 + $0x2d0] sm:$0xff]  ;;  %v3438_v41 = vld [vmem:[#allocation2 + $0x2d8] sm:$0xff] }
 0x36d   :  { %2543 = vst.msk [vmem:[#allocation2 + $0x2e8] sm:$0xff] %vm2449_vm3, %v2252_v21  ;;  %2542 = vst.msk [vmem:[#allocation2 + $0x2e0] sm:$0xff] %vm2449_vm3, %v2250_v34  ;;  %9765 = vmatprep.mubr.msk.f32.mxu0 %vm3480_vm5, %v3437_v37 }
 0x36e   :  { %747 = vrot.lane.b32.xlu1 %v12039_v40, %s9987_s18  ;;  %3050 = vrot.lane.b32.xlu0 %v12064_v5, %s9990_s23 }
 0x36f   :  { %v9719_v44 = vpop.f32.mrf.mxu0  ;;  %9766 = vmatmul.mubr.msk.f32.gmra.mxu0 %vm3480_vm5, %v3438_v41 }
 0x370   :  { %v3021_v8 = vpop.permute.xlu1 %3020  ;;  %v3019_v51 = vpop.permute.xlu0 %3018 }
 0x371   :  { %3312 = vst.msk [vmem:[#allocation2 + $0x2e8] sm:$0xff] %vm3218_vm4, %v3021_v8  ;;  %3311 = vst.msk [vmem:[#allocation2 + $0x2e0] sm:$0xff] %vm3218_vm4, %v3019_v51  ;;  %v4221_v52 = vpop.f32.mrf.mxu0 }
 0x372   :  { %v4599_v53 = vmax.f32 %v4221_v52, %v9719_v44  ;;  %749 = vrot.lane.b32.xlu1 %v12064_v5, %s9987_s18  ;;  %3052 = vrot.lane.b32.xlu0 %v12091_v15, %s9990_s23 }
 0x373   :  { %v12465_v40 = vld [vmem:[#allocation3 + $0xf0] sm:$0xff] }
 0x374   :  { %v4668_v0 = vadd.f32 %v12006_v13, %v4599_v53  ;;  %v1487_v54 = vpop.permute.xlu1 %1486  ;;  %v1485_v57 = vpop.permute.xlu0 %1484  ;;  %4930 = vst.msk [vmem:[#allocation4 + $0xf0] sm:$0xff] %vm4767_vm6, %v12465_v40 }
 0x375   :  { %1776 = vst.msk [vmem:[#allocation2 + $0x2f8] sm:$0xff] %vm1680_vm2, %v1487_v54  ;;  %1775 = vst.msk [vmem:[#allocation2 + $0x2f0] sm:$0xff] %vm1680_vm2, %v1485_v57 }
 0x376   :  { %v4732_v1 = vmax.f32 %v4668_v0, 0.0  ;;  %1518 = vrot.lane.b32.xlu1 %v12091_v15, %s9988_s19  ;;  %1516 = vrot.lane.b32.xlu0 %v12064_v5, %s9988_s19  ;;  %v9991_v5 = vmov 0.0  }
 0x377   :  { %4769 = vst.msk [vmem:[#allocation3 + $0x8] sm:$0xff] %vm4767_vm6, %v9991_v5  ;;  %4768 = vst.msk [vmem:[#allocation3] sm:$0xff] %vm4767_vm6, %v9991_v5 }
 0x378   :  { %4801 = vst.msk [vmem:[#allocation3 + $0xf8] sm:$0xff] %vm4767_vm6, %v4732_v1  ;;  %v2256_v10 = vpop.permute.xlu1 %2255  ;;  %v2254_v20 = vpop.permute.xlu0 %2253  ;;  %v3439_v22 = vld [vmem:[#allocation2 + $0x2e0] sm:$0xff]  ;;  %v3440_v23 = vld [vmem:[#allocation2 + $0x2e8] sm:$0xff]  ;;  %4770 = vst.msk [vmem:[#allocation3 + $0x210] sm:$0xff] %vm4767_vm6, %v9991_v5 }
 0x379   :  { %2545 = vst.msk [vmem:[#allocation2 + $0x2f8] sm:$0xff] %vm2449_vm3, %v2256_v10  ;;  %2544 = vst.msk [vmem:[#allocation2 + $0x2f0] sm:$0xff] %vm2449_vm3, %v2254_v20  ;;  %9768 = vmatprep.mubr.msk.f32.mxu0 %vm3480_vm5, %v3439_v22 }
 0x37a   :  { %2287 = vrot.lane.b32.xlu1 %v12110_v32, %s9989_s22  ;;  %2285 = vrot.lane.b32.xlu0 %v12091_v15, %s9989_s22  ;;  %4771 = vst.msk [vmem:[#allocation3 + $0x218] sm:$0xff] %vm4767_vm6, %v9991_v5 }
 0x37b   :  { %v9722_v30 = vpop.f32.mrf.mxu0  ;;  %9769 = vmatmul.mubr.msk.f32.gmra.mxu0 %vm3480_vm5, %v3440_v23  ;;  %7258 = vst.msk [vmem:[#allocation5] sm:$0xff] %vm7257_vm12, %v9991_v5  ;;  %7259 = vst.msk [vmem:[#allocation5 + $0x8] sm:$0xff] %vm7257_vm12, %v9991_v5 }
 0x37c   :  { %v3025_v21 = vpop.permute.xlu1 %3024  ;;  %v3023_v34 = vpop.permute.xlu0 %3022  ;;  %7260 = vst.msk [vmem:[#allocation5 + $0x110] sm:$0xff] %vm7257_vm12, %v9991_v5  ;;  %7261 = vst.msk [vmem:[#allocation5 + $0x118] sm:$0xff] %vm7257_vm12, %v9991_v5 }
 0x37d   :  { %3314 = vst.msk [vmem:[#allocation2 + $0x2f8] sm:$0xff] %vm3218_vm4, %v3025_v21  ;;  %3313 = vst.msk [vmem:[#allocation2 + $0x2f0] sm:$0xff] %vm3218_vm4, %v3023_v34  ;;  %v4231_v37 = vpop.f32.mrf.mxu0 }
 0x37e   :  { %v4600_v41 = vmax.f32 %v4231_v37, %v9722_v30  ;;  %751 = vrot.lane.b32.xlu1 %v12091_v15, %s9987_s18  ;;  %3054 = vrot.lane.b32.xlu0 %v12110_v32, %s9990_s23  ;;  %v12510_v15 = vld [vmem:[#allocation3 + $0x8] sm:$0xff] }
 0x37f   :  { %v12499_v44 = vld [vmem:[#allocation3 + $0xf8] sm:$0xff]  ;;  %4901 = vst.msk [vmem:[#allocation4 + $0x8] sm:$0xff] %vm4767_vm6, %v12510_v15 }
 0x380   :  { %v4669_v8 = vadd.f32 %v12006_v13, %v4600_v41  ;;  %v1491_v51 = vpop.permute.xlu1 %1490  ;;  %v1489_v52 = vpop.permute.xlu0 %1488  ;;  %4931 = vst.msk [vmem:[#allocation4 + $0xf8] sm:$0xff] %vm4767_vm6, %v12499_v44 }
 0x381   :  { %1778 = vst.msk [vmem:[#allocation2 + $0x308] sm:$0xff] %vm1680_vm2, %v1491_v51  ;;  %1777 = vst.msk [vmem:[#allocation2 + $0x300] sm:$0xff] %vm1680_vm2, %v1489_v52 }
 0x382   :  { %v4733_v53 = vmax.f32 %v4669_v8, 0.0  ;;  %753 = vrot.lane.b32.xlu1 %v12110_v32, %s9987_s18  ;;  %3056 = vrot.lane.b32.xlu0 %v12137_v2, %s9990_s23 }
 0x384   :  { %4802 = vst.msk [vmem:[#allocation3 + $0x100] sm:$0xff] %vm4767_vm6, %v4733_v53  ;;  %v2260_v0 = vpop.permute.xlu1 %2259  ;;  %v2258_v54 = vpop.permute.xlu0 %2257  ;;  %v3441_v57 = vld [vmem:[#allocation2 + $0x2f0] sm:$0xff]  ;;  %v3442_v1 = vld [vmem:[#allocation2 + $0x2f8] sm:$0xff] }
 0x385   :  { %2547 = vst.msk [vmem:[#allocation2 + $0x308] sm:$0xff] %vm2449_vm3, %v2260_v0  ;;  %2546 = vst.msk [vmem:[#allocation2 + $0x300] sm:$0xff] %vm2449_vm3, %v2258_v54  ;;  %9771 = vmatprep.mubr.msk.f32.mxu0 %vm3480_vm5, %v3441_v57 }
 0x386   :  { %1522 = vrot.lane.b32.xlu1 %v12137_v2, %s9988_s19  ;;  %1520 = vrot.lane.b32.xlu0 %v12110_v32, %s9988_s19 }
 0x387   :  { %v9725_v10 = vpop.f32.mrf.mxu0  ;;  %9772 = vmatmul.mubr.msk.f32.gmra.mxu0 %vm3480_vm5, %v3442_v1 }
 0x388   :  { %v3029_v20 = vpop.permute.xlu1 %3028  ;;  %v3027_v22 = vpop.permute.xlu0 %3026 }
 0x389   :  { %3316 = vst.msk [vmem:[#allocation2 + $0x308] sm:$0xff] %vm3218_vm4, %v3029_v20  ;;  %3315 = vst.msk [vmem:[#allocation2 + $0x300] sm:$0xff] %vm3218_vm4, %v3027_v22  ;;  %v4241_v23 = vpop.f32.mrf.mxu0 }
 0x38a   :  { %v4601_v30 = vmax.f32 %v4241_v23, %v9725_v10  ;;  %2291 = vrot.lane.b32.xlu1 %v12164_v19, %s9989_s22  ;;  %2289 = vrot.lane.b32.xlu0 %v12137_v2, %s9989_s22  ;;  %v12560_v10 = vld [vmem:[%s14922_s2] ss:$0 sm:$0xff] }
 0x38b   :  { %v12529_v21 = vld [vmem:[#allocation3 + $0x100] sm:$0xff] }
 0x38c   :  { %v4670_v32 = vadd.f32 %v12006_v13, %v4601_v30  ;;  %v1495_v34 = vpop.permute.xlu1 %1494  ;;  %v1493_v37 = vpop.permute.xlu0 %1492  ;;  %4932 = vst.msk [vmem:[#allocation4 + $0x100] sm:$0xff] %vm4767_vm6, %v12529_v21 }
 0x38d   :  { %1780 = vst.msk [vmem:[#allocation2 + $0x318] sm:$0xff] %vm1680_vm2, %v1495_v34  ;;  %1779 = vst.msk [vmem:[#allocation2 + $0x310] sm:$0xff] %vm1680_vm2, %v1493_v37 }
 0x38e   :  { %v4734_v41 = vmax.f32 %v4670_v32, 0.0  ;;  %755 = vrot.lane.b32.xlu1 %v12137_v2, %s9987_s18  ;;  %3058 = vrot.lane.b32.xlu0 %v12164_v19, %s9990_s23 }
 0x390   :  { %4803 = vst.msk [vmem:[#allocation3 + $0x108] sm:$0xff] %vm4767_vm6, %v4734_v41  ;;  %v2264_v8 = vpop.permute.xlu1 %2263  ;;  %v2262_v13 = vpop.permute.xlu0 %2261  ;;  %v3443_v51 = vld [vmem:[#allocation2 + $0x300] sm:$0xff]  ;;  %v3444_v52 = vld [vmem:[#allocation2 + $0x308] sm:$0xff] }
 0x391   :  { %2549 = vst.msk [vmem:[#allocation2 + $0x318] sm:$0xff] %vm2449_vm3, %v2264_v8  ;;  %2548 = vst.msk [vmem:[#allocation2 + $0x310] sm:$0xff] %vm2449_vm3, %v2262_v13  ;;  %9774 = vmatprep.mubr.msk.f32.mxu0 %vm3480_vm5, %v3443_v51 }
 0x392   :  { %757 = vrot.lane.b32.xlu1 %v12164_v19, %s9987_s18  ;;  %3060 = vrot.lane.b32.xlu0 %v12185_v43, %s9990_s23 }
 0x393   :  { %v9728_v2 = vpop.f32.mrf.mxu0  ;;  %9775 = vmatmul.mubr.msk.f32.gmra.mxu0 %vm3480_vm5, %v3444_v52 }
 0x394   :  { %v3033_v53 = vpop.permute.xlu1 %3032  ;;  %v3031_v0 = vpop.permute.xlu0 %3030 }
 0x395   :  { %3318 = vst.msk [vmem:[#allocation2 + $0x318] sm:$0xff] %vm3218_vm4, %v3033_v53  ;;  %3317 = vst.msk [vmem:[#allocation2 + $0x310] sm:$0xff] %vm3218_vm4, %v3031_v0  ;;  %v4251_v54 = vpop.f32.mrf.mxu0 }
 0x396   :  { %v4602_v57 = vmax.f32 %v4251_v54, %v9728_v2  ;;  %1526 = vrot.lane.b32.xlu1 %v12185_v43, %s9988_s19  ;;  %1524 = vrot.lane.b32.xlu0 %v12164_v19, %s9988_s19 }
 0x397   :  { %v12555_v1 = vld [vmem:[#allocation3 + $0x108] sm:$0xff] }
 0x398   :  { %v4671_v20 = vadd.f32 %v12560_v10, %v4602_v57  ;;  %v1499_v22 = vpop.permute.xlu1 %1498  ;;  %v1497_v23 = vpop.permute.xlu0 %1496  ;;  %4933 = vst.msk [vmem:[#allocation4 + $0x108] sm:$0xff] %vm4767_vm6, %v12555_v1 }
 0x399   :  { %1782 = vst.msk [vmem:[#allocation2 + $0x328] sm:$0xff] %vm1680_vm2, %v1499_v22  ;;  %1781 = vst.msk [vmem:[#allocation2 + $0x320] sm:$0xff] %vm1680_vm2, %v1497_v23 }
 0x39a   :  { %v4735_v30 = vmax.f32 %v4671_v20, 0.0  ;;  %2295 = vrot.lane.b32.xlu1 %v12210_v28, %s9989_s22  ;;  %2293 = vrot.lane.b32.xlu0 %v12185_v43, %s9989_s22 }
 0x39c   :  { %4804 = vst.msk [vmem:[#allocation3 + $0x110] sm:$0xff] %vm4767_vm6, %v4735_v30  ;;  %v2268_v19 = vpop.permute.xlu1 %2267  ;;  %v2266_v32 = vpop.permute.xlu0 %2265  ;;  %v3445_v34 = vld [vmem:[#allocation2 + $0x310] sm:$0xff]  ;;  %v3446_v37 = vld [vmem:[#allocation2 + $0x318] sm:$0xff] }
 0x39d   :  { %2551 = vst.msk [vmem:[#allocation2 + $0x328] sm:$0xff] %vm2449_vm3, %v2268_v19  ;;  %2550 = vst.msk [vmem:[#allocation2 + $0x320] sm:$0xff] %vm2449_vm3, %v2266_v32  ;;  %9777 = vmatprep.mubr.msk.f32.mxu0 %vm3480_vm5, %v3445_v34 }
 0x39e   :  { %759 = vrot.lane.b32.xlu1 %v12185_v43, %s9987_s18  ;;  %3062 = vrot.lane.b32.xlu0 %v12210_v28, %s9990_s23 }
 0x39f   :  { %v9731_v41 = vpop.f32.mrf.mxu0  ;;  %9778 = vmatmul.mubr.msk.f32.gmra.mxu0 %vm3480_vm5, %v3446_v37 }
 0x3a0   :  { %v732_v8 = vpop.permute.xlu1 %731  ;;  %v3035_v13 = vpop.permute.xlu0 %3034 }
 0x3a1   :  { %1014 = vst.msk [vmem:[#allocation2 + $0x330] sm:$0xff] %vm911_vm1, %v732_v8  ;;  %v4261_v51 = vpop.f32.mrf.mxu0 }
 0x3a2   :  { %3319 = vst.msk [vmem:[#allocation2 + $0x320] sm:$0xff] %vm3218_vm4, %v3035_v13  ;;  %v4603_v52 = vmax.f32 %v4261_v51, %v9731_v41  ;;  %761 = vrot.lane.b32.xlu1 %v12210_v28, %s9987_s18  ;;  %3064 = vrot.lane.b32.xlu0 %v12234_v25, %s9990_s23 }
 0x3a3   :  { %v12586_v43 = vld [vmem:[#allocation3 + $0x110] sm:$0xff] }
 0x3a4   :  { %v4672_v2 = vadd.f32 %v12560_v10, %v4603_v52  ;;  %v734_v53 = vpop.permute.xlu1 %733  ;;  %v3037_v0 = vpop.permute.xlu0 %3036  ;;  %4934 = vst.msk [vmem:[#allocation4 + $0x110] sm:$0xff] %vm4767_vm6, %v12586_v43 }
 0x3a5   :  { %1015 = vst.msk [vmem:[#allocation2 + $0x338] sm:$0xff] %vm911_vm1, %v734_v53 }
 0x3a6   :  { %3320 = vst.msk [vmem:[#allocation2 + $0x328] sm:$0xff] %vm3218_vm4, %v3037_v0  ;;  %v4736_v54 = vmax.f32 %v4672_v2, 0.0  ;;  %1530 = vrot.lane.b32.xlu1 %v12234_v25, %s9988_s19  ;;  %1528 = vrot.lane.b32.xlu0 %v12210_v28, %s9988_s19 }
 0x3a8   :  { %4805 = vst.msk [vmem:[#allocation3 + $0x118] sm:$0xff] %vm4767_vm6, %v4736_v54  ;;  %v1503_v57 = vpop.permute.xlu1 %1502  ;;  %v1501_v20 = vpop.permute.xlu0 %1500 }
 0x3a9   :  { %v3447_v22 = vld [vmem:[#allocation2 + $0x320] sm:$0xff]  ;;  %1784 = vst.msk [vmem:[#allocation2 + $0x338] sm:$0xff] %vm1680_vm2, %v1503_v57  ;;  %1783 = vst.msk [vmem:[#allocation2 + $0x330] sm:$0xff] %vm1680_vm2, %v1501_v20 }
 0x3aa   :  { %9780 = vmatprep.mubr.msk.f32.mxu0 %vm3480_vm5, %v3447_v22  ;;  %2299 = vrot.lane.b32.xlu1 %v12252_v48, %s9989_s22 }
 0x3ab   :  { %2297 = vrot.lane.b32.xlu0 %v12234_v25, %s9989_s22  ;;  %v9734_v23 = vpop.f32.mrf.mxu0 }
 0x3ac   :  { %v2272_v30 = vpop.permute.xlu1 %2271  ;;  %v2270_v28 = vpop.permute.xlu0 %2269 }
 0x3ad   :  { %v3448_v19 = vld [vmem:[#allocation2 + $0x328] sm:$0xff]  ;;  %2553 = vst.msk [vmem:[#allocation2 + $0x338] sm:$0xff] %vm2449_vm3, %v2272_v30  ;;  %2552 = vst.msk [vmem:[#allocation2 + $0x330] sm:$0xff] %vm2449_vm3, %v2270_v28  ;;  %v4271_v32 = vpop.f32.mrf.mxu0 }
 0x3ae   :  { %9781 = vmatmul.mubr.msk.f32.gmra.mxu0 %vm3480_vm5, %v3448_v19  ;;  %v4604_v34 = vmax.f32 %v4271_v32, %v9734_v23  ;;  %763 = vrot.lane.b32.xlu1 %v12234_v25, %s9987_s18 }
 0x3af   :  { %3066 = vrot.lane.b32.xlu0 %v12252_v48, %s9990_s23  ;;  %v12612_v37 = vld [vmem:[#allocation3 + $0x118] sm:$0xff] }
 0x3b0   :  { %v4673_v41 = vadd.f32 %v12560_v10, %v4604_v34  ;;  %v736_v8 = vpop.permute.xlu1 %735  ;;  %v3039_v13 = vpop.permute.xlu0 %3038  ;;  %4935 = vst.msk [vmem:[#allocation4 + $0x118] sm:$0xff] %vm4767_vm6, %v12612_v37 }
 0x3b1   :  { %1016 = vst.msk [vmem:[#allocation2 + $0x340] sm:$0xff] %vm911_vm1, %v736_v8 }
 0x3b2   :  { %3321 = vst.msk [vmem:[#allocation2 + $0x330] sm:$0xff] %vm3218_vm4, %v3039_v13  ;;  %v4737_v51 = vmax.f32 %v4673_v41, 0.0  ;;  %765 = vrot.lane.b32.xlu1 %v12252_v48, %s9987_s18 }
 0x3b3   :  { %3068 = vrot.lane.b32.xlu0 %v12282_v39, %s9990_s23 }
 0x3b4   :  { %4806 = vst.msk [vmem:[#allocation3 + $0x120] sm:$0xff] %vm4767_vm6, %v4737_v51  ;;  %v738_v25 = vpop.permute.xlu1 %737  ;;  %v3041_v52 = vpop.permute.xlu0 %3040 }
 0x3b5   :  { %1017 = vst.msk [vmem:[#allocation2 + $0x348] sm:$0xff] %vm911_vm1, %v738_v25 }
 0x3b6   :  { %3322 = vst.msk [vmem:[#allocation2 + $0x338] sm:$0xff] %vm3218_vm4, %v3041_v52  ;;  %1534 = vrot.lane.b32.xlu1 %v12282_v39, %s9988_s19 }
 0x3b7   :  { %1532 = vrot.lane.b32.xlu0 %v12252_v48, %s9988_s19  ;;  %v9737_v2 = vpop.f32.mrf.mxu0 }
 0x3b8   :  { %v1507_v53 = vpop.permute.xlu1 %1506  ;;  %v1505_v0 = vpop.permute.xlu0 %1504 }
 0x3b9   :  { %v3449_v54 = vld [vmem:[#allocation2 + $0x330] sm:$0xff]  ;;  %1786 = vst.msk [vmem:[#allocation2 + $0x348] sm:$0xff] %vm1680_vm2, %v1507_v53  ;;  %1785 = vst.msk [vmem:[#allocation2 + $0x340] sm:$0xff] %vm1680_vm2, %v1505_v0  ;;  %v4281_v57 = vpop.f32.mrf.mxu0 }
 0x3ba   :  { %9783 = vmatprep.mubr.msk.f32.mxu0 %vm3480_vm5, %v3449_v54  ;;  %v4605_v20 = vmax.f32 %v4281_v57, %v9737_v2  ;;  %2303 = vrot.lane.b32.xlu1 %v12307_v4, %s9989_s22 }
 0x3bb   :  { %2301 = vrot.lane.b32.xlu0 %v12282_v39, %s9989_s22  ;;  %v12637_v22 = vld [vmem:[#allocation3 + $0x120] sm:$0xff] }
 0x3bc   :  { %v4674_v48 = vadd.f32 %v12560_v10, %v4605_v20  ;;  %v2276_v23 = vpop.permute.xlu1 %2275  ;;  %v2274_v30 = vpop.permute.xlu0 %2273  ;;  %4936 = vst.msk [vmem:[#allocation4 + $0x120] sm:$0xff] %vm4767_vm6, %v12637_v22 }
 0x3bd   :  { %v3450_v28 = vld [vmem:[#allocation2 + $0x338] sm:$0xff]  ;;  %2555 = vst.msk [vmem:[#allocation2 + $0x348] sm:$0xff] %vm2449_vm3, %v2276_v23  ;;  %2554 = vst.msk [vmem:[#allocation2 + $0x340] sm:$0xff] %vm2449_vm3, %v2274_v30 }
 0x3be   :  { %9784 = vmatmul.mubr.msk.f32.gmra.mxu0 %vm3480_vm5, %v3450_v28  ;;  %v4738_v19 = vmax.f32 %v4674_v48, 0.0  ;;  %767 = vrot.lane.b32.xlu1 %v12282_v39, %s9987_s18 }
 0x3bf   :  { %3070 = vrot.lane.b32.xlu0 %v12307_v4, %s9990_s23 }
 0x3c0   :  { %4807 = vst.msk [vmem:[#allocation3 + $0x128] sm:$0xff] %vm4767_vm6, %v4738_v19  ;;  %v740_v32 = vpop.permute.xlu1 %739  ;;  %v3043_v34 = vpop.permute.xlu0 %3042 }
 0x3c1   :  { %1018 = vst.msk [vmem:[#allocation2 + $0x350] sm:$0xff] %vm911_vm1, %v740_v32 }
 0x3c2   :  { %3323 = vst.msk [vmem:[#allocation2 + $0x340] sm:$0xff] %vm3218_vm4, %v3043_v34  ;;  %769 = vrot.lane.b32.xlu1 %v12307_v4, %s9987_s18 }
 0x3c3   :  { %3072 = vrot.lane.b32.xlu0 %v12329_v59, %s9990_s23  ;;  %v9740_v41 = vpop.f32.mrf.mxu0 }
 0x3c4   :  { %v742_v8 = vpop.permute.xlu1 %741  ;;  %v3045_v39 = vpop.permute.xlu0 %3044 }
 0x3c5   :  { %1019 = vst.msk [vmem:[#allocation2 + $0x358] sm:$0xff] %vm911_vm1, %v742_v8  ;;  %v4291_v13 = vpop.f32.mrf.mxu0 }
 0x3c6   :  { %3324 = vst.msk [vmem:[#allocation2 + $0x348] sm:$0xff] %vm3218_vm4, %v3045_v39  ;;  %v4606_v51 = vmax.f32 %v4291_v13, %v9740_v41  ;;  %1538 = vrot.lane.b32.xlu1 %v12329_v59, %s9988_s19 }
 0x3c7   :  { %1536 = vrot.lane.b32.xlu0 %v12307_v4, %s9988_s19  ;;  %v12662_v25 = vld [vmem:[#allocation3 + $0x128] sm:$0xff] }
 0x3c8   :  { %v4675_v52 = vadd.f32 %v12560_v10, %v4606_v51  ;;  %v1511_v2 = vpop.permute.xlu1 %1510  ;;  %v1509_v53 = vpop.permute.xlu0 %1508  ;;  %4937 = vst.msk [vmem:[#allocation4 + $0x128] sm:$0xff] %vm4767_vm6, %v12662_v25 }
 0x3c9   :  { %v3451_v0 = vld [vmem:[#allocation2 + $0x340] sm:$0xff]  ;;  %1788 = vst.msk [vmem:[#allocation2 + $0x358] sm:$0xff] %vm1680_vm2, %v1511_v2  ;;  %1787 = vst.msk [vmem:[#allocation2 + $0x350] sm:$0xff] %vm1680_vm2, %v1509_v53 }
 0x3ca   :  { %9786 = vmatprep.mubr.msk.f32.mxu0 %vm3480_vm5, %v3451_v0  ;;  %v4739_v54 = vmax.f32 %v4675_v52, 0.0  ;;  %2307 = vrot.lane.b32.xlu1 %v12355_v17, %s9989_s22 }
 0x3cb   :  { %2305 = vrot.lane.b32.xlu0 %v12329_v59, %s9989_s22 }
 0x3cc   :  { %4808 = vst.msk [vmem:[#allocation3 + $0x130] sm:$0xff] %vm4767_vm6, %v4739_v54  ;;  %v2280_v4 = vpop.permute.xlu1 %2279  ;;  %v2278_v57 = vpop.permute.xlu0 %2277 }
 0x3cd   :  { %v3452_v20 = vld [vmem:[#allocation2 + $0x348] sm:$0xff]  ;;  %2557 = vst.msk [vmem:[#allocation2 + $0x358] sm:$0xff] %vm2449_vm3, %v2280_v4  ;;  %2556 = vst.msk [vmem:[#allocation2 + $0x350] sm:$0xff] %vm2449_vm3, %v2278_v57 }
 0x3ce   :  { %9787 = vmatmul.mubr.msk.f32.gmra.mxu0 %vm3480_vm5, %v3452_v20  ;;  %771 = vrot.lane.b32.xlu1 %v12329_v59, %s9987_s18 }
 0x3cf   :  { %3074 = vrot.lane.b32.xlu0 %v12355_v17, %s9990_s23  ;;  %v9743_v48 = vpop.f32.mrf.mxu0 }
 0x3d0   :  { %v744_v23 = vpop.permute.xlu1 %743  ;;  %v3047_v30 = vpop.permute.xlu0 %3046 }
 0x3d1   :  { %1020 = vst.msk [vmem:[#allocation2 + $0x360] sm:$0xff] %vm911_vm1, %v744_v23  ;;  %v4301_v28 = vpop.f32.mrf.mxu0 }
 0x3d2   :  { %3325 = vst.msk [vmem:[#allocation2 + $0x350] sm:$0xff] %vm3218_vm4, %v3047_v30  ;;  %v4607_v19 = vmax.f32 %v4301_v28, %v9743_v48  ;;  %773 = vrot.lane.b32.xlu1 %v12355_v17, %s9987_s18 }
 0x3d3   :  { %3076 = vrot.lane.b32.xlu0 %v12380_v35, %s9990_s23  ;;  %v12688_v32 = vld [vmem:[#allocation3 + $0x130] sm:$0xff] }
 0x3d4   :  { %v4676_v59 = vadd.f32 %v12560_v10, %v4607_v19  ;;  %v746_v34 = vpop.permute.xlu1 %745  ;;  %v3049_v41 = vpop.permute.xlu0 %3048  ;;  %4938 = vst.msk [vmem:[#allocation4 + $0x130] sm:$0xff] %vm4767_vm6, %v12688_v32  ;;  %v1934_v19 = vld [vmem:[%s14920_s0 + $0x400] sm:$0xff] }
 0x3d5   :  { %1021 = vst.msk [vmem:[#allocation2 + $0x368] sm:$0xff] %vm911_vm1, %v746_v34 }
 0x3d6   :  { %3326 = vst.msk [vmem:[#allocation2 + $0x358] sm:$0xff] %vm3218_vm4, %v3049_v41  ;;  %v4740_v8 = vmax.f32 %v4676_v59, 0.0  ;;  %1542 = vrot.lane.b32.xlu1 %v12380_v35, %s9988_s19 }
 0x3d7   :  { %1540 = vrot.lane.b32.xlu0 %v12355_v17, %s9988_s19 }
 0x3d8   :  { %4809 = vst.msk [vmem:[#allocation3 + $0x138] sm:$0xff] %vm4767_vm6, %v4740_v8  ;;  %v1515_v39 = vpop.permute.xlu1 %1514  ;;  %v1513_v13 = vpop.permute.xlu0 %1512 }
 0x3d9   :  { %v3453_v51 = vld [vmem:[#allocation2 + $0x350] sm:$0xff]  ;;  %1790 = vst.msk [vmem:[#allocation2 + $0x368] sm:$0xff] %vm1680_vm2, %v1515_v39  ;;  %1789 = vst.msk [vmem:[#allocation2 + $0x360] sm:$0xff] %vm1680_vm2, %v1513_v13 }
 0x3da   :  { %9789 = vmatprep.mubr.msk.f32.mxu0 %vm3480_vm5, %v3453_v51  ;;  %2311 = vrot.lane.b32.xlu1 %v12398_v24, %s9989_s22 }
 0x3db   :  { %2309 = vrot.lane.b32.xlu0 %v12380_v35, %s9989_s22  ;;  %v9746_v52 = vpop.f32.mrf.mxu0 }
 0x3dc   :  { %v2284_v2 = vpop.permute.xlu1 %2283  ;;  %v2282_v17 = vpop.permute.xlu0 %2281 }
 0x3dd   :  { %v3454_v53 = vld [vmem:[#allocation2 + $0x358] sm:$0xff]  ;;  %2559 = vst.msk [vmem:[#allocation2 + $0x368] sm:$0xff] %vm2449_vm3, %v2284_v2  ;;  %2558 = vst.msk [vmem:[#allocation2 + $0x360] sm:$0xff] %vm2449_vm3, %v2282_v17  ;;  %v4311_v0 = vpop.f32.mrf.mxu0 }
 0x3de   :  { %9790 = vmatmul.mubr.msk.f32.gmra.mxu0 %vm3480_vm5, %v3454_v53  ;;  %v4608_v54 = vmax.f32 %v4311_v0, %v9746_v52  ;;  %775 = vrot.lane.b32.xlu1 %v12380_v35, %s9987_s18  ;;  %v2703_v53 = vld [vmem:[%s14920_s0 + $0x408] sm:$0xff] }
 0x3df   :  { %3078 = vrot.lane.b32.xlu0 %v12398_v24, %s9990_s23  ;;  %v12714_v4 = vld [vmem:[#allocation3 + $0x138] sm:$0xff] }
 0x3e0   :  { %v4677_v57 = vadd.f32 %v12560_v10, %v4608_v54  ;;  %v748_v20 = vpop.permute.xlu1 %747  ;;  %v3051_v48 = vpop.permute.xlu0 %3050  ;;  %4939 = vst.msk [vmem:[#allocation4 + $0x138] sm:$0xff] %vm4767_vm6, %v12714_v4 }
 0x3e1   :  { %1022 = vst.msk [vmem:[#allocation2 + $0x370] sm:$0xff] %vm911_vm1, %v748_v20 }
 0x3e2   :  { %3327 = vst.msk [vmem:[#allocation2 + $0x360] sm:$0xff] %vm3218_vm4, %v3051_v48  ;;  %v4741_v23 = vmax.f32 %v4677_v57, 0.0  ;;  %777 = vrot.lane.b32.xlu1 %v12398_v24, %s9987_s18  ;;  %v4836_v48 = vld [vmem:[#allocation3] sm:$0xff] }
 0x3e3   :  { %3080 = vrot.lane.b32.xlu0 %v12428_v55, %s9990_s23  ;;  %4900 = vst.msk [vmem:[#allocation4] sm:$0xff] %vm4767_vm6, %v4836_v48 }
 0x3e4   :  { %4810 = vst.msk [vmem:[#allocation3 + $0x140] sm:$0xff] %vm4767_vm6, %v4741_v23  ;;  %v750_v35 = vpop.permute.xlu1 %749  ;;  %v3053_v30 = vpop.permute.xlu0 %3052 }
 0x3e5   :  { %1023 = vst.msk [vmem:[#allocation2 + $0x378] sm:$0xff] %vm911_vm1, %v750_v35 }
 0x3e6   :  { %3328 = vst.msk [vmem:[#allocation2 + $0x368] sm:$0xff] %vm3218_vm4, %v3053_v30  ;;  %1546 = vrot.lane.b32.xlu1 %v12428_v55, %s9988_s19  ;;  %v1936_v30 = vld [vmem:[%s14920_s0 + $0x410] sm:$0xff] }
 0x3e7   :  { %1544 = vrot.lane.b32.xlu0 %v12398_v24, %s9988_s19  ;;  %v9749_v28 = vpop.f32.mrf.mxu0 }
 0x3e8   :  { %v1519_v59 = vpop.permute.xlu1 %1518  ;;  %v1517_v34 = vpop.permute.xlu0 %1516 }
 0x3e9   :  { %v3455_v41 = vld [vmem:[#allocation2 + $0x360] sm:$0xff]  ;;  %1792 = vst.msk [vmem:[#allocation2 + $0x378] sm:$0xff] %vm1680_vm2, %v1519_v59  ;;  %1791 = vst.msk [vmem:[#allocation2 + $0x370] sm:$0xff] %vm1680_vm2, %v1517_v34  ;;  %v4321_v8 = vpop.f32.mrf.mxu0 }
 0x3ea   :  { %9792 = vmatprep.mubr.msk.f32.mxu0 %vm3480_vm5, %v3455_v41  ;;  %v4609_v39 = vmax.f32 %v4321_v8, %v9749_v28  ;;  %2315 = vrot.lane.b32.xlu1 %v1934_v19, %s9989_s22 }
 0x3eb   :  { %2313 = vrot.lane.b32.xlu0 %v12428_v55, %s9989_s22  ;;  %v12741_v24 = vld [vmem:[#allocation3 + $0x140] sm:$0xff] }
 0x3ec   :  { %v4678_v13 = vadd.f32 %v12560_v10, %v4609_v39  ;;  %v2288_v51 = vpop.permute.xlu1 %2287  ;;  %v2286_v52 = vpop.permute.xlu0 %2285  ;;  %4940 = vst.msk [vmem:[#allocation4 + $0x140] sm:$0xff] %vm4767_vm6, %v12741_v24 }
 0x3ed   :  { %v3456_v2 = vld [vmem:[#allocation2 + $0x368] sm:$0xff]  ;;  %2561 = vst.msk [vmem:[#allocation2 + $0x378] sm:$0xff] %vm2449_vm3, %v2288_v51  ;;  %2560 = vst.msk [vmem:[#allocation2 + $0x370] sm:$0xff] %vm2449_vm3, %v2286_v52 }
 0x3ee   :  { %9793 = vmatmul.mubr.msk.f32.gmra.mxu0 %vm3480_vm5, %v3456_v2  ;;  %v4742_v17 = vmax.f32 %v4678_v13, 0.0  ;;  %779 = vrot.lane.b32.xlu1 %v12428_v55, %s9987_s18  ;;  %v2705_v13 = vld [vmem:[%s14920_s0 + $0x418] sm:$0xff]  ;;  %v6576_v51 = vld [vmem:[%s14921_s1 + $0x68] sm:$0xff] }
 0x3ef   :  { %3082 = vrot.lane.b32.xlu0 %v1934_v19, %s9990_s23 }
 0x3f0   :  { %4811 = vst.msk [vmem:[#allocation3 + $0x148] sm:$0xff] %vm4767_vm6, %v4742_v17  ;;  %v752_v0 = vpop.permute.xlu1 %751  ;;  %v3055_v54 = vpop.permute.xlu0 %3054 }
 0x3f1   :  { %1024 = vst.msk [vmem:[#allocation2 + $0x380] sm:$0xff] %vm911_vm1, %v752_v0 }
 0x3f2   :  { %3329 = vst.msk [vmem:[#allocation2 + $0x370] sm:$0xff] %vm3218_vm4, %v3055_v54  ;;  %781 = vrot.lane.b32.xlu1 %v1934_v19, %s9987_s18 }
 0x3f3   :  { %3084 = vrot.lane.b32.xlu0 %v2703_v53, %s9990_s23  ;;  %v9752_v57 = vpop.f32.mrf.mxu0 }
 0x3f4   :  { %v754_v55 = vpop.permute.xlu1 %753  ;;  %v3057_v20 = vpop.permute.xlu0 %3056 }
 0x3f5   :  { %1025 = vst.msk [vmem:[#allocation2 + $0x388] sm:$0xff] %vm911_vm1, %v754_v55  ;;  %v4331_v23 = vpop.f32.mrf.mxu0  ;;  %v6574_v55 = vld [vmem:[%s14921_s1 + $0x58] sm:$0xff] }
 0x3f6   :  { %3330 = vst.msk [vmem:[#allocation2 + $0x378] sm:$0xff] %vm3218_vm4, %v3057_v20  ;;  %v4610_v35 = vmax.f32 %v4331_v23, %v9752_v57  ;;  %1550 = vrot.lane.b32.xlu1 %v2703_v53, %s9988_s19  ;;  %v6573_v23 = vld [vmem:[%s14921_s1 + $0x50] sm:$0xff] }
 0x3f7   :  { %1548 = vrot.lane.b32.xlu0 %v1934_v19, %s9988_s19  ;;  %v12768_v28 = vld [vmem:[#allocation3 + $0x148] sm:$0xff]  ;;  %v6577_v19 = vld [vmem:[%s14921_s1 + $0x70] sm:$0xff] }
 0x3f8   :  { %v4679_v59 = vadd.f32 %v12560_v10, %v4610_v35  ;;  %v1523_v34 = vpop.permute.xlu1 %1522  ;;  %v1521_v41 = vpop.permute.xlu0 %1520  ;;  %4941 = vst.msk [vmem:[#allocation4 + $0x148] sm:$0xff] %vm4767_vm6, %v12768_v28  ;;  %9822 = vmatprep.subr.mxu1 %v6577_v19 }
 0x3f9   :  { %v3457_v8 = vld [vmem:[#allocation2 + $0x370] sm:$0xff]  ;;  %1794 = vst.msk [vmem:[#allocation2 + $0x388] sm:$0xff] %vm1680_vm2, %v1523_v34  ;;  %1793 = vst.msk [vmem:[#allocation2 + $0x380] sm:$0xff] %vm1680_vm2, %v1521_v41  ;;  %9823 = vmatpush3.msra.mxu1 %v6577_v19 }
 0x3fa   :  { %9795 = vmatprep.mubr.msk.f32.mxu0 %vm3480_vm5, %v3457_v8  ;;  %v4743_v39 = vmax.f32 %v4679_v59, 0.0  ;;  %2319 = vrot.lane.b32.xlu1 %v1936_v30, %s9989_s22 }
 0x3fb   :  { %2317 = vrot.lane.b32.xlu0 %v2703_v53, %s9989_s22  ;;  %9824 = vmatprep.subr.mxu1 %v6576_v51  ;;  %v6575_v53 = vld [vmem:[%s14921_s1 + $0x60] sm:$0xff] }
 0x3fc   :  { %4812 = vst.msk [vmem:[#allocation3 + $0x150] sm:$0xff] %vm4767_vm6, %v4743_v39  ;;  %v2292_v52 = vpop.permute.xlu1 %2291  ;;  %v2290_v2 = vpop.permute.xlu0 %2289  ;;  %9825 = vmatpush3.msra.mxu1 %v6576_v51 }
 0x3fd   :  { %v3458_v17 = vld [vmem:[#allocation2 + $0x378] sm:$0xff]  ;;  %2563 = vst.msk [vmem:[#allocation2 + $0x388] sm:$0xff] %vm2449_vm3, %v2292_v52  ;;  %2562 = vst.msk [vmem:[#allocation2 + $0x380] sm:$0xff] %vm2449_vm3, %v2290_v2  ;;  %9826 = vmatprep.subr.mxu1 %v6575_v53 }
 0x3fe   :  { %9796 = vmatmul.mubr.msk.f32.gmra.mxu0 %vm3480_vm5, %v3458_v17  ;;  %3088 = vrot.lane.b32.xlu1 %v2705_v13, %s9990_s23  ;;  %v6571_v13 = vld [vmem:[%s14921_s1 + $0x40] sm:$0xff] }
 0x3ff   :  { %3086 = vrot.lane.b32.xlu0 %v1936_v30, %s9990_s23  ;;  %v9755_v0 = vpop.f32.mrf.mxu0  ;;  %9827 = vmatpush3.msra.mxu1 %v6575_v53 }
 0x400   :  { %v756_v54 = vpop.permute.xlu1 %755  ;;  %v3059_v57 = vpop.permute.xlu0 %3058  ;;  %9828 = vmatprep.subr.mxu1 %v6574_v55 }
 0x401   :  { %1026 = vst.msk [vmem:[#allocation2 + $0x390] sm:$0xff] %vm911_vm1, %v756_v54  ;;  %v4341_v20 = vpop.f32.mrf.mxu0  ;;  %9829 = vmatpush3.msra.mxu1 %v6574_v55 }
 0x402   :  { %3331 = vst.msk [vmem:[#allocation2 + $0x380] sm:$0xff] %vm3218_vm4, %v3059_v57  ;;  %v4611_v48 = vmax.f32 %v4341_v20, %v9755_v0  ;;  %5094 = vrot.lane.b32.xlu1 %v11555_v46, %s9988_s19  ;;  %9830 = vmatprep.subr.mxu1 %v6573_v23  ;;  %v6569_v0 = vld [vmem:[%s14921_s1 + $0x30] sm:$0xff] }
 0x403   :  { %5092 = vrot.lane.b32.xlu0 %v12510_v15, %s9988_s19  ;;  %v12808_v35 = vld [vmem:[#allocation3 + $0x150] sm:$0xff]  ;;  %v6572_v15 = vld [vmem:[%s14921_s1 + $0x48] sm:$0xff]  ;;  %9831 = vmatpush3.msra.mxu1 %v6573_v23 }
 0x404   :  { %v4680_v30 = vadd.f32 %v12560_v10, %v4611_v48  ;;  %v758_v59 = vpop.permute.xlu1 %757  ;;  %v3061_v34 = vpop.permute.xlu0 %3060  ;;  %4942 = vst.msk [vmem:[#allocation4 + $0x150] sm:$0xff] %vm4767_vm6, %v12808_v35  ;;  %9832 = vmatprep.subr.mxu1 %v6572_v15  ;;  %v6568_v23 = vld [vmem:[%s14921_s1 + $0x28] sm:$0xff] }
 0x405   :  { %1027 = vst.msk [vmem:[#allocation2 + $0x398] sm:$0xff] %vm911_vm1, %v758_v59  ;;  %9833 = vmatpush3.msra.mxu1 %v6572_v15 }
 0x406   :  { %3332 = vst.msk [vmem:[#allocation2 + $0x388] sm:$0xff] %vm3218_vm4, %v3061_v34  ;;  %v4744_v41 = vmax.f32 %v4680_v30, 0.0  ;;  %5479 = vrot.lane.b32.xlu1 %v11581_v3, %s9990_s23  ;;  %9834 = vmatprep.subr.mxu1 %v6571_v13 }
 0x407   :  { %5477 = vrot.lane.b32.xlu0 %v11555_v46, %s9990_s23  ;;  %v6570_v46 = vld [vmem:[%s14921_s1 + $0x38] sm:$0xff]  ;;  %9835 = vmatpush3.msra.mxu1 %v6571_v13 }
 0x408   :  { %4813 = vst.msk [vmem:[#allocation3 + $0x158] sm:$0xff] %vm4767_vm6, %v4744_v41  ;;  %v1527_v8 = vpop.permute.xlu1 %1526  ;;  %v1525_v19 = vpop.permute.xlu0 %1524  ;;  %9836 = vmatprep.subr.mxu1 %v6570_v46 }
 0x409   :  { %v3459_v39 = vld [vmem:[#allocation2 + $0x380] sm:$0xff]  ;;  %1796 = vst.msk [vmem:[#allocation2 + $0x398] sm:$0xff] %vm1680_vm2, %v1527_v8  ;;  %1795 = vst.msk [vmem:[#allocation2 + $0x390] sm:$0xff] %vm1680_vm2, %v1525_v19  ;;  %9837 = vmatpush3.msra.mxu1 %v6570_v46 }
 0x40a   :  { %9798 = vmatprep.mubr.msk.f32.mxu0 %vm3480_vm5, %v3459_v39  ;;  %5864 = vrot.lane.b32.xlu1 %v11607_v14, %s9992_s5 }
 0x40b   :  { %5862 = vrot.lane.b32.xlu0 %v11581_v3, %s9992_s5  ;;  %v9758_v51 = vpop.f32.mrf.mxu0  ;;  %9838 = vmatprep.subr.mxu1 %v6569_v0 }
 0x40c   :  { %v2296_v52 = vpop.permute.xlu1 %2295  ;;  %v2294_v2 = vpop.permute.xlu0 %2293  ;;  %9839 = vmatpush3.msra.mxu1 %v6569_v0 }
 0x40d   :  { %v3460_v17 = vld [vmem:[#allocation2 + $0x388] sm:$0xff]  ;;  %2565 = vst.msk [vmem:[#allocation2 + $0x398] sm:$0xff] %vm2449_vm3, %v2296_v52  ;;  %2564 = vst.msk [vmem:[#allocation2 + $0x390] sm:$0xff] %vm2449_vm3, %v2294_v2  ;;  %v4351_v53 = vpop.f32.mrf.mxu0  ;;  %9840 = vmatprep.subr.mxu1 %v6568_v23 }
 0x40e   :  { %9799 = vmatmul.mubr.msk.f32.gmra.mxu0 %vm3480_vm5, %v3460_v17  ;;  %v4612_v54 = vmax.f32 %v4351_v53, %v9758_v51  ;;  %5096 = vrot.lane.b32.xlu1 %v11581_v3, %s9988_s19 }
 0x40f   :  { %6247 = vrot.lane.b32.xlu0 %v11607_v14, %s9993_s10  ;;  %v12846_v57 = vld [vmem:[#allocation3 + $0x158] sm:$0xff]  ;;  %9841 = vmatpush3.msra.mxu1 %v6568_v23 }
 0x410   :  { %v4681_v55 = vadd.f32 %v12560_v10, %v4612_v54  ;;  %v760_v20 = vpop.permute.xlu1 %759  ;;  %v3063_v48 = vpop.permute.xlu0 %3062  ;;  %4943 = vst.msk [vmem:[#allocation4 + $0x158] sm:$0xff] %vm4767_vm6, %v12846_v57  ;;  %8181 = vmatprep.subr.mxu1 %v9991_v5 }
 0x411   :  { %1028 = vst.msk [vmem:[#allocation2 + $0x3a0] sm:$0xff] %vm911_vm1, %v760_v20 }
 0x412   :  { %3333 = vst.msk [vmem:[#allocation2 + $0x390] sm:$0xff] %vm3218_vm4, %v3063_v48  ;;  %v4745_v3 = vmax.f32 %v4681_v55, 0.0  ;;  %5098 = vrot.lane.b32.xlu1 %v11607_v14, %s9988_s19 }
 0x413   :  { %6249 = vrot.lane.b32.xlu0 %v11633_v31, %s9993_s10 }
 0x414   :  { %4814 = vst.msk [vmem:[#allocation3 + $0x160] sm:$0xff] %vm4767_vm6, %v4745_v3  ;;  %v762_v30 = vpop.permute.xlu1 %761  ;;  %v3065_v59 = vpop.permute.xlu0 %3064 }
 0x415   :  { %1029 = vst.msk [vmem:[#allocation2 + $0x3a8] sm:$0xff] %vm911_vm1, %v762_v30 }
 0x416   :  { %3334 = vst.msk [vmem:[#allocation2 + $0x398] sm:$0xff] %vm3218_vm4, %v3065_v59  ;;  %5483 = vrot.lane.b32.xlu1 %v11633_v31, %s9990_s23 }
 0x417   :  { %5481 = vrot.lane.b32.xlu0 %v11607_v14, %s9990_s23  ;;  %v9761_v34 = vpop.f32.mrf.mxu0 }
 0x418   :  { %v1531_v15 = vpop.permute.xlu1 %1530  ;;  %v1529_v41 = vpop.permute.xlu0 %1528 }
 0x419   :  { %v3461_v8 = vld [vmem:[#allocation2 + $0x390] sm:$0xff]  ;;  %1798 = vst.msk [vmem:[#allocation2 + $0x3a8] sm:$0xff] %vm1680_vm2, %v1531_v15  ;;  %1797 = vst.msk [vmem:[#allocation2 + $0x3a0] sm:$0xff] %vm1680_vm2, %v1529_v41  ;;  %v4361_v19 = vpop.f32.mrf.mxu0 }
 0x41a   :  { %9801 = vmatprep.mubr.msk.f32.mxu0 %vm3480_vm5, %v3461_v8  ;;  %v4613_v39 = vmax.f32 %v4361_v19, %v9761_v34  ;;  %5868 = vrot.lane.b32.xlu1 %v11659_v11, %s9992_s5 }
 0x41b   :  { %5866 = vrot.lane.b32.xlu0 %v11633_v31, %s9992_s5  ;;  %v12875_v14 = vld [vmem:[#allocation3 + $0x160] sm:$0xff] }
 0x41c   :  { %v4682_v13 = vadd.f32 %v12560_v10, %v4613_v39  ;;  %v2300_v46 = vpop.permute.xlu1 %2299  ;;  %4944 = vst.msk [vmem:[#allocation4 + $0x160] sm:$0xff] %vm4767_vm6, %v12875_v14 }
 0x41d   :  { %v2298_v51 = vpop.permute.xlu0 %2297  ;;  %v3462_v52 = vld [vmem:[#allocation2 + $0x398] sm:$0xff]  ;;  %2567 = vst.msk [vmem:[#allocation2 + $0x3a8] sm:$0xff] %vm2449_vm3, %v2300_v46 }
 0x41e   :  { %2566 = vst.msk [vmem:[#allocation2 + $0x3a0] sm:$0xff] %vm2449_vm3, %v2298_v51  ;;  %9802 = vmatmul.mubr.msk.f32.gmra.mxu0 %vm3480_vm5, %v3462_v52  ;;  %v4746_v2 = vmax.f32 %v4682_v13, 0.0  ;;  %5100 = vrot.lane.b32.xlu1 %v11633_v31, %s9988_s19 }
 0x41f   :  { %6251 = vrot.lane.b32.xlu0 %v11659_v11, %s9993_s10 }
 0x420   :  { %4815 = vst.msk [vmem:[#allocation3 + $0x168] sm:$0xff] %vm4767_vm6, %v4746_v2  ;;  %v764_v17 = vpop.permute.xlu1 %763 }
 0x421   :  { %v3067_v53 = vpop.permute.xlu0 %3066  ;;  %1030 = vst.msk [vmem:[#allocation2 + $0x3b0] sm:$0xff] %vm911_vm1, %v764_v17 }
 0x422   :  { %3335 = vst.msk [vmem:[#allocation2 + $0x3a0] sm:$0xff] %vm3218_vm4, %v3067_v53  ;;  %5102 = vrot.lane.b32.xlu1 %v11659_v11, %s9988_s19 }
 0x423   :  { %6253 = vrot.lane.b32.xlu0 %v11685_v56, %s9993_s10  ;;  %v9764_v0 = vpop.f32.mrf.mxu0 }
 0x424   :  { %v766_v54 = vpop.permute.xlu1 %765 }
 0x425   :  { %v3069_v55 = vpop.permute.xlu0 %3068  ;;  %1031 = vst.msk [vmem:[#allocation2 + $0x3b8] sm:$0xff] %vm911_vm1, %v766_v54  ;;  %v4371_v31 = vpop.f32.mrf.mxu0 }
 0x426   :  { %3336 = vst.msk [vmem:[#allocation2 + $0x3a8] sm:$0xff] %vm3218_vm4, %v3069_v55  ;;  %v4614_v20 = vmax.f32 %v4371_v31, %v9764_v0  ;;  %5487 = vrot.lane.b32.xlu1 %v11685_v56, %s9990_s23 }
 0x427   :  { %5485 = vrot.lane.b32.xlu0 %v11659_v11, %s9990_s23  ;;  %v12900_v48 = vld [vmem:[#allocation3 + $0x168] sm:$0xff] }
 0x428   :  { %v4683_v23 = vadd.f32 %v12560_v10, %v4614_v20  ;;  %v1535_v3 = vpop.permute.xlu1 %1534  ;;  %4945 = vst.msk [vmem:[#allocation4 + $0x168] sm:$0xff] %vm4767_vm6, %v12900_v48 }
 0x429   :  { %v1533_v30 = vpop.permute.xlu0 %1532  ;;  %v3463_v59 = vld [vmem:[#allocation2 + $0x3a0] sm:$0xff]  ;;  %1800 = vst.msk [vmem:[#allocation2 + $0x3b8] sm:$0xff] %vm1680_vm2, %v1535_v3 }
 0x42a   :  { %1799 = vst.msk [vmem:[#allocation2 + $0x3b0] sm:$0xff] %vm1680_vm2, %v1533_v30  ;;  %9804 = vmatprep.mubr.msk.f32.mxu0 %vm3480_vm5, %v3463_v59  ;;  %v4747_v11 = vmax.f32 %v4683_v23, 0.0  ;;  %5872 = vrot.lane.b32.xlu1 %v11711_v18, %s9992_s5 }
 0x42b   :  { %5870 = vrot.lane.b32.xlu0 %v11685_v56, %s9992_s5 }
 0x42c   :  { %4816 = vst.msk [vmem:[#allocation3 + $0x170] sm:$0xff] %vm4767_vm6, %v4747_v11  ;;  %v2304_v34 = vpop.permute.xlu1 %2303 }
 0x42d   :  { %v2302_v15 = vpop.permute.xlu0 %2301  ;;  %v3464_v41 = vld [vmem:[#allocation2 + $0x3a8] sm:$0xff]  ;;  %2569 = vst.msk [vmem:[#allocation2 + $0x3b8] sm:$0xff] %vm2449_vm3, %v2304_v34 }
 0x42e   :  { %2568 = vst.msk [vmem:[#allocation2 + $0x3b0] sm:$0xff] %vm2449_vm3, %v2302_v15  ;;  %9805 = vmatmul.mubr.msk.f32.gmra.mxu0 %vm3480_vm5, %v3464_v41  ;;  %5104 = vrot.lane.b32.xlu1 %v11685_v56, %s9988_s19 }
 0x42f   :  { %6255 = vrot.lane.b32.xlu0 %v11711_v18, %s9993_s10  ;;  %v9767_v8 = vpop.f32.mrf.mxu0 }
 0x430   :  { %v768_v19 = vpop.permute.xlu1 %767 }
 0x431   :  { %v3071_v39 = vpop.permute.xlu0 %3070  ;;  %1032 = vst.msk [vmem:[#allocation2 + $0x3c0] sm:$0xff] %vm911_vm1, %v768_v19  ;;  %v4381_v13 = vpop.f32.mrf.mxu0 }
 0x432   :  { %3337 = vst.msk [vmem:[#allocation2 + $0x3b0] sm:$0xff] %vm3218_vm4, %v3071_v39  ;;  %v4615_v46 = vmax.f32 %v4381_v13, %v9767_v8  ;;  %5106 = vrot.lane.b32.xlu1 %v11711_v18, %s9988_s19 }
 0x433   :  { %6257 = vrot.lane.b32.xlu0 %v11737_v36, %s9993_s10  ;;  %v12926_v51 = vld [vmem:[#allocation3 + $0x170] sm:$0xff] }
 0x434   :  { %v4684_v52 = vadd.f32 %v12560_v10, %v4615_v46  ;;  %v770_v56 = vpop.permute.xlu1 %769  ;;  %4946 = vst.msk [vmem:[#allocation4 + $0x170] sm:$0xff] %vm4767_vm6, %v12926_v51 }
 0x435   :  { %v3073_v2 = vpop.permute.xlu0 %3072  ;;  %1033 = vst.msk [vmem:[#allocation2 + $0x3c8] sm:$0xff] %vm911_vm1, %v770_v56 }
 0x436   :  { %3338 = vst.msk [vmem:[#allocation2 + $0x3b8] sm:$0xff] %vm3218_vm4, %v3073_v2  ;;  %v4748_v17 = vmax.f32 %v4684_v52, 0.0  ;;  %5491 = vrot.lane.b32.xlu1 %v11737_v36, %s9990_s23 }
 0x437   :  { %5489 = vrot.lane.b32.xlu0 %v11711_v18, %s9990_s23 }
 0x438   :  { %4817 = vst.msk [vmem:[#allocation3 + $0x178] sm:$0xff] %vm4767_vm6, %v4748_v17  ;;  %v1539_v53 = vpop.permute.xlu1 %1538 }
 0x439   :  { %v1537_v0 = vpop.permute.xlu0 %1536  ;;  %v3465_v54 = vld [vmem:[#allocation2 + $0x3b0] sm:$0xff]  ;;  %1802 = vst.msk [vmem:[#allocation2 + $0x3c8] sm:$0xff] %vm1680_vm2, %v1539_v53 }
 0x43a   :  { %1801 = vst.msk [vmem:[#allocation2 + $0x3c0] sm:$0xff] %vm1680_vm2, %v1537_v0  ;;  %9807 = vmatprep.mubr.msk.f32.mxu0 %vm3480_vm5, %v3465_v54  ;;  %5876 = vrot.lane.b32.xlu1 %v11763_v50, %s9992_s5 }
 0x43b   :  { %5874 = vrot.lane.b32.xlu0 %v11737_v36, %s9992_s5  ;;  %v9770_v18 = vpop.f32.mrf.mxu0 }
 0x43c   :  { %v2308_v55 = vpop.permute.xlu1 %2307 }
 0x43d   :  { %v2306_v31 = vpop.permute.xlu0 %2305  ;;  %v3466_v20 = vld [vmem:[#allocation2 + $0x3b8] sm:$0xff]  ;;  %2571 = vst.msk [vmem:[#allocation2 + $0x3c8] sm:$0xff] %vm2449_vm3, %v2308_v55  ;;  %v4391_v23 = vpop.f32.mrf.mxu0 }
 0x43e   :  { %2570 = vst.msk [vmem:[#allocation2 + $0x3c0] sm:$0xff] %vm2449_vm3, %v2306_v31  ;;  %9808 = vmatmul.mubr.msk.f32.gmra.mxu0 %vm3480_vm5, %v3466_v20  ;;  %v4616_v3 = vmax.f32 %v4391_v23, %v9770_v18  ;;  %5108 = vrot.lane.b32.xlu1 %v11737_v36, %s9988_s19 }
 0x43f   :  { %6259 = vrot.lane.b32.xlu0 %v11763_v50, %s9993_s10  ;;  %v12952_v30 = vld [vmem:[#allocation3 + $0x178] sm:$0xff] }
 0x440   :  { %v4685_v59 = vadd.f32 %v12560_v10, %v4616_v3  ;;  %v772_v11 = vpop.permute.xlu1 %771  ;;  %4947 = vst.msk [vmem:[#allocation4 + $0x178] sm:$0xff] %vm4767_vm6, %v12952_v30 }
 0x441   :  { %v3075_v34 = vpop.permute.xlu0 %3074  ;;  %1034 = vst.msk [vmem:[#allocation2 + $0x3d0] sm:$0xff] %vm911_vm1, %v772_v11 }
 0x442   :  { %3339 = vst.msk [vmem:[#allocation2 + $0x3c0] sm:$0xff] %vm3218_vm4, %v3075_v34  ;;  %v4749_v15 = vmax.f32 %v4685_v59, 0.0  ;;  %5110 = vrot.lane.b32.xlu1 %v11763_v50, %s9988_s19 }
 0x443   :  { %6261 = vrot.lane.b32.xlu0 %v11789_v63, %s9993_s10 }
 0x444   :  { %4818 = vst.msk [vmem:[#allocation3 + $0x180] sm:$0xff] %vm4767_vm6, %v4749_v15  ;;  %v774_v36 = vpop.permute.xlu1 %773 }
 0x445   :  { %v3077_v41 = vpop.permute.xlu0 %3076  ;;  %1035 = vst.msk [vmem:[#allocation2 + $0x3d8] sm:$0xff] %vm911_vm1, %v774_v36 }
 0x446   :  { %3340 = vst.msk [vmem:[#allocation2 + $0x3c8] sm:$0xff] %vm3218_vm4, %v3077_v41  ;;  %5495 = vrot.lane.b32.xlu1 %v11789_v63, %s9990_s23 }
 0x447   :  { %5493 = vrot.lane.b32.xlu0 %v11763_v50, %s9990_s23  ;;  %v9773_v8 = vpop.f32.mrf.mxu0 }
 0x448   :  { %v1543_v19 = vpop.permute.xlu1 %1542 }
 0x449   :  { %v1541_v39 = vpop.permute.xlu0 %1540  ;;  %v3467_v13 = vld [vmem:[#allocation2 + $0x3c0] sm:$0xff]  ;;  %1804 = vst.msk [vmem:[#allocation2 + $0x3d8] sm:$0xff] %vm1680_vm2, %v1543_v19  ;;  %v4401_v46 = vpop.f32.mrf.mxu0 }
 0x44a   :  { %1803 = vst.msk [vmem:[#allocation2 + $0x3d0] sm:$0xff] %vm1680_vm2, %v1541_v39  ;;  %9810 = vmatprep.mubr.msk.f32.mxu0 %vm3480_vm5, %v3467_v13  ;;  %v4617_v52 = vmax.f32 %v4401_v46, %v9773_v8  ;;  %5880 = vrot.lane.b32.xlu1 %v11815_v26, %s9992_s5 }
 0x44b   :  { %5878 = vrot.lane.b32.xlu0 %v11789_v63, %s9992_s5  ;;  %v12977_v50 = vld [vmem:[#allocation3 + $0x180] sm:$0xff] }
 0x44c   :  { %v4686_v56 = vadd.f32 %v12560_v10, %v4617_v52  ;;  %v2312_v2 = vpop.permute.xlu1 %2311  ;;  %4948 = vst.msk [vmem:[#allocation4 + $0x180] sm:$0xff] %vm4767_vm6, %v12977_v50 }
 0x44d   :  { %v2310_v17 = vpop.permute.xlu0 %2309  ;;  %v3468_v53 = vld [vmem:[#allocation2 + $0x3c8] sm:$0xff]  ;;  %2573 = vst.msk [vmem:[#allocation2 + $0x3d8] sm:$0xff] %vm2449_vm3, %v2312_v2 }
 0x44e   :  { %2572 = vst.msk [vmem:[#allocation2 + $0x3d0] sm:$0xff] %vm2449_vm3, %v2310_v17  ;;  %9811 = vmatmul.mubr.msk.f32.gmra.mxu0 %vm3480_vm5, %v3468_v53  ;;  %v4750_v0 = vmax.f32 %v4686_v56, 0.0  ;;  %5112 = vrot.lane.b32.xlu1 %v11789_v63, %s9988_s19 }
 0x44f   :  { %6263 = vrot.lane.b32.xlu0 %v11815_v26, %s9993_s10 }
 0x450   :  { %4819 = vst.msk [vmem:[#allocation3 + $0x188] sm:$0xff] %vm4767_vm6, %v4750_v0  ;;  %v776_v54 = vpop.permute.xlu1 %775 }
 0x451   :  { %v3079_v18 = vpop.permute.xlu0 %3078  ;;  %1036 = vst.msk [vmem:[#allocation2 + $0x3e0] sm:$0xff] %vm911_vm1, %v776_v54 }
 0x452   :  { %3341 = vst.msk [vmem:[#allocation2 + $0x3d0] sm:$0xff] %vm3218_vm4, %v3079_v18  ;;  %5114 = vrot.lane.b32.xlu1 %v11815_v26, %s9988_s19 }
 0x453   :  { %6265 = vrot.lane.b32.xlu0 %v11855_v47, %s9993_s10  ;;  %v9776_v55 = vpop.f32.mrf.mxu0 }
 0x454   :  { %v778_v31 = vpop.permute.xlu1 %777 }
 0x455   :  { %v3081_v20 = vpop.permute.xlu0 %3080  ;;  %1037 = vst.msk [vmem:[#allocation2 + $0x3e8] sm:$0xff] %vm911_vm1, %v778_v31  ;;  %v4411_v63 = vpop.f32.mrf.mxu0 }
 0x456   :  { %3342 = vst.msk [vmem:[#allocation2 + $0x3d8] sm:$0xff] %vm3218_vm4, %v3081_v20  ;;  %v4618_v23 = vmax.f32 %v4411_v63, %v9776_v55  ;;  %5499 = vrot.lane.b32.xlu1 %v11855_v47, %s9990_s23 }
 0x457   :  { %5497 = vrot.lane.b32.xlu0 %v11815_v26, %s9990_s23  ;;  %v13002_v3 = vld [vmem:[#allocation3 + $0x188] sm:$0xff] }
 0x458   :  { %v4687_v59 = vadd.f32 %v12560_v10, %v4618_v23  ;;  %v1547_v11 = vpop.permute.xlu1 %1546  ;;  %4949 = vst.msk [vmem:[#allocation4 + $0x188] sm:$0xff] %vm4767_vm6, %v13002_v3 }
 0x459   :  { %v1545_v34 = vpop.permute.xlu0 %1544  ;;  %v3469_v15 = vld [vmem:[#allocation2 + $0x3d0] sm:$0xff]  ;;  %1806 = vst.msk [vmem:[#allocation2 + $0x3e8] sm:$0xff] %vm1680_vm2, %v1547_v11 }
 0x45a   :  { %1805 = vst.msk [vmem:[#allocation2 + $0x3e0] sm:$0xff] %vm1680_vm2, %v1545_v34  ;;  %9813 = vmatprep.mubr.msk.f32.mxu0 %vm3480_vm5, %v3469_v15  ;;  %v4751_v26 = vmax.f32 %v4687_v59, 0.0  ;;  %5884 = vrot.lane.b32.xlu1 %v11895_v61, %s9992_s5 }
 0x45b   :  { %5882 = vrot.lane.b32.xlu0 %v11855_v47, %s9992_s5 }
 0x45c   :  { %4820 = vst.msk [vmem:[#allocation3 + $0x190] sm:$0xff] %vm4767_vm6, %v4751_v26  ;;  %v2316_v10 = vpop.permute.xlu1 %2315 }
 0x45d   :  { %v2314_v36 = vpop.permute.xlu0 %2313  ;;  %v3470_v41 = vld [vmem:[#allocation2 + $0x3d8] sm:$0xff]  ;;  %2575 = vst.msk [vmem:[#allocation2 + $0x3e8] sm:$0xff] %vm2449_vm3, %v2316_v10 }
 0x45e   :  { %2574 = vst.msk [vmem:[#allocation2 + $0x3e0] sm:$0xff] %vm2449_vm3, %v2314_v36  ;;  %9814 = vmatmul.mubr.msk.f32.gmra.mxu0 %vm3480_vm5, %v3470_v41  ;;  %5116 = vrot.lane.b32.xlu1 %v11855_v47, %s9988_s19  ;;  %v13033_v47 = vld [vmem:[%s14922_s2] ss:$0 sm:$0xff] }
 0x45f   :  { %6267 = vrot.lane.b32.xlu0 %v11895_v61, %s9993_s10  ;;  %v9779_v8 = vpop.f32.mrf.mxu0 }
 0x460   :  { %v780_v19 = vpop.permute.xlu1 %779 }
 0x461   :  { %v3083_v39 = vpop.permute.xlu0 %3082  ;;  %1038 = vst.msk [vmem:[#allocation2 + $0x3f0] sm:$0xff] %vm911_vm1, %v780_v19  ;;  %v4421_v13 = vpop.f32.mrf.mxu0 }
 0x462   :  { %3343 = vst.msk [vmem:[#allocation2 + $0x3e0] sm:$0xff] %vm3218_vm4, %v3083_v39  ;;  %v4619_v46 = vmax.f32 %v4421_v13, %v9779_v8  ;;  %5118 = vrot.lane.b32.xlu1 %v11895_v61, %s9988_s19 }
 0x463   :  { %6269 = vrot.lane.b32.xlu0 %v11928_v27, %s9993_s10  ;;  %v13028_v52 = vld [vmem:[#allocation3 + $0x190] sm:$0xff] }
 0x464   :  { %v4688_v56 = vadd.f32 %v13033_v47, %v4619_v46  ;;  %v782_v2 = vpop.permute.xlu1 %781  ;;  %4950 = vst.msk [vmem:[#allocation4 + $0x190] sm:$0xff] %vm4767_vm6, %v13028_v52 }
 0x465   :  { %v3085_v17 = vpop.permute.xlu0 %3084  ;;  %1039 = vst.msk [vmem:[#allocation2 + $0x3f8] sm:$0xff] %vm911_vm1, %v782_v2  ;;  %vm8465_vm1 = vcmask 1048064  }
 0x466   :  { %3344 = vst.msk [vmem:[#allocation2 + $0x3e8] sm:$0xff] %vm3218_vm4, %v3085_v17  ;;  %v4752_v53 = vmax.f32 %v4688_v56, 0.0  ;;  %5503 = vrot.lane.b32.xlu1 %v11928_v27, %s9990_s23 }
 0x467   :  { %5501 = vrot.lane.b32.xlu0 %v11895_v61, %s9990_s23 }
 0x468   :  { %4821 = vst.msk [vmem:[#allocation3 + $0x198] sm:$0xff] %vm4767_vm6, %v4752_v53  ;;  %v1551_v0 = vpop.permute.xlu1 %1550 }
 0x469   :  { %v1549_v54 = vpop.permute.xlu0 %1548  ;;  %v3471_v18 = vld [vmem:[#allocation2 + $0x3e0] sm:$0xff]  ;;  %1808 = vst.msk [vmem:[#allocation2 + $0x3f8] sm:$0xff] %vm1680_vm2, %v1551_v0 }
 0x46a   :  { %1807 = vst.msk [vmem:[#allocation2 + $0x3f0] sm:$0xff] %vm1680_vm2, %v1549_v54  ;;  %9816 = vmatprep.mubr.msk.f32.mxu0 %vm3480_vm5, %v3471_v18  ;;  %5888 = vrot.lane.b32.xlu1 %v11968_v49, %s9992_s5  ;;  %vm9995_vm2 = vmmov 0  }
 0x46b   :  { %5886 = vrot.lane.b32.xlu0 %v11928_v27, %s9992_s5 }
 0x46c   :  { %v2320_v61 = vpop.permute.xlu1 %2319 }
 0x46d   :  { %v2318_v55 = vpop.permute.xlu0 %2317  ;;  %v3472_v31 = vld [vmem:[#allocation2 + $0x3e8] sm:$0xff]  ;;  %2577 = vst.msk [vmem:[#allocation2 + $0x3f8] sm:$0xff] %vm2449_vm3, %v2320_v61 }
 0x46e   :  { %2576 = vst.msk [vmem:[#allocation2 + $0x3f0] sm:$0xff] %vm2449_vm3, %v2318_v55  ;;  %v9782_v20 = vpop.f32.mrf.mxu0  ;;  %9817 = vmatmul.mubr.msk.f32.gmra.mxu0 %vm3480_vm5, %v3472_v31  ;;  %5120 = vrot.lane.b32.xlu1 %v11928_v27, %s9988_s19 }
 0x46f   :  { %6271 = vrot.lane.b32.xlu0 %v11968_v49, %s9993_s10  ;;  %v13059_v23 = vld [vmem:[#allocation3 + $0x198] sm:$0xff] }
 0x470   :  { %v4431_v63 = vpop.f32.mrf.mxu0  ;;  %v3089_v11 = vpop.permute.xlu1 %3088  ;;  %4951 = vst.msk [vmem:[#allocation4 + $0x198] sm:$0xff] %vm4767_vm6, %v13059_v23 }
 0x471   :  { %v4620_v59 = vmax.f32 %v4431_v63, %v9782_v20  ;;  %v3087_v34 = vpop.permute.xlu0 %3086  ;;  %3346 = vst.msk [vmem:[#allocation2 + $0x3f8] sm:$0xff] %vm3218_vm4, %v3089_v11 }
 0x472   :  { %3345 = vst.msk [vmem:[#allocation2 + $0x3f0] sm:$0xff] %vm3218_vm4, %v3087_v34  ;;  %5122 = vrot.lane.b32.xlu1 %v11968_v49, %s9988_s19 }
 0x473   :  { %v4689_v15 = vadd.f32 %v13033_v47, %v4620_v59  ;;  %6273 = vrot.lane.b32.xlu0 %v12001_v12, %s9993_s10 }
 0x474   :  { %v5095_v10 = vpop.permute.xlu1 %5094 }
 0x475   :  { %v4753_v27 = vmax.f32 %v4689_v15, 0.0  ;;  %v5093_v26 = vpop.permute.xlu0 %5092  ;;  %5286 = vst.msk [vmem:[#allocation4 + $0x8] sm:$0xff] %vm5284_vm7, %v5095_v10 }
 0x476   :  { %5285 = vst.msk [vmem:[#allocation4] sm:$0xff] %vm5284_vm7, %v5093_v26  ;;  %5507 = vrot.lane.b32.xlu1 %v12001_v12, %s9990_s23 }
 0x477   :  { %4822 = vst.msk [vmem:[#allocation3 + $0x1a0] sm:$0xff] %vm4767_vm6, %v4753_v27  ;;  %5505 = vrot.lane.b32.xlu0 %v11968_v49, %s9990_s23 }
 0x478   :  { %v5480_v41 = vpop.permute.xlu1 %5479  ;;  %v3474_v19 = vld [vmem:[#allocation2 + $0x3f8] sm:$0xff] }
 0x479   :  { %v5478_v36 = vpop.permute.xlu0 %5477  ;;  %v3473_v8 = vld [vmem:[#allocation2 + $0x3f0] sm:$0xff]  ;;  %5671 = vst.msk [vmem:[#allocation4 + $0x8] sm:$0xff] %vm5669_vm8, %v5480_v41 }
 0x47a   :  { %5670 = vst.msk [vmem:[#allocation4] sm:$0xff] %vm5669_vm8, %v5478_v36  ;;  %9819 = vmatprep.mubr.msk.f32.mxu0 %vm3480_vm5, %v3473_v8  ;;  %5892 = vrot.lane.b32.xlu1 %v12046_v42, %s9992_s5 }
 0x47b   :  { %9820 = vmatmul.mubr.msk.f32.gmra.mxu0 %vm3480_vm5, %v3474_v19  ;;  %5890 = vrot.lane.b32.xlu0 %v12001_v12, %s9992_s5 }
 0x47c   :  { %v5865_v39 = vpop.permute.xlu1 %5864 }
 0x47d   :  { %v5863_v49 = vpop.permute.xlu0 %5862  ;;  %6056 = vst.msk [vmem:[#allocation4 + $0x8] sm:$0xff] %vm6054_vm9, %v5865_v39 }
 0x47e   :  { %6055 = vst.msk [vmem:[#allocation4] sm:$0xff] %vm6054_vm9, %v5863_v49  ;;  %v9785_v13 = vpop.f32.mrf.mxu0  ;;  %v13087_v46 = vld [vmem:[#allocation3 + $0x1a0] sm:$0xff]  ;;  %5124 = vrot.lane.b32.xlu1 %v12001_v12, %s9988_s19 }
 0x47f   :  { %6275 = vrot.lane.b32.xlu0 %v12046_v42, %s9993_s10  ;;  %4952 = vst.msk [vmem:[#allocation4 + $0x1a0] sm:$0xff] %vm4767_vm6, %v13087_v46 }
 0x480   :  { %v4441_v56 = vpop.f32.mrf.mxu0  ;;  %v5097_v53 = vpop.permute.xlu1 %5096 }
 0x481   :  { %v4621_v2 = vmax.f32 %v4441_v56, %v9785_v13  ;;  %v6248_v17 = vpop.permute.xlu0 %6247  ;;  %5287 = vst.msk [vmem:[#allocation4 + $0x10] sm:$0xff] %vm5284_vm7, %v5097_v53 }
 0x482   :  { %6440 = vst.msk [vmem:[#allocation4] sm:$0xff] %vm6439_vm10, %v6248_v17  ;;  %5126 = vrot.lane.b32.xlu1 %v12046_v42, %s9988_s19 }
 0x483   :  { %v4690_v0 = vadd.f32 %v13033_v47, %v4621_v2  ;;  %6277 = vrot.lane.b32.xlu0 %v12079_v60, %s9993_s10 }
 0x484   :  { %v5099_v18 = vpop.permute.xlu1 %5098 }
 0x485   :  { %v4754_v54 = vmax.f32 %v4690_v0, 0.0  ;;  %v6250_v61 = vpop.permute.xlu0 %6249  ;;  %5288 = vst.msk [vmem:[#allocation4 + $0x18] sm:$0xff] %vm5284_vm7, %v5099_v18 }
 0x486   :  { %6441 = vst.msk [vmem:[#allocation4 + $0x8] sm:$0xff] %vm6439_vm10, %v6250_v61  ;;  %5511 = vrot.lane.b32.xlu1 %v12079_v60, %s9990_s23 }
 0x487   :  { %4823 = vst.msk [vmem:[#allocation3 + $0x1a8] sm:$0xff] %vm4767_vm6, %v4754_v54  ;;  %5509 = vrot.lane.b32.xlu0 %v12046_v42, %s9990_s23 }
 0x488   :  { %v5484_v55 = vpop.permute.xlu1 %5483 }
 0x489   :  { %v5482_v12 = vpop.permute.xlu0 %5481  ;;  %v6504_v31 = vld [vmem:[#allocation4] sm:$0xff]  ;;  %5673 = vst.msk [vmem:[#allocation4 + $0x18] sm:$0xff] %vm5669_vm8, %v5484_v55 }
 0x48a   :  { %5672 = vst.msk [vmem:[#allocation4 + $0x10] sm:$0xff] %vm5669_vm8, %v5482_v12  ;;  %9842 = vmatprep.mubr.msk.f32.mxu1 %vm6578_vm11, %v6504_v31  ;;  %5896 = vrot.lane.b32.xlu1 %v12119_v38, %s9992_s5 }
 0x48b   :  { %5894 = vrot.lane.b32.xlu0 %v12079_v60, %s9992_s5 }
 0x48c   :  { %v5869_v20 = vpop.permute.xlu1 %5868 }
 0x48d   :  { %v5867_v42 = vpop.permute.xlu0 %5866  ;;  %v6505_v63 = vld [vmem:[#allocation4 + $0x8] sm:$0xff]  ;;  %6058 = vst.msk [vmem:[#allocation4 + $0x18] sm:$0xff] %vm6054_vm9, %v5869_v20 }
 0x48e   :  { %6057 = vst.msk [vmem:[#allocation4 + $0x10] sm:$0xff] %vm6054_vm9, %v5867_v42  ;;  %v9788_v59 = vpop.f32.mrf.mxu0  ;;  %9843 = vmatmul.mubr.msk.f32.vlgmr.msra.gmra.mxu1 %vm6578_vm11, %v6505_v63  ;;  %v13119_v11 = vld [vmem:[#allocation3 + $0x1a8] sm:$0xff]  ;;  %5128 = vrot.lane.b32.xlu1 %v12079_v60, %s9988_s19 }
 0x48f   :  { %6279 = vrot.lane.b32.xlu0 %v12119_v38, %s9993_s10  ;;  %4953 = vst.msk [vmem:[#allocation4 + $0x1a8] sm:$0xff] %vm4767_vm6, %v13119_v11 }
 0x490   :  { %v4451_v34 = vpop.f32.mrf.mxu0  ;;  %v5101_v26 = vpop.permute.xlu1 %5100 }
 0x491   :  { %v4622_v15 = vmax.f32 %v4451_v34, %v9788_v59  ;;  %v6252_v27 = vpop.permute.xlu0 %6251  ;;  %5289 = vst.msk [vmem:[#allocation4 + $0x20] sm:$0xff] %vm5284_vm7, %v5101_v26 }
 0x492   :  { %6442 = vst.msk [vmem:[#allocation4 + $0x10] sm:$0xff] %vm6439_vm10, %v6252_v27  ;;  %5130 = vrot.lane.b32.xlu1 %v12119_v38, %s9988_s19 }
 0x493   :  { %v4691_v10 = vadd.f32 %v13033_v47, %v4622_v15  ;;  %6281 = vrot.lane.b32.xlu0 %v12152_v62, %s9993_s10 }
 0x494   :  { %v5103_v41 = vpop.permute.xlu1 %5102 }
 0x495   :  { %v4755_v36 = vmax.f32 %v4691_v10, 0.0  ;;  %v6254_v8 = vpop.permute.xlu0 %6253  ;;  %5290 = vst.msk [vmem:[#allocation4 + $0x28] sm:$0xff] %vm5284_vm7, %v5103_v41 }
 0x496   :  { %6443 = vst.msk [vmem:[#allocation4 + $0x18] sm:$0xff] %vm6439_vm10, %v6254_v8  ;;  %5515 = vrot.lane.b32.xlu1 %v12152_v62, %s9990_s23 }
 0x497   :  { %4824 = vst.msk [vmem:[#allocation3 + $0x1b0] sm:$0xff] %vm4767_vm6, %v4755_v36  ;;  %5513 = vrot.lane.b32.xlu0 %v12119_v38, %s9990_s23 }
 0x498   :  { %v5488_v19 = vpop.permute.xlu1 %5487 }
 0x499   :  { %v5486_v60 = vpop.permute.xlu0 %5485  ;;  %v6506_v49 = vld [vmem:[#allocation4 + $0x10] sm:$0xff]  ;;  %5675 = vst.msk [vmem:[#allocation4 + $0x28] sm:$0xff] %vm5669_vm8, %v5488_v19 }
 0x49a   :  { %5674 = vst.msk [vmem:[#allocation4 + $0x20] sm:$0xff] %vm5669_vm8, %v5486_v60  ;;  %9845 = vmatprep.mubr.msk.f32.mxu1 %vm6578_vm11, %v6506_v49  ;;  %5900 = vrot.lane.b32.xlu1 %v12192_v45, %s9992_s5 }
 0x49b   :  { %5898 = vrot.lane.b32.xlu0 %v12152_v62, %s9992_s5 }
 0x49c   :  { %v5873_v38 = vpop.permute.xlu1 %5872 }
 0x49d   :  { %v5871_v39 = vpop.permute.xlu0 %5870  ;;  %v6507_v13 = vld [vmem:[#allocation4 + $0x18] sm:$0xff]  ;;  %6060 = vst.msk [vmem:[#allocation4 + $0x28] sm:$0xff] %vm6054_vm9, %v5873_v38 }
 0x49e   :  { %6059 = vst.msk [vmem:[#allocation4 + $0x20] sm:$0xff] %vm6054_vm9, %v5871_v39  ;;  %v9791_v56 = vpop.f32.mrf.mxu0  ;;  %9846 = vmatmul.mubr.msk.f32.gmra.mxu1 %vm6578_vm11, %v6507_v13  ;;  %v13151_v2 = vld [vmem:[#allocation3 + $0x1b0] sm:$0xff]  ;;  %5132 = vrot.lane.b32.xlu1 %v12152_v62, %s9988_s19 }
 0x49f   :  { %6283 = vrot.lane.b32.xlu0 %v12192_v45, %s9993_s10  ;;  %4954 = vst.msk [vmem:[#allocation4 + $0x1b0] sm:$0xff] %vm4767_vm6, %v13151_v2 }
 0x4a0   :  { %v4461_v17 = vpop.f32.mrf.mxu0  ;;  %v5105_v54 = vpop.permute.xlu1 %5104 }
 0x4a1   :  { %v4623_v53 = vmax.f32 %v4461_v17, %v9791_v56  ;;  %v6256_v0 = vpop.permute.xlu0 %6255  ;;  %5291 = vst.msk [vmem:[#allocation4 + $0x30] sm:$0xff] %vm5284_vm7, %v5105_v54 }
 0x4a2   :  { %6444 = vst.msk [vmem:[#allocation4 + $0x20] sm:$0xff] %vm6439_vm10, %v6256_v0  ;;  %5134 = vrot.lane.b32.xlu1 %v12192_v45, %s9988_s19 }
 0x4a3   :  { %v4692_v18 = vadd.f32 %v13033_v47, %v4623_v53  ;;  %6285 = vrot.lane.b32.xlu0 %v12220_v16, %s9993_s10 }
 0x4a4   :  { %v5107_v12 = vpop.permute.xlu1 %5106 }
 0x4a5   :  { %v4756_v61 = vmax.f32 %v4692_v18, 0.0  ;;  %v6258_v55 = vpop.permute.xlu0 %6257  ;;  %5292 = vst.msk [vmem:[#allocation4 + $0x38] sm:$0xff] %vm5284_vm7, %v5107_v12 }
 0x4a6   :  { %6445 = vst.msk [vmem:[#allocation4 + $0x28] sm:$0xff] %vm6439_vm10, %v6258_v55  ;;  %5519 = vrot.lane.b32.xlu1 %v12220_v16, %s9990_s23 }
 0x4a7   :  { %4825 = vst.msk [vmem:[#allocation3 + $0x1b8] sm:$0xff] %vm4767_vm6, %v4756_v61  ;;  %5517 = vrot.lane.b32.xlu0 %v12192_v45, %s9990_s23 }
 0x4a8   :  { %v5492_v31 = vpop.permute.xlu1 %5491 }
 0x4a9   :  { %v5490_v62 = vpop.permute.xlu0 %5489  ;;  %v6508_v42 = vld [vmem:[#allocation4 + $0x20] sm:$0xff]  ;;  %5677 = vst.msk [vmem:[#allocation4 + $0x38] sm:$0xff] %vm5669_vm8, %v5492_v31 }
 0x4aa   :  { %5676 = vst.msk [vmem:[#allocation4 + $0x30] sm:$0xff] %vm5669_vm8, %v5490_v62  ;;  %9848 = vmatprep.mubr.msk.f32.mxu1 %vm6578_vm11, %v6508_v42  ;;  %5904 = vrot.lane.b32.xlu1 %v12260_v33, %s9992_s5 }
 0x4ab   :  { %5902 = vrot.lane.b32.xlu0 %v12220_v16, %s9992_s5 }
 0x4ac   :  { %v5877_v45 = vpop.permute.xlu1 %5876 }
 0x4ad   :  { %v5875_v20 = vpop.permute.xlu0 %5874  ;;  %v6509_v63 = vld [vmem:[#allocation4 + $0x28] sm:$0xff]  ;;  %6062 = vst.msk [vmem:[#allocation4 + $0x38] sm:$0xff] %vm6054_vm9, %v5877_v45 }
 0x4ae   :  { %6061 = vst.msk [vmem:[#allocation4 + $0x30] sm:$0xff] %vm6054_vm9, %v5875_v20  ;;  %v9794_v59 = vpop.f32.mrf.mxu0  ;;  %9849 = vmatmul.mubr.msk.f32.gmra.mxu1 %vm6578_vm11, %v6509_v63  ;;  %v13183_v34 = vld [vmem:[#allocation3 + $0x1b8] sm:$0xff]  ;;  %5136 = vrot.lane.b32.xlu1 %v12220_v16, %s9988_s19 }
 0x4af   :  { %6287 = vrot.lane.b32.xlu0 %v12260_v33, %s9993_s10  ;;  %4955 = vst.msk [vmem:[#allocation4 + $0x1b8] sm:$0xff] %vm4767_vm6, %v13183_v34 }
 0x4b0   :  { %v4471_v15 = vpop.f32.mrf.mxu0  ;;  %v5109_v10 = vpop.permute.xlu1 %5108 }
 0x4b1   :  { %v4624_v27 = vmax.f32 %v4471_v15, %v9794_v59  ;;  %v6260_v26 = vpop.permute.xlu0 %6259  ;;  %5293 = vst.msk [vmem:[#allocation4 + $0x40] sm:$0xff] %vm5284_vm7, %v5109_v10 }
 0x4b2   :  { %6446 = vst.msk [vmem:[#allocation4 + $0x30] sm:$0xff] %vm6439_vm10, %v6260_v26  ;;  %5138 = vrot.lane.b32.xlu1 %v12260_v33, %s9988_s19 }
 0x4b3   :  { %v4693_v36 = vadd.f32 %v13033_v47, %v4624_v27  ;;  %6289 = vrot.lane.b32.xlu0 %v12293_v29, %s9993_s10 }
 0x4b4   :  { %v5111_v8 = vpop.permute.xlu1 %5110 }
 0x4b5   :  { %v4757_v41 = vmax.f32 %v4693_v36, 0.0  ;;  %v6262_v60 = vpop.permute.xlu0 %6261  ;;  %5294 = vst.msk [vmem:[#allocation4 + $0x48] sm:$0xff] %vm5284_vm7, %v5111_v8 }
 0x4b6   :  { %6447 = vst.msk [vmem:[#allocation4 + $0x38] sm:$0xff] %vm6439_vm10, %v6262_v60  ;;  %5523 = vrot.lane.b32.xlu1 %v12293_v29, %s9990_s23 }
 0x4b7   :  { %4826 = vst.msk [vmem:[#allocation3 + $0x1c0] sm:$0xff] %vm4767_vm6, %v4757_v41  ;;  %5521 = vrot.lane.b32.xlu0 %v12260_v33, %s9990_s23 }
 0x4b8   :  { %v5496_v19 = vpop.permute.xlu1 %5495 }
 0x4b9   :  { %v5494_v16 = vpop.permute.xlu0 %5493  ;;  %v6510_v49 = vld [vmem:[#allocation4 + $0x30] sm:$0xff]  ;;  %5679 = vst.msk [vmem:[#allocation4 + $0x48] sm:$0xff] %vm5669_vm8, %v5496_v19 }
 0x4ba   :  { %5678 = vst.msk [vmem:[#allocation4 + $0x40] sm:$0xff] %vm5669_vm8, %v5494_v16  ;;  %9851 = vmatprep.mubr.msk.f32.mxu1 %vm6578_vm11, %v6510_v49  ;;  %5908 = vrot.lane.b32.xlu1 %v12333_v7, %s9992_s5 }
 0x4bb   :  { %5906 = vrot.lane.b32.xlu0 %v12293_v29, %s9992_s5 }
 0x4bc   :  { %v5881_v33 = vpop.permute.xlu1 %5880 }
 0x4bd   :  { %v5879_v39 = vpop.permute.xlu0 %5878  ;;  %v6511_v38 = vld [vmem:[#allocation4 + $0x38] sm:$0xff]  ;;  %6064 = vst.msk [vmem:[#allocation4 + $0x48] sm:$0xff] %vm6054_vm9, %v5881_v33 }
 0x4be   :  { %6063 = vst.msk [vmem:[#allocation4 + $0x40] sm:$0xff] %vm6054_vm9, %v5879_v39  ;;  %v9797_v13 = vpop.f32.mrf.mxu0  ;;  %9852 = vmatmul.mubr.msk.f32.gmra.mxu1 %vm6578_vm11, %v6511_v38  ;;  %v13215_v56 = vld [vmem:[#allocation3 + $0x1c0] sm:$0xff]  ;;  %5140 = vrot.lane.b32.xlu1 %v12293_v29, %s9988_s19 }
 0x4bf   :  { %6291 = vrot.lane.b32.xlu0 %v12333_v7, %s9993_s10  ;;  %4956 = vst.msk [vmem:[#allocation4 + $0x1c0] sm:$0xff] %vm4767_vm6, %v13215_v56 }
 0x4c0   :  { %v4481_v17 = vpop.f32.mrf.mxu0  ;;  %v5113_v54 = vpop.permute.xlu1 %5112 }
 0x4c1   :  { %v4625_v53 = vmax.f32 %v4481_v17, %v9797_v13  ;;  %v6264_v0 = vpop.permute.xlu0 %6263  ;;  %5295 = vst.msk [vmem:[#allocation4 + $0x50] sm:$0xff] %vm5284_vm7, %v5113_v54 }
 0x4c2   :  { %6448 = vst.msk [vmem:[#allocation4 + $0x40] sm:$0xff] %vm6439_vm10, %v6264_v0  ;;  %5142 = vrot.lane.b32.xlu1 %v12333_v7, %s9988_s19 }
 0x4c3   :  { %v4694_v18 = vadd.f32 %v13033_v47, %v4625_v53  ;;  %6293 = vrot.lane.b32.xlu0 %v12366_v9, %s9993_s10 }
 0x4c4   :  { %v5115_v12 = vpop.permute.xlu1 %5114 }
 0x4c5   :  { %v4758_v61 = vmax.f32 %v4694_v18, 0.0  ;;  %v6266_v55 = vpop.permute.xlu0 %6265  ;;  %5296 = vst.msk [vmem:[#allocation4 + $0x58] sm:$0xff] %vm5284_vm7, %v5115_v12 }
 0x4c6   :  { %6449 = vst.msk [vmem:[#allocation4 + $0x48] sm:$0xff] %vm6439_vm10, %v6266_v55  ;;  %5527 = vrot.lane.b32.xlu1 %v12366_v9, %s9990_s23 }
 0x4c7   :  { %4827 = vst.msk [vmem:[#allocation3 + $0x1c8] sm:$0xff] %vm4767_vm6, %v4758_v61  ;;  %5525 = vrot.lane.b32.xlu0 %v12333_v7, %s9990_s23 }
 0x4c8   :  { %v5500_v62 = vpop.permute.xlu1 %5499 }
 0x4c9   :  { %v5498_v29 = vpop.permute.xlu0 %5497  ;;  %v6512_v31 = vld [vmem:[#allocation4 + $0x40] sm:$0xff]  ;;  %5681 = vst.msk [vmem:[#allocation4 + $0x58] sm:$0xff] %vm5669_vm8, %v5500_v62 }
 0x4ca   :  { %5680 = vst.msk [vmem:[#allocation4 + $0x50] sm:$0xff] %vm5669_vm8, %v5498_v29  ;;  %9854 = vmatprep.mubr.msk.f32.mxu1 %vm6578_vm11, %v6512_v31  ;;  %5912 = vrot.lane.b32.xlu1 %v12406_v6, %s9992_s5 }
 0x4cb   :  { %5910 = vrot.lane.b32.xlu0 %v12366_v9, %s9992_s5 }
 0x4cc   :  { %v5885_v7 = vpop.permute.xlu1 %5884 }
 0x4cd   :  { %v5883_v42 = vpop.permute.xlu0 %5882  ;;  %v6513_v20 = vld [vmem:[#allocation4 + $0x48] sm:$0xff]  ;;  %6066 = vst.msk [vmem:[#allocation4 + $0x58] sm:$0xff] %vm6054_vm9, %v5885_v7 }
 0x4ce   :  { %6065 = vst.msk [vmem:[#allocation4 + $0x50] sm:$0xff] %vm6054_vm9, %v5883_v42  ;;  %v9800_v45 = vpop.f32.mrf.mxu0  ;;  %9855 = vmatmul.mubr.msk.f32.gmra.mxu1 %vm6578_vm11, %v6513_v20  ;;  %v13247_v63 = vld [vmem:[#allocation3 + $0x1c8] sm:$0xff]  ;;  %5144 = vrot.lane.b32.xlu1 %v12366_v9, %s9988_s19 }
 0x4cf   :  { %6295 = vrot.lane.b32.xlu0 %v12406_v6, %s9993_s10  ;;  %4957 = vst.msk [vmem:[#allocation4 + $0x1c8] sm:$0xff] %vm4767_vm6, %v13247_v63 }
 0x4d0   :  { %v4491_v59 = vpop.f32.mrf.mxu0  ;;  %v5117_v26 = vpop.permute.xlu1 %5116 }
 0x4d1   :  { %v4626_v15 = vmax.f32 %v4491_v59, %v9800_v45  ;;  %v6268_v27 = vpop.permute.xlu0 %6267  ;;  %5297 = vst.msk [vmem:[#allocation4 + $0x60] sm:$0xff] %vm5284_vm7, %v5117_v26 }
 0x4d2   :  { %6450 = vst.msk [vmem:[#allocation4 + $0x50] sm:$0xff] %vm6439_vm10, %v6268_v27  ;;  %5146 = vrot.lane.b32.xlu1 %v12406_v6, %s9988_s19 }
 0x4d3   :  { %v4695_v10 = vadd.f32 %v13033_v47, %v4626_v15  ;;  %6297 = vrot.lane.b32.xlu0 %v12439_v58, %s9993_s10 }
 0x4d4   :  { %v5119_v41 = vpop.permute.xlu1 %5118 }
 0x4d5   :  { %v4759_v36 = vmax.f32 %v4695_v10, 0.0  ;;  %v6270_v8 = vpop.permute.xlu0 %6269  ;;  %5298 = vst.msk [vmem:[#allocation4 + $0x68] sm:$0xff] %vm5284_vm7, %v5119_v41 }
 0x4d6   :  { %6451 = vst.msk [vmem:[#allocation4 + $0x58] sm:$0xff] %vm6439_vm10, %v6270_v8  ;;  %5531 = vrot.lane.b32.xlu1 %v12439_v58, %s9990_s23 }
 0x4d7   :  { %4828 = vst.msk [vmem:[#allocation3 + $0x1d0] sm:$0xff] %vm4767_vm6, %v4759_v36  ;;  %5529 = vrot.lane.b32.xlu0 %v12406_v6, %s9990_s23 }
 0x4d8   :  { %v5504_v60 = vpop.permute.xlu1 %5503 }
 0x4d9   :  { %v5502_v9 = vpop.permute.xlu0 %5501  ;;  %v6514_v16 = vld [vmem:[#allocation4 + $0x50] sm:$0xff]  ;;  %5683 = vst.msk [vmem:[#allocation4 + $0x68] sm:$0xff] %vm5669_vm8, %v5504_v60 }
 0x4da   :  { %5682 = vst.msk [vmem:[#allocation4 + $0x60] sm:$0xff] %vm5669_vm8, %v5502_v9  ;;  %9857 = vmatprep.mubr.msk.f32.mxu1 %vm6578_vm11, %v6514_v16  ;;  %5916 = vrot.lane.b32.xlu1 %v12465_v40, %s9992_s5 }
 0x4db   :  { %5914 = vrot.lane.b32.xlu0 %v12439_v58, %s9992_s5 }
 0x4dc   :  { %v5889_v6 = vpop.permute.xlu1 %5888 }
 0x4dd   :  { %v5887_v19 = vpop.permute.xlu0 %5886  ;;  %v6515_v49 = vld [vmem:[#allocation4 + $0x58] sm:$0xff]  ;;  %6068 = vst.msk [vmem:[#allocation4 + $0x68] sm:$0xff] %vm6054_vm9, %v5889_v6 }
 0x4de   :  { %6067 = vst.msk [vmem:[#allocation4 + $0x60] sm:$0xff] %vm6054_vm9, %v5887_v19  ;;  %v9803_v39 = vpop.f32.mrf.mxu0  ;;  %9858 = vmatmul.mubr.msk.f32.gmra.mxu1 %vm6578_vm11, %v6515_v49  ;;  %v13287_v33 = vld [vmem:[#allocation3 + $0x1d0] sm:$0xff]  ;;  %5148 = vrot.lane.b32.xlu1 %v12439_v58, %s9988_s19 }
 0x4df   :  { %6299 = vrot.lane.b32.xlu0 %v12465_v40, %s9993_s10  ;;  %4958 = vst.msk [vmem:[#allocation4 + $0x1d0] sm:$0xff] %vm4767_vm6, %v13287_v33 }
 0x4e0   :  { %v4501_v38 = vpop.f32.mrf.mxu0  ;;  %v5121_v53 = vpop.permute.xlu1 %5120 }
 0x4e1   :  { %v4627_v13 = vmax.f32 %v4501_v38, %v9803_v39  ;;  %v6272_v17 = vpop.permute.xlu0 %6271  ;;  %5299 = vst.msk [vmem:[#allocation4 + $0x70] sm:$0xff] %vm5284_vm7, %v5121_v53 }
 0x4e2   :  { %6452 = vst.msk [vmem:[#allocation4 + $0x60] sm:$0xff] %vm6439_vm10, %v6272_v17  ;;  %5150 = vrot.lane.b32.xlu1 %v12465_v40, %s9988_s19 }
 0x4e3   :  { %v4696_v0 = vadd.f32 %v13033_v47, %v4627_v13  ;;  %6301 = vrot.lane.b32.xlu0 %v12499_v44, %s9993_s10 }
 0x4e4   :  { %v5123_v18 = vpop.permute.xlu1 %5122 }
 0x4e5   :  { %v4760_v54 = vmax.f32 %v4696_v0, 0.0  ;;  %v6274_v61 = vpop.permute.xlu0 %6273  ;;  %5300 = vst.msk [vmem:[#allocation4 + $0x78] sm:$0xff] %vm5284_vm7, %v5123_v18 }
 0x4e6   :  { %6453 = vst.msk [vmem:[#allocation4 + $0x68] sm:$0xff] %vm6439_vm10, %v6274_v61  ;;  %5535 = vrot.lane.b32.xlu1 %v12499_v44, %s9990_s23 }
 0x4e7   :  { %4829 = vst.msk [vmem:[#allocation3 + $0x1d8] sm:$0xff] %vm4767_vm6, %v4760_v54  ;;  %5533 = vrot.lane.b32.xlu0 %v12465_v40, %s9990_s23 }
 0x4e8   :  { %v5508_v12 = vpop.permute.xlu1 %5507 }
 0x4e9   :  { %v5506_v58 = vpop.permute.xlu0 %5505  ;;  %v6516_v55 = vld [vmem:[#allocation4 + $0x60] sm:$0xff]  ;;  %5685 = vst.msk [vmem:[#allocation4 + $0x78] sm:$0xff] %vm5669_vm8, %v5508_v12 }
 0x4ea   :  { %5684 = vst.msk [vmem:[#allocation4 + $0x70] sm:$0xff] %vm5669_vm8, %v5506_v58  ;;  %9860 = vmatprep.mubr.msk.f32.mxu1 %vm6578_vm11, %v6516_v55  ;;  %5920 = vrot.lane.b32.xlu1 %v12529_v21, %s9992_s5 }
 0x4eb   :  { %5918 = vrot.lane.b32.xlu0 %v12499_v44, %s9992_s5 }
 0x4ec   :  { %v5893_v62 = vpop.permute.xlu1 %5892 }
 0x4ed   :  { %v5891_v29 = vpop.permute.xlu0 %5890  ;;  %v6517_v40 = vld [vmem:[#allocation4 + $0x68] sm:$0xff]  ;;  %6070 = vst.msk [vmem:[#allocation4 + $0x78] sm:$0xff] %vm6054_vm9, %v5893_v62 }
 0x4ee   :  { %6069 = vst.msk [vmem:[#allocation4 + $0x70] sm:$0xff] %vm6054_vm9, %v5891_v29  ;;  %v9806_v31 = vpop.f32.mrf.mxu0  ;;  %9861 = vmatmul.mubr.msk.f32.gmra.mxu1 %vm6578_vm11, %v6517_v40  ;;  %v13318_v42 = vld [vmem:[#allocation3 + $0x1d8] sm:$0xff]  ;;  %5152 = vrot.lane.b32.xlu1 %v12499_v44, %s9988_s19 }
 0x4ef   :  { %6303 = vrot.lane.b32.xlu0 %v12529_v21, %s9993_s10  ;;  %4959 = vst.msk [vmem:[#allocation4 + $0x1d8] sm:$0xff] %vm4767_vm6, %v13318_v42 }
 0x4f0   :  { %v4511_v7 = vpop.f32.mrf.mxu0  ;;  %v5125_v59 = vpop.permute.xlu1 %5124 }
 0x4f1   :  { %v4628_v20 = vmax.f32 %v4511_v7, %v9806_v31  ;;  %v6276_v45 = vpop.permute.xlu0 %6275  ;;  %5301 = vst.msk [vmem:[#allocation4 + $0x80] sm:$0xff] %vm5284_vm7, %v5125_v59 }
 0x4f2   :  { %6454 = vst.msk [vmem:[#allocation4 + $0x70] sm:$0xff] %vm6439_vm10, %v6276_v45  ;;  %5154 = vrot.lane.b32.xlu1 %v12529_v21, %s9988_s19 }
 0x4f3   :  { %v4697_v15 = vadd.f32 %v13033_v47, %v4628_v20  ;;  %6305 = vrot.lane.b32.xlu0 %v12555_v1, %s9993_s10 }
 0x4f4   :  { %v5127_v10 = vpop.permute.xlu1 %5126 }
 0x4f5   :  { %v4761_v27 = vmax.f32 %v4697_v15, 0.0  ;;  %v6278_v26 = vpop.permute.xlu0 %6277  ;;  %5302 = vst.msk [vmem:[#allocation4 + $0x88] sm:$0xff] %vm5284_vm7, %v5127_v10 }
 0x4f6   :  { %6455 = vst.msk [vmem:[#allocation4 + $0x78] sm:$0xff] %vm6439_vm10, %v6278_v26  ;;  %5539 = vrot.lane.b32.xlu1 %v12555_v1, %s9990_s23 }
 0x4f7   :  { %4830 = vst.msk [vmem:[#allocation3 + $0x1e0] sm:$0xff] %vm4767_vm6, %v4761_v27  ;;  %5537 = vrot.lane.b32.xlu0 %v12529_v21, %s9990_s23 }
 0x4f8   :  { %v5512_v41 = vpop.permute.xlu1 %5511 }
 0x4f9   :  { %v5510_v44 = vpop.permute.xlu0 %5509  ;;  %v6518_v36 = vld [vmem:[#allocation4 + $0x70] sm:$0xff]  ;;  %5687 = vst.msk [vmem:[#allocation4 + $0x88] sm:$0xff] %vm5669_vm8, %v5512_v41 }
 0x4fa   :  { %5686 = vst.msk [vmem:[#allocation4 + $0x80] sm:$0xff] %vm5669_vm8, %v5510_v44  ;;  %9863 = vmatprep.mubr.msk.f32.mxu1 %vm6578_vm11, %v6518_v36  ;;  %5924 = vrot.lane.b32.xlu1 %v12586_v43, %s9992_s5 }
 0x4fb   :  { %5922 = vrot.lane.b32.xlu0 %v12555_v1, %s9992_s5 }
 0x4fc   :  { %v5897_v9 = vpop.permute.xlu1 %5896 }
 0x4fd   :  { %v5895_v8 = vpop.permute.xlu0 %5894  ;;  %v6519_v21 = vld [vmem:[#allocation4 + $0x78] sm:$0xff]  ;;  %6072 = vst.msk [vmem:[#allocation4 + $0x88] sm:$0xff] %vm6054_vm9, %v5897_v9 }
 0x4fe   :  { %6071 = vst.msk [vmem:[#allocation4 + $0x80] sm:$0xff] %vm6054_vm9, %v5895_v8  ;;  %v9809_v60 = vpop.f32.mrf.mxu0  ;;  %9864 = vmatmul.mubr.msk.f32.gmra.mxu1 %vm6578_vm11, %v6519_v21  ;;  %v13350_v16 = vld [vmem:[#allocation3 + $0x1e0] sm:$0xff]  ;;  %5156 = vrot.lane.b32.xlu1 %v12555_v1, %s9988_s19 }
 0x4ff   :  { %6307 = vrot.lane.b32.xlu0 %v12586_v43, %s9993_s10  ;;  %4960 = vst.msk [vmem:[#allocation4 + $0x1e0] sm:$0xff] %vm4767_vm6, %v13350_v16 }
 0x500   :  { %v4521_v19 = vpop.f32.mrf.mxu0  ;;  %v5129_v39 = vpop.permute.xlu1 %5128 }
 0x501   :  { %v4629_v6 = vmax.f32 %v4521_v19, %v9809_v60  ;;  %v6280_v49 = vpop.permute.xlu0 %6279  ;;  %5303 = vst.msk [vmem:[#allocation4 + $0x90] sm:$0xff] %vm5284_vm7, %v5129_v39 }
 0x502   :  { %6456 = vst.msk [vmem:[#allocation4 + $0x80] sm:$0xff] %vm6439_vm10, %v6280_v49  ;;  %5158 = vrot.lane.b32.xlu1 %v12586_v43, %s9988_s19 }
 0x503   :  { %v4698_v38 = vadd.f32 %v13033_v47, %v4629_v6  ;;  %6309 = vrot.lane.b32.xlu0 %v12612_v37, %s9993_s10 }
 0x504   :  { %v5131_v53 = vpop.permute.xlu1 %5130 }
 0x505   :  { %v4762_v13 = vmax.f32 %v4698_v38, 0.0  ;;  %v6282_v17 = vpop.permute.xlu0 %6281  ;;  %5304 = vst.msk [vmem:[#allocation4 + $0x98] sm:$0xff] %vm5284_vm7, %v5131_v53 }
 0x506   :  { %6457 = vst.msk [vmem:[#allocation4 + $0x88] sm:$0xff] %vm6439_vm10, %v6282_v17  ;;  %5543 = vrot.lane.b32.xlu1 %v12612_v37, %s9990_s23 }
 0x507   :  { %4831 = vst.msk [vmem:[#allocation3 + $0x1e8] sm:$0xff] %vm4767_vm6, %v4762_v13  ;;  %5541 = vrot.lane.b32.xlu0 %v12586_v43, %s9990_s23 }
 0x508   :  { %v5516_v54 = vpop.permute.xlu1 %5515 }
 0x509   :  { %v5514_v1 = vpop.permute.xlu0 %5513  ;;  %v6520_v0 = vld [vmem:[#allocation4 + $0x80] sm:$0xff]  ;;  %5689 = vst.msk [vmem:[#allocation4 + $0x98] sm:$0xff] %vm5669_vm8, %v5516_v54 }
 0x50a   :  { %5688 = vst.msk [vmem:[#allocation4 + $0x90] sm:$0xff] %vm5669_vm8, %v5514_v1  ;;  %9866 = vmatprep.mubr.msk.f32.mxu1 %vm6578_vm11, %v6520_v0  ;;  %5928 = vrot.lane.b32.xlu1 %v12637_v22, %s9992_s5 }
 0x50b   :  { %5926 = vrot.lane.b32.xlu0 %v12612_v37, %s9992_s5 }
 0x50c   :  { %v5901_v61 = vpop.permute.xlu1 %5900 }
 0x50d   :  { %v5899_v18 = vpop.permute.xlu0 %5898  ;;  %v6521_v43 = vld [vmem:[#allocation4 + $0x88] sm:$0xff]  ;;  %6074 = vst.msk [vmem:[#allocation4 + $0x98] sm:$0xff] %vm6054_vm9, %v5901_v61 }
 0x50e   :  { %6073 = vst.msk [vmem:[#allocation4 + $0x90] sm:$0xff] %vm6054_vm9, %v5899_v18  ;;  %v9812_v58 = vpop.f32.mrf.mxu0  ;;  %9867 = vmatmul.mubr.msk.f32.gmra.mxu1 %vm6578_vm11, %v6521_v43  ;;  %v13382_v12 = vld [vmem:[#allocation3 + $0x1e8] sm:$0xff]  ;;  %5160 = vrot.lane.b32.xlu1 %v12612_v37, %s9988_s19 }
 0x50f   :  { %6311 = vrot.lane.b32.xlu0 %v12637_v22, %s9993_s10  ;;  %4961 = vst.msk [vmem:[#allocation4 + $0x1e8] sm:$0xff] %vm4767_vm6, %v13382_v12 }
 0x510   :  { %v4531_v55 = vpop.f32.mrf.mxu0  ;;  %v5133_v62 = vpop.permute.xlu1 %5132 }
 0x511   :  { %v4630_v29 = vmax.f32 %v4531_v55, %v9812_v58  ;;  %v6284_v40 = vpop.permute.xlu0 %6283  ;;  %5305 = vst.msk [vmem:[#allocation4 + $0xa0] sm:$0xff] %vm5284_vm7, %v5133_v62 }
 0x512   :  { %6458 = vst.msk [vmem:[#allocation4 + $0x90] sm:$0xff] %vm6439_vm10, %v6284_v40  ;;  %5162 = vrot.lane.b32.xlu1 %v12637_v22, %s9988_s19 }
 0x513   :  { %v4699_v31 = vadd.f32 %v13033_v47, %v4630_v29  ;;  %6313 = vrot.lane.b32.xlu0 %v12662_v25, %s9993_s10 }
 0x514   :  { %v5135_v45 = vpop.permute.xlu1 %5134 }
 0x515   :  { %v4763_v7 = vmax.f32 %v4699_v31, 0.0  ;;  %v6286_v20 = vpop.permute.xlu0 %6285  ;;  %5306 = vst.msk [vmem:[#allocation4 + $0xa8] sm:$0xff] %vm5284_vm7, %v5135_v45 }
 0x516   :  { %6459 = vst.msk [vmem:[#allocation4 + $0x98] sm:$0xff] %vm6439_vm10, %v6286_v20  ;;  %5547 = vrot.lane.b32.xlu1 %v12662_v25, %s9990_s23 }
 0x517   :  { %4832 = vst.msk [vmem:[#allocation3 + $0x1f0] sm:$0xff] %vm4767_vm6, %v4763_v7  ;;  %5545 = vrot.lane.b32.xlu0 %v12637_v22, %s9990_s23 }
 0x518   :  { %v5520_v15 = vpop.permute.xlu1 %5519 }
 0x519   :  { %v5518_v37 = vpop.permute.xlu0 %5517  ;;  %v6522_v59 = vld [vmem:[#allocation4 + $0x90] sm:$0xff]  ;;  %5691 = vst.msk [vmem:[#allocation4 + $0xa8] sm:$0xff] %vm5669_vm8, %v5520_v15 }
 0x51a   :  { %5690 = vst.msk [vmem:[#allocation4 + $0xa0] sm:$0xff] %vm5669_vm8, %v5518_v37  ;;  %9869 = vmatprep.mubr.msk.f32.mxu1 %vm6578_vm11, %v6522_v59  ;;  %5932 = vrot.lane.b32.xlu1 %v12688_v32, %s9992_s5 }
 0x51b   :  { %5930 = vrot.lane.b32.xlu0 %v12662_v25, %s9992_s5 }
 0x51c   :  { %v5905_v26 = vpop.permute.xlu1 %5904 }
 0x51d   :  { %v5903_v27 = vpop.permute.xlu0 %5902  ;;  %v6523_v22 = vld [vmem:[#allocation4 + $0x98] sm:$0xff]  ;;  %6076 = vst.msk [vmem:[#allocation4 + $0xa8] sm:$0xff] %vm6054_vm9, %v5905_v26 }
 0x51e   :  { %6075 = vst.msk [vmem:[#allocation4 + $0xa0] sm:$0xff] %vm6054_vm9, %v5903_v27  ;;  %v9815_v10 = vpop.f32.mrf.mxu0  ;;  %9870 = vmatmul.mubr.msk.f32.gmra.mxu1 %vm6578_vm11, %v6523_v22  ;;  %v13414_v44 = vld [vmem:[#allocation3 + $0x1f0] sm:$0xff]  ;;  %5164 = vrot.lane.b32.xlu1 %v12662_v25, %s9988_s19 }
 0x51f   :  { %6315 = vrot.lane.b32.xlu0 %v12688_v32, %s9993_s10  ;;  %4962 = vst.msk [vmem:[#allocation4 + $0x1f0] sm:$0xff] %vm4767_vm6, %v13414_v44 }
 0x520   :  { %v4541_v36 = vpop.f32.mrf.mxu0  ;;  %v5137_v21 = vpop.permute.xlu1 %5136 }
 0x521   :  { %v4631_v41 = vmax.f32 %v4541_v36, %v9815_v10  ;;  %v6288_v8 = vpop.permute.xlu0 %6287  ;;  %5307 = vst.msk [vmem:[#allocation4 + $0xb0] sm:$0xff] %vm5284_vm7, %v5137_v21 }
 0x522   :  { %6460 = vst.msk [vmem:[#allocation4 + $0xa0] sm:$0xff] %vm6439_vm10, %v6288_v8  ;;  %5166 = vrot.lane.b32.xlu1 %v12688_v32, %s9988_s19 }
 0x523   :  { %v4700_v9 = vadd.f32 %v13033_v47, %v4631_v41  ;;  %6317 = vrot.lane.b32.xlu0 %v12714_v4, %s9993_s10 }
 0x524   :  { %v5139_v6 = vpop.permute.xlu1 %5138 }
 0x525   :  { %v4764_v60 = vmax.f32 %v4700_v9, 0.0  ;;  %v6290_v19 = vpop.permute.xlu0 %6289  ;;  %5308 = vst.msk [vmem:[#allocation4 + $0xb8] sm:$0xff] %vm5284_vm7, %v5139_v6  ;;  %v13514_v9 = vld [vmem:[%s14922_s2 + $0x1] ss:$0 sm:$0xff] }
 0x526   :  { %6461 = vst.msk [vmem:[#allocation4 + $0xa8] sm:$0xff] %vm6439_vm10, %v6290_v19  ;;  %5551 = vrot.lane.b32.xlu1 %v12714_v4, %s9990_s23 }
 0x527   :  { %4833 = vst.msk [vmem:[#allocation3 + $0x1f8] sm:$0xff] %vm4767_vm6, %v4764_v60  ;;  %5549 = vrot.lane.b32.xlu0 %v12688_v32, %s9990_s23 }
 0x528   :  { %v5524_v39 = vpop.permute.xlu1 %5523 }
 0x529   :  { %v5522_v25 = vpop.permute.xlu0 %5521  ;;  %v6524_v49 = vld [vmem:[#allocation4 + $0xa0] sm:$0xff]  ;;  %5693 = vst.msk [vmem:[#allocation4 + $0xb8] sm:$0xff] %vm5669_vm8, %v5524_v39 }
 0x52a   :  { %5692 = vst.msk [vmem:[#allocation4 + $0xb0] sm:$0xff] %vm5669_vm8, %v5522_v25  ;;  %9872 = vmatprep.mubr.msk.f32.mxu1 %vm6578_vm11, %v6524_v49  ;;  %5936 = vrot.lane.b32.xlu1 %v12741_v24, %s9992_s5 }
 0x52b   :  { %5934 = vrot.lane.b32.xlu0 %v12714_v4, %s9992_s5 }
 0x52c   :  { %v5909_v13 = vpop.permute.xlu1 %5908 }
 0x52d   :  { %v5907_v38 = vpop.permute.xlu0 %5906  ;;  %v6525_v32 = vld [vmem:[#allocation4 + $0xa8] sm:$0xff]  ;;  %6078 = vst.msk [vmem:[#allocation4 + $0xb8] sm:$0xff] %vm6054_vm9, %v5909_v13 }
 0x52e   :  { %6077 = vst.msk [vmem:[#allocation4 + $0xb0] sm:$0xff] %vm6054_vm9, %v5907_v38  ;;  %v9818_v17 = vpop.f32.mrf.mxu0  ;;  %9873 = vmatmul.mubr.msk.f32.gmra.mxu1 %vm6578_vm11, %v6525_v32  ;;  %v13446_v53 = vld [vmem:[#allocation3 + $0x1f8] sm:$0xff]  ;;  %5168 = vrot.lane.b32.xlu1 %v12714_v4, %s9988_s19 }
 0x52f   :  { %6319 = vrot.lane.b32.xlu0 %v12741_v24, %s9993_s10  ;;  %4963 = vst.msk [vmem:[#allocation4 + $0x1f8] sm:$0xff] %vm4767_vm6, %v13446_v53 }
 0x530   :  { %v4551_v1 = vpop.f32.mrf.mxu0  ;;  %v5141_v18 = vpop.permute.xlu1 %5140 }
 0x531   :  { %v4632_v0 = vmax.f32 %v4551_v1, %v9818_v17  ;;  %v6292_v54 = vpop.permute.xlu0 %6291  ;;  %5309 = vst.msk [vmem:[#allocation4 + $0xc0] sm:$0xff] %vm5284_vm7, %v5141_v18 }
 0x532   :  { %6462 = vst.msk [vmem:[#allocation4 + $0xb0] sm:$0xff] %vm6439_vm10, %v6292_v54  ;;  %5170 = vrot.lane.b32.xlu1 %v12741_v24, %s9988_s19 }
 0x533   :  { %v4701_v43 = vadd.f32 %v13033_v47, %v4632_v0  ;;  %6321 = vrot.lane.b32.xlu0 %v12768_v28, %s9993_s10 }
 0x534   :  { %v5143_v55 = vpop.permute.xlu1 %5142 }
 0x535   :  { %v4765_v61 = vmax.f32 %v4701_v43, 0.0  ;;  %v6294_v58 = vpop.permute.xlu0 %6293  ;;  %5310 = vst.msk [vmem:[#allocation4 + $0xc8] sm:$0xff] %vm5284_vm7, %v5143_v55 }
 0x536   :  { %6463 = vst.msk [vmem:[#allocation4 + $0xb8] sm:$0xff] %vm6439_vm10, %v6294_v58  ;;  %5555 = vrot.lane.b32.xlu1 %v12768_v28, %s9990_s23 }
 0x537   :  { %4834 = vst.msk [vmem:[#allocation3 + $0x200] sm:$0xff] %vm4767_vm6, %v4765_v61  ;;  %5553 = vrot.lane.b32.xlu0 %v12741_v24, %s9990_s23 }
 0x538   :  { %v5528_v40 = vpop.permute.xlu1 %5527 }
 0x539   :  { %v5526_v4 = vpop.permute.xlu0 %5525  ;;  %v6526_v29 = vld [vmem:[#allocation4 + $0xb0] sm:$0xff]  ;;  %5695 = vst.msk [vmem:[#allocation4 + $0xc8] sm:$0xff] %vm5669_vm8, %v5528_v40 }
 0x53a   :  { %5694 = vst.msk [vmem:[#allocation4 + $0xc0] sm:$0xff] %vm5669_vm8, %v5526_v4  ;;  %9875 = vmatprep.mubr.msk.f32.mxu1 %vm6578_vm11, %v6526_v29  ;;  %5940 = vrot.lane.b32.xlu1 %v12808_v35, %s9992_s5 }
 0x53b   :  { %5938 = vrot.lane.b32.xlu0 %v12768_v28, %s9992_s5  ;;  %v9821_v62 = vpop.f32.mrf.mxu0 }
 0x53c   :  { %v5913_v20 = vpop.permute.xlu1 %5912 }
 0x53d   :  { %v5911_v24 = vpop.permute.xlu0 %5910  ;;  %v4561_v31 = vpop.f32.mrf.mxu0  ;;  %v6527_v7 = vld [vmem:[#allocation4 + $0xb8] sm:$0xff]  ;;  %6080 = vst.msk [vmem:[#allocation4 + $0xc8] sm:$0xff] %vm6054_vm9, %v5913_v20 }
 0x53e   :  { %6079 = vst.msk [vmem:[#allocation4 + $0xc0] sm:$0xff] %vm6054_vm9, %v5911_v24  ;;  %v4633_v45 = vmax.f32 %v4561_v31, %v9821_v62  ;;  %9876 = vmatmul.mubr.msk.f32.gmra.mxu1 %vm6578_vm11, %v6527_v7  ;;  %5172 = vrot.lane.b32.xlu1 %v12768_v28, %s9988_s19 }
 0x53f   :  { %6323 = vrot.lane.b32.xlu0 %v12808_v35, %s9993_s10 }
 0x540   :  { %v4702_v37 = vadd.f32 %v13033_v47, %v4633_v45  ;;  %v5145_v27 = vpop.permute.xlu1 %5144 }
 0x541   :  { %v6296_v59 = vpop.permute.xlu0 %6295  ;;  %5311 = vst.msk [vmem:[#allocation4 + $0xd0] sm:$0xff] %vm5284_vm7, %v5145_v27 }
 0x542   :  { %v4766_v15 = vmax.f32 %v4702_v37, 0.0  ;;  %6464 = vst.msk [vmem:[#allocation4 + $0xc0] sm:$0xff] %vm6439_vm10, %v6296_v59  ;;  %5174 = vrot.lane.b32.xlu1 %v12808_v35, %s9988_s19 }
 0x543   :  { %6325 = vrot.lane.b32.xlu0 %v12846_v57, %s9993_s10 }
 0x544   :  { %4835 = vst.msk [vmem:[#allocation3 + $0x208] sm:$0xff] %vm4767_vm6, %v4766_v15  ;;  %v5147_v47 = vpop.permute.xlu1 %5146 }
 0x545   :  { %v6298_v22 = vpop.permute.xlu0 %6297  ;;  %5312 = vst.msk [vmem:[#allocation4 + $0xd8] sm:$0xff] %vm5284_vm7, %v5147_v47 }
 0x546   :  { %6465 = vst.msk [vmem:[#allocation4 + $0xc8] sm:$0xff] %vm6439_vm10, %v6298_v22  ;;  %5559 = vrot.lane.b32.xlu1 %v12846_v57, %s9990_s23 }
 0x547   :  { %5557 = vrot.lane.b32.xlu0 %v12808_v35, %s9990_s23 }
 0x548   :  { %v5532_v10 = vpop.permute.xlu1 %5531 }
 0x549   :  { %v5530_v28 = vpop.permute.xlu0 %5529  ;;  %v6528_v26 = vld [vmem:[#allocation4 + $0xc0] sm:$0xff]  ;;  %5697 = vst.msk [vmem:[#allocation4 + $0xd8] sm:$0xff] %vm5669_vm8, %v5532_v10 }
 0x54a   :  { %5696 = vst.msk [vmem:[#allocation4 + $0xd0] sm:$0xff] %vm5669_vm8, %v5530_v28  ;;  %9878 = vmatprep.mubr.msk.f32.mxu1 %vm6578_vm11, %v6528_v26  ;;  %5944 = vrot.lane.b32.xlu1 %v12875_v14, %s9992_s5 }
 0x54b   :  { %5942 = vrot.lane.b32.xlu0 %v12846_v57, %s9992_s5 }
 0x54c   :  { %v5917_v41 = vpop.permute.xlu1 %5916 }
 0x54d   :  { %v5915_v36 = vpop.permute.xlu0 %5914  ;;  %v6529_v35 = vld [vmem:[#allocation4 + $0xc8] sm:$0xff]  ;;  %6082 = vst.msk [vmem:[#allocation4 + $0xd8] sm:$0xff] %vm6054_vm9, %v5917_v41 }
 0x54e   :  { %6081 = vst.msk [vmem:[#allocation4 + $0xd0] sm:$0xff] %vm6054_vm9, %v5915_v36  ;;  %v9844_v8 = vpop.f32.mrf.mxu1  ;;  %9879 = vmatmul.mubr.msk.f32.gmra.mxu1 %vm6578_vm11, %v6529_v35  ;;  %5176 = vrot.lane.b32.xlu1 %v12846_v57, %s9988_s19 }
 0x54f   :  { %6327 = vrot.lane.b32.xlu0 %v12875_v14, %s9993_s10 }
 0x550   :  { %v6837_v21 = vpop.f32.mrf.mxu1  ;;  %v5149_v6 = vpop.permute.xlu1 %5148 }
 0x551   :  { %v7156_v60 = vmax.f32 %v6837_v21, %v9844_v8  ;;  %v6300_v19 = vpop.permute.xlu0 %6299  ;;  %5313 = vst.msk [vmem:[#allocation4 + $0xe0] sm:$0xff] %vm5284_vm7, %v5149_v6 }
 0x552   :  { %6466 = vst.msk [vmem:[#allocation4 + $0xd0] sm:$0xff] %vm6439_vm10, %v6300_v19  ;;  %5178 = vrot.lane.b32.xlu1 %v12875_v14, %s9988_s19 }
 0x553   :  { %v7193_v25 = vadd.f32 %v13514_v9, %v7156_v60  ;;  %6329 = vrot.lane.b32.xlu0 %v12900_v48, %s9993_s10 }
 0x554   :  { %v5151_v39 = vpop.permute.xlu1 %5150 }
 0x555   :  { %v7225_v57 = vmax.f32 %v7193_v25, 0.0  ;;  %v6302_v49 = vpop.permute.xlu0 %6301  ;;  %5314 = vst.msk [vmem:[#allocation4 + $0xe8] sm:$0xff] %vm5284_vm7, %v5151_v39 }
 0x556   :  { %6467 = vst.msk [vmem:[#allocation4 + $0xd8] sm:$0xff] %vm6439_vm10, %v6302_v49  ;;  %5563 = vrot.lane.b32.xlu1 %v12900_v48, %s9990_s23  ;;  %v13619_v49 = vld [vmem:[#allocation5 + $0x8] sm:$0xff] }
 0x557   :  { %7262 = vst.msk [vmem:[#allocation5 + $0x10] sm:$0xff] %vm7257_vm12, %v7225_v57  ;;  %5561 = vrot.lane.b32.xlu0 %v12875_v14, %s9990_s23  ;;  %7327 = vst.msk [vmem:[#allocation6 + $0x10] sm:$0xff] %vm7257_vm12, %v13619_v49 }
 0x558   :  { %v5536_v13 = vpop.permute.xlu1 %5535 }
 0x559   :  { %v5534_v38 = vpop.permute.xlu0 %5533  ;;  %v6530_v32 = vld [vmem:[#allocation4 + $0xd0] sm:$0xff]  ;;  %5699 = vst.msk [vmem:[#allocation4 + $0xe8] sm:$0xff] %vm5669_vm8, %v5536_v13 }
 0x55a   :  { %5698 = vst.msk [vmem:[#allocation4 + $0xe0] sm:$0xff] %vm5669_vm8, %v5534_v38  ;;  %9881 = vmatprep.mubr.msk.f32.mxu1 %vm6578_vm11, %v6530_v32  ;;  %5948 = vrot.lane.b32.xlu1 %v12926_v51, %s9992_s5 }
 0x55b   :  { %5946 = vrot.lane.b32.xlu0 %v12900_v48, %s9992_s5 }
 0x55c   :  { %v5921_v1 = vpop.permute.xlu1 %5920 }
 0x55d   :  { %v5919_v17 = vpop.permute.xlu0 %5918  ;;  %v6531_v14 = vld [vmem:[#allocation4 + $0xd8] sm:$0xff]  ;;  %6084 = vst.msk [vmem:[#allocation4 + $0xe8] sm:$0xff] %vm6054_vm9, %v5921_v1 }
 0x55e   :  { %6083 = vst.msk [vmem:[#allocation4 + $0xe0] sm:$0xff] %vm6054_vm9, %v5919_v17  ;;  %v9847_v0 = vpop.f32.mrf.mxu1  ;;  %9882 = vmatmul.mubr.msk.f32.gmra.mxu1 %vm6578_vm11, %v6531_v14  ;;  %v13539_v54 = vld [vmem:[#allocation5 + $0x10] sm:$0xff]  ;;  %5180 = vrot.lane.b32.xlu1 %v12900_v48, %s9988_s19 }
 0x55f   :  { %6331 = vrot.lane.b32.xlu0 %v12926_v51, %s9993_s10  ;;  %7328 = vst.msk [vmem:[#allocation6 + $0x20] sm:$0xff] %vm7257_vm12, %v13539_v54 }
 0x560   :  { %v6847_v18 = vpop.f32.mrf.mxu1  ;;  %v5153_v58 = vpop.permute.xlu1 %5152 }
 0x561   :  { %v7157_v43 = vmax.f32 %v6847_v18, %v9847_v0  ;;  %v6304_v61 = vpop.permute.xlu0 %6303  ;;  %5315 = vst.msk [vmem:[#allocation4 + $0xf0] sm:$0xff] %vm5284_vm7, %v5153_v58 }
 0x562   :  { %6468 = vst.msk [vmem:[#allocation4 + $0xe0] sm:$0xff] %vm6439_vm10, %v6304_v61  ;;  %5182 = vrot.lane.b32.xlu1 %v12926_v51, %s9988_s19 }
 0x563   :  { %v7194_v55 = vadd.f32 %v13514_v9, %v7157_v43  ;;  %6333 = vrot.lane.b32.xlu0 %v12952_v30, %s9993_s10 }
 0x564   :  { %v5155_v40 = vpop.permute.xlu1 %5154 }
 0x565   :  { %v7226_v4 = vmax.f32 %v7194_v55, 0.0  ;;  %v6306_v29 = vpop.permute.xlu0 %6305  ;;  %5316 = vst.msk [vmem:[#allocation4 + $0xf8] sm:$0xff] %vm5284_vm7, %v5155_v40 }
 0x566   :  { %6469 = vst.msk [vmem:[#allocation4 + $0xe8] sm:$0xff] %vm6439_vm10, %v6306_v29  ;;  %5567 = vrot.lane.b32.xlu1 %v12952_v30, %s9990_s23 }
 0x567   :  { %7263 = vst.msk [vmem:[#allocation5 + $0x18] sm:$0xff] %vm7257_vm12, %v7226_v4  ;;  %5565 = vrot.lane.b32.xlu0 %v12926_v51, %s9990_s23 }
 0x568   :  { %v5540_v24 = vpop.permute.xlu1 %5539 }
 0x569   :  { %v5538_v48 = vpop.permute.xlu0 %5537  ;;  %v6532_v62 = vld [vmem:[#allocation4 + $0xe0] sm:$0xff]  ;;  %5701 = vst.msk [vmem:[#allocation4 + $0xf8] sm:$0xff] %vm5669_vm8, %v5540_v24 }
 0x56a   :  { %5700 = vst.msk [vmem:[#allocation4 + $0xf0] sm:$0xff] %vm5669_vm8, %v5538_v48  ;;  %9884 = vmatprep.mubr.msk.f32.mxu1 %vm6578_vm11, %v6532_v62  ;;  %5952 = vrot.lane.b32.xlu1 %v12977_v50, %s9992_s5 }
 0x56b   :  { %5950 = vrot.lane.b32.xlu0 %v12952_v30, %s9992_s5 }
 0x56c   :  { %v5925_v7 = vpop.permute.xlu1 %5924 }
 0x56d   :  { %v5923_v31 = vpop.permute.xlu0 %5922  ;;  %v6533_v51 = vld [vmem:[#allocation4 + $0xe8] sm:$0xff]  ;;  %6086 = vst.msk [vmem:[#allocation4 + $0xf8] sm:$0xff] %vm6054_vm9, %v5925_v7 }
 0x56e   :  { %6085 = vst.msk [vmem:[#allocation4 + $0xf0] sm:$0xff] %vm6054_vm9, %v5923_v31  ;;  %v9850_v20 = vpop.f32.mrf.mxu1  ;;  %9885 = vmatmul.mubr.msk.f32.gmra.mxu1 %vm6578_vm11, %v6533_v51  ;;  %v13571_v45 = vld [vmem:[#allocation5 + $0x18] sm:$0xff]  ;;  %5184 = vrot.lane.b32.xlu1 %v12952_v30, %s9988_s19 }
 0x56f   :  { %6335 = vrot.lane.b32.xlu0 %v12977_v50, %s9993_s10  ;;  %7329 = vst.msk [vmem:[#allocation6 + $0x30] sm:$0xff] %vm7257_vm12, %v13571_v45 }
 0x570   :  { %v6857_v37 = vpop.f32.mrf.mxu1  ;;  %v5157_v27 = vpop.permute.xlu1 %5156 }
 0x571   :  { %v7158_v59 = vmax.f32 %v6857_v37, %v9850_v20  ;;  %v6308_v15 = vpop.permute.xlu0 %6307  ;;  %5317 = vst.msk [vmem:[#allocation4 + $0x100] sm:$0xff] %vm5284_vm7, %v5157_v27 }
 0x572   :  { %6470 = vst.msk [vmem:[#allocation4 + $0xf0] sm:$0xff] %vm6439_vm10, %v6308_v15  ;;  %5186 = vrot.lane.b32.xlu1 %v12977_v50, %s9988_s19 }
 0x573   :  { %v7195_v22 = vadd.f32 %v13514_v9, %v7158_v59  ;;  %6337 = vrot.lane.b32.xlu0 %v13002_v3, %s9993_s10 }
 0x574   :  { %v5159_v26 = vpop.permute.xlu1 %5158 }
 0x575   :  { %v7227_v47 = vmax.f32 %v7195_v22, 0.0  ;;  %v6310_v28 = vpop.permute.xlu0 %6309  ;;  %5318 = vst.msk [vmem:[#allocation4 + $0x108] sm:$0xff] %vm5284_vm7, %v5159_v26 }
 0x576   :  { %6471 = vst.msk [vmem:[#allocation4 + $0xf8] sm:$0xff] %vm6439_vm10, %v6310_v28  ;;  %5571 = vrot.lane.b32.xlu1 %v13002_v3, %s9990_s23 }
 0x577   :  { %7264 = vst.msk [vmem:[#allocation5 + $0x20] sm:$0xff] %vm7257_vm12, %v7227_v47  ;;  %5569 = vrot.lane.b32.xlu0 %v12977_v50, %s9990_s23 }
 0x578   :  { %v5544_v36 = vpop.permute.xlu1 %5543 }
 0x579   :  { %v5542_v30 = vpop.permute.xlu0 %5541  ;;  %v6534_v10 = vld [vmem:[#allocation4 + $0xf0] sm:$0xff]  ;;  %5703 = vst.msk [vmem:[#allocation4 + $0x108] sm:$0xff] %vm5669_vm8, %v5544_v36 }
 0x57a   :  { %5702 = vst.msk [vmem:[#allocation4 + $0x100] sm:$0xff] %vm5669_vm8, %v5542_v30  ;;  %9887 = vmatprep.mubr.msk.f32.mxu1 %vm6578_vm11, %v6534_v10  ;;  %5956 = vrot.lane.b32.xlu1 %v13028_v52, %s9992_s5 }
 0x57b   :  { %5954 = vrot.lane.b32.xlu0 %v13002_v3, %s9992_s5 }
 0x57c   :  { %v5929_v41 = vpop.permute.xlu1 %5928 }
 0x57d   :  { %v5927_v35 = vpop.permute.xlu0 %5926  ;;  %v6535_v50 = vld [vmem:[#allocation4 + $0xf8] sm:$0xff]  ;;  %6088 = vst.msk [vmem:[#allocation4 + $0x108] sm:$0xff] %vm6054_vm9, %v5929_v41 }
 0x57e   :  { %6087 = vst.msk [vmem:[#allocation4 + $0x100] sm:$0xff] %vm6054_vm9, %v5927_v35  ;;  %v9853_v8 = vpop.f32.mrf.mxu1  ;;  %9888 = vmatmul.mubr.msk.f32.gmra.mxu1 %vm6578_vm11, %v6535_v50  ;;  %v13603_v21 = vld [vmem:[#allocation5 + $0x20] sm:$0xff]  ;;  %5188 = vrot.lane.b32.xlu1 %v13002_v3, %s9988_s19 }
 0x57f   :  { %6339 = vrot.lane.b32.xlu0 %v13028_v52, %s9993_s10  ;;  %7969 = vst.msk [vmem:[#allocation6 + $0x8] sm:$0xff] %vm7257_vm12, %v13603_v21  ;;  %7330 = vst.msk [vmem:[#allocation6 + $0x40] sm:$0xff] %vm7257_vm12, %v13603_v21 }
 0x580   :  { %v6867_v60 = vpop.f32.mrf.mxu1  ;;  %v5161_v25 = vpop.permute.xlu1 %5160 }
 0x581   :  { %v7159_v19 = vmax.f32 %v6867_v60, %v9853_v8  ;;  %v6312_v6 = vpop.permute.xlu0 %6311  ;;  %5319 = vst.msk [vmem:[#allocation4 + $0x110] sm:$0xff] %vm5284_vm7, %v5161_v25 }
 0x582   :  { %6472 = vst.msk [vmem:[#allocation4 + $0x100] sm:$0xff] %vm6439_vm10, %v6312_v6  ;;  %5190 = vrot.lane.b32.xlu1 %v13028_v52, %s9988_s19 }
 0x583   :  { %v7196_v57 = vadd.f32 %v13514_v9, %v7159_v19  ;;  %6341 = vrot.lane.b32.xlu0 %v13059_v23, %s9993_s10 }
 0x584   :  { %v5163_v38 = vpop.permute.xlu1 %5162 }
 0x585   :  { %v7228_v3 = vmax.f32 %v7196_v57, 0.0  ;;  %v6314_v39 = vpop.permute.xlu0 %6313  ;;  %5320 = vst.msk [vmem:[#allocation4 + $0x118] sm:$0xff] %vm5284_vm7, %v5163_v38 }
 0x586   :  { %6473 = vst.msk [vmem:[#allocation4 + $0x108] sm:$0xff] %vm6439_vm10, %v6314_v39  ;;  %5575 = vrot.lane.b32.xlu1 %v13059_v23, %s9990_s23 }
 0x587   :  { %7265 = vst.msk [vmem:[#allocation5 + $0x28] sm:$0xff] %vm7257_vm12, %v7228_v3  ;;  %5573 = vrot.lane.b32.xlu0 %v13028_v52, %s9990_s23 }
 0x588   :  { %v5548_v17 = vpop.permute.xlu1 %5547 }
 0x589   :  { %v5546_v32 = vpop.permute.xlu0 %5545  ;;  %v6536_v13 = vld [vmem:[#allocation4 + $0x100] sm:$0xff]  ;;  %5705 = vst.msk [vmem:[#allocation4 + $0x118] sm:$0xff] %vm5669_vm8, %v5548_v17 }
 0x58a   :  { %5704 = vst.msk [vmem:[#allocation4 + $0x110] sm:$0xff] %vm5669_vm8, %v5546_v32  ;;  %9890 = vmatprep.mubr.msk.f32.mxu1 %vm6578_vm11, %v6536_v13  ;;  %5960 = vrot.lane.b32.xlu1 %v13087_v46, %s9992_s5 }
 0x58b   :  { %5958 = vrot.lane.b32.xlu0 %v13059_v23, %s9992_s5 }
 0x58c   :  { %v5933_v1 = vpop.permute.xlu1 %5932 }
 0x58d   :  { %v5931_v14 = vpop.permute.xlu0 %5930  ;;  %v6537_v52 = vld [vmem:[#allocation4 + $0x108] sm:$0xff]  ;;  %6090 = vst.msk [vmem:[#allocation4 + $0x118] sm:$0xff] %vm6054_vm9, %v5933_v1 }
 0x58e   :  { %6089 = vst.msk [vmem:[#allocation4 + $0x110] sm:$0xff] %vm6054_vm9, %v5931_v14  ;;  %v9856_v0 = vpop.f32.mrf.mxu1  ;;  %9891 = vmatmul.mubr.msk.f32.gmra.mxu1 %vm6578_vm11, %v6537_v52  ;;  %v13641_v18 = vld [vmem:[#allocation5 + $0x28] sm:$0xff]  ;;  %5192 = vrot.lane.b32.xlu1 %v13059_v23, %s9988_s19 }
 0x58f   :  { %6343 = vrot.lane.b32.xlu0 %v13087_v46, %s9993_s10  ;;  %7970 = vst.msk [vmem:[#allocation6 + $0x18] sm:$0xff] %vm7257_vm12, %v13641_v18  ;;  %7331 = vst.msk [vmem:[#allocation6 + $0x50] sm:$0xff] %vm7257_vm12, %v13641_v18 }
 0x590   :  { %v6877_v43 = vpop.f32.mrf.mxu1  ;;  %v5165_v55 = vpop.permute.xlu1 %5164 }
 0x591   :  { %v7160_v61 = vmax.f32 %v6877_v43, %v9856_v0  ;;  %v6316_v58 = vpop.permute.xlu0 %6315  ;;  %5321 = vst.msk [vmem:[#allocation4 + $0x120] sm:$0xff] %vm5284_vm7, %v5165_v55 }
 0x592   :  { %6474 = vst.msk [vmem:[#allocation4 + $0x110] sm:$0xff] %vm6439_vm10, %v6316_v58  ;;  %5194 = vrot.lane.b32.xlu1 %v13087_v46, %s9988_s19 }
 0x593   :  { %v7197_v4 = vadd.f32 %v13514_v9, %v7160_v61  ;;  %6345 = vrot.lane.b32.xlu0 %v13119_v11, %s9993_s10 }
 0x594   :  { %v5167_v48 = vpop.permute.xlu1 %5166 }
 0x595   :  { %v7229_v29 = vmax.f32 %v7197_v4, 0.0  ;;  %v6318_v40 = vpop.permute.xlu0 %6317  ;;  %5322 = vst.msk [vmem:[#allocation4 + $0x128] sm:$0xff] %vm5284_vm7, %v5167_v48 }
 0x596   :  { %6475 = vst.msk [vmem:[#allocation4 + $0x118] sm:$0xff] %vm6439_vm10, %v6318_v40  ;;  %5579 = vrot.lane.b32.xlu1 %v13119_v11, %s9990_s23 }
 0x597   :  { %7266 = vst.msk [vmem:[#allocation5 + $0x30] sm:$0xff] %vm7257_vm12, %v7229_v29  ;;  %5577 = vrot.lane.b32.xlu0 %v13087_v46, %s9990_s23 }
 0x598   :  { %v5552_v24 = vpop.permute.xlu1 %5551 }
 0x599   :  { %v5550_v23 = vpop.permute.xlu0 %5549  ;;  %v6538_v62 = vld [vmem:[#allocation4 + $0x110] sm:$0xff]  ;;  %5707 = vst.msk [vmem:[#allocation4 + $0x128] sm:$0xff] %vm5669_vm8, %v5552_v24 }
 0x59a   :  { %5706 = vst.msk [vmem:[#allocation4 + $0x120] sm:$0xff] %vm5669_vm8, %v5550_v23  ;;  %9893 = vmatprep.mubr.msk.f32.mxu1 %vm6578_vm11, %v6538_v62  ;;  %5964 = vrot.lane.b32.xlu1 %v13151_v2, %s9992_s5 }
 0x59b   :  { %5962 = vrot.lane.b32.xlu0 %v13119_v11, %s9992_s5 }
 0x59c   :  { %v5937_v51 = vpop.permute.xlu1 %5936 }
 0x59d   :  { %v5935_v31 = vpop.permute.xlu0 %5934  ;;  %v6539_v46 = vld [vmem:[#allocation4 + $0x118] sm:$0xff]  ;;  %6092 = vst.msk [vmem:[#allocation4 + $0x128] sm:$0xff] %vm6054_vm9, %v5937_v51 }
 0x59e   :  { %6091 = vst.msk [vmem:[#allocation4 + $0x120] sm:$0xff] %vm6054_vm9, %v5935_v31  ;;  %v9859_v7 = vpop.f32.mrf.mxu1  ;;  %9894 = vmatmul.mubr.msk.f32.gmra.mxu1 %vm6578_vm11, %v6539_v46  ;;  %v13675_v20 = vld [vmem:[#allocation5 + $0x30] sm:$0xff]  ;;  %5196 = vrot.lane.b32.xlu1 %v13119_v11, %s9988_s19 }
 0x59f   :  { %6347 = vrot.lane.b32.xlu0 %v13151_v2, %s9993_s10  ;;  %7971 = vst.msk [vmem:[#allocation6 + $0x28] sm:$0xff] %vm7257_vm12, %v13675_v20  ;;  %7332 = vst.msk [vmem:[#allocation6 + $0x60] sm:$0xff] %vm7257_vm12, %v13675_v20 }
 0x5a0   :  { %v6887_v37 = vpop.f32.mrf.mxu1  ;;  %v5169_v27 = vpop.permute.xlu1 %5168 }
 0x5a1   :  { %v7161_v59 = vmax.f32 %v6887_v37, %v9859_v7  ;;  %v6320_v15 = vpop.permute.xlu0 %6319  ;;  %5323 = vst.msk [vmem:[#allocation4 + $0x130] sm:$0xff] %vm5284_vm7, %v5169_v27 }
 0x5a2   :  { %6476 = vst.msk [vmem:[#allocation4 + $0x120] sm:$0xff] %vm6439_vm10, %v6320_v15  ;;  %5198 = vrot.lane.b32.xlu1 %v13151_v2, %s9988_s19 }
 0x5a3   :  { %v7198_v22 = vadd.f32 %v13514_v9, %v7161_v59  ;;  %6349 = vrot.lane.b32.xlu0 %v13183_v34, %s9993_s10 }
 0x5a4   :  { %v5171_v26 = vpop.permute.xlu1 %5170 }
 0x5a5   :  { %v7230_v47 = vmax.f32 %v7198_v22, 0.0  ;;  %v6322_v28 = vpop.permute.xlu0 %6321  ;;  %5324 = vst.msk [vmem:[#allocation4 + $0x138] sm:$0xff] %vm5284_vm7, %v5171_v26  ;;  %v8080_v26 = vld [vmem:[%s14921_s1 + $0xf0] sm:$0xff] }
 0x5a6   :  { %6477 = vst.msk [vmem:[#allocation4 + $0x128] sm:$0xff] %vm6439_vm10, %v6322_v28  ;;  %5583 = vrot.lane.b32.xlu1 %v13183_v34, %s9990_s23  ;;  %8182 = vmatpush1.msra.mxu1 %v8080_v26  ;;  %v8083_v26 = vld [vmem:[%s14921_s1 + $0x108] sm:$0xff] }
 0x5a7   :  { %7267 = vst.msk [vmem:[#allocation5 + $0x38] sm:$0xff] %vm7257_vm12, %v7230_v47  ;;  %5581 = vrot.lane.b32.xlu0 %v13151_v2, %s9990_s23  ;;  %8183 = vmatprep.subr.mxu1 %v9991_v5 }
 0x5a8   :  { %v5556_v10 = vpop.permute.xlu1 %5555 }
 0x5a9   :  { %v5554_v11 = vpop.permute.xlu0 %5553  ;;  %v6540_v30 = vld [vmem:[#allocation4 + $0x120] sm:$0xff]  ;;  %5709 = vst.msk [vmem:[#allocation4 + $0x138] sm:$0xff] %vm5669_vm8, %v5556_v10 }
 0x5aa   :  { %5708 = vst.msk [vmem:[#allocation4 + $0x130] sm:$0xff] %vm5669_vm8, %v5554_v11  ;;  %9896 = vmatprep.mubr.msk.f32.mxu1 %vm6578_vm11, %v6540_v30  ;;  %5968 = vrot.lane.b32.xlu1 %v13215_v56, %s9992_s5 }
 0x5ab   :  { %5966 = vrot.lane.b32.xlu0 %v13183_v34, %s9992_s5 }
 0x5ac   :  { %v5941_v35 = vpop.permute.xlu1 %5940 }
 0x5ad   :  { %v5939_v36 = vpop.permute.xlu0 %5938  ;;  %v6541_v2 = vld [vmem:[#allocation4 + $0x128] sm:$0xff]  ;;  %6094 = vst.msk [vmem:[#allocation4 + $0x138] sm:$0xff] %vm6054_vm9, %v5941_v35  ;;  %v8078_v35 = vld [vmem:[%s14921_s1 + $0xe0] sm:$0xff] }
 0x5ae   :  { %6093 = vst.msk [vmem:[#allocation4 + $0x130] sm:$0xff] %vm6054_vm9, %v5939_v36  ;;  %v9862_v50 = vpop.f32.mrf.mxu1  ;;  %9897 = vmatmul.mubr.msk.f32.gmra.mxu1 %vm6578_vm11, %v6541_v2  ;;  %v13709_v41 = vld [vmem:[#allocation5 + $0x38] sm:$0xff]  ;;  %5200 = vrot.lane.b32.xlu1 %v13183_v34, %s9988_s19 }
 0x5af   :  { %6351 = vrot.lane.b32.xlu0 %v13215_v56, %s9993_s10  ;;  %7972 = vst.msk [vmem:[#allocation6 + $0x38] sm:$0xff] %vm7257_vm12, %v13709_v41  ;;  %7333 = vst.msk [vmem:[#allocation6 + $0x70] sm:$0xff] %vm7257_vm12, %v13709_v41 }
 0x5b0   :  { %v6897_v8 = vpop.f32.mrf.mxu1  ;;  %v5173_v6 = vpop.permute.xlu1 %5172 }
 0x5b1   :  { %v7162_v60 = vmax.f32 %v6897_v8, %v9862_v50  ;;  %v6324_v19 = vpop.permute.xlu0 %6323  ;;  %5325 = vst.msk [vmem:[#allocation4 + $0x140] sm:$0xff] %vm5284_vm7, %v5173_v6 }
 0x5b2   :  { %6478 = vst.msk [vmem:[#allocation4 + $0x130] sm:$0xff] %vm6439_vm10, %v6324_v19  ;;  %5202 = vrot.lane.b32.xlu1 %v13215_v56, %s9988_s19  ;;  %v8077_v19 = vld [vmem:[%s14921_s1 + $0xd8] sm:$0xff] }
 0x5b3   :  { %v7199_v25 = vadd.f32 %v13514_v9, %v7162_v60  ;;  %6353 = vrot.lane.b32.xlu0 %v13247_v63, %s9993_s10 }
 0x5b4   :  { %v5175_v39 = vpop.permute.xlu1 %5174 }
 0x5b5   :  { %v7231_v57 = vmax.f32 %v7199_v25, 0.0  ;;  %v6326_v3 = vpop.permute.xlu0 %6325  ;;  %5326 = vst.msk [vmem:[#allocation4 + $0x148] sm:$0xff] %vm5284_vm7, %v5175_v39  ;;  %v8075_v39 = vld [vmem:[%s14921_s1 + $0xc8] sm:$0xff] }
 0x5b6   :  { %6479 = vst.msk [vmem:[#allocation4 + $0x138] sm:$0xff] %vm6439_vm10, %v6326_v3  ;;  %5587 = vrot.lane.b32.xlu1 %v13247_v63, %s9990_s23 }
 0x5b7   :  { %7268 = vst.msk [vmem:[#allocation5 + $0x40] sm:$0xff] %vm7257_vm12, %v7231_v57  ;;  %5585 = vrot.lane.b32.xlu0 %v13215_v56, %s9990_s23 }
 0x5b8   :  { %v5560_v32 = vpop.permute.xlu1 %5559 }
 0x5b9   :  { %v5558_v34 = vpop.permute.xlu0 %5557  ;;  %v6542_v38 = vld [vmem:[#allocation4 + $0x130] sm:$0xff]  ;;  %5711 = vst.msk [vmem:[#allocation4 + $0x148] sm:$0xff] %vm5669_vm8, %v5560_v32  ;;  %v8073_v32 = vld [vmem:[%s14921_s1 + $0xb8] sm:$0xff] }
 0x5ba   :  { %5710 = vst.msk [vmem:[#allocation4 + $0x140] sm:$0xff] %vm5669_vm8, %v5558_v34  ;;  %9899 = vmatprep.mubr.msk.f32.mxu1 %vm6578_vm11, %v6542_v38  ;;  %5972 = vrot.lane.b32.xlu1 %v13287_v33, %s9992_s5  ;;  %v8074_v38 = vld [vmem:[%s14921_s1 + $0xc0] sm:$0xff] }
 0x5bb   :  { %5970 = vrot.lane.b32.xlu0 %v13247_v63, %s9992_s5 }
 0x5bc   :  { %v5945_v17 = vpop.permute.xlu1 %5944 }
 0x5bd   :  { %v5943_v13 = vpop.permute.xlu0 %5942  ;;  %v6543_v56 = vld [vmem:[#allocation4 + $0x138] sm:$0xff]  ;;  %6096 = vst.msk [vmem:[#allocation4 + $0x148] sm:$0xff] %vm6054_vm9, %v5945_v17  ;;  %v5795_v17 = vld [vmem:[#allocation3 + $0x200] sm:$0xff] }
 0x5be   :  { %6095 = vst.msk [vmem:[#allocation4 + $0x140] sm:$0xff] %vm6054_vm9, %v5943_v13  ;;  %v9865_v14 = vpop.f32.mrf.mxu1  ;;  %9900 = vmatmul.mubr.msk.f32.gmra.mxu1 %vm6578_vm11, %v6543_v56  ;;  %v13743_v52 = vld [vmem:[#allocation5 + $0x40] sm:$0xff]  ;;  %5204 = vrot.lane.b32.xlu1 %v13247_v63, %s9988_s19 }
 0x5bf   :  { %6355 = vrot.lane.b32.xlu0 %v13287_v33, %s9993_s10  ;;  %7973 = vst.msk [vmem:[#allocation6 + $0x48] sm:$0xff] %vm7257_vm12, %v13743_v52  ;;  %7334 = vst.msk [vmem:[#allocation6 + $0x80] sm:$0xff] %vm7257_vm12, %v13743_v52 }
 0x5c0   :  { %v6907_v1 = vpop.f32.mrf.mxu1  ;;  %v5177_v61 = vpop.permute.xlu1 %5176 }
 0x5c1   :  { %v7163_v0 = vmax.f32 %v6907_v1, %v9865_v14  ;;  %v6328_v43 = vpop.permute.xlu0 %6327  ;;  %5327 = vst.msk [vmem:[#allocation4 + $0x150] sm:$0xff] %vm5284_vm7, %v5177_v61  ;;  %v8072_v14 = vld [vmem:[%s14921_s1 + $0xb0] sm:$0xff]  ;;  %v8071_v1 = vld [vmem:[%s14921_s1 + $0xa8] sm:$0xff] }
 0x5c2   :  { %6480 = vst.msk [vmem:[#allocation4 + $0x140] sm:$0xff] %vm6439_vm10, %v6328_v43  ;;  %5206 = vrot.lane.b32.xlu1 %v13287_v33, %s9988_s19 }
 0x5c3   :  { %v7200_v58 = vadd.f32 %v13514_v9, %v7163_v0  ;;  %6357 = vrot.lane.b32.xlu0 %v13318_v42, %s9993_s10 }
 0x5c4   :  { %v5179_v29 = vpop.permute.xlu1 %5178 }
 0x5c5   :  { %v7232_v55 = vmax.f32 %v7200_v58, 0.0  ;;  %v6330_v4 = vpop.permute.xlu0 %6329  ;;  %5328 = vst.msk [vmem:[#allocation4 + $0x158] sm:$0xff] %vm5284_vm7, %v5179_v29 }
 0x5c6   :  { %6481 = vst.msk [vmem:[#allocation4 + $0x148] sm:$0xff] %vm6439_vm10, %v6330_v4  ;;  %5591 = vrot.lane.b32.xlu1 %v13318_v42, %s9990_s23  ;;  %v8070_v4 = vld [vmem:[%s14921_s1 + $0xa0] sm:$0xff] }
 0x5c7   :  { %7269 = vst.msk [vmem:[#allocation5 + $0x48] sm:$0xff] %vm7257_vm12, %v7232_v55  ;;  %5589 = vrot.lane.b32.xlu0 %v13287_v33, %s9990_s23 }
 0x5c8   :  { %v5564_v48 = vpop.permute.xlu1 %5563 }
 0x5c9   :  { %v5562_v63 = vpop.permute.xlu0 %5561  ;;  %v6544_v40 = vld [vmem:[#allocation4 + $0x140] sm:$0xff]  ;;  %5713 = vst.msk [vmem:[#allocation4 + $0x158] sm:$0xff] %vm5669_vm8, %v5564_v48  ;;  %v8069_v48 = vld [vmem:[%s14921_s1 + $0x98] sm:$0xff] }
 0x5ca   :  { %5712 = vst.msk [vmem:[#allocation4 + $0x150] sm:$0xff] %vm5669_vm8, %v5562_v63  ;;  %9902 = vmatprep.mubr.msk.f32.mxu1 %vm6578_vm11, %v6544_v40  ;;  %5976 = vrot.lane.b32.xlu1 %v13350_v16, %s9992_s5 }
 0x5cb   :  { %5974 = vrot.lane.b32.xlu0 %v13318_v42, %s9992_s5 }
 0x5cc   :  { %v5949_v62 = vpop.permute.xlu1 %5948 }
 0x5cd   :  { %v5947_v23 = vpop.permute.xlu0 %5946  ;;  %v6545_v33 = vld [vmem:[#allocation4 + $0x148] sm:$0xff]  ;;  %6098 = vst.msk [vmem:[#allocation4 + $0x158] sm:$0xff] %vm6054_vm9, %v5949_v62 }
 0x5ce   :  { %6097 = vst.msk [vmem:[#allocation4 + $0x150] sm:$0xff] %vm6054_vm9, %v5947_v23  ;;  %v9868_v24 = vpop.f32.mrf.mxu1  ;;  %9903 = vmatmul.mubr.msk.f32.gmra.mxu1 %vm6578_vm11, %v6545_v33  ;;  %v13777_v31 = vld [vmem:[#allocation5 + $0x48] sm:$0xff]  ;;  %5208 = vrot.lane.b32.xlu1 %v13318_v42, %s9988_s19 }
 0x5cf   :  { %6359 = vrot.lane.b32.xlu0 %v13350_v16, %s9993_s10  ;;  %7974 = vst.msk [vmem:[#allocation6 + $0x58] sm:$0xff] %vm7257_vm12, %v13777_v31  ;;  %7335 = vst.msk [vmem:[#allocation6 + $0x90] sm:$0xff] %vm7257_vm12, %v13777_v31  ;;  %v6180_v33 = vld [vmem:[#allocation3 + $0x208] sm:$0xff] }
 0x5d0   :  { %v6917_v46 = vpop.f32.mrf.mxu1  ;;  %v5181_v37 = vpop.permute.xlu1 %5180 }
 0x5d1   :  { %v7164_v51 = vmax.f32 %v6917_v46, %v9868_v24  ;;  %v6332_v7 = vpop.permute.xlu0 %6331  ;;  %5329 = vst.msk [vmem:[#allocation4 + $0x160] sm:$0xff] %vm5284_vm7, %v5181_v37 }
 0x5d2   :  { %6482 = vst.msk [vmem:[#allocation4 + $0x150] sm:$0xff] %vm6439_vm10, %v6332_v7  ;;  %5210 = vrot.lane.b32.xlu1 %v13350_v16, %s9988_s19  ;;  %v7294_v7 = vld [vmem:[#allocation5] sm:$0xff] }
 0x5d3   :  { %v7201_v59 = vadd.f32 %v13514_v9, %v7164_v51  ;;  %6361 = vrot.lane.b32.xlu0 %v13382_v12, %s9993_s10  ;;  %v8067_v51 = vld [vmem:[%s14921_s1 + $0x88] sm:$0xff]  ;;  %7326 = vst.msk [vmem:[#allocation6] sm:$0xff] %vm7257_vm12, %v7294_v7 }
 0x5d4   :  { %v5183_v22 = vpop.permute.xlu1 %5182 }
 0x5d5   :  { %v7233_v15 = vmax.f32 %v7201_v59, 0.0  ;;  %v6334_v27 = vpop.permute.xlu0 %6333  ;;  %5330 = vst.msk [vmem:[#allocation4 + $0x168] sm:$0xff] %vm5284_vm7, %v5183_v22  ;;  %v8066_v59 = vld [vmem:[%s14921_s1 + $0x80] sm:$0xff] }
 0x5d6   :  { %6483 = vst.msk [vmem:[#allocation4 + $0x158] sm:$0xff] %vm6439_vm10, %v6334_v27  ;;  %5595 = vrot.lane.b32.xlu1 %v13382_v12, %s9990_s23 }
 0x5d7   :  { %7270 = vst.msk [vmem:[#allocation5 + $0x50] sm:$0xff] %vm7257_vm12, %v7233_v15  ;;  %5593 = vrot.lane.b32.xlu0 %v13350_v16, %s9990_s23  ;;  %v8079_v16 = vld [vmem:[%s14921_s1 + $0xe8] sm:$0xff]  ;;  %v8065_v15 = vld [vmem:[%s14921_s1 + $0x78] sm:$0xff] }
 0x5d8   :  { %v5568_v28 = vpop.permute.xlu1 %5567  ;;  %8184 = vmatpush1.msra.mxu1 %v8079_v16 }
 0x5d9   :  { %v5566_v42 = vpop.permute.xlu0 %5565  ;;  %v6546_v47 = vld [vmem:[#allocation4 + $0x150] sm:$0xff]  ;;  %5715 = vst.msk [vmem:[#allocation4 + $0x168] sm:$0xff] %vm5669_vm8, %v5568_v28  ;;  %8185 = vmatprep.subr.mxu1 %v9991_v5 }
 0x5da   :  { %5714 = vst.msk [vmem:[#allocation4 + $0x160] sm:$0xff] %vm5669_vm8, %v5566_v42  ;;  %9905 = vmatprep.mubr.msk.f32.mxu1 %vm6578_vm11, %v6546_v47  ;;  %5980 = vrot.lane.b32.xlu1 %v13414_v44, %s9992_s5  ;;  %v5797_v42 = vld [vmem:[#allocation3 + $0x210] sm:$0xff] }
 0x5db   :  { %5978 = vrot.lane.b32.xlu0 %v13382_v12, %s9992_s5  ;;  %8186 = vmatpush1.msra.mxu1 %v8078_v35  ;;  %v8084_v28 = vld [vmem:[%s14921_s1 + $0x110] sm:$0xff] }
 0x5dc   :  { %v5953_v10 = vpop.permute.xlu1 %5952  ;;  %8187 = vmatprep.subr.mxu1 %v9991_v5 }
 0x5dd   :  { %v5951_v11 = vpop.permute.xlu0 %5950  ;;  %v6547_v30 = vld [vmem:[#allocation4 + $0x158] sm:$0xff]  ;;  %6100 = vst.msk [vmem:[#allocation4 + $0x168] sm:$0xff] %vm6054_vm9, %v5953_v10  ;;  %8188 = vmatpush1.msra.mxu1 %v8077_v19 }
 0x5de   :  { %6099 = vst.msk [vmem:[#allocation4 + $0x160] sm:$0xff] %vm6054_vm9, %v5951_v11  ;;  %v9871_v36 = vpop.f32.mrf.mxu1  ;;  %9906 = vmatmul.mubr.msk.f32.gmra.mxu1 %vm6578_vm11, %v6547_v30  ;;  %v13818_v2 = vld [vmem:[#allocation5 + $0x50] sm:$0xff]  ;;  %5212 = vrot.lane.b32.xlu1 %v13382_v12, %s9988_s19  ;;  %v6182_v30 = vld [vmem:[#allocation3 + $0x218] sm:$0xff] }
 0x5df   :  { %6363 = vrot.lane.b32.xlu0 %v13414_v44, %s9993_s10  ;;  %7975 = vst.msk [vmem:[#allocation6 + $0x68] sm:$0xff] %vm7257_vm12, %v13818_v2  ;;  %7336 = vst.msk [vmem:[#allocation6 + $0xa0] sm:$0xff] %vm7257_vm12, %v13818_v2  ;;  %v8076_v12 = vld [vmem:[%s14921_s1 + $0xd0] sm:$0xff]  ;;  %8189 = vmatprep.subr.mxu1 %v9991_v5 }
 0x5e0   :  { %v6927_v50 = vpop.f32.mrf.mxu1  ;;  %v5185_v6 = vpop.permute.xlu1 %5184  ;;  %8190 = vmatpush1.msra.mxu1 %v8076_v12 }
 0x5e1   :  { %v7165_v8 = vmax.f32 %v6927_v50, %v9871_v36  ;;  %v6336_v60 = vpop.permute.xlu0 %6335  ;;  %5331 = vst.msk [vmem:[#allocation4 + $0x170] sm:$0xff] %vm5284_vm7, %v5185_v6  ;;  %8191 = vmatprep.subr.mxu1 %v9991_v5  ;;  %v8082_v50 = vld [vmem:[%s14921_s1 + $0x100] sm:$0xff]  ;;  %v8081_v6 = vld [vmem:[%s14921_s1 + $0xf8] sm:$0xff] }
 0x5e2   :  { %6484 = vst.msk [vmem:[#allocation4 + $0x160] sm:$0xff] %vm6439_vm10, %v6336_v60  ;;  %5214 = vrot.lane.b32.xlu1 %v13414_v44, %s9988_s19  ;;  %8192 = vmatpush1.msra.mxu1 %v8075_v39 }
 0x5e3   :  { %v7202_v25 = vadd.f32 %v13514_v9, %v7165_v8  ;;  %6365 = vrot.lane.b32.xlu0 %v13446_v53, %s9993_s10  ;;  %8193 = vmatprep.subr.mxu1 %v9991_v5 }
 0x5e4   :  { %v5187_v34 = vpop.permute.xlu1 %5186  ;;  %8194 = vmatpush1.msra.mxu1 %v8074_v38 }
 0x5e5   :  { %v7234_v57 = vmax.f32 %v7202_v25, 0.0  ;;  %v6338_v3 = vpop.permute.xlu0 %6337  ;;  %5332 = vst.msk [vmem:[#allocation4 + $0x178] sm:$0xff] %vm5284_vm7, %v5187_v34  ;;  %8195 = vmatprep.subr.mxu1 %v9991_v5 }
 0x5e6   :  { %6485 = vst.msk [vmem:[#allocation4 + $0x168] sm:$0xff] %vm6439_vm10, %v6338_v3  ;;  %5599 = vrot.lane.b32.xlu1 %v13446_v53, %s9990_s23  ;;  %8196 = vmatpush1.msra.mxu1 %v8073_v32 }
 0x5e7   :  { %7271 = vst.msk [vmem:[#allocation5 + $0x58] sm:$0xff] %vm7257_vm12, %v7234_v57  ;;  %5597 = vrot.lane.b32.xlu0 %v13414_v44, %s9990_s23  ;;  %8197 = vmatprep.subr.mxu1 %v9991_v5 }
 0x5e8   :  { %v5572_v44 = vpop.permute.xlu1 %5571  ;;  %8198 = vmatpush1.msra.mxu1 %v8072_v14 }
 0x5e9   :  { %v5570_v13 = vpop.permute.xlu0 %5569  ;;  %v6548_v56 = vld [vmem:[#allocation4 + $0x160] sm:$0xff]  ;;  %5717 = vst.msk [vmem:[#allocation4 + $0x178] sm:$0xff] %vm5669_vm8, %v5572_v44  ;;  %8199 = vmatprep.subr.mxu1 %v9991_v5 }
 0x5ea   :  { %5716 = vst.msk [vmem:[#allocation4 + $0x170] sm:$0xff] %vm5669_vm8, %v5570_v13  ;;  %9908 = vmatprep.mubr.msk.f32.mxu1 %vm6578_vm11, %v6548_v56  ;;  %5984 = vrot.lane.b32.xlu1 %v5795_v17, %s9992_s5 }
 0x5eb   :  { %5982 = vrot.lane.b32.xlu0 %v13446_v53, %s9992_s5  ;;  %8200 = vmatpush1.msra.mxu1 %v8071_v1 }
 0x5ec   :  { %v5957_v61 = vpop.permute.xlu1 %5956  ;;  %8201 = vmatprep.subr.mxu1 %v9991_v5 }
 0x5ed   :  { %v5955_v0 = vpop.permute.xlu0 %5954  ;;  %v6549_v43 = vld [vmem:[#allocation4 + $0x168] sm:$0xff]  ;;  %6102 = vst.msk [vmem:[#allocation4 + $0x178] sm:$0xff] %vm6054_vm9, %v5957_v61  ;;  %8202 = vmatpush1.msra.mxu1 %v8070_v4 }
 0x5ee   :  { %6101 = vst.msk [vmem:[#allocation4 + $0x170] sm:$0xff] %vm6054_vm9, %v5955_v0  ;;  %v9874_v58 = vpop.f32.mrf.mxu1  ;;  %9909 = vmatmul.mubr.msk.f32.gmra.mxu1 %vm6578_vm11, %v6549_v43  ;;  %v13882_v55 = vld [vmem:[#allocation5 + $0x58] sm:$0xff]  ;;  %5216 = vrot.lane.b32.xlu1 %v13446_v53, %s9988_s19  ;;  %v8068_v53 = vld [vmem:[%s14921_s1 + $0x90] sm:$0xff]  ;;  %v13998_v0 = vld [vmem:[%s14922_s2 + $0x1] ss:$0 sm:$0xff] }
 0x5ef   :  { %6367 = vrot.lane.b32.xlu0 %v5795_v17, %s9993_s10  ;;  %7976 = vst.msk [vmem:[#allocation6 + $0x78] sm:$0xff] %vm7257_vm12, %v13882_v55  ;;  %7337 = vst.msk [vmem:[#allocation6 + $0xb0] sm:$0xff] %vm7257_vm12, %v13882_v55  ;;  %8203 = vmatprep.subr.mxu1 %v9991_v5 }
 0x5f0   :  { %v6937_v29 = vpop.f32.mrf.mxu1  ;;  %v5189_v23 = vpop.permute.xlu1 %5188  ;;  %8204 = vmatpush1.msra.mxu1 %v8069_v48 }
 0x5f1   :  { %v7166_v63 = vmax.f32 %v6937_v29, %v9874_v58  ;;  %v6340_v40 = vpop.permute.xlu0 %6339  ;;  %5333 = vst.msk [vmem:[#allocation4 + $0x180] sm:$0xff] %vm5284_vm7, %v5189_v23  ;;  %8205 = vmatprep.subr.mxu1 %v9991_v5 }
 0x5f2   :  { %6486 = vst.msk [vmem:[#allocation4 + $0x170] sm:$0xff] %vm6439_vm10, %v6340_v40  ;;  %5218 = vrot.lane.b32.xlu1 %v5795_v17, %s9988_s19  ;;  %8206 = vmatpush1.msra.mxu1 %v8068_v53 }
 0x5f3   :  { %v7203_v62 = vadd.f32 %v13514_v9, %v7166_v63  ;;  %6369 = vrot.lane.b32.xlu0 %v6180_v33, %s9993_s10  ;;  %8207 = vmatprep.subr.mxu1 %v9991_v5 }
 0x5f4   :  { %v5191_v37 = vpop.permute.xlu1 %5190  ;;  %8208 = vmatpush1.msra.mxu1 %v8067_v51 }
 0x5f5   :  { %v7235_v24 = vmax.f32 %v7203_v62, 0.0  ;;  %v6342_v46 = vpop.permute.xlu0 %6341  ;;  %5334 = vst.msk [vmem:[#allocation4 + $0x188] sm:$0xff] %vm5284_vm7, %v5191_v37  ;;  %8209 = vmatprep.subr.mxu1 %v9991_v5 }
 0x5f6   :  { %6487 = vst.msk [vmem:[#allocation4 + $0x178] sm:$0xff] %vm6439_vm10, %v6342_v46  ;;  %5603 = vrot.lane.b32.xlu1 %v6180_v33, %s9990_s23  ;;  %8210 = vmatpush1.msra.mxu1 %v8066_v59 }
 0x5f7   :  { %7272 = vst.msk [vmem:[#allocation5 + $0x60] sm:$0xff] %vm7257_vm12, %v7235_v24  ;;  %5601 = vrot.lane.b32.xlu0 %v5795_v17, %s9990_s23  ;;  %8211 = vmatprep.subr.mxu1 %v9991_v5 }
 0x5f8   :  { %v5576_v47 = vpop.permute.xlu1 %5575  ;;  %8212 = vmatpush1.msra.mxu1 %v8065_v15 }
 0x5f9   :  { %v5574_v27 = vpop.permute.xlu0 %5573  ;;  %v6550_v22 = vld [vmem:[#allocation4 + $0x170] sm:$0xff]  ;;  %5719 = vst.msk [vmem:[#allocation4 + $0x188] sm:$0xff] %vm5669_vm8, %v5576_v47  ;;  %8237 = vmatprep.subr.mxu1 %v9991_v5 }
 0x5fa   :  { %5718 = vst.msk [vmem:[#allocation4 + $0x180] sm:$0xff] %vm5669_vm8, %v5574_v27  ;;  %9911 = vmatprep.mubr.msk.f32.mxu1 %vm6578_vm11, %v6550_v22  ;;  %5988 = vrot.lane.b32.xlu1 %v5797_v42, %s9992_s5 }
 0x5fb   :  { %5986 = vrot.lane.b32.xlu0 %v6180_v33, %s9992_s5  ;;  %8238 = vmatpush2.msra.mxu1 %v8084_v28 }
 0x5fc   :  { %v5961_v10 = vpop.permute.xlu1 %5960  ;;  %8239 = vmatprep.subr.mxu1 %v9991_v5 }
 0x5fd   :  { %v5959_v16 = vpop.permute.xlu0 %5958  ;;  %v6551_v11 = vld [vmem:[#allocation4 + $0x178] sm:$0xff]  ;;  %6104 = vst.msk [vmem:[#allocation4 + $0x188] sm:$0xff] %vm6054_vm9, %v5961_v10  ;;  %8240 = vmatpush2.msra.mxu1 %v8083_v26 }
 0x5fe   :  { %6103 = vst.msk [vmem:[#allocation4 + $0x180] sm:$0xff] %vm6054_vm9, %v5959_v16  ;;  %v9877_v36 = vpop.f32.mrf.mxu1  ;;  %9912 = vmatmul.mubr.msk.f32.gmra.mxu1 %vm6578_vm11, %v6551_v11  ;;  %v13942_v35 = vld [vmem:[#allocation5 + $0x60] sm:$0xff]  ;;  %6373 = vrot.lane.b32.xlu1 %v6182_v30, %s9993_s10 }
 0x5ff   :  { %6371 = vrot.lane.b32.xlu0 %v5797_v42, %s9993_s10  ;;  %7977 = vst.msk [vmem:[#allocation6 + $0x88] sm:$0xff] %vm7257_vm12, %v13942_v35  ;;  %7338 = vst.msk [vmem:[#allocation6 + $0xc0] sm:$0xff] %vm7257_vm12, %v13942_v35  ;;  %8241 = vmatprep.subr.mxu1 %v9991_v5 }
 0x600   :  { %v6947_v8 = vpop.f32.mrf.mxu1  ;;  %8242 = vmatpush2.msra.mxu1 %v8082_v50  ;;  %v5193_v25 = vpop.permute.xlu1 %5192 }
 0x601   :  { %v7167_v60 = vmax.f32 %v6947_v8, %v9877_v36  ;;  %v6344_v19 = vpop.permute.xlu0 %6343  ;;  %8243 = vmatprep.subr.mxu1 %v9991_v5  ;;  %5335 = vst.msk [vmem:[#allocation4 + $0x190] sm:$0xff] %vm5284_vm7, %v5193_v25 }
 0x602   :  { %6488 = vst.msk [vmem:[#allocation4 + $0x180] sm:$0xff] %vm6439_vm10, %v6344_v19  ;;  %8244 = vmatpush2.msra.mxu1 %v8081_v6  ;;  %7615 = vrot.lane.b32.xlu1 %v13539_v54, %s9993_s10 }
 0x603   :  { %v7204_v12 = vadd.f32 %v13514_v9, %v7167_v60  ;;  %7422 = vrot.lane.b32.xlu0 %v13619_v49, %s9990_s23 }
 0x604   :  { %v5195_v39 = vpop.permute.xlu1 %5194 }
 0x605   :  { %v7236_v57 = vmax.f32 %v7204_v12, 0.0  ;;  %v6346_v3 = vpop.permute.xlu0 %6345  ;;  %5336 = vst.msk [vmem:[#allocation4 + $0x198] sm:$0xff] %vm5284_vm7, %v5195_v39 }
 0x606   :  { %6489 = vst.msk [vmem:[#allocation4 + $0x188] sm:$0xff] %vm6439_vm10, %v6346_v3  ;;  %7424 = vrot.lane.b32.xlu1 %v13539_v54, %s9990_s23 }
 0x607   :  { %7273 = vst.msk [vmem:[#allocation5 + $0x68] sm:$0xff] %vm7257_vm12, %v7236_v57  ;;  %7808 = vrot.lane.b32.xlu0 %v13571_v45, %s9994_s6 }
 0x608   :  { %v5580_v34 = vpop.permute.xlu1 %5579 }
 0x609   :  { %v5578_v9 = vpop.permute.xlu0 %5577  ;;  %v6552_v49 = vld [vmem:[#allocation4 + $0x180] sm:$0xff]  ;;  %5721 = vst.msk [vmem:[#allocation4 + $0x198] sm:$0xff] %vm5669_vm8, %v5580_v34 }
 0x60a   :  { %5720 = vst.msk [vmem:[#allocation4 + $0x190] sm:$0xff] %vm5669_vm8, %v5578_v9  ;;  %9914 = vmatprep.mubr.msk.f32.mxu1 %vm6578_vm11, %v6552_v49  ;;  %7810 = vrot.lane.b32.xlu1 %v13603_v21, %s9994_s6 }
 0x60b   :  { %7617 = vrot.lane.b32.xlu0 %v13571_v45, %s9993_s10 }
 0x60c   :  { %v5965_v54 = vpop.permute.xlu1 %5964 }
 0x60d   :  { %v5963_v38 = vpop.permute.xlu0 %5962  ;;  %v6553_v32 = vld [vmem:[#allocation4 + $0x188] sm:$0xff]  ;;  %6106 = vst.msk [vmem:[#allocation4 + $0x198] sm:$0xff] %vm6054_vm9, %v5965_v54 }
 0x60e   :  { %6105 = vst.msk [vmem:[#allocation4 + $0x190] sm:$0xff] %vm6054_vm9, %v5963_v38  ;;  %v9880_v13 = vpop.f32.mrf.mxu1  ;;  %9915 = vmatmul.mubr.msk.f32.gmra.mxu1 %vm6578_vm11, %v6553_v32  ;;  %v13983_v56 = vld [vmem:[#allocation5 + $0x68] sm:$0xff]  ;;  %7619 = vrot.lane.b32.xlu1 %v13603_v21, %s9993_s10 }
 0x60f   :  { %7426 = vrot.lane.b32.xlu0 %v13571_v45, %s9990_s23  ;;  %7978 = vst.msk [vmem:[#allocation6 + $0x98] sm:$0xff] %vm7257_vm12, %v13983_v56  ;;  %7339 = vst.msk [vmem:[#allocation6 + $0xd0] sm:$0xff] %vm7257_vm12, %v13983_v56 }
 0x610   :  { %v6957_v44 = vpop.f32.mrf.mxu1  ;;  %v5197_v1 = vpop.permute.xlu1 %5196 }
 0x611   :  { %v7168_v17 = vmax.f32 %v6957_v44, %v9880_v13  ;;  %v6348_v14 = vpop.permute.xlu0 %6347  ;;  %5337 = vst.msk [vmem:[#allocation4 + $0x1a0] sm:$0xff] %vm5284_vm7, %v5197_v1 }
 0x612   :  { %6490 = vst.msk [vmem:[#allocation4 + $0x190] sm:$0xff] %vm6439_vm10, %v6348_v14  ;;  %7428 = vrot.lane.b32.xlu1 %v13603_v21, %s9990_s23 }
 0x613   :  { %v7205_v45 = vadd.f32 %v13998_v0, %v7168_v17  ;;  %7812 = vrot.lane.b32.xlu0 %v13641_v18, %s9994_s6 }
 0x614   :  { %v5199_v58 = vpop.permute.xlu1 %5198 }
 0x615   :  { %v7237_v43 = vmax.f32 %v7205_v45, 0.0  ;;  %v6350_v61 = vpop.permute.xlu0 %6349  ;;  %5338 = vst.msk [vmem:[#allocation4 + $0x1a8] sm:$0xff] %vm5284_vm7, %v5199_v58 }
 0x616   :  { %6491 = vst.msk [vmem:[#allocation4 + $0x198] sm:$0xff] %vm6439_vm10, %v6350_v61  ;;  %7814 = vrot.lane.b32.xlu1 %v13675_v20, %s9994_s6 }
 0x617   :  { %7274 = vst.msk [vmem:[#allocation5 + $0x70] sm:$0xff] %vm7257_vm12, %v7237_v43  ;;  %7621 = vrot.lane.b32.xlu0 %v13641_v18, %s9993_s10 }
 0x618   :  { %v5584_v21 = vpop.permute.xlu1 %5583 }
 0x619   :  { %v5582_v4 = vpop.permute.xlu0 %5581  ;;  %v6554_v29 = vld [vmem:[#allocation4 + $0x190] sm:$0xff]  ;;  %5723 = vst.msk [vmem:[#allocation4 + $0x1a8] sm:$0xff] %vm5669_vm8, %v5584_v21 }
 0x61a   :  { %5722 = vst.msk [vmem:[#allocation4 + $0x1a0] sm:$0xff] %vm5669_vm8, %v5582_v4  ;;  %9917 = vmatprep.mubr.msk.f32.mxu1 %vm6578_vm11, %v6554_v29  ;;  %7623 = vrot.lane.b32.xlu1 %v13675_v20, %s9993_s10 }
 0x61b   :  { %7430 = vrot.lane.b32.xlu0 %v13641_v18, %s9990_s23 }
 0x61c   :  { %v5969_v48 = vpop.permute.xlu1 %5968 }
 0x61d   :  { %v5967_v63 = vpop.permute.xlu0 %5966  ;;  %v6555_v40 = vld [vmem:[#allocation4 + $0x198] sm:$0xff]  ;;  %6108 = vst.msk [vmem:[#allocation4 + $0x1a8] sm:$0xff] %vm6054_vm9, %v5969_v48 }
 0x61e   :  { %6107 = vst.msk [vmem:[#allocation4 + $0x1a0] sm:$0xff] %vm6054_vm9, %v5967_v63  ;;  %v9883_v23 = vpop.f32.mrf.mxu1  ;;  %9918 = vmatmul.mubr.msk.f32.gmra.mxu1 %vm6578_vm11, %v6555_v40  ;;  %v14022_v33 = vld [vmem:[#allocation5 + $0x70] sm:$0xff]  ;;  %7432 = vrot.lane.b32.xlu1 %v13675_v20, %s9990_s23 }
 0x61f   :  { %7816 = vrot.lane.b32.xlu0 %v13709_v41, %s9994_s6  ;;  %7979 = vst.msk [vmem:[#allocation6 + $0xa8] sm:$0xff] %vm7257_vm12, %v14022_v33  ;;  %7340 = vst.msk [vmem:[#allocation6 + $0xe0] sm:$0xff] %vm7257_vm12, %v14022_v33 }
 0x620   :  { %v6967_v18 = vpop.f32.mrf.mxu1  ;;  %v5201_v24 = vpop.permute.xlu1 %5200 }
 0x621   :  { %v7169_v62 = vmax.f32 %v6967_v18, %v9883_v23  ;;  %v6352_v53 = vpop.permute.xlu0 %6351  ;;  %5339 = vst.msk [vmem:[#allocation4 + $0x1b0] sm:$0xff] %vm5284_vm7, %v5201_v24 }
 0x622   :  { %6492 = vst.msk [vmem:[#allocation4 + $0x1a0] sm:$0xff] %vm6439_vm10, %v6352_v53  ;;  %7818 = vrot.lane.b32.xlu1 %v13743_v52, %s9994_s6 }
 0x623   :  { %v7206_v46 = vadd.f32 %v13998_v0, %v7169_v62  ;;  %7625 = vrot.lane.b32.xlu0 %v13709_v41, %s9993_s10 }
 0x624   :  { %v5203_v37 = vpop.permute.xlu1 %5202 }
 0x625   :  { %v7238_v51 = vmax.f32 %v7206_v46, 0.0  ;;  %v6354_v7 = vpop.permute.xlu0 %6353  ;;  %5340 = vst.msk [vmem:[#allocation4 + $0x1b8] sm:$0xff] %vm5284_vm7, %v5203_v37 }
 0x626   :  { %6493 = vst.msk [vmem:[#allocation4 + $0x1a8] sm:$0xff] %vm6439_vm10, %v6354_v7  ;;  %7627 = vrot.lane.b32.xlu1 %v13743_v52, %s9993_s10 }
 0x627   :  { %7275 = vst.msk [vmem:[#allocation5 + $0x78] sm:$0xff] %vm7257_vm12, %v7238_v51  ;;  %7434 = vrot.lane.b32.xlu0 %v13709_v41, %s9990_s23 }
 0x628   :  { %v5588_v15 = vpop.permute.xlu1 %5587 }
 0x629   :  { %v5586_v20 = vpop.permute.xlu0 %5585  ;;  %v6556_v59 = vld [vmem:[#allocation4 + $0x1a0] sm:$0xff]  ;;  %5725 = vst.msk [vmem:[#allocation4 + $0x1b8] sm:$0xff] %vm5669_vm8, %v5588_v15 }
 0x62a   :  { %5724 = vst.msk [vmem:[#allocation4 + $0x1b0] sm:$0xff] %vm5669_vm8, %v5586_v20  ;;  %9920 = vmatprep.mubr.msk.f32.mxu1 %vm6578_vm11, %v6556_v59  ;;  %7436 = vrot.lane.b32.xlu1 %v13743_v52, %s9990_s23 }
 0x62b   :  { %7820 = vrot.lane.b32.xlu0 %v13777_v31, %s9994_s6 }
 0x62c   :  { %v5973_v22 = vpop.permute.xlu1 %5972 }
 0x62d   :  { %v5971_v27 = vpop.permute.xlu0 %5970  ;;  %v6557_v41 = vld [vmem:[#allocation4 + $0x1a8] sm:$0xff]  ;;  %6110 = vst.msk [vmem:[#allocation4 + $0x1b8] sm:$0xff] %vm6054_vm9, %v5973_v22 }
 0x62e   :  { %6109 = vst.msk [vmem:[#allocation4 + $0x1b0] sm:$0xff] %vm6054_vm9, %v5971_v27  ;;  %v9886_v42 = vpop.f32.mrf.mxu1  ;;  %9921 = vmatmul.mubr.msk.f32.gmra.mxu1 %vm6578_vm11, %v6557_v41  ;;  %v14056_v47 = vld [vmem:[#allocation5 + $0x78] sm:$0xff]  ;;  %7822 = vrot.lane.b32.xlu1 %v13818_v2, %s9994_s6 }
 0x62f   :  { %7629 = vrot.lane.b32.xlu0 %v13777_v31, %s9993_s10  ;;  %7980 = vst.msk [vmem:[#allocation6 + $0xb8] sm:$0xff] %vm7257_vm12, %v14056_v47  ;;  %7341 = vst.msk [vmem:[#allocation6 + $0xf0] sm:$0xff] %vm7257_vm12, %v14056_v47 }
 0x630   :  { %v6977_v52 = vpop.f32.mrf.mxu1  ;;  %v5205_v16 = vpop.permute.xlu1 %5204 }
 0x631   :  { %v7170_v28 = vmax.f32 %v6977_v52, %v9886_v42  ;;  %v6356_v26 = vpop.permute.xlu0 %6355  ;;  %5341 = vst.msk [vmem:[#allocation4 + $0x1c0] sm:$0xff] %vm5284_vm7, %v5205_v16 }
 0x632   :  { %6494 = vst.msk [vmem:[#allocation4 + $0x1b0] sm:$0xff] %vm6439_vm10, %v6356_v26  ;;  %7631 = vrot.lane.b32.xlu1 %v13818_v2, %s9993_s10 }
 0x633   :  { %v7207_v11 = vadd.f32 %v13998_v0, %v7170_v28  ;;  %7438 = vrot.lane.b32.xlu0 %v13777_v31, %s9990_s23 }
 0x634   :  { %v5207_v36 = vpop.permute.xlu1 %5206 }
 0x635   :  { %v7239_v30 = vmax.f32 %v7207_v11, 0.0  ;;  %v6358_v10 = vpop.permute.xlu0 %6357  ;;  %5342 = vst.msk [vmem:[#allocation4 + $0x1c8] sm:$0xff] %vm5284_vm7, %v5207_v36 }
 0x636   :  { %6495 = vst.msk [vmem:[#allocation4 + $0x1b8] sm:$0xff] %vm6439_vm10, %v6358_v10  ;;  %7440 = vrot.lane.b32.xlu1 %v13818_v2, %s9990_s23 }
 0x637   :  { %7276 = vst.msk [vmem:[#allocation5 + $0x80] sm:$0xff] %vm7257_vm12, %v7239_v30  ;;  %7824 = vrot.lane.b32.xlu0 %v13882_v55, %s9994_s6 }
 0x638   :  { %v5592_v8 = vpop.permute.xlu1 %5591 }
 0x639   :  { %v5590_v50 = vpop.permute.xlu0 %5589  ;;  %v6558_v31 = vld [vmem:[#allocation4 + $0x1b0] sm:$0xff]  ;;  %5727 = vst.msk [vmem:[#allocation4 + $0x1c8] sm:$0xff] %vm5669_vm8, %v5592_v8 }
 0x63a   :  { %5726 = vst.msk [vmem:[#allocation4 + $0x1c0] sm:$0xff] %vm5669_vm8, %v5590_v50  ;;  %9923 = vmatprep.mubr.msk.f32.mxu1 %vm6578_vm11, %v6558_v31  ;;  %7826 = vrot.lane.b32.xlu1 %v13942_v35, %s9994_s6 }
 0x63b   :  { %7633 = vrot.lane.b32.xlu0 %v13882_v55, %s9993_s10 }
 0x63c   :  { %v5977_v2 = vpop.permute.xlu1 %5976 }
 0x63d   :  { %v5975_v60 = vpop.permute.xlu0 %5974  ;;  %v6559_v19 = vld [vmem:[#allocation4 + $0x1b8] sm:$0xff]  ;;  %6112 = vst.msk [vmem:[#allocation4 + $0x1c8] sm:$0xff] %vm6054_vm9, %v5977_v2 }
 0x63e   :  { %6111 = vst.msk [vmem:[#allocation4 + $0x1c0] sm:$0xff] %vm6054_vm9, %v5975_v60  ;;  %v9889_v6 = vpop.f32.mrf.mxu1  ;;  %9924 = vmatmul.mubr.msk.f32.gmra.mxu1 %vm6578_vm11, %v6559_v19  ;;  %v14090_v25 = vld [vmem:[#allocation5 + $0x80] sm:$0xff]  ;;  %7635 = vrot.lane.b32.xlu1 %v13942_v35, %s9993_s10 }
 0x63f   :  { %7442 = vrot.lane.b32.xlu0 %v13882_v55, %s9990_s23  ;;  %7981 = vst.msk [vmem:[#allocation6 + $0xc8] sm:$0xff] %vm7257_vm12, %v14090_v25  ;;  %7342 = vst.msk [vmem:[#allocation6 + $0x100] sm:$0xff] %vm7257_vm12, %v14090_v25 }
 0x640   :  { %v6987_v12 = vpop.f32.mrf.mxu1  ;;  %v5209_v39 = vpop.permute.xlu1 %5208 }
 0x641   :  { %v7171_v57 = vmax.f32 %v6987_v12, %v9889_v6  ;;  %v6360_v3 = vpop.permute.xlu0 %6359  ;;  %5343 = vst.msk [vmem:[#allocation4 + $0x1d0] sm:$0xff] %vm5284_vm7, %v5209_v39  ;;  %v8002_v6 = vld [vmem:[#allocation6 + $0x8] sm:$0xff] }
 0x642   :  { %6496 = vst.msk [vmem:[#allocation4 + $0x1c0] sm:$0xff] %vm6439_vm10, %v6360_v3  ;;  %7444 = vrot.lane.b32.xlu1 %v13942_v35, %s9990_s23 }
 0x643   :  { %v7208_v9 = vadd.f32 %v13998_v0, %v7171_v57  ;;  %7828 = vrot.lane.b32.xlu0 %v13983_v56, %s9994_s6 }
 0x644   :  { %v5211_v34 = vpop.permute.xlu1 %5210 }
 0x645   :  { %v7240_v55 = vmax.f32 %v7208_v9, 0.0  ;;  %v6362_v49 = vpop.permute.xlu0 %6361  ;;  %5344 = vst.msk [vmem:[#allocation4 + $0x1d8] sm:$0xff] %vm5284_vm7, %v5211_v34 }
 0x646   :  { %6497 = vst.msk [vmem:[#allocation4 + $0x1c8] sm:$0xff] %vm6439_vm10, %v6362_v49  ;;  %7830 = vrot.lane.b32.xlu1 %v14022_v33, %s9994_s6 }
 0x647   :  { %7277 = vst.msk [vmem:[#allocation5 + $0x88] sm:$0xff] %vm7257_vm12, %v7240_v55  ;;  %7637 = vrot.lane.b32.xlu0 %v13983_v56, %s9993_s10 }
 0x648   :  { %v5596_v35 = vpop.permute.xlu1 %5595 }
 0x649   :  { %v5594_v38 = vpop.permute.xlu0 %5593  ;;  %v6560_v32 = vld [vmem:[#allocation4 + $0x1c0] sm:$0xff]  ;;  %5729 = vst.msk [vmem:[#allocation4 + $0x1d8] sm:$0xff] %vm5669_vm8, %v5596_v35 }
 0x64a   :  { %5728 = vst.msk [vmem:[#allocation4 + $0x1d0] sm:$0xff] %vm5669_vm8, %v5594_v38  ;;  %9926 = vmatprep.mubr.msk.f32.mxu1 %vm6578_vm11, %v6560_v32  ;;  %7639 = vrot.lane.b32.xlu1 %v14022_v33, %s9993_s10  ;;  %v8004_v38 = vld [vmem:[#allocation6 + $0x18] sm:$0xff] }
 0x64b   :  { %7446 = vrot.lane.b32.xlu0 %v13983_v56, %s9990_s23 }
 0x64c   :  { %v5981_v44 = vpop.permute.xlu1 %5980 }
 0x64d   :  { %v5979_v54 = vpop.permute.xlu0 %5978  ;;  %v6561_v13 = vld [vmem:[#allocation4 + $0x1c8] sm:$0xff]  ;;  %6114 = vst.msk [vmem:[#allocation4 + $0x1d8] sm:$0xff] %vm6054_vm9, %v5981_v44 }
 0x64e   :  { %6113 = vst.msk [vmem:[#allocation4 + $0x1d0] sm:$0xff] %vm6054_vm9, %v5979_v54  ;;  %v9892_v17 = vpop.f32.mrf.mxu1  ;;  %9927 = vmatmul.mubr.msk.f32.gmra.mxu1 %vm6578_vm11, %v6561_v13  ;;  %v7758_v14 = vld [vmem:[#allocation5 + $0x88] sm:$0xff]  ;;  %7448 = vrot.lane.b32.xlu1 %v14022_v33, %s9990_s23 }
 0x64f   :  { %7832 = vrot.lane.b32.xlu0 %v14056_v47, %s9994_s6  ;;  %7982 = vst.msk [vmem:[#allocation6 + $0xd8] sm:$0xff] %vm7257_vm12, %v7758_v14  ;;  %7343 = vst.msk [vmem:[#allocation6 + $0x110] sm:$0xff] %vm7257_vm12, %v7758_v14 }
 0x650   :  { %v6997_v56 = vpop.f32.mrf.mxu1  ;;  %v5213_v43 = vpop.permute.xlu1 %5212 }
 0x651   :  { %v7172_v1 = vmax.f32 %v6997_v56, %v9892_v17  ;;  %v6364_v45 = vpop.permute.xlu0 %6363  ;;  %5345 = vst.msk [vmem:[#allocation4 + $0x1e0] sm:$0xff] %vm5284_vm7, %v5213_v43  ;;  %v8006_v17 = vld [vmem:[#allocation6 + $0x28] sm:$0xff] }
 0x652   :  { %6498 = vst.msk [vmem:[#allocation4 + $0x1d0] sm:$0xff] %vm6439_vm10, %v6364_v45  ;;  %7834 = vrot.lane.b32.xlu1 %v14090_v25, %s9994_s6 }
 0x653   :  { %v7209_v61 = vadd.f32 %v13998_v0, %v7172_v1  ;;  %7641 = vrot.lane.b32.xlu0 %v14056_v47, %s9993_s10 }
 0x654   :  { %v5215_v29 = vpop.permute.xlu1 %5214 }
 0x655   :  { %v7241_v58 = vmax.f32 %v7209_v61, 0.0  ;;  %v6366_v4 = vpop.permute.xlu0 %6365  ;;  %5346 = vst.msk [vmem:[#allocation4 + $0x1e8] sm:$0xff] %vm5284_vm7, %v5215_v29 }
 0x656   :  { %6499 = vst.msk [vmem:[#allocation4 + $0x1d8] sm:$0xff] %vm6439_vm10, %v6366_v4  ;;  %7643 = vrot.lane.b32.xlu1 %v14090_v25, %s9993_s10  ;;  %v8008_v4 = vld [vmem:[#allocation6 + $0x38] sm:$0xff] }
 0x657   :  { %7278 = vst.msk [vmem:[#allocation5 + $0x90] sm:$0xff] %vm7257_vm12, %v7241_v58  ;;  %7450 = vrot.lane.b32.xlu0 %v14056_v47, %s9990_s23 }
 0x658   :  { %v5600_v40 = vpop.permute.xlu1 %5599 }
 0x659   :  { %v5598_v21 = vpop.permute.xlu0 %5597  ;;  %v6562_v63 = vld [vmem:[#allocation4 + $0x1d0] sm:$0xff]  ;;  %5731 = vst.msk [vmem:[#allocation4 + $0x1e8] sm:$0xff] %vm5669_vm8, %v5600_v40 }
 0x65a   :  { %5730 = vst.msk [vmem:[#allocation4 + $0x1e0] sm:$0xff] %vm5669_vm8, %v5598_v21  ;;  %9929 = vmatprep.mubr.msk.f32.mxu1 %vm6578_vm11, %v6562_v63  ;;  %7452 = vrot.lane.b32.xlu1 %v14090_v25, %s9990_s23 }
 0x65b   :  { %7836 = vrot.lane.b32.xlu0 %v7758_v14, %s9994_s6 }
 0x65c   :  { %v5985_v33 = vpop.permute.xlu1 %5984 }
 0x65d   :  { %v5983_v48 = vpop.permute.xlu0 %5982  ;;  %v6563_v23 = vld [vmem:[#allocation4 + $0x1d8] sm:$0xff]  ;;  %6116 = vst.msk [vmem:[#allocation4 + $0x1e8] sm:$0xff] %vm6054_vm9, %v5985_v33  ;;  %v8010_v33 = vld [vmem:[#allocation6 + $0x48] sm:$0xff] }
 0x65e   :  { %6115 = vst.msk [vmem:[#allocation4 + $0x1e0] sm:$0xff] %vm6054_vm9, %v5983_v48  ;;  %v9895_v18 = vpop.f32.mrf.mxu1  ;;  %9930 = vmatmul.mubr.msk.f32.gmra.mxu1 %vm6578_vm11, %v6563_v23  ;;  %v7759_v62 = vld [vmem:[#allocation5 + $0x90] sm:$0xff] }
 0x65f   :  { %7645 = vrot.lane.b32.xlu0 %v7758_v14, %s9993_s10  ;;  %7983 = vst.msk [vmem:[#allocation6 + $0xe8] sm:$0xff] %vm7257_vm12, %v7759_v62  ;;  %7344 = vst.msk [vmem:[#allocation6 + $0x120] sm:$0xff] %vm7257_vm12, %v7759_v62  ;;  %7838 = vrot.lane.b32.xlu1 %v7759_v62, %s9994_s6 }
 0x660   :  { %v7007_v53 = vpop.f32.mrf.mxu1  ;;  %v5217_v51 = vpop.permute.xlu1 %5216 }
 0x661   :  { %v7173_v24 = vmax.f32 %v7007_v53, %v9895_v18  ;;  %v6368_v46 = vpop.permute.xlu0 %6367  ;;  %5347 = vst.msk [vmem:[#allocation4 + $0x1f0] sm:$0xff] %vm5284_vm7, %v5217_v51 }
 0x662   :  { %6500 = vst.msk [vmem:[#allocation4 + $0x1e0] sm:$0xff] %vm6439_vm10, %v6368_v46 }
 0x663   :  { %v7210_v7 = vadd.f32 %v13998_v0, %v7173_v24  ;;  %7454 = vrot.lane.b32.xlu0 %v7758_v14, %s9990_s23  ;;  %7647 = vrot.lane.b32.xlu1 %v7759_v62, %s9993_s10 }
 0x664   :  { %v5219_v59 = vpop.permute.xlu1 %5218 }
 0x665   :  { %v7242_v37 = vmax.f32 %v7210_v7, 0.0  ;;  %v6370_v20 = vpop.permute.xlu0 %6369  ;;  %5348 = vst.msk [vmem:[#allocation4 + $0x1f8] sm:$0xff] %vm5284_vm7, %v5219_v59  ;;  %v8012_v7 = vld [vmem:[#allocation6 + $0x58] sm:$0xff] }
 0x666   :  { %6501 = vst.msk [vmem:[#allocation4 + $0x1e8] sm:$0xff] %vm6439_vm10, %v6370_v20 }
 0x667   :  { %7279 = vst.msk [vmem:[#allocation5 + $0x98] sm:$0xff] %vm7257_vm12, %v7242_v37  ;;  %7456 = vrot.lane.b32.xlu1 %v7759_v62, %s9990_s23 }
 0x668   :  { %v5604_v41 = vpop.permute.xlu1 %5603 }
 0x669   :  { %v5602_v15 = vpop.permute.xlu0 %5601  ;;  %v6564_v27 = vld [vmem:[#allocation4 + $0x1e0] sm:$0xff]  ;;  %5733 = vst.msk [vmem:[#allocation4 + $0x1f8] sm:$0xff] %vm5669_vm8, %v5604_v41  ;;  %v8014_v41 = vld [vmem:[#allocation6 + $0x68] sm:$0xff] }
 0x66a   :  { %5732 = vst.msk [vmem:[#allocation4 + $0x1f0] sm:$0xff] %vm5669_vm8, %v5602_v15  ;;  %9932 = vmatprep.mubr.msk.f32.mxu1 %vm6578_vm11, %v6564_v27 }
 0x66c   :  { %v5989_v47 = vpop.permute.xlu1 %5988 }
 0x66d   :  { %v5987_v22 = vpop.permute.xlu0 %5986  ;;  %v6565_v42 = vld [vmem:[#allocation4 + $0x1e8] sm:$0xff]  ;;  %6118 = vst.msk [vmem:[#allocation4 + $0x1f8] sm:$0xff] %vm6054_vm9, %v5989_v47 }
 0x66e   :  { %6117 = vst.msk [vmem:[#allocation4 + $0x1f0] sm:$0xff] %vm6054_vm9, %v5987_v22  ;;  %v9898_v52 = vpop.f32.mrf.mxu1  ;;  %9933 = vmatmul.mubr.msk.f32.gmra.mxu1 %vm6578_vm11, %v6565_v42  ;;  %v7760_v28 = vld [vmem:[#allocation5 + $0x98] sm:$0xff] }
 0x66f   :  { %7840 = vrot.lane.b32.xlu0 %v7760_v28, %s9994_s6  ;;  %7984 = vst.msk [vmem:[#allocation6 + $0xf8] sm:$0xff] %vm7257_vm12, %v7760_v28  ;;  %7345 = vst.msk [vmem:[#allocation6 + $0x130] sm:$0xff] %vm7257_vm12, %v7760_v28 }
 0x670   :  { %v7017_v26 = vpop.f32.mrf.mxu1  ;;  %v6374_v30 = vpop.permute.xlu1 %6373 }
 0x671   :  { %v7174_v16 = vmax.f32 %v7017_v26, %v9898_v52  ;;  %v6372_v11 = vpop.permute.xlu0 %6371  ;;  %6503 = vst.msk [vmem:[#allocation4 + $0x1f8] sm:$0xff] %vm6439_vm10, %v6374_v30 }
 0x672   :  { %6502 = vst.msk [vmem:[#allocation4 + $0x1f0] sm:$0xff] %vm6439_vm10, %v6372_v11 }
 0x673   :  { %v7211_v10 = vadd.f32 %v13998_v0, %v7174_v16  ;;  %7649 = vrot.lane.b32.xlu0 %v7760_v28, %s9993_s10 }
 0x674   :  { %v7616_v31 = vpop.permute.xlu1 %7615 }
 0x675   :  { %v7243_v36 = vmax.f32 %v7211_v10, 0.0  ;;  %v7423_v50 = vpop.permute.xlu0 %7422  ;;  %v8016_v10 = vld [vmem:[#allocation6 + $0x78] sm:$0xff] }
 0x676   :  { %7519 = vst.msk [vmem:[#allocation6] sm:$0xff] %vm7518_vm13, %v7423_v50 }
 0x677   :  { %7280 = vst.msk [vmem:[#allocation5 + $0xa0] sm:$0xff] %vm7257_vm12, %v7243_v36  ;;  %7458 = vrot.lane.b32.xlu0 %v7760_v28, %s9990_s23 }
 0x678   :  { %7712 = vst.msk [vmem:[#allocation6] sm:$0xff] %vm7711_vm14, %v7616_v31  ;;  %v7425_v19 = vpop.permute.xlu1 %7424  ;;  %v6567_v2 = vld [vmem:[#allocation4 + $0x1f8] sm:$0xff] }
 0x679   :  { %v7809_v8 = vpop.permute.xlu0 %7808  ;;  %v6566_v60 = vld [vmem:[#allocation4 + $0x1f0] sm:$0xff]  ;;  %7520 = vst.msk [vmem:[#allocation6 + $0x10] sm:$0xff] %vm7518_vm13, %v7425_v19 }
 0x67a   :  { %7905 = vst.msk [vmem:[#allocation6] sm:$0xff] %vm7904_vm15, %v7809_v8  ;;  %9935 = vmatprep.mubr.msk.f32.mxu1 %vm6578_vm11, %v6566_v60  ;;  %v8018_v8 = vld [vmem:[#allocation6 + $0x88] sm:$0xff] }
 0x67b   :  { %9936 = vmatmul.mubr.msk.f32.gmra.mxu1 %vm6578_vm11, %v6567_v2 }
 0x67c   :  { %9221 = vmatprep.mubr.msk.f32.mxu1 %vm7257_vm12, %v8002_v6  ;;  %v7811_v12 = vpop.permute.xlu1 %7810 }
 0x67d   :  { %v7618_v25 = vpop.permute.xlu0 %7617 }
 0x67e   :  { %7713 = vst.msk [vmem:[#allocation6 + $0x10] sm:$0xff] %vm7711_vm14, %v7618_v25  ;;  %v9901_v57 = vpop.f32.mrf.mxu1  ;;  %v7761_v3 = vld [vmem:[#allocation5 + $0xa0] sm:$0xff] }
 0x67f   :  { %7906 = vst.msk [vmem:[#allocation6 + $0x10] sm:$0xff] %vm7904_vm15, %v7811_v12  ;;  %7842 = vrot.lane.b32.xlu1 %v7761_v3, %s9994_s6 }
 0x680   :  { %7985 = vst.msk [vmem:[#allocation6 + $0x108] sm:$0xff] %vm7257_vm12, %v7761_v3  ;;  %7346 = vst.msk [vmem:[#allocation6 + $0x140] sm:$0xff] %vm7257_vm12, %v7761_v3  ;;  %v7027_v39 = vpop.f32.mrf.mxu1  ;;  %v7620_v34 = vpop.permute.xlu1 %7619 }
 0x681   :  { %v7175_v9 = vmax.f32 %v7027_v39, %v9901_v57  ;;  %v7427_v55 = vpop.permute.xlu0 %7426  ;;  %v8001_v49 = vld [vmem:[#allocation6] sm:$0xff] }
 0x682   :  { %7521 = vst.msk [vmem:[#allocation6 + $0x20] sm:$0xff] %vm7518_vm13, %v7427_v55  ;;  %8246 = vmatmul.mubr.f32.vlgmr.msra.gmra.mxu1 %v8001_v49 }
 0x683   :  { %v7212_v32 = vadd.f32 %v13998_v0, %v7175_v9  ;;  %7714 = vst.msk [vmem:[#allocation6 + $0x20] sm:$0xff] %vm7711_vm14, %v7620_v34  ;;  %7651 = vrot.lane.b32.xlu1 %v7761_v3, %s9993_s10  ;;  %9222 = vmatprep.mubr.msk.f32.mxu1 %vm7257_vm12, %v8004_v38  ;;  %v8020_v9 = vld [vmem:[#allocation6 + $0x98] sm:$0xff] }
 0x684   :  { %v7429_v13 = vpop.permute.xlu1 %7428 }
 0x685   :  { %v7244_v35 = vmax.f32 %v7212_v32, 0.0  ;;  %v7813_v54 = vpop.permute.xlu0 %7812  ;;  %7522 = vst.msk [vmem:[#allocation6 + $0x30] sm:$0xff] %vm7518_vm13, %v7429_v13 }
 0x686   :  { %7907 = vst.msk [vmem:[#allocation6 + $0x20] sm:$0xff] %vm7904_vm15, %v7813_v54  ;;  %v8003_v44 = vld [vmem:[#allocation6 + $0x10] sm:$0xff] }
 0x687   :  { %7281 = vst.msk [vmem:[#allocation5 + $0xa8] sm:$0xff] %vm7257_vm12, %v7244_v35  ;;  %7460 = vrot.lane.b32.xlu1 %v7761_v3, %s9990_s23  ;;  %8251 = vmatmul.mubr.f32.gmra.mxu1 %v8003_v44  ;;  %v8022_v35 = vld [vmem:[#allocation6 + $0xa8] sm:$0xff] }
 0x688   :  { %9223 = vmatprep.mubr.msk.f32.mxu1 %vm7257_vm12, %v8006_v17  ;;  %v7815_v56 = vpop.permute.xlu1 %7814 }
 0x689   :  { %v7622_v14 = vpop.permute.xlu0 %7621 }
 0x68a   :  { %7715 = vst.msk [vmem:[#allocation6 + $0x30] sm:$0xff] %vm7711_vm14, %v7622_v14 }
 0x68b   :  { %7908 = vst.msk [vmem:[#allocation6 + $0x30] sm:$0xff] %vm7904_vm15, %v7815_v56 }
 0x68c   :  { %v7624_v43 = vpop.permute.xlu1 %7623 }
 0x68d   :  { %v7431_v1 = vpop.permute.xlu0 %7430  ;;  %v8005_v45 = vld [vmem:[#allocation6 + $0x20] sm:$0xff] }
 0x68e   :  { %7523 = vst.msk [vmem:[#allocation6 + $0x40] sm:$0xff] %vm7518_vm13, %v7431_v1  ;;  %v9904_v61 = vpop.f32.mrf.mxu1  ;;  %8256 = vmatmul.mubr.f32.gmra.mxu1 %v8005_v45  ;;  %v7762_v58 = vld [vmem:[#allocation5 + $0xa8] sm:$0xff]  ;;  %v8024_v45 = vld [vmem:[#allocation6 + $0xb8] sm:$0xff] }
 0x68f   :  { %7716 = vst.msk [vmem:[#allocation6 + $0x40] sm:$0xff] %vm7711_vm14, %v7624_v43  ;;  %7844 = vrot.lane.b32.xlu0 %v7762_v58, %s9994_s6  ;;  %9224 = vmatprep.mubr.msk.f32.mxu1 %vm7257_vm12, %v8008_v4 }
 0x690   :  { %7986 = vst.msk [vmem:[#allocation6 + $0x118] sm:$0xff] %vm7257_vm12, %v7762_v58  ;;  %7347 = vst.msk [vmem:[#allocation6 + $0x150] sm:$0xff] %vm7257_vm12, %v7762_v58  ;;  %v7037_v29 = vpop.f32.mrf.mxu1  ;;  %v7433_v40 = vpop.permute.xlu1 %7432 }
 0x691   :  { %v7176_v21 = vmax.f32 %v7037_v29, %v9904_v61  ;;  %v7817_v63 = vpop.permute.xlu0 %7816  ;;  %7524 = vst.msk [vmem:[#allocation6 + $0x50] sm:$0xff] %vm7518_vm13, %v7433_v40 }
 0x692   :  { %7909 = vst.msk [vmem:[#allocation6 + $0x40] sm:$0xff] %vm7904_vm15, %v7817_v63  ;;  %v8007_v48 = vld [vmem:[#allocation6 + $0x30] sm:$0xff]  ;;  %v8026_v63 = vld [vmem:[#allocation6 + $0xc8] sm:$0xff] }
 0x693   :  { %v7213_v23 = vadd.f32 %v13998_v0, %v7176_v21  ;;  %7653 = vrot.lane.b32.xlu0 %v7762_v58, %s9993_s10  ;;  %8261 = vmatmul.mubr.f32.gmra.mxu1 %v8007_v48 }
 0x694   :  { %9225 = vmatprep.mubr.msk.f32.mxu1 %vm7257_vm12, %v8010_v33  ;;  %v7819_v53 = vpop.permute.xlu1 %7818 }
 0x695   :  { %v7245_v18 = vmax.f32 %v7213_v23, 0.0  ;;  %v7626_v62 = vpop.permute.xlu0 %7625 }
 0x696   :  { %7717 = vst.msk [vmem:[#allocation6 + $0x50] sm:$0xff] %vm7711_vm14, %v7626_v62 }
 0x697   :  { %7282 = vst.msk [vmem:[#allocation5 + $0xb0] sm:$0xff] %vm7257_vm12, %v7245_v18  ;;  %7462 = vrot.lane.b32.xlu0 %v7762_v58, %s9990_s23 }
 0x698   :  { %7910 = vst.msk [vmem:[#allocation6 + $0x50] sm:$0xff] %vm7904_vm15, %v7819_v53  ;;  %v7628_v51 = vpop.permute.xlu1 %7627  ;;  %v8028_v53 = vld [vmem:[#allocation6 + $0xd8] sm:$0xff] }
 0x699   :  { %v7435_v24 = vpop.permute.xlu0 %7434  ;;  %v8009_v46 = vld [vmem:[#allocation6 + $0x40] sm:$0xff] }
 0x69a   :  { %7525 = vst.msk [vmem:[#allocation6 + $0x60] sm:$0xff] %vm7518_vm13, %v7435_v24  ;;  %8266 = vmatmul.mubr.f32.gmra.mxu1 %v8009_v46 }
 0x69b   :  { %7718 = vst.msk [vmem:[#allocation6 + $0x60] sm:$0xff] %vm7711_vm14, %v7628_v51  ;;  %9226 = vmatprep.mubr.msk.f32.mxu1 %vm7257_vm12, %v8012_v7 }
 0x69c   :  { %v7437_v20 = vpop.permute.xlu1 %7436 }
 0x69d   :  { %v7821_v37 = vpop.permute.xlu0 %7820  ;;  %7526 = vst.msk [vmem:[#allocation6 + $0x70] sm:$0xff] %vm7518_vm13, %v7437_v20  ;;  %v8030_v20 = vld [vmem:[#allocation6 + $0xe8] sm:$0xff] }
 0x69e   :  { %7911 = vst.msk [vmem:[#allocation6 + $0x60] sm:$0xff] %vm7904_vm15, %v7821_v37  ;;  %v9907_v59 = vpop.f32.mrf.mxu1  ;;  %v7763_v15 = vld [vmem:[#allocation5 + $0xb0] sm:$0xff] }
 0x69f   :  { %v8011_v27 = vld [vmem:[#allocation6 + $0x50] sm:$0xff]  ;;  %7846 = vrot.lane.b32.xlu1 %v7763_v15, %s9994_s6  ;;  %7987 = vst.msk [vmem:[#allocation6 + $0x128] sm:$0xff] %vm7257_vm12, %v7763_v15  ;;  %7348 = vst.msk [vmem:[#allocation6 + $0x160] sm:$0xff] %vm7257_vm12, %v7763_v15 }
 0x6a0   :  { %8271 = vmatmul.mubr.f32.gmra.mxu1 %v8011_v27  ;;  %v7047_v22 = vpop.f32.mrf.mxu1  ;;  %v7823_v52 = vpop.permute.xlu1 %7822 }
 0x6a1   :  { %9227 = vmatprep.mubr.msk.f32.mxu1 %vm7257_vm12, %v8014_v41  ;;  %v7177_v42 = vmax.f32 %v7047_v22, %v9907_v59  ;;  %v7630_v47 = vpop.permute.xlu0 %7629 }
 0x6a2   :  { %7719 = vst.msk [vmem:[#allocation6 + $0x70] sm:$0xff] %vm7711_vm14, %v7630_v47 }
 0x6a3   :  { %v7214_v28 = vadd.f32 %v13998_v0, %v7177_v42  ;;  %7912 = vst.msk [vmem:[#allocation6 + $0x70] sm:$0xff] %vm7904_vm15, %v7823_v52  ;;  %7655 = vrot.lane.b32.xlu1 %v7763_v15, %s9993_s10 }
 0x6a4   :  { %v7632_v30 = vpop.permute.xlu1 %7631 }
 0x6a5   :  { %v7246_v26 = vmax.f32 %v7214_v28, 0.0  ;;  %v7439_v16 = vpop.permute.xlu0 %7438  ;;  %v8013_v11 = vld [vmem:[#allocation6 + $0x60] sm:$0xff] }
 0x6a6   :  { %7527 = vst.msk [vmem:[#allocation6 + $0x80] sm:$0xff] %vm7518_vm13, %v7439_v16  ;;  %8276 = vmatmul.mubr.f32.gmra.mxu1 %v8013_v11  ;;  %v8032_v16 = vld [vmem:[#allocation6 + $0xf8] sm:$0xff] }
 0x6a7   :  { %7283 = vst.msk [vmem:[#allocation5 + $0xb8] sm:$0xff] %vm7257_vm12, %v7246_v26  ;;  %7464 = vrot.lane.b32.xlu1 %v7763_v15, %s9990_s23  ;;  %9228 = vmatprep.mubr.msk.f32.mxu1 %vm7257_vm12, %v8016_v10  ;;  %v14283_v15 = vld [vmem:[#allocation5 + $0x110] sm:$0xff]  ;;  %v8034_v10 = vld [vmem:[#allocation6 + $0x108] sm:$0xff] }
 0x6a8   :  { %7720 = vst.msk [vmem:[#allocation6 + $0x80] sm:$0xff] %vm7711_vm14, %v7632_v30  ;;  %v7441_v50 = vpop.permute.xlu1 %7440 }
 0x6a9   :  { %v7825_v36 = vpop.permute.xlu0 %7824  ;;  %7528 = vst.msk [vmem:[#allocation6 + $0x90] sm:$0xff] %vm7518_vm13, %v7441_v50 }
 0x6aa   :  { %7913 = vst.msk [vmem:[#allocation6 + $0x80] sm:$0xff] %vm7904_vm15, %v7825_v36  ;;  %v8015_v31 = vld [vmem:[#allocation6 + $0x70] sm:$0xff] }
 0x6ab   :  { %8281 = vmatmul.mubr.f32.gmra.mxu1 %v8015_v31  ;;  %7999 = vst.msk [vmem:[#allocation6 + $0x1e8] sm:$0xff] %vm7257_vm12, %v14283_v15 }
 0x6ac   :  { %9229 = vmatprep.mubr.msk.f32.mxu1 %vm7257_vm12, %v8018_v8  ;;  %v7827_v19 = vpop.permute.xlu1 %7826 }
 0x6ad   :  { %v7634_v60 = vpop.permute.xlu0 %7633 }
 0x6ae   :  { %7721 = vst.msk [vmem:[#allocation6 + $0x90] sm:$0xff] %vm7711_vm14, %v7634_v60  ;;  %v9910_v2 = vpop.f32.mrf.mxu1  ;;  %v7764_v6 = vld [vmem:[#allocation5 + $0xb8] sm:$0xff] }
 0x6af   :  { %7914 = vst.msk [vmem:[#allocation6 + $0x90] sm:$0xff] %vm7904_vm15, %v7827_v19  ;;  %7848 = vrot.lane.b32.xlu0 %v7764_v6, %s9994_s6 }
 0x6b0   :  { %7988 = vst.msk [vmem:[#allocation6 + $0x138] sm:$0xff] %vm7257_vm12, %v7764_v6  ;;  %7349 = vst.msk [vmem:[#allocation6 + $0x170] sm:$0xff] %vm7257_vm12, %v7764_v6  ;;  %v7057_v25 = vpop.f32.mrf.mxu1  ;;  %v7636_v39 = vpop.permute.xlu1 %7635 }
 0x6b1   :  { %v7178_v12 = vmax.f32 %v7057_v25, %v9910_v2  ;;  %v7443_v57 = vpop.permute.xlu0 %7442  ;;  %v8017_v3 = vld [vmem:[#allocation6 + $0x80] sm:$0xff] }
 0x6b2   :  { %7529 = vst.msk [vmem:[#allocation6 + $0xa0] sm:$0xff] %vm7518_vm13, %v7443_v57  ;;  %8286 = vmatmul.mubr.f32.gmra.mxu1 %v8017_v3  ;;  %v8036_v57 = vld [vmem:[#allocation6 + $0x118] sm:$0xff] }
 0x6b3   :  { %v7215_v55 = vadd.f32 %v13998_v0, %v7178_v12  ;;  %7722 = vst.msk [vmem:[#allocation6 + $0xa0] sm:$0xff] %vm7711_vm14, %v7636_v39  ;;  %7657 = vrot.lane.b32.xlu0 %v7764_v6, %s9993_s10  ;;  %9230 = vmatprep.mubr.msk.f32.mxu1 %vm7257_vm12, %v8020_v9 }
 0x6b4   :  { %v7445_v38 = vpop.permute.xlu1 %7444 }
 0x6b5   :  { %v7247_v49 = vmax.f32 %v7215_v55, 0.0  ;;  %v7829_v34 = vpop.permute.xlu0 %7828  ;;  %7530 = vst.msk [vmem:[#allocation6 + $0xb0] sm:$0xff] %vm7518_vm13, %v7445_v38 }
 0x6b6   :  { %7915 = vst.msk [vmem:[#allocation6 + $0xa0] sm:$0xff] %vm7904_vm15, %v7829_v34  ;;  %v8019_v32 = vld [vmem:[#allocation6 + $0x90] sm:$0xff] }
 0x6b7   :  { %7284 = vst.msk [vmem:[#allocation5 + $0xc0] sm:$0xff] %vm7257_vm12, %v7247_v49  ;;  %7466 = vrot.lane.b32.xlu0 %v7764_v6, %s9990_s23  ;;  %8291 = vmatmul.mubr.f32.gmra.mxu1 %v8019_v32 }
 0x6b8   :  { %9231 = vmatprep.mubr.msk.f32.mxu1 %vm7257_vm12, %v8022_v35  ;;  %v7831_v13 = vpop.permute.xlu1 %7830 }
 0x6b9   :  { %v7638_v54 = vpop.permute.xlu0 %7637 }
 0x6ba   :  { %7723 = vst.msk [vmem:[#allocation6 + $0xb0] sm:$0xff] %vm7711_vm14, %v7638_v54 }
 0x6bb   :  { %7916 = vst.msk [vmem:[#allocation6 + $0xb0] sm:$0xff] %vm7904_vm15, %v7831_v13  ;;  %v8038_v13 = vld [vmem:[#allocation6 + $0x128] sm:$0xff] }
 0x6bc   :  { %v7640_v14 = vpop.permute.xlu1 %7639 }
 0x6bd   :  { %v7447_v44 = vpop.permute.xlu0 %7446  ;;  %v8021_v17 = vld [vmem:[#allocation6 + $0xa0] sm:$0xff] }
 0x6be   :  { %7531 = vst.msk [vmem:[#allocation6 + $0xc0] sm:$0xff] %vm7518_vm13, %v7447_v44  ;;  %v9913_v56 = vpop.f32.mrf.mxu1  ;;  %8296 = vmatmul.mubr.f32.gmra.mxu1 %v8021_v17  ;;  %v7765_v1 = vld [vmem:[#allocation5 + $0xc0] sm:$0xff] }
 0x6bf   :  { %7724 = vst.msk [vmem:[#allocation6 + $0xc0] sm:$0xff] %vm7711_vm14, %v7640_v14  ;;  %7850 = vrot.lane.b32.xlu1 %v7765_v1, %s9994_s6  ;;  %9232 = vmatprep.mubr.msk.f32.mxu1 %vm7257_vm12, %v8024_v45 }
 0x6c0   :  { %7989 = vst.msk [vmem:[#allocation6 + $0x148] sm:$0xff] %vm7257_vm12, %v7765_v1  ;;  %7350 = vst.msk [vmem:[#allocation6 + $0x180] sm:$0xff] %vm7257_vm12, %v7765_v1  ;;  %v7067_v43 = vpop.f32.mrf.mxu1  ;;  %v7449_v4 = vpop.permute.xlu1 %7448 }
 0x6c1   :  { %v7179_v61 = vmax.f32 %v7067_v43, %v9913_v56  ;;  %v7833_v58 = vpop.permute.xlu0 %7832  ;;  %7532 = vst.msk [vmem:[#allocation6 + $0xd0] sm:$0xff] %vm7518_vm13, %v7449_v4 }
 0x6c2   :  { %7917 = vst.msk [vmem:[#allocation6 + $0xc0] sm:$0xff] %vm7904_vm15, %v7833_v58  ;;  %v8023_v29 = vld [vmem:[#allocation6 + $0xb0] sm:$0xff] }
 0x6c3   :  { %v7216_v21 = vadd.f32 %v13998_v0, %v7179_v61  ;;  %7659 = vrot.lane.b32.xlu1 %v7765_v1, %s9993_s10  ;;  %8301 = vmatmul.mubr.f32.gmra.mxu1 %v8023_v29  ;;  %v8040_v29 = vld [vmem:[#allocation6 + $0x138] sm:$0xff] }
 0x6c4   :  { %9233 = vmatprep.mubr.msk.f32.mxu1 %vm7257_vm12, %v8026_v63  ;;  %v7835_v23 = vpop.permute.xlu1 %7834 }
 0x6c5   :  { %v7248_v40 = vmax.f32 %v7216_v21, 0.0  ;;  %v7642_v48 = vpop.permute.xlu0 %7641 }
 0x6c6   :  { %7725 = vst.msk [vmem:[#allocation6 + $0xd0] sm:$0xff] %vm7711_vm14, %v7642_v48 }
 0x6c7   :  { %7285 = vst.msk [vmem:[#allocation5 + $0xc8] sm:$0xff] %vm7257_vm12, %v7248_v40  ;;  %7468 = vrot.lane.b32.xlu1 %v7765_v1, %s9990_s23  ;;  %v14327_v1 = vld [vmem:[%s14922_s2 + $0x1] ss:$0 sm:$0xff] }
 0x6c8   :  { %7918 = vst.msk [vmem:[#allocation6 + $0xd0] sm:$0xff] %vm7904_vm15, %v7835_v23  ;;  %v7644_v62 = vpop.permute.xlu1 %7643 }
 0x6c9   :  { %v7451_v33 = vpop.permute.xlu0 %7450  ;;  %v8025_v18 = vld [vmem:[#allocation6 + $0xc0] sm:$0xff] }
 0x6ca   :  { %7533 = vst.msk [vmem:[#allocation6 + $0xe0] sm:$0xff] %vm7518_vm13, %v7451_v33  ;;  %8306 = vmatmul.mubr.f32.gmra.mxu1 %v8025_v18 }
 0x6cb   :  { %7726 = vst.msk [vmem:[#allocation6 + $0xe0] sm:$0xff] %vm7711_vm14, %v7644_v62  ;;  %9234 = vmatprep.mubr.msk.f32.mxu1 %vm7257_vm12, %v8028_v53 }
 0x6cc   :  { %v7453_v46 = vpop.permute.xlu1 %7452 }
 0x6cd   :  { %v7837_v24 = vpop.permute.xlu0 %7836  ;;  %7534 = vst.msk [vmem:[#allocation6 + $0xf0] sm:$0xff] %vm7518_vm13, %v7453_v46  ;;  %v8042_v46 = vld [vmem:[#allocation6 + $0x148] sm:$0xff] }
 0x6ce   :  { %7919 = vst.msk [vmem:[#allocation6 + $0xe0] sm:$0xff] %vm7904_vm15, %v7837_v24  ;;  %v9916_v51 = vpop.f32.mrf.mxu1  ;;  %v7766_v7 = vld [vmem:[#allocation5 + $0xc8] sm:$0xff] }
 0x6cf   :  { %v8027_v37 = vld [vmem:[#allocation6 + $0xd0] sm:$0xff]  ;;  %7852 = vrot.lane.b32.xlu0 %v7766_v7, %s9994_s6  ;;  %7990 = vst.msk [vmem:[#allocation6 + $0x158] sm:$0xff] %vm7257_vm12, %v7766_v7  ;;  %7351 = vst.msk [vmem:[#allocation6 + $0x190] sm:$0xff] %vm7257_vm12, %v7766_v7 }
 0x6d0   :  { %8311 = vmatmul.mubr.f32.gmra.mxu1 %v8027_v37  ;;  %v7077_v59 = vpop.f32.mrf.mxu1 }
 0x6d1   :  { %9235 = vmatprep.mubr.msk.f32.mxu1 %vm7257_vm12, %v8030_v20  ;;  %v7180_v27 = vmax.f32 %v7077_v59, %v9916_v51  ;;  %v7646_v41 = vpop.permute.xlu0 %7645  ;;  %v7839_v22 = vpop.permute.xlu1 %7838 }
 0x6d2   :  { %7727 = vst.msk [vmem:[#allocation6 + $0xf0] sm:$0xff] %vm7711_vm14, %v7646_v41 }
 0x6d3   :  { %v7217_v42 = vadd.f32 %v13998_v0, %v7180_v27  ;;  %7920 = vst.msk [vmem:[#allocation6 + $0xf0] sm:$0xff] %vm7904_vm15, %v7839_v22  ;;  %7661 = vrot.lane.b32.xlu0 %v7766_v7, %s9993_s10 }
 0x6d5   :  { %v7249_v47 = vmax.f32 %v7217_v42, 0.0  ;;  %v7455_v52 = vpop.permute.xlu0 %7454  ;;  %v8029_v28 = vld [vmem:[#allocation6 + $0xe0] sm:$0xff]  ;;  %v7648_v26 = vpop.permute.xlu1 %7647 }
 0x6d6   :  { %7535 = vst.msk [vmem:[#allocation6 + $0x100] sm:$0xff] %vm7518_vm13, %v7455_v52  ;;  %8316 = vmatmul.mubr.f32.gmra.mxu1 %v8029_v28  ;;  %v8044_v52 = vld [vmem:[#allocation6 + $0x158] sm:$0xff] }
 0x6d7   :  { %7286 = vst.msk [vmem:[#allocation5 + $0xd0] sm:$0xff] %vm7257_vm12, %v7249_v47  ;;  %7470 = vrot.lane.b32.xlu0 %v7766_v7, %s9990_s23  ;;  %9236 = vmatprep.mubr.msk.f32.mxu1 %vm7257_vm12, %v8032_v16 }
 0x6d8   :  { %7728 = vst.msk [vmem:[#allocation6 + $0x100] sm:$0xff] %vm7711_vm14, %v7648_v26 }
 0x6d9   :  { %v7457_v11 = vpop.permute.xlu1 %7456 }
 0x6da   :  { %v8031_v30 = vld [vmem:[#allocation6 + $0xf0] sm:$0xff]  ;;  %7536 = vst.msk [vmem:[#allocation6 + $0x110] sm:$0xff] %vm7518_vm13, %v7457_v11 }
 0x6db   :  { %8321 = vmatmul.mubr.f32.gmra.mxu1 %v8031_v30 }
 0x6dc   :  { %9237 = vmatprep.mubr.msk.f32.mxu1 %vm7257_vm12, %v8034_v10 }
 0x6de   :  { %v9919_v36 = vpop.f32.mrf.mxu1  ;;  %v7767_v50 = vld [vmem:[#allocation5 + $0xd0] sm:$0xff] }
 0x6df   :  { %7854 = vrot.lane.b32.xlu1 %v7767_v50, %s9994_s6  ;;  %7991 = vst.msk [vmem:[#allocation6 + $0x168] sm:$0xff] %vm7257_vm12, %v7767_v50  ;;  %7352 = vst.msk [vmem:[#allocation6 + $0x1a0] sm:$0xff] %vm7257_vm12, %v7767_v50 }
 0x6e0   :  { %v7087_v31 = vpop.f32.mrf.mxu1 }
 0x6e1   :  { %v7181_v8 = vmax.f32 %v7087_v31, %v9919_v36  ;;  %v7841_v60 = vpop.permute.xlu0 %7840 }
 0x6e2   :  { %7921 = vst.msk [vmem:[#allocation6 + $0x100] sm:$0xff] %vm7904_vm15, %v7841_v60 }
 0x6e3   :  { %v7218_v19 = vadd.f32 %v13998_v0, %v7181_v8  ;;  %7663 = vrot.lane.b32.xlu1 %v7767_v50, %s9993_s10 }
 0x6e5   :  { %v7250_v2 = vmax.f32 %v7218_v19, 0.0  ;;  %v7650_v6 = vpop.permute.xlu0 %7649 }
 0x6e6   :  { %7729 = vst.msk [vmem:[#allocation6 + $0x110] sm:$0xff] %vm7711_vm14, %v7650_v6  ;;  %v8046_v60 = vld [vmem:[#allocation6 + $0x168] sm:$0xff] }
 0x6e7   :  { %7287 = vst.msk [vmem:[#allocation5 + $0xd8] sm:$0xff] %vm7257_vm12, %v7250_v2  ;;  %7472 = vrot.lane.b32.xlu1 %v7767_v50, %s9990_s23 }
 0x6e9   :  { %v7459_v25 = vpop.permute.xlu0 %7458  ;;  %v8033_v12 = vld [vmem:[#allocation6 + $0x100] sm:$0xff] }
 0x6ea   :  { %7537 = vst.msk [vmem:[#allocation6 + $0x120] sm:$0xff] %vm7518_vm13, %v7459_v25  ;;  %8326 = vmatmul.mubr.f32.gmra.mxu1 %v8033_v12 }
 0x6eb   :  { %9238 = vmatprep.mubr.msk.f32.mxu1 %vm7257_vm12, %v8036_v57 }
 0x6ee   :  { %v9922_v3 = vpop.f32.mrf.mxu1  ;;  %v7768_v39 = vld [vmem:[#allocation5 + $0xd8] sm:$0xff] }
 0x6ef   :  { %7856 = vrot.lane.b32.xlu0 %v7768_v39, %s9994_s6  ;;  %7992 = vst.msk [vmem:[#allocation6 + $0x178] sm:$0xff] %vm7257_vm12, %v7768_v39  ;;  %7353 = vst.msk [vmem:[#allocation6 + $0x1b0] sm:$0xff] %vm7257_vm12, %v7768_v39 }
 0x6f0   :  { %v7097_v9 = vpop.f32.mrf.mxu1 }
 0x6f1   :  { %v7182_v55 = vmax.f32 %v7097_v9, %v9922_v3  ;;  %v7843_v49 = vpop.permute.xlu1 %7842  ;;  %v7968_v9 = vld [vmem:[#allocation5 + $0x118] sm:$0xff] }
 0x6f2   :  { %7922 = vst.msk [vmem:[#allocation6 + $0x110] sm:$0xff] %vm7904_vm15, %v7843_v49 }
 0x6f3   :  { %v7219_v34 = vadd.f32 %v13998_v0, %v7182_v55  ;;  %7665 = vrot.lane.b32.xlu0 %v7768_v39, %s9993_s10  ;;  %8000 = vst.msk [vmem:[#allocation6 + $0x1f8] sm:$0xff] %vm7257_vm12, %v7968_v9 }
 0x6f5   :  { %v7251_v38 = vmax.f32 %v7219_v34, 0.0  ;;  %v7652_v32 = vpop.permute.xlu1 %7651 }
 0x6f6   :  { %7730 = vst.msk [vmem:[#allocation6 + $0x120] sm:$0xff] %vm7711_vm14, %v7652_v32 }
 0x6f7   :  { %7288 = vst.msk [vmem:[#allocation5 + $0xe0] sm:$0xff] %vm7257_vm12, %v7251_v38  ;;  %7474 = vrot.lane.b32.xlu0 %v7768_v39, %s9990_s23  ;;  %v14381_v38 = vld [vmem:[%s14922_s2 + $0x2] ss:$0 sm:$0xff] }
 0x6f9   :  { %v7461_v35 = vpop.permute.xlu1 %7460  ;;  %v8035_v54 = vld [vmem:[#allocation6 + $0x110] sm:$0xff] }
 0x6fa   :  { %7538 = vst.msk [vmem:[#allocation6 + $0x130] sm:$0xff] %vm7518_vm13, %v7461_v35  ;;  %8331 = vmatmul.mubr.f32.gmra.mxu1 %v8035_v54 }
 0x6fb   :  { %9239 = vmatprep.mubr.msk.f32.mxu1 %vm7257_vm12, %v8038_v13 }
 0x6fe   :  { %v9925_v44 = vpop.f32.mrf.mxu1  ;;  %v7769_v0 = vld [vmem:[#allocation5 + $0xe0] sm:$0xff] }
 0x6ff   :  { %7858 = vrot.lane.b32.xlu1 %v7769_v0, %s9994_s6  ;;  %7993 = vst.msk [vmem:[#allocation6 + $0x188] sm:$0xff] %vm7257_vm12, %v7769_v0  ;;  %7354 = vst.msk [vmem:[#allocation6 + $0x1c0] sm:$0xff] %vm7257_vm12, %v7769_v0 }
 0x700   :  { %v7107_v17 = vpop.f32.mrf.mxu1 }
 0x701   :  { %v7183_v14 = vmax.f32 %v7107_v17, %v9925_v44  ;;  %v7845_v56 = vpop.permute.xlu0 %7844 }
 0x702   :  { %7923 = vst.msk [vmem:[#allocation6 + $0x120] sm:$0xff] %vm7904_vm15, %v7845_v56  ;;  %v8548_v56 = vld [vmem:[%s14921_s1 + $0x210] sm:$0xff] }
 0x703   :  { %v7220_v45 = vadd.f32 %v14327_v1, %v7183_v14  ;;  %7667 = vrot.lane.b32.xlu1 %v7769_v0, %s9993_s10  ;;  %9463 = vmatprep.subr.mxu0 %v8548_v56 }
 0x705   :  { %v7252_v43 = vmax.f32 %v7220_v45, 0.0  ;;  %v7654_v61 = vpop.permute.xlu0 %7653  ;;  %v8547_v45 = vld [vmem:[%s14921_s1 + $0x208] sm:$0xff] }
 0x706   :  { %7731 = vst.msk [vmem:[#allocation6 + $0x130] sm:$0xff] %vm7711_vm14, %v7654_v61  ;;  %v8546_v61 = vld [vmem:[%s14921_s1 + $0x200] sm:$0xff] }
 0x707   :  { %7289 = vst.msk [vmem:[#allocation5 + $0xe8] sm:$0xff] %vm7257_vm12, %v7252_v43  ;;  %7476 = vrot.lane.b32.xlu1 %v7769_v0, %s9990_s23  ;;  %v8048_v0 = vld [vmem:[#allocation6 + $0x178] sm:$0xff] }
 0x709   :  { %v7463_v58 = vpop.permute.xlu0 %7462  ;;  %v8037_v4 = vld [vmem:[#allocation6 + $0x120] sm:$0xff] }
 0x70a   :  { %7539 = vst.msk [vmem:[#allocation6 + $0x140] sm:$0xff] %vm7518_vm13, %v7463_v58  ;;  %8336 = vmatmul.mubr.f32.gmra.mxu1 %v8037_v4  ;;  %v8530_v4 = vld [vmem:[%s14921_s1 + $0x180] sm:$0xff] }
 0x70b   :  { %9240 = vmatprep.mubr.msk.f32.mxu1 %vm7257_vm12, %v8040_v29 }
 0x70e   :  { %v9928_v21 = vpop.f32.mrf.mxu1  ;;  %v7770_v63 = vld [vmem:[#allocation5 + $0xe8] sm:$0xff] }
 0x70f   :  { %7860 = vrot.lane.b32.xlu0 %v7770_v63, %s9994_s6  ;;  %7994 = vst.msk [vmem:[#allocation6 + $0x198] sm:$0xff] %vm7257_vm12, %v7770_v63  ;;  %7355 = vst.msk [vmem:[#allocation6 + $0x1d0] sm:$0xff] %vm7257_vm12, %v7770_v63 }
 0x710   :  { %v7117_v40 = vpop.f32.mrf.mxu1 }
 0x711   :  { %v7184_v48 = vmax.f32 %v7117_v40, %v9928_v21  ;;  %v7847_v23 = vpop.permute.xlu1 %7846  ;;  %v8545_v21 = vld [vmem:[%s14921_s1 + $0x1f8] sm:$0xff] }
 0x712   :  { %7924 = vst.msk [vmem:[#allocation6 + $0x130] sm:$0xff] %vm7904_vm15, %v7847_v23 }
 0x713   :  { %v7221_v33 = vadd.f32 %v14327_v1, %v7184_v48  ;;  %7669 = vrot.lane.b32.xlu0 %v7770_v63, %s9993_s10  ;;  %v8544_v48 = vld [vmem:[%s14921_s1 + $0x1f0] sm:$0xff] }
 0x715   :  { %v7253_v18 = vmax.f32 %v7221_v33, 0.0  ;;  %v7656_v62 = vpop.permute.xlu1 %7655  ;;  %v8528_v33 = vld [vmem:[%s14921_s1 + $0x170] sm:$0xff] }
 0x716   :  { %7732 = vst.msk [vmem:[#allocation6 + $0x140] sm:$0xff] %vm7711_vm14, %v7656_v62 }
 0x717   :  { %7290 = vst.msk [vmem:[#allocation5 + $0xf0] sm:$0xff] %vm7257_vm12, %v7253_v18  ;;  %7478 = vrot.lane.b32.xlu0 %v7770_v63, %s9990_s23  ;;  %v8529_v63 = vld [vmem:[%s14921_s1 + $0x178] sm:$0xff] }
 0x719   :  { %v7465_v53 = vpop.permute.xlu1 %7464  ;;  %v8039_v24 = vld [vmem:[#allocation6 + $0x130] sm:$0xff] }
 0x71a   :  { %7540 = vst.msk [vmem:[#allocation6 + $0x150] sm:$0xff] %vm7518_vm13, %v7465_v53  ;;  %8341 = vmatmul.mubr.f32.gmra.mxu1 %v8039_v24  ;;  %v8543_v53 = vld [vmem:[%s14921_s1 + $0x1e8] sm:$0xff] }
 0x71b   :  { %9241 = vmatprep.mubr.msk.f32.mxu1 %vm7257_vm12, %v8042_v46  ;;  %v8527_v46 = vld [vmem:[%s14921_s1 + $0x168] sm:$0xff] }
 0x71e   :  { %v9931_v51 = vpop.f32.mrf.mxu1  ;;  %v7771_v7 = vld [vmem:[#allocation5 + $0xf0] sm:$0xff] }
 0x71f   :  { %7862 = vrot.lane.b32.xlu1 %v7771_v7, %s9994_s6  ;;  %7995 = vst.msk [vmem:[#allocation6 + $0x1a8] sm:$0xff] %vm7257_vm12, %v7771_v7  ;;  %7356 = vst.msk [vmem:[#allocation6 + $0x1e0] sm:$0xff] %vm7257_vm12, %v7771_v7 }
 0x720   :  { %v7127_v37 = vpop.f32.mrf.mxu1 }
 0x721   :  { %v7185_v20 = vmax.f32 %v7127_v37, %v9931_v51  ;;  %v7849_v59 = vpop.permute.xlu0 %7848 }
 0x722   :  { %7925 = vst.msk [vmem:[#allocation6 + $0x140] sm:$0xff] %vm7904_vm15, %v7849_v59  ;;  %v8050_v59 = vld [vmem:[#allocation6 + $0x188] sm:$0xff] }
 0x723   :  { %v7222_v27 = vadd.f32 %v14327_v1, %v7185_v20  ;;  %7671 = vrot.lane.b32.xlu1 %v7771_v7, %s9993_s10 }
 0x725   :  { %v7254_v41 = vmax.f32 %v7222_v27, 0.0  ;;  %v7658_v22 = vpop.permute.xlu0 %7657  ;;  %v8542_v27 = vld [vmem:[%s14921_s1 + $0x1e0] sm:$0xff] }
 0x726   :  { %7733 = vst.msk [vmem:[#allocation6 + $0x150] sm:$0xff] %vm7711_vm14, %v7658_v22 }
 0x727   :  { %7291 = vst.msk [vmem:[#allocation5 + $0xf8] sm:$0xff] %vm7257_vm12, %v7254_v41  ;;  %7480 = vrot.lane.b32.xlu1 %v7771_v7, %s9990_s23  ;;  %v8526_v41 = vld [vmem:[%s14921_s1 + $0x160] sm:$0xff] }
 0x729   :  { %v7467_v42 = vpop.permute.xlu0 %7466  ;;  %v8041_v47 = vld [vmem:[#allocation6 + $0x140] sm:$0xff] }
 0x72a   :  { %7541 = vst.msk [vmem:[#allocation6 + $0x160] sm:$0xff] %vm7518_vm13, %v7467_v42  ;;  %8346 = vmatmul.mubr.f32.gmra.mxu1 %v8041_v47  ;;  %v8541_v42 = vld [vmem:[%s14921_s1 + $0x1d8] sm:$0xff] }
 0x72b   :  { %9242 = vmatprep.mubr.msk.f32.mxu1 %vm7257_vm12, %v8044_v52  ;;  %v8525_v47 = vld [vmem:[%s14921_s1 + $0x158] sm:$0xff]  ;;  %v8540_v52 = vld [vmem:[%s14921_s1 + $0x1d0] sm:$0xff] }
 0x72e   :  { %v9934_v28 = vpop.f32.mrf.mxu1  ;;  %v7772_v26 = vld [vmem:[#allocation5 + $0xf8] sm:$0xff] }
 0x72f   :  { %7864 = vrot.lane.b32.xlu0 %v7772_v26, %s9994_s6  ;;  %7996 = vst.msk [vmem:[#allocation6 + $0x1b8] sm:$0xff] %vm7257_vm12, %v7772_v26  ;;  %7357 = vst.msk [vmem:[#allocation6 + $0x1f0] sm:$0xff] %vm7257_vm12, %v7772_v26 }
 0x730   :  { %v7137_v16 = vpop.f32.mrf.mxu1 }
 0x731   :  { %v7186_v11 = vmax.f32 %v7137_v16, %v9934_v28  ;;  %v7851_v30 = vpop.permute.xlu1 %7850  ;;  %v8539_v16 = vld [vmem:[%s14921_s1 + $0x1c8] sm:$0xff] }
 0x732   :  { %7926 = vst.msk [vmem:[#allocation6 + $0x150] sm:$0xff] %vm7904_vm15, %v7851_v30 }
 0x733   :  { %v7223_v10 = vadd.f32 %v14327_v1, %v7186_v11  ;;  %7673 = vrot.lane.b32.xlu0 %v7772_v26, %s9993_s10  ;;  %v8523_v11 = vld [vmem:[%s14921_s1 + $0x148] sm:$0xff] }
 0x735   :  { %v7255_v36 = vmax.f32 %v7223_v10, 0.0  ;;  %v7660_v50 = vpop.permute.xlu1 %7659 }
 0x736   :  { %7734 = vst.msk [vmem:[#allocation6 + $0x160] sm:$0xff] %vm7711_vm14, %v7660_v50  ;;  %v8538_v50 = vld [vmem:[%s14921_s1 + $0x1c0] sm:$0xff] }
 0x737   :  { %7292 = vst.msk [vmem:[#allocation5 + $0x100] sm:$0xff] %vm7257_vm12, %v7255_v36  ;;  %7482 = vrot.lane.b32.xlu0 %v7772_v26, %s9990_s23  ;;  %v8524_v26 = vld [vmem:[%s14921_s1 + $0x150] sm:$0xff] }
 0x739   :  { %v7469_v31 = vpop.permute.xlu1 %7468  ;;  %v8043_v8 = vld [vmem:[#allocation6 + $0x150] sm:$0xff] }
 0x73a   :  { %7542 = vst.msk [vmem:[#allocation6 + $0x170] sm:$0xff] %vm7518_vm13, %v7469_v31  ;;  %8351 = vmatmul.mubr.f32.gmra.mxu1 %v8043_v8  ;;  %v8522_v31 = vld [vmem:[%s14921_s1 + $0x140] sm:$0xff] }
 0x73b   :  { %v9937_v19 = vpop.f32.mrf.mxu1  ;;  %9243 = vmatprep.mubr.msk.f32.mxu1 %vm7257_vm12, %v8046_v60  ;;  %v8537_v60 = vld [vmem:[%s14921_s1 + $0x1b8] sm:$0xff] }
 0x73d   :  { %v7147_v2 = vpop.f32.mrf.mxu1 }
 0x73e   :  { %v7187_v6 = vmax.f32 %v7147_v2, %v9937_v19  ;;  %v7773_v25 = vld [vmem:[#allocation5 + $0x100] sm:$0xff] }
 0x73f   :  { %7866 = vrot.lane.b32.xlu1 %v7773_v25, %s9994_s6  ;;  %7997 = vst.msk [vmem:[#allocation6 + $0x1c8] sm:$0xff] %vm7257_vm12, %v7773_v25 }
 0x740   :  { %v7224_v12 = vadd.f32 %v14327_v1, %v7187_v6  ;;  %v8532_v1 = vld [vmem:[%s14921_s1 + $0x190] sm:$0xff]  ;;  %v8521_v6 = vld [vmem:[%s14921_s1 + $0x138] sm:$0xff] }
 0x741   :  { %v7853_v57 = vpop.permute.xlu0 %7852  ;;  %9464 = vmatpush3.msra.mxu0 %v8532_v1 }
 0x742   :  { %v7256_v3 = vmax.f32 %v7224_v12, 0.0  ;;  %7927 = vst.msk [vmem:[#allocation6 + $0x160] sm:$0xff] %vm7904_vm15, %v7853_v57  ;;  %v8247_v39 = vpop.f32.mrf.mxu1  ;;  %9465 = vmatprep.subr.mxu0 %v8547_v45  ;;  %v8520_v12 = vld [vmem:[%s14921_s1 + $0x130] sm:$0xff] }
 0x743   :  { %7675 = vrot.lane.b32.xlu1 %v7773_v25, %s9993_s10 }
 0x744   :  { %7293 = vst.msk [vmem:[#allocation5 + $0x108] sm:$0xff] %vm7257_vm12, %v7256_v3  ;;  %v8249_v55 = vpop.f32.mrf.mxu1  ;;  %v8535_v3 = vld [vmem:[%s14921_s1 + $0x1a8] sm:$0xff] }
 0x745   :  { %v7662_v49 = vpop.permute.xlu0 %7661 }
 0x746   :  { %7735 = vst.msk [vmem:[#allocation6 + $0x170] sm:$0xff] %vm7711_vm14, %v7662_v49 }
 0x747   :  { %7484 = vrot.lane.b32.xlu1 %v7773_v25, %s9990_s23  ;;  %v8252_v34 = vpop.f32.mrf.mxu1  ;;  %v8536_v25 = vld [vmem:[%s14921_s1 + $0x1b0] sm:$0xff] }
 0x748   :  { %v8406_v32 = vmax.f32 %v8247_v39, %v8252_v34  ;;  %v8519_v39 = vld [vmem:[%s14921_s1 + $0x128] sm:$0xff]  ;;  %v8052_v34 = vld [vmem:[#allocation6 + $0x198] sm:$0xff] }
 0x749   :  { %v7471_v35 = vpop.permute.xlu0 %7470  ;;  %v8254_v54 = vpop.f32.mrf.mxu1  ;;  %v8045_v13 = vld [vmem:[#allocation6 + $0x160] sm:$0xff] }
 0x74a   :  { %v8427_v44 = vadd.f32 %v14381_v38, %v8406_v32  ;;  %7543 = vst.msk [vmem:[#allocation6 + $0x180] sm:$0xff] %vm7518_vm13, %v7471_v35  ;;  %8356 = vmatmul.mubr.f32.gmra.mxu1 %v8045_v13  ;;  %v8534_v32 = vld [vmem:[%s14921_s1 + $0x1a0] sm:$0xff] }
 0x74b   :  { %9244 = vmatprep.mubr.msk.f32.mxu1 %vm7257_vm12, %v8048_v0  ;;  %v7774_v17 = vld [vmem:[#allocation5 + $0x108] sm:$0xff]  ;;  %7870 = vrot.lane.b32.xlu1 %v14283_v15, %s9994_s6  ;;  %v8518_v35 = vld [vmem:[%s14921_s1 + $0x120] sm:$0xff]  ;;  %v8517_v0 = vld [vmem:[%s14921_s1 + $0x118] sm:$0xff] }
 0x74c   :  { %v8443_v14 = vmax.f32 %v8427_v44, 0.0  ;;  %7868 = vrot.lane.b32.xlu0 %v7774_v17, %s9994_s6  ;;  %7998 = vst.msk [vmem:[#allocation6 + $0x1d8] sm:$0xff] %vm7257_vm12, %v7774_v17  ;;  %v8531_v15 = vld [vmem:[%s14921_s1 + $0x188] sm:$0xff]  ;;  %v8533_v44 = vld [vmem:[%s14921_s1 + $0x198] sm:$0xff] }
 0x74d   :  { %9466 = vmatpush3.msra.mxu0 %v8531_v15 }
 0x74e   :  { %v8257_v43 = vpop.f32.mrf.mxu1  ;;  %8460 = vst.msk [vmem:[#allocation7] sm:$0xff] %vm8459_vm0, %v8443_v14  ;;  %9467 = vmatprep.subr.mxu0 %v8546_v61 }
 0x74f   :  { %9468 = vmatpush3.msra.mxu0 %v8530_v4 }
 0x750   :  { %7677 = vrot.lane.b32.xlu0 %v7774_v17, %s9993_s10  ;;  %v8259_v58 = vpop.f32.mrf.mxu1  ;;  %9469 = vmatprep.subr.mxu0 %v8545_v21 }
 0x751   :  { %v7855_v29 = vpop.permute.xlu1 %7854  ;;  %9470 = vmatpush3.msra.mxu0 %v8529_v63 }
 0x752   :  { %7928 = vst.msk [vmem:[#allocation6 + $0x170] sm:$0xff] %vm7904_vm15, %v7855_v29  ;;  %9471 = vmatprep.subr.mxu0 %v8544_v48 }
 0x753   :  { %v8262_v40 = vpop.f32.mrf.mxu1  ;;  %9472 = vmatpush3.msra.mxu0 %v8528_v33  ;;  %v8580_v33 = vld [vmem:[%s14921_s1 + $0x310] sm:$0xff] }
 0x754   :  { %v8407_v23 = vmax.f32 %v8257_v43, %v8262_v40  ;;  %9473 = vmatprep.subr.mxu0 %v8543_v53  ;;  %v8054_v40 = vld [vmem:[#allocation6 + $0x1a8] sm:$0xff]  ;;  %9498 = vmatprep.subr.mxu1 %v8580_v33 }
 0x755   :  { %v8264_v18 = vpop.f32.mrf.mxu1  ;;  %v7664_v62 = vpop.permute.xlu1 %7663  ;;  %9474 = vmatpush3.msra.mxu0 %v8527_v46  ;;  %v8579_v53 = vld [vmem:[%s14921_s1 + $0x308] sm:$0xff] }
 0x756   :  { %v8428_v24 = vadd.f32 %v14381_v38, %v8407_v23  ;;  %7736 = vst.msk [vmem:[#allocation6 + $0x180] sm:$0xff] %vm7711_vm14, %v7664_v62  ;;  %9475 = vmatprep.subr.mxu0 %v8542_v27  ;;  %v8564_v18 = vld [vmem:[%s14921_s1 + $0x290] sm:$0xff]  ;;  %v8563_v46 = vld [vmem:[%s14921_s1 + $0x288] sm:$0xff] }
 0x757   :  { %9476 = vmatpush3.msra.mxu0 %v8526_v41  ;;  %9499 = vmatpush3.msra.mxu1 %v8564_v18  ;;  %v8576_v41 = vld [vmem:[%s14921_s1 + $0x2f0] sm:$0xff] }
 0x758   :  { %v8444_v51 = vmax.f32 %v8428_v24, 0.0  ;;  %9477 = vmatprep.subr.mxu0 %v8541_v42  ;;  %9500 = vmatprep.subr.mxu1 %v8579_v53 }
 0x759   :  { %v7473_v7 = vpop.permute.xlu1 %7472  ;;  %v8047_v37 = vld [vmem:[#allocation6 + $0x170] sm:$0xff]  ;;  %9478 = vmatpush3.msra.mxu0 %v8525_v47  ;;  %9501 = vmatpush3.msra.mxu1 %v8563_v46  ;;  %v8060_v46 = vld [vmem:[#allocation6 + $0x1d8] sm:$0xff] }
 0x75a   :  { %7544 = vst.msk [vmem:[#allocation6 + $0x190] sm:$0xff] %vm7518_vm13, %v7473_v7  ;;  %8462 = vrot.lane.b32.xlu1 %v8444_v51, %s9993_s10  ;;  %v8267_v20 = vpop.f32.mrf.mxu1  ;;  %8361 = vmatmul.mubr.f32.gmra.mxu1 %v8047_v37  ;;  %v8578_v51 = vld [vmem:[%s14921_s1 + $0x300] sm:$0xff]  ;;  %v8577_v37 = vld [vmem:[%s14921_s1 + $0x2f8] sm:$0xff]  ;;  %v8560_v47 = vld [vmem:[%s14921_s1 + $0x270] sm:$0xff] }
 0x75b   :  { %9245 = vmatprep.mubr.msk.f32.mxu1 %vm7257_vm12, %v8050_v59  ;;  %9479 = vmatprep.subr.mxu0 %v8540_v52  ;;  %v8562_v7 = vld [vmem:[%s14921_s1 + $0x280] sm:$0xff]  ;;  %v8561_v59 = vld [vmem:[%s14921_s1 + $0x278] sm:$0xff] }
 0x75c   :  { %v8269_v22 = vpop.f32.mrf.mxu1  ;;  %9480 = vmatpush3.msra.mxu0 %v8524_v26  ;;  %9502 = vmatprep.subr.mxu1 %v8578_v51 }
 0x75d   :  { %9481 = vmatprep.subr.mxu0 %v8539_v16  ;;  %9503 = vmatpush3.msra.mxu1 %v8562_v7  ;;  %v8559_v16 = vld [vmem:[%s14921_s1 + $0x268] sm:$0xff] }
 0x75e   :  { %9482 = vmatpush3.msra.mxu0 %v8523_v11  ;;  %9504 = vmatprep.subr.mxu1 %v8577_v37 }
 0x75f   :  { %9483 = vmatprep.subr.mxu0 %v8538_v50  ;;  %9505 = vmatpush3.msra.mxu1 %v8561_v59  ;;  %v8574_v50 = vld [vmem:[%s14921_s1 + $0x2e0] sm:$0xff] }
 0x760   :  { %v8272_v28 = vpop.f32.mrf.mxu1  ;;  %9484 = vmatpush3.msra.mxu0 %v8522_v31  ;;  %9506 = vmatprep.subr.mxu1 %v8576_v41  ;;  %v8558_v31 = vld [vmem:[%s14921_s1 + $0x260] sm:$0xff] }
 0x761   :  { %v8408_v30 = vmax.f32 %v8267_v20, %v8272_v28  ;;  %v7857_v10 = vpop.permute.xlu0 %7856  ;;  %9485 = vmatprep.subr.mxu0 %v8537_v60  ;;  %v8575_v28 = vld [vmem:[%s14921_s1 + $0x2e8] sm:$0xff]  ;;  %9507 = vmatpush3.msra.mxu1 %v8560_v47  ;;  %v8573_v60 = vld [vmem:[%s14921_s1 + $0x2d8] sm:$0xff] }
 0x762   :  { %v8274_v36 = vpop.f32.mrf.mxu1  ;;  %7929 = vst.msk [vmem:[#allocation6 + $0x180] sm:$0xff] %vm7904_vm15, %v7857_v10  ;;  %9486 = vmatpush3.msra.mxu0 %v8521_v6  ;;  %9508 = vmatprep.subr.mxu1 %v8575_v28  ;;  %v8556_v6 = vld [vmem:[%s14921_s1 + $0x250] sm:$0xff] }
 0x763   :  { %v8429_v8 = vadd.f32 %v14381_v38, %v8408_v30  ;;  %9487 = vmatprep.subr.mxu0 %v8536_v25  ;;  %v8056_v36 = vld [vmem:[#allocation6 + $0x1b8] sm:$0xff]  ;;  %9509 = vmatpush3.msra.mxu1 %v8559_v16 }
 0x764   :  { %9488 = vmatpush3.msra.mxu0 %v8520_v12  ;;  %9510 = vmatprep.subr.mxu1 %v8574_v50  ;;  %v8571_v12 = vld [vmem:[%s14921_s1 + $0x2c8] sm:$0xff] }
 0x765   :  { %v8445_v19 = vmax.f32 %v8429_v8, 0.0  ;;  %v7666_v2 = vpop.permute.xlu0 %7665  ;;  %9489 = vmatprep.subr.mxu0 %v8535_v3  ;;  %9511 = vmatpush3.msra.mxu1 %v8558_v31  ;;  %v8555_v3 = vld [vmem:[%s14921_s1 + $0x248] sm:$0xff] }
 0x766   :  { %7737 = vst.msk [vmem:[#allocation6 + $0x190] sm:$0xff] %vm7711_vm14, %v7666_v2  ;;  %v8277_v57 = vpop.f32.mrf.mxu1  ;;  %9490 = vmatpush3.msra.mxu0 %v8519_v39  ;;  %v8572_v2 = vld [vmem:[%s14921_s1 + $0x2d0] sm:$0xff]  ;;  %9512 = vmatprep.subr.mxu1 %v8573_v60 }
 0x767   :  { %8467 = vst.msk [vmem:[#allocation7 + $0x8] sm:$0xff] %vm8459_vm0, %v8445_v19  ;;  %9491 = vmatprep.subr.mxu0 %v8534_v32  ;;  %v8557_v19 = vld [vmem:[%s14921_s1 + $0x258] sm:$0xff] }
 0x768   :  { %v8279_v9 = vpop.f32.mrf.mxu1  ;;  %9492 = vmatpush3.msra.mxu0 %v8518_v35  ;;  %9513 = vmatpush3.msra.mxu1 %v8557_v19  ;;  %v8569_v32 = vld [vmem:[%s14921_s1 + $0x2b8] sm:$0xff] }
 0x769   :  { %v7475_v55 = vpop.permute.xlu0 %7474  ;;  %v8049_v49 = vld [vmem:[#allocation6 + $0x180] sm:$0xff]  ;;  %9493 = vmatprep.subr.mxu0 %v8533_v44  ;;  %9514 = vmatprep.subr.mxu1 %v8572_v2  ;;  %v8568_v44 = vld [vmem:[%s14921_s1 + $0x2b0] sm:$0xff] }
 0x76a   :  { %7545 = vst.msk [vmem:[#allocation6 + $0x1a0] sm:$0xff] %vm7518_vm13, %v7475_v55  ;;  %8366 = vmatmul.mubr.f32.gmra.mxu1 %v8049_v49  ;;  %9494 = vmatpush3.msra.mxu0 %v8517_v0  ;;  %v8570_v55 = vld [vmem:[%s14921_s1 + $0x2c0] sm:$0xff] }
 0x76b   :  { %v8282_v54 = vpop.f32.mrf.mxu1  ;;  %9246 = vmatprep.mubr.msk.f32.mxu1 %vm7257_vm12, %v8052_v34  ;;  %9515 = vmatpush3.msra.mxu1 %v8556_v6  ;;  %v8554_v34 = vld [vmem:[%s14921_s1 + $0x240] sm:$0xff] }
 0x76c   :  { %v8409_v13 = vmax.f32 %v8277_v57, %v8282_v54  ;;  %9516 = vmatprep.subr.mxu1 %v8571_v12 }
 0x76d   :  { %v8284_v17 = vpop.f32.mrf.mxu1  ;;  %9517 = vmatpush3.msra.mxu1 %v8555_v3 }
 0x76e   :  { %v8430_v14 = vadd.f32 %v14381_v38, %v8409_v13  ;;  %9518 = vmatprep.subr.mxu1 %v8570_v55  ;;  %v8553_v13 = vld [vmem:[%s14921_s1 + $0x238] sm:$0xff]  ;;  %v8552_v17 = vld [vmem:[%s14921_s1 + $0x230] sm:$0xff] }
 0x76f   :  { %9519 = vmatpush3.msra.mxu1 %v8554_v34 }
 0x770   :  { %v8446_v56 = vmax.f32 %v8430_v14, 0.0  ;;  %9520 = vmatprep.subr.mxu1 %v8569_v32  ;;  %v8567_v14 = vld [vmem:[%s14921_s1 + $0x2a8] sm:$0xff] }
 0x771   :  { %v7859_v1 = vpop.permute.xlu1 %7858  ;;  %9521 = vmatpush3.msra.mxu1 %v8553_v13 }
 0x772   :  { %7930 = vst.msk [vmem:[#allocation6 + $0x190] sm:$0xff] %vm7904_vm15, %v7859_v1  ;;  %8469 = vrot.lane.b32.xlu0 %v8446_v56, %s9993_s10  ;;  %v8287_v45 = vpop.f32.mrf.mxu1  ;;  %9522 = vmatprep.subr.mxu1 %v8568_v44  ;;  %v8551_v1 = vld [vmem:[%s14921_s1 + $0x228] sm:$0xff] }
 0x773   :  { %9523 = vmatpush3.msra.mxu1 %v8552_v17  ;;  %v8611_v44 = vld [vmem:[%s14921_s1 + $0x408] sm:$0xff]  ;;  %v8610_v17 = vld [vmem:[%s14921_s1 + $0x400] sm:$0xff] }
 0x774   :  { %v8289_v43 = vpop.f32.mrf.mxu1  ;;  %9524 = vmatprep.subr.mxu1 %v8567_v14  ;;  %v8594_v14 = vld [vmem:[%s14921_s1 + $0x380] sm:$0xff] }
 0x775   :  { %v7668_v15 = vpop.permute.xlu1 %7667  ;;  %9525 = vmatpush3.msra.mxu1 %v8551_v1  ;;  %v8593_v1 = vld [vmem:[%s14921_s1 + $0x378] sm:$0xff] }
 0x776   :  { %7738 = vst.msk [vmem:[#allocation6 + $0x1a0] sm:$0xff] %vm7711_vm14, %v7668_v15  ;;  %v8058_v15 = vld [vmem:[#allocation6 + $0x1c8] sm:$0xff] }
 0x777   :  { %v8292_v61 = vpop.f32.mrf.mxu1 }
 0x778   :  { %v8410_v58 = vmax.f32 %v8287_v45, %v8292_v61  ;;  %v8566_v61 = vld [vmem:[%s14921_s1 + $0x2a0] sm:$0xff] }
 0x779   :  { %v8294_v4 = vpop.f32.mrf.mxu1  ;;  %v7477_v29 = vpop.permute.xlu1 %7476  ;;  %v8051_v21 = vld [vmem:[#allocation6 + $0x190] sm:$0xff]  ;;  %9526 = vmatprep.subr.mxu1 %v8566_v61  ;;  %v8591_v61 = vld [vmem:[%s14921_s1 + $0x368] sm:$0xff] }
 0x77a   :  { %v8431_v63 = vadd.f32 %v14381_v38, %v8410_v58  ;;  %7546 = vst.msk [vmem:[#allocation6 + $0x1b0] sm:$0xff] %vm7518_vm13, %v7477_v29  ;;  %8371 = vmatmul.mubr.f32.gmra.mxu1 %v8051_v21  ;;  %v8550_v4 = vld [vmem:[%s14921_s1 + $0x220] sm:$0xff]  ;;  %v8565_v21 = vld [vmem:[%s14921_s1 + $0x298] sm:$0xff] }
 0x77b   :  { %9247 = vmatprep.mubr.msk.f32.mxu1 %vm7257_vm12, %v8054_v40  ;;  %9527 = vmatpush3.msra.mxu1 %v8550_v4  ;;  %v8549_v40 = vld [vmem:[%s14921_s1 + $0x218] sm:$0xff]  ;;  %v8590_v4 = vld [vmem:[%s14921_s1 + $0x360] sm:$0xff] }
 0x77c   :  { %v8447_v48 = vmax.f32 %v8431_v63, 0.0  ;;  %9528 = vmatprep.subr.mxu1 %v8565_v21 }
 0x77d   :  { %9529 = vmatpush3.msra.mxu1 %v8549_v40  ;;  %v8589_v40 = vld [vmem:[%s14921_s1 + $0x358] sm:$0xff] }
 0x77e   :  { %v8297_v23 = vpop.f32.mrf.mxu1  ;;  %8473 = vst.msk [vmem:[#allocation7 + $0x10] sm:$0xff] %vm8459_vm0, %v8447_v48 }
 0x780   :  { %v8299_v62 = vpop.f32.mrf.mxu1 }
 0x781   :  { %v7861_v24 = vpop.permute.xlu0 %7860 }
 0x782   :  { %7931 = vst.msk [vmem:[#allocation6 + $0x1a0] sm:$0xff] %vm7904_vm15, %v7861_v24 }
 0x783   :  { %v8302_v20 = vpop.f32.mrf.mxu1 }
 0x784   :  { %v8411_v27 = vmax.f32 %v8297_v23, %v8302_v20  ;;  %v8062_v20 = vld [vmem:[#allocation6 + $0x1e8] sm:$0xff] }
 0x785   :  { %v7670_v22 = vpop.permute.xlu0 %7669  ;;  %v8304_v42 = vpop.f32.mrf.mxu1 }
 0x786   :  { %v8432_v52 = vadd.f32 %v14381_v38, %v8411_v27  ;;  %7739 = vst.msk [vmem:[#allocation6 + $0x1b0] sm:$0xff] %vm7711_vm14, %v7670_v22 }
 0x788   :  { %v8448_v26 = vmax.f32 %v8432_v52, 0.0 }
 0x789   :  { %v7479_v11 = vpop.permute.xlu0 %7478  ;;  %v8053_v30 = vld [vmem:[#allocation6 + $0x1a0] sm:$0xff] }
 0x78a   :  { %7547 = vst.msk [vmem:[#allocation6 + $0x1c0] sm:$0xff] %vm7518_vm13, %v7479_v11  ;;  %8475 = vrot.lane.b32.xlu1 %v8448_v26, %s9993_s10  ;;  %v8307_v10 = vpop.f32.mrf.mxu1  ;;  %8376 = vmatmul.mubr.f32.gmra.mxu1 %v8053_v30  ;;  %v8064_v11 = vld [vmem:[#allocation6 + $0x1f8] sm:$0xff] }
 0x78b   :  { %9248 = vmatprep.mubr.msk.f32.mxu1 %vm7257_vm12, %v8056_v36 }
 0x78c   :  { %v8309_v8 = vpop.f32.mrf.mxu1 }
 0x790   :  { %v8312_v25 = vpop.f32.mrf.mxu1 }
 0x791   :  { %v8412_v57 = vmax.f32 %v8307_v10, %v8312_v25  ;;  %v7863_v9 = vpop.permute.xlu1 %7862 }
 0x792   :  { %v8314_v39 = vpop.f32.mrf.mxu1  ;;  %7932 = vst.msk [vmem:[#allocation6 + $0x1b0] sm:$0xff] %vm7904_vm15, %v7863_v9 }
 0x793   :  { %v8433_v49 = vadd.f32 %v14381_v38, %v8412_v57 }
 0x795   :  { %v8449_v35 = vmax.f32 %v8433_v49, 0.0  ;;  %v7672_v54 = vpop.permute.xlu1 %7671 }
 0x796   :  { %7740 = vst.msk [vmem:[#allocation6 + $0x1c0] sm:$0xff] %vm7711_vm14, %v7672_v54  ;;  %v8317_v0 = vpop.f32.mrf.mxu1  ;;  %v8596_v54 = vld [vmem:[%s14921_s1 + $0x390] sm:$0xff] }
 0x797   :  { %8479 = vst.msk [vmem:[#allocation7 + $0x18] sm:$0xff] %vm8459_vm0, %v8449_v35  ;;  %v8612_v35 = vld [vmem:[%s14921_s1 + $0x410] sm:$0xff] }
 0x798   :  { %v8319_v56 = vpop.f32.mrf.mxu1  ;;  %9533 = vmatprep.subr.mxu0 %v8612_v35  ;;  %v8642_v35 = vld [vmem:[%s14921_s1 + $0x500] sm:$0xff] }
 0x799   :  { %v7481_v45 = vpop.permute.xlu1 %7480  ;;  %v8055_v43 = vld [vmem:[#allocation6 + $0x1b0] sm:$0xff]  ;;  %v8609_v56 = vld [vmem:[%s14921_s1 + $0x3f8] sm:$0xff] }
 0x79a   :  { %7548 = vst.msk [vmem:[#allocation6 + $0x1d0] sm:$0xff] %vm7518_vm13, %v7481_v45  ;;  %8381 = vmatmul.mubr.f32.gmra.mxu1 %v8055_v43  ;;  %v8608_v45 = vld [vmem:[%s14921_s1 + $0x3f0] sm:$0xff] }
 0x79b   :  { %v8322_v58 = vpop.f32.mrf.mxu1  ;;  %9249 = vmatprep.mubr.msk.f32.mxu1 %vm7257_vm12, %v8058_v15  ;;  %v8592_v43 = vld [vmem:[%s14921_s1 + $0x370] sm:$0xff]  ;;  %v8607_v15 = vld [vmem:[%s14921_s1 + $0x3e8] sm:$0xff] }
 0x79c   :  { %v8413_v29 = vmax.f32 %v8317_v0, %v8322_v58  ;;  %v8595_v0 = vld [vmem:[%s14921_s1 + $0x388] sm:$0xff]  ;;  %v8606_v58 = vld [vmem:[%s14921_s1 + $0x3e0] sm:$0xff] }
 0x79d   :  { %v8324_v63 = vpop.f32.mrf.mxu1 }
 0x79e   :  { %v8434_v48 = vadd.f32 %v14381_v38, %v8413_v29  ;;  %v8605_v29 = vld [vmem:[%s14921_s1 + $0x3d8] sm:$0xff] }
 0x7a0   :  { %v8450_v23 = vmax.f32 %v8434_v48, 0.0  ;;  %v8604_v48 = vld [vmem:[%s14921_s1 + $0x3d0] sm:$0xff] }
 0x7a1   :  { %v7865_v33 = vpop.permute.xlu0 %7864 }
 0x7a2   :  { %7933 = vst.msk [vmem:[#allocation6 + $0x1c0] sm:$0xff] %vm7904_vm15, %v7865_v33  ;;  %8481 = vrot.lane.b32.xlu0 %v8450_v23, %s9993_s10  ;;  %v8588_v23 = vld [vmem:[%s14921_s1 + $0x350] sm:$0xff]  ;;  %v8603_v33 = vld [vmem:[%s14921_s1 + $0x3c8] sm:$0xff] }
 0x7a5   :  { %v7674_v18 = vpop.permute.xlu0 %7673 }
 0x7a6   :  { %7741 = vst.msk [vmem:[#allocation6 + $0x1d0] sm:$0xff] %vm7711_vm14, %v7674_v18  ;;  %v8587_v18 = vld [vmem:[%s14921_s1 + $0x348] sm:$0xff] }
 0x7a9   :  { %v7483_v62 = vpop.permute.xlu0 %7482  ;;  %v8057_v53 = vld [vmem:[#allocation6 + $0x1c0] sm:$0xff] }
 0x7aa   :  { %7549 = vst.msk [vmem:[#allocation6 + $0x1e0] sm:$0xff] %vm7518_vm13, %v7483_v62  ;;  %v8327_v24 = vpop.f32.mrf.mxu1  ;;  %8386 = vmatmul.mubr.f32.gmra.mxu1 %v8057_v53  ;;  %v8602_v62 = vld [vmem:[%s14921_s1 + $0x3c0] sm:$0xff] }
 0x7ab   :  { %9250 = vmatprep.mubr.msk.f32.mxu1 %vm7257_vm12, %v8060_v46  ;;  %v8586_v53 = vld [vmem:[%s14921_s1 + $0x340] sm:$0xff] }
 0x7ac   :  { %v8329_v51 = vpop.f32.mrf.mxu1 }
 0x7ad   :  { %v8585_v51 = vld [vmem:[%s14921_s1 + $0x338] sm:$0xff] }
 0x7b1   :  { %v7867_v7 = vpop.permute.xlu1 %7866 }
 0x7b2   :  { %7934 = vst.msk [vmem:[#allocation6 + $0x1d0] sm:$0xff] %vm7904_vm15, %v7867_v7  ;;  %v8600_v7 = vld [vmem:[%s14921_s1 + $0x3b0] sm:$0xff] }
 0x7b5   :  { %v7676_v37 = vpop.permute.xlu1 %7675 }
 0x7b6   :  { %7742 = vst.msk [vmem:[#allocation6 + $0x1e0] sm:$0xff] %vm7711_vm14, %v7676_v37  ;;  %v8584_v37 = vld [vmem:[%s14921_s1 + $0x330] sm:$0xff] }
 0x7b9   :  { %v7485_v59 = vpop.permute.xlu1 %7484  ;;  %v8059_v27 = vld [vmem:[#allocation6 + $0x1d0] sm:$0xff] }
 0x7ba   :  { %7550 = vst.msk [vmem:[#allocation6 + $0x1f0] sm:$0xff] %vm7518_vm13, %v7485_v59  ;;  %v8332_v41 = vpop.f32.mrf.mxu1  ;;  %8391 = vmatmul.mubr.f32.gmra.mxu1 %v8059_v27  ;;  %v8583_v59 = vld [vmem:[%s14921_s1 + $0x328] sm:$0xff]  ;;  %v8598_v27 = vld [vmem:[%s14921_s1 + $0x3a0] sm:$0xff] }
 0x7bb   :  { %v8414_v22 = vmax.f32 %v8327_v24, %v8332_v41  ;;  %9251 = vmatprep.mubr.msk.f32.mxu1 %vm7257_vm12, %v8062_v20  ;;  %v8601_v24 = vld [vmem:[%s14921_s1 + $0x3b8] sm:$0xff]  ;;  %v8599_v20 = vld [vmem:[%s14921_s1 + $0x3a8] sm:$0xff]  ;;  %v8582_v41 = vld [vmem:[%s14921_s1 + $0x320] sm:$0xff] }
 0x7bc   :  { %v8334_v42 = vpop.f32.mrf.mxu1 }
 0x7bd   :  { %v8435_v47 = vadd.f32 %v14381_v38, %v8414_v22  ;;  %v7871_v26 = vpop.permute.xlu1 %7870  ;;  %v8597_v22 = vld [vmem:[%s14921_s1 + $0x398] sm:$0xff] }
 0x7be   :  { %v7869_v52 = vpop.permute.xlu0 %7868 }
 0x7bf   :  { %v8451_v28 = vmax.f32 %v8435_v47, 0.0  ;;  %7935 = vst.msk [vmem:[#allocation6 + $0x1e0] sm:$0xff] %vm7904_vm15, %v7869_v52  ;;  %v8581_v47 = vld [vmem:[%s14921_s1 + $0x318] sm:$0xff] }
 0x7c1   :  { %8485 = vst.msk [vmem:[#allocation7 + $0x20] sm:$0xff] %vm8459_vm0, %v8451_v28 }
 0x7c2   :  { %v7678_v16 = vpop.permute.xlu0 %7677 }
 0x7c3   :  { %7743 = vst.msk [vmem:[#allocation6 + $0x1f0] sm:$0xff] %vm7711_vm14, %v7678_v16 }
 0x7c4   :  { %7936 = vst.msk [vmem:[#allocation6 + $0x1f0] sm:$0xff] %vm7904_vm15, %v7871_v26 }
 0x7c6   :  { %v8061_v30 = vld [vmem:[#allocation6 + $0x1e0] sm:$0xff] }
 0x7c7   :  { %8396 = vmatmul.mubr.f32.gmra.mxu1 %v8061_v30 }
 0x7c8   :  { %9252 = vmatprep.mubr.msk.f32.mxu1 %vm7257_vm12, %v8064_v11 }
 0x7ca   :  { %v8337_v10 = vpop.f32.mrf.mxu1 }
 0x7cb   :  { %v8063_v36 = vld [vmem:[#allocation6 + $0x1f0] sm:$0xff] }
 0x7cc   :  { %v8339_v50 = vpop.f32.mrf.mxu1  ;;  %8401 = vmatmul.mubr.f32.gmra.mxu1 %v8063_v36  ;;  %v8463_v31 = vpop.permute.xlu1 %8462 }
 0x7cd   :  { %8466 = vst.msk [vmem:[#allocation7] sm:$0xff] %vm8465_vm1, %v8463_v31 }
 0x7d4   :  { %v8509_v39 = vld [vmem:[#allocation7] sm:$0xff] }
 0x7da   :  { %v8342_v8 = vpop.f32.mrf.mxu1 }
 0x7db   :  { %v8415_v60 = vmax.f32 %v8337_v10, %v8342_v8 }
 0x7dc   :  { %v8344_v19 = vpop.f32.mrf.mxu1 }
 0x7dd   :  { %v8436_v2 = vadd.f32 %v14381_v38, %v8415_v60 }
 0x7df   :  { %v8452_v6 = vmax.f32 %v8436_v2, 0.0 }
 0x7e1   :  { %8487 = vrot.lane.b32.xlu1 %v8452_v6, %s9993_s10 }
 0x7e4   :  { %v8470_v25 = vpop.permute.xlu0 %8469 }
 0x7e5   :  { %8472 = vst.msk [vmem:[#allocation7 + $0x8] sm:$0xff] %vm8465_vm1, %v8470_v25 }
 0x7ea   :  { %v8347_v12 = vpop.f32.mrf.mxu1 }
 0x7ec   :  { %v8349_v57 = vpop.f32.mrf.mxu1  ;;  %v8510_v3 = vld [vmem:[#allocation7 + $0x8] sm:$0xff] }
 0x7ed   :  { %8714 = vmatprep.mubr.f32.mxu0 %v8510_v3 }
 0x7ee   :  { %8715 = vmatmul.mubr.f32.vlgmr.msra.gmra.mxu0 %v8509_v39 }
 0x7ef   :  { %9534 = vmatpush3.msra.mxu0 %v8596_v54  ;;  %v8626_v54 = vld [vmem:[%s14921_s1 + $0x480] sm:$0xff] }
 0x7f0   :  { %9535 = vmatprep.subr.mxu0 %v8611_v44  ;;  %v8625_v44 = vld [vmem:[%s14921_s1 + $0x478] sm:$0xff] }
 0x7f1   :  { %9536 = vmatpush3.msra.mxu0 %v8595_v0  ;;  %v8640_v0 = vld [vmem:[%s14921_s1 + $0x4f0] sm:$0xff] }
 0x7f2   :  { %9537 = vmatprep.subr.mxu0 %v8610_v17 }
 0x7f3   :  { %9538 = vmatpush3.msra.mxu0 %v8594_v14  ;;  %v8624_v14 = vld [vmem:[%s14921_s1 + $0x470] sm:$0xff] }
 0x7f4   :  { %9539 = vmatprep.subr.mxu0 %v8609_v56  ;;  %v8639_v56 = vld [vmem:[%s14921_s1 + $0x4e8] sm:$0xff] }
 0x7f5   :  { %9540 = vmatpush3.msra.mxu0 %v8593_v1 }
 0x7f6   :  { %9541 = vmatprep.subr.mxu0 %v8608_v45  ;;  %v8623_v45 = vld [vmem:[%s14921_s1 + $0x468] sm:$0xff] }
 0x7f7   :  { %9542 = vmatpush3.msra.mxu0 %v8592_v43  ;;  %v8638_v43 = vld [vmem:[%s14921_s1 + $0x4e0] sm:$0xff] }
 0x7f8   :  { %9543 = vmatprep.subr.mxu0 %v8607_v15  ;;  %v8622_v15 = vld [vmem:[%s14921_s1 + $0x460] sm:$0xff] }
 0x7f9   :  { %9544 = vmatpush3.msra.mxu0 %v8591_v61  ;;  %v8637_v61 = vld [vmem:[%s14921_s1 + $0x4d8] sm:$0xff] }
 0x7fa   :  { %v8352_v9 = vpop.f32.mrf.mxu1  ;;  %9545 = vmatprep.subr.mxu0 %v8606_v58  ;;  %v8621_v58 = vld [vmem:[%s14921_s1 + $0x458] sm:$0xff] }
 0x7fb   :  { %v8416_v55 = vmax.f32 %v8347_v12, %v8352_v9  ;;  %9546 = vmatpush3.msra.mxu0 %v8590_v4  ;;  %v8636_v4 = vld [vmem:[%s14921_s1 + $0x4d0] sm:$0xff] }
 0x7fc   :  { %v8354_v49 = vpop.f32.mrf.mxu1  ;;  %v8476_v34 = vpop.permute.xlu1 %8475  ;;  %9547 = vmatprep.subr.mxu0 %v8605_v29  ;;  %v8620_v29 = vld [vmem:[%s14921_s1 + $0x450] sm:$0xff] }
 0x7fd   :  { %v8437_v32 = vadd.f32 %v14381_v38, %v8416_v55  ;;  %8478 = vst.msk [vmem:[#allocation7 + $0x10] sm:$0xff] %vm8465_vm1, %v8476_v34  ;;  %9548 = vmatpush3.msra.mxu0 %v8589_v40  ;;  %v8644_v55 = vld [vmem:[%s14921_s1 + $0x510] sm:$0xff]  ;;  %v8643_v34 = vld [vmem:[%s14921_s1 + $0x508] sm:$0xff]  ;;  %v8634_v40 = vld [vmem:[%s14921_s1 + $0x4c0] sm:$0xff] }
 0x7fe   :  { %9549 = vmatprep.subr.mxu0 %v8604_v48  ;;  %v8628_v49 = vld [vmem:[%s14921_s1 + $0x490] sm:$0xff]  ;;  %9568 = vmatprep.subr.mxu1 %v8644_v55  ;;  %v8618_v48 = vld [vmem:[%s14921_s1 + $0x440] sm:$0xff] }
 0x7ff   :  { %v8453_v13 = vmax.f32 %v8437_v32, 0.0  ;;  %9550 = vmatpush3.msra.mxu0 %v8588_v23  ;;  %v8627_v32 = vld [vmem:[%s14921_s1 + $0x488] sm:$0xff] }
 0x800   :  { %9551 = vmatprep.subr.mxu0 %v8603_v33 }
 0x801   :  { %8491 = vst.msk [vmem:[#allocation7 + $0x28] sm:$0xff] %vm8459_vm0, %v8453_v13  ;;  %9552 = vmatpush3.msra.mxu0 %v8587_v18  ;;  %v8641_v13 = vld [vmem:[%s14921_s1 + $0x4f8] sm:$0xff] }
 0x802   :  { %9553 = vmatprep.subr.mxu0 %v8602_v62 }
 0x803   :  { %9554 = vmatpush3.msra.mxu0 %v8586_v53 }
 0x804   :  { %9555 = vmatprep.subr.mxu0 %v8601_v24  ;;  %v8511_v11 = vld [vmem:[#allocation7 + $0x10] sm:$0xff]  ;;  %v8633_v24 = vld [vmem:[%s14921_s1 + $0x4b8] sm:$0xff] }
 0x805   :  { %9556 = vmatpush3.msra.mxu0 %v8585_v51  ;;  %v8632_v51 = vld [vmem:[%s14921_s1 + $0x4b0] sm:$0xff] }
 0x806   :  { %9557 = vmatprep.subr.mxu0 %v8600_v7  ;;  %v8616_v7 = vld [vmem:[%s14921_s1 + $0x430] sm:$0xff] }
 0x807   :  { %9558 = vmatpush3.msra.mxu0 %v8584_v37 }
 0x808   :  { %9559 = vmatprep.subr.mxu0 %v8599_v20  ;;  %v8631_v20 = vld [vmem:[%s14921_s1 + $0x4a8] sm:$0xff] }
 0x809   :  { %9560 = vmatpush3.msra.mxu0 %v8583_v59  ;;  %v8615_v59 = vld [vmem:[%s14921_s1 + $0x428] sm:$0xff] }
 0x80a   :  { %v8357_v21 = vpop.f32.mrf.mxu1  ;;  %9561 = vmatprep.subr.mxu0 %v8598_v27 }
 0x80b   :  { %9562 = vmatpush3.msra.mxu0 %v8582_v41  ;;  %v8630_v41 = vld [vmem:[%s14921_s1 + $0x4a0] sm:$0xff] }
 0x80c   :  { %v8359_v63 = vpop.f32.mrf.mxu1  ;;  %9563 = vmatprep.subr.mxu0 %v8597_v22  ;;  %v8614_v22 = vld [vmem:[%s14921_s1 + $0x420] sm:$0xff] }
 0x80d   :  { %9564 = vmatpush3.msra.mxu0 %v8581_v47  ;;  %v8619_v63 = vld [vmem:[%s14921_s1 + $0x448] sm:$0xff] }
 0x80e   :  { %9938 = vmatprep.subr.mxu0 %v9991_v5 }
 0x814   :  { %v8482_v46 = vpop.permute.xlu0 %8481 }
 0x815   :  { %8484 = vst.msk [vmem:[#allocation7 + $0x18] sm:$0xff] %vm8465_vm1, %v8482_v46  ;;  %v8617_v46 = vld [vmem:[%s14921_s1 + $0x438] sm:$0xff] }
 0x81a   :  { %v8362_v42 = vpop.f32.mrf.mxu1 }
 0x81b   :  { %v8417_v52 = vmax.f32 %v8357_v21, %v8362_v42  ;;  %v8635_v21 = vld [vmem:[%s14921_s1 + $0x4c8] sm:$0xff]  ;;  %v8629_v42 = vld [vmem:[%s14921_s1 + $0x498] sm:$0xff] }
 0x81c   :  { %v8364_v28 = vpop.f32.mrf.mxu1  ;;  %v8512_v26 = vld [vmem:[#allocation7 + $0x18] sm:$0xff] }
 0x81d   :  { %v8438_v16 = vadd.f32 %v14381_v38, %v8417_v52  ;;  %8784 = vmatprep.mubr.f32.mxu1 %v8512_v26  ;;  %v8613_v52 = vld [vmem:[%s14921_s1 + $0x418] sm:$0xff] }
 0x81e   :  { %8785 = vmatmul.mubr.f32.vlgmr.msra.gmra.mxu1 %v8511_v11 }
 0x81f   :  { %v8454_v30 = vmax.f32 %v8438_v16, 0.0  ;;  %9569 = vmatpush3.msra.mxu1 %v8628_v49  ;;  %v8935_v49 = vld [vmem:[%s14921_s1 + $0x538] sm:$0xff] }
 0x820   :  { %9570 = vmatprep.subr.mxu1 %v8643_v34  ;;  %v8934_v34 = vld [vmem:[%s14921_s1 + $0x530] sm:$0xff] }
 0x821   :  { %8493 = vrot.lane.b32.xlu0 %v8454_v30, %s9993_s10  ;;  %9571 = vmatpush3.msra.mxu1 %v8627_v32  ;;  %v8933_v32 = vld [vmem:[%s14921_s1 + $0x528] sm:$0xff] }
 0x822   :  { %9572 = vmatprep.subr.mxu1 %v8642_v35  ;;  %v8932_v35 = vld [vmem:[%s14921_s1 + $0x520] sm:$0xff] }
 0x823   :  { %9573 = vmatpush3.msra.mxu1 %v8626_v54  ;;  %v8931_v54 = vld [vmem:[%s14921_s1 + $0x518] sm:$0xff] }
 0x824   :  { %9574 = vmatprep.subr.mxu1 %v8641_v13 }
 0x825   :  { %9575 = vmatpush3.msra.mxu1 %v8625_v44 }
 0x826   :  { %9576 = vmatprep.subr.mxu1 %v8640_v0 }
 0x827   :  { %9577 = vmatpush3.msra.mxu1 %v8624_v14 }
 0x828   :  { %9578 = vmatprep.subr.mxu1 %v8639_v56 }
 0x829   :  { %9579 = vmatpush3.msra.mxu1 %v8623_v45 }
 0x82a   :  { %v8367_v10 = vpop.f32.mrf.mxu1  ;;  %9580 = vmatprep.subr.mxu1 %v8638_v43 }
 0x82b   :  { %9581 = vmatpush3.msra.mxu1 %v8622_v15 }
 0x82c   :  { %v8369_v36 = vpop.f32.mrf.mxu1  ;;  %9582 = vmatprep.subr.mxu1 %v8637_v61 }
 0x82d   :  { %9583 = vmatpush3.msra.mxu1 %v8621_v58 }
 0x82e   :  { %9584 = vmatprep.subr.mxu1 %v8636_v4 }
 0x82f   :  { %9585 = vmatpush3.msra.mxu1 %v8620_v29 }
 0x830   :  { %9586 = vmatprep.subr.mxu1 %v8635_v21 }
 0x831   :  { %9587 = vmatpush3.msra.mxu1 %v8619_v63 }
 0x832   :  { %9588 = vmatprep.subr.mxu1 %v8634_v40 }
 0x833   :  { %9589 = vmatpush3.msra.mxu1 %v8618_v48  ;;  %v9255_v48 = vld [vmem:[%s14922_s2 + $0x4] ss:$0 sm:$0xff] }
 0x834   :  { %9590 = vmatprep.subr.mxu1 %v8633_v24 }
 0x835   :  { %9591 = vmatpush3.msra.mxu1 %v8617_v46 }
 0x836   :  { %9592 = vmatprep.subr.mxu1 %v8632_v51 }
 0x837   :  { %9593 = vmatpush3.msra.mxu1 %v8616_v7 }
 0x838   :  { %9594 = vmatprep.subr.mxu1 %v8631_v20 }
 0x839   :  { %9595 = vmatpush3.msra.mxu1 %v8615_v59 }
 0x83a   :  { %v8372_v50 = vpop.f32.mrf.mxu1  ;;  %9596 = vmatprep.subr.mxu1 %v8630_v41 }
 0x83b   :  { %v8418_v31 = vmax.f32 %v8367_v10, %v8372_v50  ;;  %9597 = vmatpush3.msra.mxu1 %v8614_v22 }
 0x83c   :  { %v8374_v8 = vpop.f32.mrf.mxu1  ;;  %9598 = vmatprep.subr.mxu1 %v8629_v42 }
 0x83d   :  { %v8439_v60 = vadd.f32 %v14381_v38, %v8418_v31  ;;  %9599 = vmatpush3.msra.mxu1 %v8613_v52  ;;  %v8946_v31 = vld [vmem:[%s14921_s1 + $0x590] sm:$0xff]  ;;  %v8944_v8 = vld [vmem:[%s14921_s1 + $0x580] sm:$0xff] }
 0x83f   :  { %v8455_v19 = vmax.f32 %v8439_v60, 0.0  ;;  %v8943_v60 = vld [vmem:[%s14921_s1 + $0x578] sm:$0xff] }
 0x841   :  { %8497 = vst.msk [vmem:[#allocation7 + $0x30] sm:$0xff] %vm8459_vm0, %v8455_v19  ;;  %v8942_v19 = vld [vmem:[%s14921_s1 + $0x570] sm:$0xff] }
 0x84a   :  { %v8377_v2 = vpop.f32.mrf.mxu1 }
 0x84c   :  { %v8379_v6 = vpop.f32.mrf.mxu1 }
 0x84d   :  { %v8940_v6 = vld [vmem:[%s14921_s1 + $0x560] sm:$0xff] }
 0x853   :  { %v8488_v25 = vpop.permute.xlu1 %8487 }
 0x854   :  { %8490 = vst.msk [vmem:[#allocation7 + $0x20] sm:$0xff] %vm8465_vm1, %v8488_v25  ;;  %v8939_v25 = vld [vmem:[%s14921_s1 + $0x558] sm:$0xff] }
 0x85a   :  { %v8382_v12 = vpop.f32.mrf.mxu1 }
 0x85b   :  { %v8419_v57 = vmax.f32 %v8377_v2, %v8382_v12  ;;  %v8513_v36 = vld [vmem:[#allocation7 + $0x20] sm:$0xff]  ;;  %v8941_v2 = vld [vmem:[%s14921_s1 + $0x568] sm:$0xff]  ;;  %v8938_v12 = vld [vmem:[%s14921_s1 + $0x550] sm:$0xff] }
 0x85c   :  { %v8384_v3 = vpop.f32.mrf.mxu1 }
 0x85d   :  { %v8440_v39 = vadd.f32 %v14381_v38, %v8419_v57  ;;  %v8937_v57 = vld [vmem:[%s14921_s1 + $0x548] sm:$0xff]  ;;  %v8936_v3 = vld [vmem:[%s14921_s1 + $0x540] sm:$0xff] }
 0x85f   :  { %v8456_v9 = vmax.f32 %v8440_v39, 0.0 }
 0x861   :  { %8499 = vrot.lane.b32.xlu1 %v8456_v9, %s9993_s10 }
 0x86a   :  { %v8387_v17 = vpop.f32.mrf.mxu1 }
 0x86c   :  { %v8389_v1 = vpop.f32.mrf.mxu1 }
 0x86d   :  { %v9254_v1 = vld [vmem:[%s14922_s2 + $0x3] ss:$0 sm:$0xff] }
 0x87a   :  { %v8392_v23 = vpop.f32.mrf.mxu1 }
 0x87b   :  { %v8420_v33 = vmax.f32 %v8387_v17, %v8392_v23 }
 0x87c   :  { %v8394_v18 = vpop.f32.mrf.mxu1 }
 0x87d   :  { %v8441_v62 = vadd.f32 %v14381_v38, %v8420_v33 }
 0x87f   :  { %v8457_v53 = vmax.f32 %v8441_v62, 0.0 }
 0x881   :  { %8503 = vst.msk [vmem:[#allocation7 + $0x38] sm:$0xff] %vm8459_vm0, %v8457_v53 }
 0x887   :  { %v8397_v37 = vpop.f32.mrf.mxu1 }
 0x889   :  { %v8399_v27 = vpop.f32.mrf.mxu1 }
 0x88c   :  { %v8402_v47 = vpop.f32.mrf.mxu1 }
 0x88d   :  { %v8421_v28 = vmax.f32 %v8397_v37, %v8402_v47 }
 0x88e   :  { %v8404_v26 = vpop.f32.mrf.mxu1 }
 0x88f   :  { %v8442_v16 = vadd.f32 %v14381_v38, %v8421_v28  ;;  %v8945_v38 = vld [vmem:[%s14921_s1 + $0x588] sm:$0xff] }
 0x891   :  { %v8458_v11 = vmax.f32 %v8442_v16, 0.0 }
 0x893   :  { %v8494_v30 = vpop.permute.xlu0 %8493  ;;  %8505 = vrot.lane.b32.xlu0 %v8458_v11, %s9993_s10 }
 0x894   :  { %8496 = vst.msk [vmem:[#allocation7 + $0x28] sm:$0xff] %vm8465_vm1, %v8494_v30 }
 0x89b   :  { %v8514_v10 = vld [vmem:[#allocation7 + $0x28] sm:$0xff] }
 0x89c   :  { %8854 = vmatprep.mubr.f32.mxu0 %v8514_v10 }
 0x89d   :  { %8855 = vmatmul.mubr.f32.vlgmr.msra.gmra.mxu0 %v8513_v36 }
 0x89e   :  { %9939 = vmatpush3.msra.mxu0 %v8946_v31  ;;  %9970 = vmatprep.mubr.msk.f32.mxu0 %vm9995_vm2, %v9991_v5 }
 0x89f   :  { %9940 = vmatprep.subr.mxu0 %v9991_v5 }
 0x8a0   :  { %9941 = vmatpush3.msra.mxu0 %v8945_v38 }
 0x8a1   :  { %9942 = vmatprep.subr.mxu0 %v9991_v5 }
 0x8a2   :  { %9943 = vmatpush3.msra.mxu0 %v8944_v8 }
 0x8a3   :  { %9944 = vmatprep.subr.mxu0 %v9991_v5 }
 0x8a4   :  { %9945 = vmatpush3.msra.mxu0 %v8943_v60 }
 0x8a5   :  { %9946 = vmatprep.subr.mxu0 %v9991_v5 }
 0x8a6   :  { %9947 = vmatpush3.msra.mxu0 %v8942_v19 }
 0x8a7   :  { %9948 = vmatprep.subr.mxu0 %v9991_v5 }
 0x8a8   :  { %9949 = vmatpush3.msra.mxu0 %v8941_v2 }
 0x8a9   :  { %9950 = vmatprep.subr.mxu0 %v9991_v5 }
 0x8aa   :  { %9951 = vmatpush3.msra.mxu0 %v8940_v6 }
 0x8ab   :  { %9952 = vmatprep.subr.mxu0 %v9991_v5 }
 0x8ac   :  { %9953 = vmatpush3.msra.mxu0 %v8939_v25 }
 0x8ad   :  { %9954 = vmatprep.subr.mxu0 %v9991_v5 }
 0x8ae   :  { %9955 = vmatpush3.msra.mxu0 %v8938_v12  ;;  %v9495_v13 = vpop.f32.mrf.mxu0 }
 0x8af   :  { %9956 = vmatprep.subr.mxu0 %v9991_v5 }
 0x8b0   :  { %9957 = vmatpush3.msra.mxu0 %v8937_v57  ;;  %v9496_v44 = vpop.f32.mrf.mxu0 }
 0x8b1   :  { %9958 = vmatprep.subr.mxu0 %v9991_v5  ;;  %v9497_v56 = vadd.f32 %v9496_v44, %v9495_v13 }
 0x8b2   :  { %9959 = vmatpush3.msra.mxu0 %v8936_v3 }
 0x8b3   :  { %9960 = vmatprep.subr.mxu0 %v9991_v5  ;;  %v8717_v15 = vadd.f32 %v9497_v56, %v9254_v1 }
 0x8b4   :  { %9961 = vmatpush3.msra.mxu0 %v8935_v49 }
 0x8b5   :  { %9962 = vmatprep.subr.mxu0 %v9991_v5 }
 0x8b6   :  { %9963 = vmatpush3.msra.mxu0 %v8934_v34 }
 0x8b7   :  { %9964 = vmatprep.subr.mxu0 %v9991_v5 }
 0x8b8   :  { %9965 = vmatpush3.msra.mxu0 %v8933_v32 }
 0x8b9   :  { %9966 = vmatprep.subr.mxu0 %v9991_v5 }
 0x8ba   :  { %9967 = vmatpush3.msra.mxu0 %v8932_v35 }
 0x8bb   :  { %9968 = vmatprep.subr.mxu0 %v9991_v5 }
 0x8bc   :  { %9969 = vmatpush3.msra.mxu0 %v8931_v54 }
 0x8d3   :  { %v8500_v50 = vpop.permute.xlu1 %8499 }
 0x8d4   :  { %8502 = vst.msk [vmem:[#allocation7 + $0x30] sm:$0xff] %vm8465_vm1, %v8500_v50 }
 0x8db   :  { %v8515_v55 = vld [vmem:[#allocation7 + $0x30] sm:$0xff] }
 0x8de   :  { %v9530_v0 = vpop.f32.mrf.mxu1 }
 0x8e0   :  { %v9531_v14 = vpop.f32.mrf.mxu1 }
 0x8e1   :  { %v9532_v43 = vadd.f32 %v9531_v14, %v9530_v0 }
 0x8e3   :  { %v8787_v4 = vadd.f32 %v9532_v43, %v8717_v15 }
 0x905   :  { %v8506_v39 = vpop.permute.xlu0 %8505 }
 0x906   :  { %8508 = vst.msk [vmem:[#allocation7 + $0x38] sm:$0xff] %vm8465_vm1, %v8506_v39 }
 0x90d   :  { %v8516_v9 = vld [vmem:[#allocation7 + $0x38] sm:$0xff] }
 0x90e   :  { %8924 = vmatprep.mubr.f32.mxu1 %v8516_v9 }
 0x90f   :  { %8925 = vmatmul.mubr.f32.vlgmr.msra.gmra.mxu1 %v8515_v55 }
 0x95d   :  { %v9565_v17 = vpop.f32.mrf.mxu0 }
 0x95f   :  { %v9566_v45 = vpop.f32.mrf.mxu0 }
 0x960   :  { %v9567_v61 = vadd.f32 %v9566_v45, %v9565_v17 }
 0x962   :  { %v8857_v21 = vadd.f32 %v9567_v61, %v8787_v4 }
 0x9cf   :  { %v9600_v58 = vpop.f32.mrf.mxu1 }
 0x9d1   :  { %v9601_v29 = vpop.f32.mrf.mxu1 }
 0x9d2   :  { %v9602_v5 = vadd.f32 %v9601_v29, %v9600_v58 }
 0x9d4   :  { %v8927_v63 = vadd.f32 %v9602_v5, %v8857_v21 }
 0x9d6   :  { %v8930_v40 = vmax.f32 %v8927_v63, 0.0 }
 0x9d8   :  { %9971 = vmatmul.mubr.f32.vlgmr.msra.gmra.mxu0 %v8930_v40 }
 0xa98   :  { %v9018_v23 = vpop.f32.mrf.mxu0 }
 0xa99   :  { %v9019_v33 = vadd.f32 %v9255_v48, %v9018_v23 }
 0xa9a   :  { %v9972_v18 = vpop.f32.mrf.mxu0 }
 0xa9b   :  { %9022 = vst [vmem:[%s14923_s3] sm:$0xff] %v9019_v33 }

</bundles_post_ra>
